<compile_context>
chip_gen: v6e
topology: v6e:2x2x1
jax: 0.10.0
libtpu: 0.0.40
codegen_flags: <defaults>
</compile_context>

<pallas_src>
import jax
import jax.numpy as jnp
from jax import lax
from jax.experimental import pallas as pl
from jax.experimental.pallas import tpu as pltpu

# ----------------------------- config ---------------------------------------
B = 2            # batch
SRC_LEN = 10     # source sequence length
TRG_LEN = 8      # target sequence length
INPUT_DIM = 20   # source vocab
OUTPUT_DIM = 24  # target vocab (decoder.output_dim)
EMB_DIM = 16
ENC_HID = 32
DEC_HID = 32
ATTN_DIM = 32
N_LAYERS = 2     # decoder.n_layers
TEACHER_FORCING_RATIO = 0.75


def _round_up(x, m):
    return ((x + m - 1) // m) * m


GPAD = _round_up(3 * ENC_HID, 128)       # fused GRU gate width (lane padded)
OUT_PAD = _round_up(OUTPUT_DIM, 128)     # lane-dense logits store
H2 = 2 * ENC_HID

VMEM_SPEC = pl.BlockSpec(memory_space=pltpu.MemorySpace.VMEM)
SMEM_SPEC = pl.BlockSpec(memory_space=pltpu.MemorySpace.SMEM)


# --------------------------- shared GRU math ---------------------------------
def _gru_from_gates(gx, h, wh, bhn):
    """GRU update from a precomputed input projection.

    gx = x@Wi + [b_ir+b_hr | b_iz+b_hz | b_in]  (f32, [B, 3H(+pad)])
    wh = [Whr|Whz|Whn] (bf16), bhn separate because
    n = tanh(xWin + b_in + r * (hWhn + b_hn))   (torch GRU semantics).
    """
    hid = wh.shape[0]
    gh = jnp.dot(h.astype(wh.dtype), wh, preferred_element_type=jnp.float32)
    r = jax.nn.sigmoid(gx[:, 0:hid] + gh[:, 0:hid])
    z = jax.nn.sigmoid(gx[:, hid:2 * hid] + gh[:, hid:2 * hid])
    n = jnp.tanh(gx[:, 2 * hid:3 * hid] + r * (gh[:, 2 * hid:3 * hid] + bhn))
    return (1.0 - z) * n + z * h


def _gru_step(x, h, wi, wh, bx, bhn):
    gx = jnp.dot(x.astype(wi.dtype), wi, preferred_element_type=jnp.float32) + bx
    return _gru_from_gates(gx, h, wh, bhn)


# --------------------------- encoder kernel ----------------------------------
def _encoder_kernel(emb_ref,
                    wif_ref, whf_ref, bxf_ref, bhnf_ref,
                    wib_ref, whb_ref, bxb_ref, bhnb_ref,
                    encf_ref, encb_ref, hfin_ref,
                    gxf_ref, gxb_ref):
    f32 = jnp.float32

    # Hoisted input projections: ONE matmul per direction, off the recurrence.
    emb = emb_ref[...]                                               # [S*B, E] bf16
    gxf_ref[...] = jnp.dot(emb, wif_ref[...], preferred_element_type=f32) + bxf_ref[...]
    gxb_ref[...] = jnp.dot(emb, wib_ref[...], preferred_element_type=f32) + bxb_ref[...]

    def step(t, carry):
        hf, hb = carry
        tb = SRC_LEN - 1 - t
        gxf = gxf_ref[pl.ds(pl.multiple_of(t * B, B), B), :]
        gxb = gxb_ref[pl.ds(pl.multiple_of(tb * B, B), B), :]
        # fwd / bwd are independent chains -> their h@Wh pushes interleave.
        hf = _gru_from_gates(gxf, hf, whf_ref[...], bhnf_ref[...])
        hb = _gru_from_gates(gxb, hb, whb_ref[...], bhnb_ref[...])
        encf_ref[t] = hf
        encb_ref[tb] = hb
        return hf, hb

    h0 = jnp.zeros((B, ENC_HID), f32)
    hf_last, hb_last = lax.fori_loop(0, SRC_LEN, step, (h0, h0), unroll=True)
    hfin_ref[:, 0:ENC_HID] = hf_last
    hfin_ref[:, ENC_HID:H2] = hb_last


def encoder_forward(fp, emb2d):
    out_shape = [
        jax.ShapeDtypeStruct((SRC_LEN, B, ENC_HID), jnp.float32),   # fwd hiddens
        jax.ShapeDtypeStruct((SRC_LEN, B, ENC_HID), jnp.float32),   # bwd hiddens
        jax.ShapeDtypeStruct((B, H2), jnp.float32),                 # [h_fwd | h_bwd]
    ]
    return pl.pallas_call(
        _encoder_kernel,
        out_shape=out_shape,
        in_specs=[VMEM_SPEC] * 9,
        out_specs=[VMEM_SPEC] * 3,
        scratch_shapes=[pltpu.VMEM((SRC_LEN * B, GPAD), jnp.float32),
                        pltpu.VMEM((SRC_LEN * B, GPAD), jnp.float32)],
    )(emb2d,
      fp["enc_wi_f"], fp["enc_wh_f"], fp["enc_bx_f"], fp["enc_bhn_f"],
      fp["enc_wi_b"], fp["enc_wh_b"], fp["enc_bx_b"], fp["enc_bhn_b"])


# --------------------------- decoder kernel ----------------------------------
def _decoder_kernel(tf_ref, embtf_ref, hfin_ref, encf_ref,
                    fcw_ref, fcb_ref,
                    awh_ref, awe_ref, ab_ref, av_ref,
                    embtbl_ref, outw_ref, outb_ref,
                    *rest):
    *gru_refs, out_ref, ee_ref, nxt_ref = rest
    n_layers = len(gru_refs) // 4
    trg_len, bsz, _ = embtf_ref.shape
    f32 = jnp.float32
    bf16 = jnp.bfloat16

    # outputs[:, 0] must stay zeros (torch.zeros init); pad lanes stay zero.
    out_ref[...] = jnp.zeros(out_ref.shape, f32)

    # initial hidden = tanh(fc(h_fwd || h_bwd)), replicated over decoder layers
    h0 = jnp.tanh(jnp.dot(hfin_ref[...].astype(bf16), fcw_ref[...],
                          preferred_element_type=f32) + fcb_ref[...])     # [B, H]

    # hoisted attention keys: enc @ We (runs once, outside the time loop)
    for b in range(bsz):
        ee_ref[b] = jnp.dot(encf_ref[:, b * H2:(b + 1) * H2], awe_ref[...],
                            preferred_element_type=f32)                   # [S, A]
    e_e = ee_ref[...] + ab_ref[...]                                       # [B, S, A]

    col_iota = lax.broadcasted_iota(jnp.int32, (bsz, OUTPUT_DIM), 1)
    row_ids = lax.broadcasted_iota(jnp.int32, (bsz, H2), 0)

    def step(t, carry):
        *hidden, emb = carry
        h_top = hidden[-1]

        # --- additive attention ---
        sh = jnp.dot(h_top.astype(bf16), awh_ref[...],
                     preferred_element_type=f32)                          # [B, A]
        energy = jnp.tanh(e_e + sh[:, None, :])                           # [B, S, A]
        scores = jnp.sum(energy * av_ref[...], axis=-1)                   # [B, S]
        m = jnp.max(scores, axis=-1, keepdims=True)
        p = jnp.exp(scores - m)
        attn = p * pl.reciprocal(jnp.sum(p, axis=-1, keepdims=True), approx=True)

        # --- weighted sum: ONE matmul over [S, B*2H], then diag-block select -
        w_all = jnp.dot(attn.astype(bf16), encf_ref[...],
                        preferred_element_type=f32)                       # [B, B*2H]
        weighted = w_all[:, 0:H2]
        for b in range(1, bsz):
            weighted = jnp.where(row_ids == b,
                                 w_all[:, b * H2:(b + 1) * H2], weighted)

        # --- stacked GRU (weights loaded at use sites) ---
        x = jnp.concatenate([emb, weighted], axis=1)
        new_hidden = []
        for l in range(n_layers):
            wi_r, wh_r, bx_r, bhn_r = gru_refs[4 * l:4 * l + 4]
            h_l = _gru_step(x, hidden[l], wi_r[...], wh_r[...],
                            bx_r[...], bhn_r[...])
            new_hidden.append(h_l)
            x = h_l

        # --- output projection (lane-padded to 128 -> dense store) ---
        logits = jnp.dot(jnp.concatenate([x, weighted, emb], axis=1).astype(bf16),
                         outw_ref[...], preferred_element_type=f32) + outb_ref[...]
        out_ref[t] = logits

        # --- next input embedding: teacher forcing default; greedy gated ----
        nxt_ref[...] = embtf_ref[t]

        @pl.when(tf_ref[t] == 0)
        def _():
            real = logits[:, 0:OUTPUT_DIM]
            mx = jnp.max(real, axis=1, keepdims=True)
            top1 = jnp.min(jnp.where(real == mx, col_iota, OUTPUT_DIM),
                           axis=1, keepdims=True)                         # first argmax
            pred_oh = (col_iota == top1).astype(bf16)
            nxt_ref[...] = jnp.dot(pred_oh, embtbl_ref[...],
                                   preferred_element_type=f32)

        return (*new_hidden, nxt_ref[...])

    init = tuple([h0] * n_layers) + (embtf_ref[0],)
    lax.fori_loop(1, trg_len, step, init, unroll=True)


def decoder_forward(fp, tf_flags, emb_tf, h_fin, enc_flat):
    gru_args = []
    for (wi, wh, bx, bhn) in fp["dec_gru"]:
        gru_args += [wi, wh, bx, bhn]
    args = [tf_flags, emb_tf, h_fin, enc_flat,
            fp["enc_fc_w"], fp["enc_fc_b"],
            fp["attn_wh"], fp["attn_we"], fp["attn_b"], fp["attn_v"],
            fp["dec_emb"], fp["fc_out_w"], fp["fc_out_b"]] + gru_args
    return pl.pallas_call(
        _decoder_kernel,
        out_shape=jax.ShapeDtypeStruct((TRG_LEN, B, OUT_PAD), jnp.float32),
        in_specs=[SMEM_SPEC] + [VMEM_SPEC] * (len(args) - 1),
        out_specs=VMEM_SPEC,
        scratch_shapes=[pltpu.VMEM((B, SRC_LEN, ATTN_DIM), jnp.float32),
                        pltpu.VMEM((B, EMB_DIM), jnp.float32)],
    )(*args)


# ------------------------------ parameters -----------------------------------
def _init_gru_params(key, in_dim, hid):
    ks = jax.random.split(key, 12)
    s = 0.1
    ws = [jax.random.normal(ks[i], (in_dim, hid), jnp.float32) * s for i in range(3)]
    whs = [jax.random.normal(ks[3 + i], (hid, hid), jnp.float32) * s for i in range(3)]
    bs = [jax.random.normal(ks[6 + i], (hid,), jnp.float32) * s for i in range(6)]
    return tuple(ws + whs + bs)


def init_params(key):
    keys = jax.random.split(key, 16)
    s = 0.1
    p = {}
    p["enc_emb"] = jax.random.normal(keys[0], (INPUT_DIM, EMB_DIM), jnp.float32) * s
    p["enc_gru_f"] = _init_gru_params(keys[1], EMB_DIM, ENC_HID)
    p["enc_gru_b"] = _init_gru_params(keys[2], EMB_DIM, ENC_HID)
    p["enc_fc_w"] = jax.random.normal(keys[3], (H2, DEC_HID), jnp.float32) * s
    p["enc_fc_b"] = jax.random.normal(keys[4], (DEC_HID,), jnp.float32) * s
    p["dec_emb"] = jax.random.normal(keys[5], (OUTPUT_DIM, EMB_DIM), jnp.float32) * s
    p["attn_wh"] = jax.random.normal(keys[6], (DEC_HID, ATTN_DIM), jnp.float32) * s
    p["attn_we"] = jax.random.normal(keys[7], (H2, ATTN_DIM), jnp.float32) * s
    p["attn_b"] = jax.random.normal(keys[8], (ATTN_DIM,), jnp.float32) * s
    p["attn_v"] = jax.random.normal(keys[9], (ATTN_DIM,), jnp.float32) * s
    dec_in0 = EMB_DIM + H2
    p["dec_gru"] = []
    for l in range(N_LAYERS):
        in_dim = dec_in0 if l == 0 else DEC_HID
        p["dec_gru"].append(_init_gru_params(keys[10 + l], in_dim, DEC_HID))
    p["fc_out_w"] = jax.random.normal(
        keys[14], (H2 + DEC_HID + EMB_DIM, OUTPUT_DIM), jnp.float32) * s
    p["fc_out_b"] = jax.random.normal(keys[15], (OUTPUT_DIM,), jnp.float32) * s
    return p


def _fuse_gru(p):
    """Fuse per-gate GRU weights into [in, 3H] (lane-padded, bf16 operands)."""
    (wir, wiz, win, whr, whz, whn, bir, biz, bin_, bhr, bhz, bhn) = p
    hid = whr.shape[0]
    pad = _round_up(3 * hid, 128) - 3 * hid
    wi = jnp.pad(jnp.concatenate([wir, wiz, win], axis=1),
                 ((0, 0), (0, pad))).astype(jnp.bfloat16)
    wh = jnp.pad(jnp.concatenate([whr, whz, whn], axis=1),
                 ((0, 0), (0, pad))).astype(jnp.bfloat16)
    bx = jnp.pad(jnp.concatenate([bir + bhr, biz + bhz, bin_], axis=0),
                 (0, pad)).reshape(1, -1)            # f32
    bhn = bhn.reshape(1, -1)                         # f32
    return wi, wh, bx, bhn


def fuse_params(p):
    bf = jnp.bfloat16
    f = {}
    f["enc_emb"] = p["enc_emb"].astype(bf)
    f["enc_wi_f"], f["enc_wh_f"], f["enc_bx_f"], f["enc_bhn_f"] = _fuse_gru(p["enc_gru_f"])
    f["enc_wi_b"], f["enc_wh_b"], f["enc_bx_b"], f["enc_bhn_b"] = _fuse_gru(p["enc_gru_b"])
    f["enc_fc_w"] = p["enc_fc_w"].astype(bf)
    f["enc_fc_b"] = p["enc_fc_b"].reshape(1, -1)
    f["dec_emb"] = p["dec_emb"].astype(bf)
    f["attn_wh"] = p["attn_wh"].astype(bf)
    f["attn_we"] = p["attn_we"].astype(bf)
    f["attn_b"] = p["attn_b"].reshape(1, -1)
    f["attn_v"] = p["attn_v"].reshape(1, -1)
    f["dec_gru"] = [_fuse_gru(g) for g in p["dec_gru"]]
    pad = OUT_PAD - OUTPUT_DIM
    f["fc_out_w"] = jnp.pad(p["fc_out_w"], ((0, 0), (0, pad))).astype(bf)
    f["fc_out_b"] = jnp.pad(p["fc_out_b"], (0, pad)).reshape(1, -1)
    return f


# ------------------------------- model ---------------------------------------
def seq2seq_forward(fp, src, trg, key, teacher_forcing_ratio=TEACHER_FORCING_RATIO):
    bsz, trg_len = trg.shape

    # ---- encoder ----
    emb2d = fp["enc_emb"][src.T].reshape(SRC_LEN * bsz, EMB_DIM)      # [S*B, E] bf16
    enc_f, enc_b, h_fin = encoder_forward(fp, emb2d)

    # enc_outputs[s, b] = [h_fwd | h_bwd]; flatten (free) + cast once for the
    # decoder's single-matmul weighted sum / key projection.
    enc_cat = jnp.concatenate([enc_f, enc_b], axis=-1)                # [S, B, 2H]
    enc_flat = enc_cat.reshape(SRC_LEN, bsz * H2).astype(jnp.bfloat16)

    # ---- decoder ----
    emb_tf = fp["dec_emb"][trg.T].astype(jnp.float32)                 # [T, B, E]
    # all teacher-forcing decisions drawn up front -> no per-step host sync
    tf_flags = (jax.random.uniform(key, (trg_len,)) <
                teacher_forcing_ratio).astype(jnp.int32)
    out_pad = decoder_forward(fp, tf_flags, emb_tf, h_fin, enc_flat)
    return jnp.transpose(out_pad, (1, 0, 2))[:, :, :OUTPUT_DIM]


# -------------------------------- main ----------------------------------------
if __name__ == "__main__":
    root = jax.random.PRNGKey(0)
    k_param, k_src, k_trg, k_tf = jax.random.split(root, 4)

    params = init_params(k_param)
    fused = fuse_params(params)
    src = jax.random.randint(k_src, (B, SRC_LEN), 0, INPUT_DIM, dtype=jnp.int32)
    trg = jax.random.randint(k_trg, (B, TRG_LEN), 0, OUTPUT_DIM, dtype=jnp.int32)

    forward = jax.jit(seq2seq_forward)
    outputs = jax.block_until_ready(forward(fused, src, trg, k_tf))

    assert outputs.shape == (B, TRG_LEN, OUTPUT_DIM)
    assert bool(jnp.all(jnp.isfinite(outputs)))
    # outputs[:, 0] must stay zeros, matching the torch.zeros init.
    assert bool(jnp.all(outputs[:, 0] == 0.0))
    print("KERNEL_OK")
</pallas_src>

<mosaic_0001>
module attributes {stable_mosaic.version = 11 : i64} {
  func.func @_encoder_kernel(%arg0: memref<20x16xbf16, #tpu.memory_space<vmem>>, %arg1: memref<16x128xbf16, #tpu.memory_space<vmem>>, %arg2: memref<32x128xbf16, #tpu.memory_space<vmem>>, %arg3: memref<1x128xf32, #tpu.memory_space<vmem>>, %arg4: memref<1x32xf32, #tpu.memory_space<vmem>>, %arg5: memref<16x128xbf16, #tpu.memory_space<vmem>>, %arg6: memref<32x128xbf16, #tpu.memory_space<vmem>>, %arg7: memref<1x128xf32, #tpu.memory_space<vmem>>, %arg8: memref<1x32xf32, #tpu.memory_space<vmem>>, %arg9: memref<10x2x32xf32, #tpu.memory_space<vmem>>, %arg10: memref<10x2x32xf32, #tpu.memory_space<vmem>>, %arg11: memref<2x64xf32, #tpu.memory_space<vmem>>, %arg12: memref<20x128xf32, #tpu.memory_space<vmem>>, %arg13: memref<20x128xf32, #tpu.memory_space<vmem>>) attributes {dimension_semantics = [], scalar_prefetch = 0 : i64, scratch_operands = 2 : i64, tpu.core_type = #tpu.core_type<tc>} {
    %c0 = arith.constant 0 : index
    %c0_0 = arith.constant 0 : index
    %0 = vector.load %arg0[%c0, %c0_0] : memref<20x16xbf16, #tpu.memory_space<vmem>>, vector<20x16xbf16>
    %c0_1 = arith.constant 0 : index
    %c0_2 = arith.constant 0 : index
    %1 = vector.load %arg1[%c0_1, %c0_2] : memref<16x128xbf16, #tpu.memory_space<vmem>>, vector<16x128xbf16>
    %cst = arith.constant dense<0.000000e+00> : vector<20x128xf32>
    %2 = tpu.matmul %0, %1, %cst {dimension_numbers = #tpu.dot_dimension_numbers<[1], [0], [0], [1], [0, 0, 1, 1], [], []>} : vector<20x16xbf16>, vector<16x128xbf16>, vector<20x128xf32> -> vector<20x128xf32>
    %c0_3 = arith.constant 0 : index
    %c0_4 = arith.constant 0 : index
    %3 = vector.load %arg3[%c0_3, %c0_4] : memref<1x128xf32, #tpu.memory_space<vmem>>, vector<1x128xf32>
    %4 = vector.broadcast %3 : vector<1x128xf32> to vector<20x128xf32>
    %5 = arith.addf %2, %4 : vector<20x128xf32>
    %c0_5 = arith.constant 0 : index
    %c0_6 = arith.constant 0 : index
    %6 = vector.load %arg12[%c0_5, %c0_6] : memref<20x128xf32, #tpu.memory_space<vmem>>, vector<20x128xf32>
    tpu.vector_store %arg12[%c0_5, %c0_6], %5 {strides = array<i32>} : memref<20x128xf32, #tpu.memory_space<vmem>>, vector<20x128xf32>,
    %c0_7 = arith.constant 0 : index
    %c0_8 = arith.constant 0 : index
    %7 = vector.load %arg5[%c0_7, %c0_8] : memref<16x128xbf16, #tpu.memory_space<vmem>>, vector<16x128xbf16>
    %cst_9 = arith.constant dense<0.000000e+00> : vector<20x128xf32>
    %8 = tpu.matmul %0, %7, %cst_9 {dimension_numbers = #tpu.dot_dimension_numbers<[1], [0], [0], [1], [0, 0, 1, 1], [], []>} : vector<20x16xbf16>, vector<16x128xbf16>, vector<20x128xf32> -> vector<20x128xf32>
    %c0_10 = arith.constant 0 : index
    %c0_11 = arith.constant 0 : index
    %9 = vector.load %arg7[%c0_10, %c0_11] : memref<1x128xf32, #tpu.memory_space<vmem>>, vector<1x128xf32>
    %10 = vector.broadcast %9 : vector<1x128xf32> to vector<20x128xf32>
    %11 = arith.addf %8, %10 : vector<20x128xf32>
    %c0_12 = arith.constant 0 : index
    %c0_13 = arith.constant 0 : index
    %12 = vector.load %arg13[%c0_12, %c0_13] : memref<20x128xf32, #tpu.memory_space<vmem>>, vector<20x128xf32>
    tpu.vector_store %arg13[%c0_12, %c0_13], %11 {strides = array<i32>} : memref<20x128xf32, #tpu.memory_space<vmem>>, vector<20x128xf32>,
    %cst_14 = arith.constant 0.000000e+00 : f32
    %13 = vector.broadcast %cst_14 : f32 to vector<2x32xf32>
    %c0_i32 = arith.constant 0 : i32
    %c9_i32 = arith.constant 9 : i32
    %14 = arith.subi %c9_i32, %c0_i32 : i32
    %c2_i32 = arith.constant 2 : i32
    %15 = arith.muli %c0_i32, %c2_i32 : i32
    %16 = tpu.assume_multiple %15, 2 : i32
    %17 = arith.index_cast %16 : i32 to index
    %c0_15 = arith.constant 0 : index
    %18 = vector.load %arg12[%17, %c0_15] : memref<20x128xf32, #tpu.memory_space<vmem>>, vector<2x128xf32>
    %c2_i32_16 = arith.constant 2 : i32
    %19 = arith.muli %14, %c2_i32_16 : i32
    %20 = tpu.assume_multiple %19, 2 : i32
    %21 = arith.index_cast %20 : i32 to index
    %c0_17 = arith.constant 0 : index
    %22 = vector.load %arg13[%21, %c0_17] : memref<20x128xf32, #tpu.memory_space<vmem>>, vector<2x128xf32>
    %c0_18 = arith.constant 0 : index
    %c0_19 = arith.constant 0 : index
    %23 = vector.load %arg2[%c0_18, %c0_19] : memref<32x128xbf16, #tpu.memory_space<vmem>>, vector<32x128xbf16>
    %c0_20 = arith.constant 0 : index
    %c0_21 = arith.constant 0 : index
    %24 = vector.load %arg4[%c0_20, %c0_21] : memref<1x32xf32, #tpu.memory_space<vmem>>, vector<1x32xf32>
    %25 = arith.truncf %13 : vector<2x32xf32> to vector<2x32xbf16>
    %cst_22 = arith.constant dense<0.000000e+00> : vector<2x128xf32>
    %26 = tpu.matmul %25, %23, %cst_22 {dimension_numbers = #tpu.dot_dimension_numbers<[1], [0], [0], [1], [0, 0, 1, 1], [], []>} : vector<2x32xbf16>, vector<32x128xbf16>, vector<2x128xf32> -> vector<2x128xf32>
    %27 = vector.extract_strided_slice %18 {offsets = [0, 0], sizes = [2, 32], strides = [1, 1]} : vector<2x128xf32> to vector<2x32xf32>
    %28 = vector.extract_strided_slice %26 {offsets = [0, 0], sizes = [2, 32], strides = [1, 1]} : vector<2x128xf32> to vector<2x32xf32>
    %29 = arith.addf %27, %28 : vector<2x32xf32>
    %30 = arith.negf %29 : vector<2x32xf32>
    %31 = math.exp %30 : vector<2x32xf32>
    %cst_23 = arith.constant 1.000000e+00 : f32
    %32 = vector.broadcast %cst_23 : f32 to vector<2x32xf32>
    %33 = arith.addf %32, %31 : vector<2x32xf32>
    %34 = arith.divf %32, %33 : vector<2x32xf32>
    %35 = vector.extract_strided_slice %18 {offsets = [0, 32], sizes = [2, 32], strides = [1, 1]} : vector<2x128xf32> to vector<2x32xf32>
    %36 = vector.extract_strided_slice %26 {offsets = [0, 32], sizes = [2, 32], strides = [1, 1]} : vector<2x128xf32> to vector<2x32xf32>
    %37 = arith.addf %35, %36 : vector<2x32xf32>
    %38 = arith.negf %37 : vector<2x32xf32>
    %39 = math.exp %38 : vector<2x32xf32>
    %cst_24 = arith.constant 1.000000e+00 : f32
    %40 = vector.broadcast %cst_24 : f32 to vector<2x32xf32>
    %41 = arith.addf %40, %39 : vector<2x32xf32>
    %42 = arith.divf %40, %41 : vector<2x32xf32>
    %43 = vector.extract_strided_slice %18 {offsets = [0, 64], sizes = [2, 32], strides = [1, 1]} : vector<2x128xf32> to vector<2x32xf32>
    %44 = vector.extract_strided_slice %26 {offsets = [0, 64], sizes = [2, 32], strides = [1, 1]} : vector<2x128xf32> to vector<2x32xf32>
    %45 = vector.broadcast %24 : vector<1x32xf32> to vector<2x32xf32>
    %46 = arith.addf %44, %45 : vector<2x32xf32>
    %47 = arith.mulf %34, %46 : vector<2x32xf32>
    %48 = arith.addf %43, %47 : vector<2x32xf32>
    %49 = math.tanh %48 : vector<2x32xf32>
    %cst_25 = arith.constant 1.000000e+00 : f32
    %50 = vector.broadcast %cst_25 : f32 to vector<2x32xf32>
    %51 = arith.subf %50, %42 : vector<2x32xf32>
    %52 = arith.mulf %51, %49 : vector<2x32xf32>
    %53 = arith.mulf %42, %13 : vector<2x32xf32>
    %54 = arith.addf %52, %53 : vector<2x32xf32>
    %c0_26 = arith.constant 0 : index
    %c0_27 = arith.constant 0 : index
    %55 = vector.load %arg6[%c0_26, %c0_27] : memref<32x128xbf16, #tpu.memory_space<vmem>>, vector<32x128xbf16>
    %c0_28 = arith.constant 0 : index
    %c0_29 = arith.constant 0 : index
    %56 = vector.load %arg8[%c0_28, %c0_29] : memref<1x32xf32, #tpu.memory_space<vmem>>, vector<1x32xf32>
    %57 = arith.truncf %13 : vector<2x32xf32> to vector<2x32xbf16>
    %cst_30 = arith.constant dense<0.000000e+00> : vector<2x128xf32>
    %58 = tpu.matmul %57, %55, %cst_30 {dimension_numbers = #tpu.dot_dimension_numbers<[1], [0], [0], [1], [0, 0, 1, 1], [], []>} : vector<2x32xbf16>, vector<32x128xbf16>, vector<2x128xf32> -> vector<2x128xf32>
    %59 = vector.extract_strided_slice %22 {offsets = [0, 0], sizes = [2, 32], strides = [1, 1]} : vector<2x128xf32> to vector<2x32xf32>
    %60 = vector.extract_strided_slice %58 {offsets = [0, 0], sizes = [2, 32], strides = [1, 1]} : vector<2x128xf32> to vector<2x32xf32>
    %61 = arith.addf %59, %60 : vector<2x32xf32>
    %62 = arith.negf %61 : vector<2x32xf32>
    %63 = math.exp %62 : vector<2x32xf32>
    %cst_31 = arith.constant 1.000000e+00 : f32
    %64 = vector.broadcast %cst_31 : f32 to vector<2x32xf32>
    %65 = arith.addf %64, %63 : vector<2x32xf32>
    %66 = arith.divf %64, %65 : vector<2x32xf32>
    %67 = vector.extract_strided_slice %22 {offsets = [0, 32], sizes = [2, 32], strides = [1, 1]} : vector<2x128xf32> to vector<2x32xf32>
    %68 = vector.extract_strided_slice %58 {offsets = [0, 32], sizes = [2, 32], strides = [1, 1]} : vector<2x128xf32> to vector<2x32xf32>
    %69 = arith.addf %67, %68 : vector<2x32xf32>
    %70 = arith.negf %69 : vector<2x32xf32>
    %71 = math.exp %70 : vector<2x32xf32>
    %cst_32 = arith.constant 1.000000e+00 : f32
    %72 = vector.broadcast %cst_32 : f32 to vector<2x32xf32>
    %73 = arith.addf %72, %71 : vector<2x32xf32>
    %74 = arith.divf %72, %73 : vector<2x32xf32>
    %75 = vector.extract_strided_slice %22 {offsets = [0, 64], sizes = [2, 32], strides = [1, 1]} : vector<2x128xf32> to vector<2x32xf32>
    %76 = vector.extract_strided_slice %58 {offsets = [0, 64], sizes = [2, 32], strides = [1, 1]} : vector<2x128xf32> to vector<2x32xf32>
    %77 = vector.broadcast %56 : vector<1x32xf32> to vector<2x32xf32>
    %78 = arith.addf %76, %77 : vector<2x32xf32>
    %79 = arith.mulf %66, %78 : vector<2x32xf32>
    %80 = arith.addf %75, %79 : vector<2x32xf32>
    %81 = math.tanh %80 : vector<2x32xf32>
    %cst_33 = arith.constant 1.000000e+00 : f32
    %82 = vector.broadcast %cst_33 : f32 to vector<2x32xf32>
    %83 = arith.subf %82, %74 : vector<2x32xf32>
    %84 = arith.mulf %83, %81 : vector<2x32xf32>
    %85 = arith.mulf %74, %13 : vector<2x32xf32>
    %86 = arith.addf %84, %85 : vector<2x32xf32>
    %87 = arith.index_cast %c0_i32 : i32 to index
    %c0_34 = arith.constant 0 : index
    %c0_35 = arith.constant 0 : index
    %88 = vector.load %arg9[%87, %c0_34, %c0_35] : memref<10x2x32xf32, #tpu.memory_space<vmem>>, vector<1x2x32xf32>
    %89 = vector.shape_cast %88 : vector<1x2x32xf32> to vector<2x32xf32>
    %90 = vector.shape_cast %54 : vector<2x32xf32> to vector<1x2x32xf32>
    tpu.vector_store %arg9[%87, %c0_34, %c0_35], %90 {strides = array<i32>} : memref<10x2x32xf32, #tpu.memory_space<vmem>>, vector<1x2x32xf32>,
    %91 = arith.index_cast %14 : i32 to index
    %c0_36 = arith.constant 0 : index
    %c0_37 = arith.constant 0 : index
    %92 = vector.load %arg10[%91, %c0_36, %c0_37] : memref<10x2x32xf32, #tpu.memory_space<vmem>>, vector<1x2x32xf32>
    %93 = vector.shape_cast %92 : vector<1x2x32xf32> to vector<2x32xf32>
    %94 = vector.shape_cast %86 : vector<2x32xf32> to vector<1x2x32xf32>
    tpu.vector_store %arg10[%91, %c0_36, %c0_37], %94 {strides = array<i32>} : memref<10x2x32xf32, #tpu.memory_space<vmem>>, vector<1x2x32xf32>,
    %c1_i32 = arith.constant 1 : i32
    %c9_i32_38 = arith.constant 9 : i32
    %95 = arith.subi %c9_i32_38, %c1_i32 : i32
    %c2_i32_39 = arith.constant 2 : i32
    %96 = arith.muli %c1_i32, %c2_i32_39 : i32
    %97 = tpu.assume_multiple %96, 2 : i32
    %98 = arith.index_cast %97 : i32 to index
    %c0_40 = arith.constant 0 : index
    %99 = vector.load %arg12[%98, %c0_40] : memref<20x128xf32, #tpu.memory_space<vmem>>, vector<2x128xf32>
    %c2_i32_41 = arith.constant 2 : i32
    %100 = arith.muli %95, %c2_i32_41 : i32
    %101 = tpu.assume_multiple %100, 2 : i32
    %102 = arith.index_cast %101 : i32 to index
    %c0_42 = arith.constant 0 : index
    %103 = vector.load %arg13[%102, %c0_42] : memref<20x128xf32, #tpu.memory_space<vmem>>, vector<2x128xf32>
    %c0_43 = arith.constant 0 : index
    %c0_44 = arith.constant 0 : index
    %104 = vector.load %arg2[%c0_43, %c0_44] : memref<32x128xbf16, #tpu.memory_space<vmem>>, vector<32x128xbf16>
    %c0_45 = arith.constant 0 : index
    %c0_46 = arith.constant 0 : index
    %105 = vector.load %arg4[%c0_45, %c0_46] : memref<1x32xf32, #tpu.memory_space<vmem>>, vector<1x32xf32>
    %106 = arith.truncf %54 : vector<2x32xf32> to vector<2x32xbf16>
    %cst_47 = arith.constant dense<0.000000e+00> : vector<2x128xf32>
    %107 = tpu.matmul %106, %104, %cst_47 {dimension_numbers = #tpu.dot_dimension_numbers<[1], [0], [0], [1], [0, 0, 1, 1], [], []>} : vector<2x32xbf16>, vector<32x128xbf16>, vector<2x128xf32> -> vector<2x128xf32>
    %108 = vector.extract_strided_slice %99 {offsets = [0, 0], sizes = [2, 32], strides = [1, 1]} : vector<2x128xf32> to vector<2x32xf32>
    %109 = vector.extract_strided_slice %107 {offsets = [0, 0], sizes = [2, 32], strides = [1, 1]} : vector<2x128xf32> to vector<2x32xf32>
    %110 = arith.addf %108, %109 : vector<2x32xf32>
    %111 = arith.negf %110 : vector<2x32xf32>
    %112 = math.exp %111 : vector<2x32xf32>
    %cst_48 = arith.constant 1.000000e+00 : f32
    %113 = vector.broadcast %cst_48 : f32 to vector<2x32xf32>
    %114 = arith.addf %113, %112 : vector<2x32xf32>
    %115 = arith.divf %113, %114 : vector<2x32xf32>
    %116 = vector.extract_strided_slice %99 {offsets = [0, 32], sizes = [2, 32], strides = [1, 1]} : vector<2x128xf32> to vector<2x32xf32>
    %117 = vector.extract_strided_slice %107 {offsets = [0, 32], sizes = [2, 32], strides = [1, 1]} : vector<2x128xf32> to vector<2x32xf32>
    %118 = arith.addf %116, %117 : vector<2x32xf32>
    %119 = arith.negf %118 : vector<2x32xf32>
    %120 = math.exp %119 : vector<2x32xf32>
    %cst_49 = arith.constant 1.000000e+00 : f32
    %121 = vector.broadcast %cst_49 : f32 to vector<2x32xf32>
    %122 = arith.addf %121, %120 : vector<2x32xf32>
    %123 = arith.divf %121, %122 : vector<2x32xf32>
    %124 = vector.extract_strided_slice %99 {offsets = [0, 64], sizes = [2, 32], strides = [1, 1]} : vector<2x128xf32> to vector<2x32xf32>
    %125 = vector.extract_strided_slice %107 {offsets = [0, 64], sizes = [2, 32], strides = [1, 1]} : vector<2x128xf32> to vector<2x32xf32>
    %126 = vector.broadcast %105 : vector<1x32xf32> to vector<2x32xf32>
    %127 = arith.addf %125, %126 : vector<2x32xf32>
    %128 = arith.mulf %115, %127 : vector<2x32xf32>
    %129 = arith.addf %124, %128 : vector<2x32xf32>
    %130 = math.tanh %129 : vector<2x32xf32>
    %cst_50 = arith.constant 1.000000e+00 : f32
    %131 = vector.broadcast %cst_50 : f32 to vector<2x32xf32>
    %132 = arith.subf %131, %123 : vector<2x32xf32>
    %133 = arith.mulf %132, %130 : vector<2x32xf32>
    %134 = arith.mulf %123, %54 : vector<2x32xf32>
    %135 = arith.addf %133, %134 : vector<2x32xf32>
    %c0_51 = arith.constant 0 : index
    %c0_52 = arith.constant 0 : index
    %136 = vector.load %arg6[%c0_51, %c0_52] : memref<32x128xbf16, #tpu.memory_space<vmem>>, vector<32x128xbf16>
    %c0_53 = arith.constant 0 : index
    %c0_54 = arith.constant 0 : index
    %137 = vector.load %arg8[%c0_53, %c0_54] : memref<1x32xf32, #tpu.memory_space<vmem>>, vector<1x32xf32>
    %138 = arith.truncf %86 : vector<2x32xf32> to vector<2x32xbf16>
    %cst_55 = arith.constant dense<0.000000e+00> : vector<2x128xf32>
    %139 = tpu.matmul %138, %136, %cst_55 {dimension_numbers = #tpu.dot_dimension_numbers<[1], [0], [0], [1], [0, 0, 1, 1], [], []>} : vector<2x32xbf16>, vector<32x128xbf16>, vector<2x128xf32> -> vector<2x128xf32>
    %140 = vector.extract_strided_slice %103 {offsets = [0, 0], sizes = [2, 32], strides = [1, 1]} : vector<2x128xf32> to vector<2x32xf32>
    %141 = vector.extract_strided_slice %139 {offsets = [0, 0], sizes = [2, 32], strides = [1, 1]} : vector<2x128xf32> to vector<2x32xf32>
    %142 = arith.addf %140, %141 : vector<2x32xf32>
    %143 = arith.negf %142 : vector<2x32xf32>
    %144 = math.exp %143 : vector<2x32xf32>
    %cst_56 = arith.constant 1.000000e+00 : f32
    %145 = vector.broadcast %cst_56 : f32 to vector<2x32xf32>
    %146 = arith.addf %145, %144 : vector<2x32xf32>
    %147 = arith.divf %145, %146 : vector<2x32xf32>
    %148 = vector.extract_strided_slice %103 {offsets = [0, 32], sizes = [2, 32], strides = [1, 1]} : vector<2x128xf32> to vector<2x32xf32>
    %149 = vector.extract_strided_slice %139 {offsets = [0, 32], sizes = [2, 32], strides = [1, 1]} : vector<2x128xf32> to vector<2x32xf32>
    %150 = arith.addf %148, %149 : vector<2x32xf32>
    %151 = arith.negf %150 : vector<2x32xf32>
    %152 = math.exp %151 : vector<2x32xf32>
    %cst_57 = arith.constant 1.000000e+00 : f32
    %153 = vector.broadcast %cst_57 : f32 to vector<2x32xf32>
    %154 = arith.addf %153, %152 : vector<2x32xf32>
    %155 = arith.divf %153, %154 : vector<2x32xf32>
    %156 = vector.extract_strided_slice %103 {offsets = [0, 64], sizes = [2, 32], strides = [1, 1]} : vector<2x128xf32> to vector<2x32xf32>
    %157 = vector.extract_strided_slice %139 {offsets = [0, 64], sizes = [2, 32], strides = [1, 1]} : vector<2x128xf32> to vector<2x32xf32>
    %158 = vector.broadcast %137 : vector<1x32xf32> to vector<2x32xf32>
    %159 = arith.addf %157, %158 : vector<2x32xf32>
    %160 = arith.mulf %147, %159 : vector<2x32xf32>
    %161 = arith.addf %156, %160 : vector<2x32xf32>
    %162 = math.tanh %161 : vector<2x32xf32>
    %cst_58 = arith.constant 1.000000e+00 : f32
    %163 = vector.broadcast %cst_58 : f32 to vector<2x32xf32>
    %164 = arith.subf %163, %155 : vector<2x32xf32>
    %165 = arith.mulf %164, %162 : vector<2x32xf32>
    %166 = arith.mulf %155, %86 : vector<2x32xf32>
    %167 = arith.addf %165, %166 : vector<2x32xf32>
    %168 = arith.index_cast %c1_i32 : i32 to index
    %c0_59 = arith.constant 0 : index
    %c0_60 = arith.constant 0 : index
    %169 = vector.load %arg9[%168, %c0_59, %c0_60] : memref<10x2x32xf32, #tpu.memory_space<vmem>>, vector<1x2x32xf32>
    %170 = vector.shape_cast %169 : vector<1x2x32xf32> to vector<2x32xf32>
    %171 = vector.shape_cast %135 : vector<2x32xf32> to vector<1x2x32xf32>
    tpu.vector_store %arg9[%168, %c0_59, %c0_60], %171 {strides = array<i32>} : memref<10x2x32xf32, #tpu.memory_space<vmem>>, vector<1x2x32xf32>,
    %172 = arith.index_cast %95 : i32 to index
    %c0_61 = arith.constant 0 : index
    %c0_62 = arith.constant 0 : index
    %173 = vector.load %arg10[%172, %c0_61, %c0_62] : memref<10x2x32xf32, #tpu.memory_space<vmem>>, vector<1x2x32xf32>
    %174 = vector.shape_cast %173 : vector<1x2x32xf32> to vector<2x32xf32>
    %175 = vector.shape_cast %167 : vector<2x32xf32> to vector<1x2x32xf32>
    tpu.vector_store %arg10[%172, %c0_61, %c0_62], %175 {strides = array<i32>} : memref<10x2x32xf32, #tpu.memory_space<vmem>>, vector<1x2x32xf32>,
    %c2_i32_63 = arith.constant 2 : i32
    %c9_i32_64 = arith.constant 9 : i32
    %176 = arith.subi %c9_i32_64, %c2_i32_63 : i32
    %c2_i32_65 = arith.constant 2 : i32
    %177 = arith.muli %c2_i32_63, %c2_i32_65 : i32
    %178 = tpu.assume_multiple %177, 2 : i32
    %179 = arith.index_cast %178 : i32 to index
    %c0_66 = arith.constant 0 : index
    %180 = vector.load %arg12[%179, %c0_66] : memref<20x128xf32, #tpu.memory_space<vmem>>, vector<2x128xf32>
    %c2_i32_67 = arith.constant 2 : i32
    %181 = arith.muli %176, %c2_i32_67 : i32
    %182 = tpu.assume_multiple %181, 2 : i32
    %183 = arith.index_cast %182 : i32 to index
    %c0_68 = arith.constant 0 : index
    %184 = vector.load %arg13[%183, %c0_68] : memref<20x128xf32, #tpu.memory_space<vmem>>, vector<2x128xf32>
    %c0_69 = arith.constant 0 : index
    %c0_70 = arith.constant 0 : index
    %185 = vector.load %arg2[%c0_69, %c0_70] : memref<32x128xbf16, #tpu.memory_space<vmem>>, vector<32x128xbf16>
    %c0_71 = arith.constant 0 : index
    %c0_72 = arith.constant 0 : index
    %186 = vector.load %arg4[%c0_71, %c0_72] : memref<1x32xf32, #tpu.memory_space<vmem>>, vector<1x32xf32>
    %187 = arith.truncf %135 : vector<2x32xf32> to vector<2x32xbf16>
    %cst_73 = arith.constant dense<0.000000e+00> : vector<2x128xf32>
    %188 = tpu.matmul %187, %185, %cst_73 {dimension_numbers = #tpu.dot_dimension_numbers<[1], [0], [0], [1], [0, 0, 1, 1], [], []>} : vector<2x32xbf16>, vector<32x128xbf16>, vector<2x128xf32> -> vector<2x128xf32>
    %189 = vector.extract_strided_slice %180 {offsets = [0, 0], sizes = [2, 32], strides = [1, 1]} : vector<2x128xf32> to vector<2x32xf32>
    %190 = vector.extract_strided_slice %188 {offsets = [0, 0], sizes = [2, 32], strides = [1, 1]} : vector<2x128xf32> to vector<2x32xf32>
    %191 = arith.addf %189, %190 : vector<2x32xf32>
    %192 = arith.negf %191 : vector<2x32xf32>
    %193 = math.exp %192 : vector<2x32xf32>
    %cst_74 = arith.constant 1.000000e+00 : f32
    %194 = vector.broadcast %cst_74 : f32 to vector<2x32xf32>
    %195 = arith.addf %194, %193 : vector<2x32xf32>
    %196 = arith.divf %194, %195 : vector<2x32xf32>
    %197 = vector.extract_strided_slice %180 {offsets = [0, 32], sizes = [2, 32], strides = [1, 1]} : vector<2x128xf32> to vector<2x32xf32>
    %198 = vector.extract_strided_slice %188 {offsets = [0, 32], sizes = [2, 32], strides = [1, 1]} : vector<2x128xf32> to vector<2x32xf32>
    %199 = arith.addf %197, %198 : vector<2x32xf32>
    %200 = arith.negf %199 : vector<2x32xf32>
    %201 = math.exp %200 : vector<2x32xf32>
    %cst_75 = arith.constant 1.000000e+00 : f32
    %202 = vector.broadcast %cst_75 : f32 to vector<2x32xf32>
    %203 = arith.addf %202, %201 : vector<2x32xf32>
    %204 = arith.divf %202, %203 : vector<2x32xf32>
    %205 = vector.extract_strided_slice %180 {offsets = [0, 64], sizes = [2, 32], strides = [1, 1]} : vector<2x128xf32> to vector<2x32xf32>
    %206 = vector.extract_strided_slice %188 {offsets = [0, 64], sizes = [2, 32], strides = [1, 1]} : vector<2x128xf32> to vector<2x32xf32>
    %207 = vector.broadcast %186 : vector<1x32xf32> to vector<2x32xf32>
    %208 = arith.addf %206, %207 : vector<2x32xf32>
    %209 = arith.mulf %196, %208 : vector<2x32xf32>
    %210 = arith.addf %205, %209 : vector<2x32xf32>
    %211 = math.tanh %210 : vector<2x32xf32>
    %cst_76 = arith.constant 1.000000e+00 : f32
    %212 = vector.broadcast %cst_76 : f32 to vector<2x32xf32>
    %213 = arith.subf %212, %204 : vector<2x32xf32>
    %214 = arith.mulf %213, %211 : vector<2x32xf32>
    %215 = arith.mulf %204, %135 : vector<2x32xf32>
    %216 = arith.addf %214, %215 : vector<2x32xf32>
    %c0_77 = arith.constant 0 : index
    %c0_78 = arith.constant 0 : index
    %217 = vector.load %arg6[%c0_77, %c0_78] : memref<32x128xbf16, #tpu.memory_space<vmem>>, vector<32x128xbf16>
    %c0_79 = arith.constant 0 : index
    %c0_80 = arith.constant 0 : index
    %218 = vector.load %arg8[%c0_79, %c0_80] : memref<1x32xf32, #tpu.memory_space<vmem>>, vector<1x32xf32>
    %219 = arith.truncf %167 : vector<2x32xf32> to vector<2x32xbf16>
    %cst_81 = arith.constant dense<0.000000e+00> : vector<2x128xf32>
    %220 = tpu.matmul %219, %217, %cst_81 {dimension_numbers = #tpu.dot_dimension_numbers<[1], [0], [0], [1], [0, 0, 1, 1], [], []>} : vector<2x32xbf16>, vector<32x128xbf16>, vector<2x128xf32> -> vector<2x128xf32>
    %221 = vector.extract_strided_slice %184 {offsets = [0, 0], sizes = [2, 32], strides = [1, 1]} : vector<2x128xf32> to vector<2x32xf32>
    %222 = vector.extract_strided_slice %220 {offsets = [0, 0], sizes = [2, 32], strides = [1, 1]} : vector<2x128xf32> to vector<2x32xf32>
    %223 = arith.addf %221, %222 : vector<2x32xf32>
    %224 = arith.negf %223 : vector<2x32xf32>
    %225 = math.exp %224 : vector<2x32xf32>
    %cst_82 = arith.constant 1.000000e+00 : f32
    %226 = vector.broadcast %cst_82 : f32 to vector<2x32xf32>
    %227 = arith.addf %226, %225 : vector<2x32xf32>
    %228 = arith.divf %226, %227 : vector<2x32xf32>
    %229 = vector.extract_strided_slice %184 {offsets = [0, 32], sizes = [2, 32], strides = [1, 1]} : vector<2x128xf32> to vector<2x32xf32>
    %230 = vector.extract_strided_slice %220 {offsets = [0, 32], sizes = [2, 32], strides = [1, 1]} : vector<2x128xf32> to vector<2x32xf32>
    %231 = arith.addf %229, %230 : vector<2x32xf32>
    %232 = arith.negf %231 : vector<2x32xf32>
    %233 = math.exp %232 : vector<2x32xf32>
    %cst_83 = arith.constant 1.000000e+00 : f32
    %234 = vector.broadcast %cst_83 : f32 to vector<2x32xf32>
    %235 = arith.addf %234, %233 : vector<2x32xf32>
    %236 = arith.divf %234, %235 : vector<2x32xf32>
    %237 = vector.extract_strided_slice %184 {offsets = [0, 64], sizes = [2, 32], strides = [1, 1]} : vector<2x128xf32> to vector<2x32xf32>
    %238 = vector.extract_strided_slice %220 {offsets = [0, 64], sizes = [2, 32], strides = [1, 1]} : vector<2x128xf32> to vector<2x32xf32>
    %239 = vector.broadcast %218 : vector<1x32xf32> to vector<2x32xf32>
    %240 = arith.addf %238, %239 : vector<2x32xf32>
    %241 = arith.mulf %228, %240 : vector<2x32xf32>
    %242 = arith.addf %237, %241 : vector<2x32xf32>
    %243 = math.tanh %242 : vector<2x32xf32>
    %cst_84 = arith.constant 1.000000e+00 : f32
    %244 = vector.broadcast %cst_84 : f32 to vector<2x32xf32>
    %245 = arith.subf %244, %236 : vector<2x32xf32>
    %246 = arith.mulf %245, %243 : vector<2x32xf32>
    %247 = arith.mulf %236, %167 : vector<2x32xf32>
    %248 = arith.addf %246, %247 : vector<2x32xf32>
    %249 = arith.index_cast %c2_i32_63 : i32 to index
    %c0_85 = arith.constant 0 : index
    %c0_86 = arith.constant 0 : index
    %250 = vector.load %arg9[%249, %c0_85, %c0_86] : memref<10x2x32xf32, #tpu.memory_space<vmem>>, vector<1x2x32xf32>
    %251 = vector.shape_cast %250 : vector<1x2x32xf32> to vector<2x32xf32>
    %252 = vector.shape_cast %216 : vector<2x32xf32> to vector<1x2x32xf32>
    tpu.vector_store %arg9[%249, %c0_85, %c0_86], %252 {strides = array<i32>} : memref<10x2x32xf32, #tpu.memory_space<vmem>>, vector<1x2x32xf32>,
    %253 = arith.index_cast %176 : i32 to index
    %c0_87 = arith.constant 0 : index
    %c0_88 = arith.constant 0 : index
    %254 = vector.load %arg10[%253, %c0_87, %c0_88] : memref<10x2x32xf32, #tpu.memory_space<vmem>>, vector<1x2x32xf32>
    %255 = vector.shape_cast %254 : vector<1x2x32xf32> to vector<2x32xf32>
    %256 = vector.shape_cast %248 : vector<2x32xf32> to vector<1x2x32xf32>
    tpu.vector_store %arg10[%253, %c0_87, %c0_88], %256 {strides = array<i32>} : memref<10x2x32xf32, #tpu.memory_space<vmem>>, vector<1x2x32xf32>,
    %c3_i32 = arith.constant 3 : i32
    %c9_i32_89 = arith.constant 9 : i32
    %257 = arith.subi %c9_i32_89, %c3_i32 : i32
    %c2_i32_90 = arith.constant 2 : i32
    %258 = arith.muli %c3_i32, %c2_i32_90 : i32
    %259 = tpu.assume_multiple %258, 2 : i32
    %260 = arith.index_cast %259 : i32 to index
    %c0_91 = arith.constant 0 : index
    %261 = vector.load %arg12[%260, %c0_91] : memref<20x128xf32, #tpu.memory_space<vmem>>, vector<2x128xf32>
    %c2_i32_92 = arith.constant 2 : i32
    %262 = arith.muli %257, %c2_i32_92 : i32
    %263 = tpu.assume_multiple %262, 2 : i32
    %264 = arith.index_cast %263 : i32 to index
    %c0_93 = arith.constant 0 : index
    %265 = vector.load %arg13[%264, %c0_93] : memref<20x128xf32, #tpu.memory_space<vmem>>, vector<2x128xf32>
    %c0_94 = arith.constant 0 : index
    %c0_95 = arith.constant 0 : index
    %266 = vector.load %arg2[%c0_94, %c0_95] : memref<32x128xbf16, #tpu.memory_space<vmem>>, vector<32x128xbf16>
    %c0_96 = arith.constant 0 : index
    %c0_97 = arith.constant 0 : index
    %267 = vector.load %arg4[%c0_96, %c0_97] : memref<1x32xf32, #tpu.memory_space<vmem>>, vector<1x32xf32>
    %268 = arith.truncf %216 : vector<2x32xf32> to vector<2x32xbf16>
    %cst_98 = arith.constant dense<0.000000e+00> : vector<2x128xf32>
    %269 = tpu.matmul %268, %266, %cst_98 {dimension_numbers = #tpu.dot_dimension_numbers<[1], [0], [0], [1], [0, 0, 1, 1], [], []>} : vector<2x32xbf16>, vector<32x128xbf16>, vector<2x128xf32> -> vector<2x128xf32>
    %270 = vector.extract_strided_slice %261 {offsets = [0, 0], sizes = [2, 32], strides = [1, 1]} : vector<2x128xf32> to vector<2x32xf32>
    %271 = vector.extract_strided_slice %269 {offsets = [0, 0], sizes = [2, 32], strides = [1, 1]} : vector<2x128xf32> to vector<2x32xf32>
    %272 = arith.addf %270, %271 : vector<2x32xf32>
    %273 = arith.negf %272 : vector<2x32xf32>
    %274 = math.exp %273 : vector<2x32xf32>
    %cst_99 = arith.constant 1.000000e+00 : f32
    %275 = vector.broadcast %cst_99 : f32 to vector<2x32xf32>
    %276 = arith.addf %275, %274 : vector<2x32xf32>
    %277 = arith.divf %275, %276 : vector<2x32xf32>
    %278 = vector.extract_strided_slice %261 {offsets = [0, 32], sizes = [2, 32], strides = [1, 1]} : vector<2x128xf32> to vector<2x32xf32>
    %279 = vector.extract_strided_slice %269 {offsets = [0, 32], sizes = [2, 32], strides = [1, 1]} : vector<2x128xf32> to vector<2x32xf32>
    %280 = arith.addf %278, %279 : vector<2x32xf32>
    %281 = arith.negf %280 : vector<2x32xf32>
    %282 = math.exp %281 : vector<2x32xf32>
    %cst_100 = arith.constant 1.000000e+00 : f32
    %283 = vector.broadcast %cst_100 : f32 to vector<2x32xf32>
    %284 = arith.addf %283, %282 : vector<2x32xf32>
    %285 = arith.divf %283, %284 : vector<2x32xf32>
    %286 = vector.extract_strided_slice %261 {offsets = [0, 64], sizes = [2, 32], strides = [1, 1]} : vector<2x128xf32> to vector<2x32xf32>
    %287 = vector.extract_strided_slice %269 {offsets = [0, 64], sizes = [2, 32], strides = [1, 1]} : vector<2x128xf32> to vector<2x32xf32>
    %288 = vector.broadcast %267 : vector<1x32xf32> to vector<2x32xf32>
    %289 = arith.addf %287, %288 : vector<2x32xf32>
    %290 = arith.mulf %277, %289 : vector<2x32xf32>
    %291 = arith.addf %286, %290 : vector<2x32xf32>
    %292 = math.tanh %291 : vector<2x32xf32>
    %cst_101 = arith.constant 1.000000e+00 : f32
    %293 = vector.broadcast %cst_101 : f32 to vector<2x32xf32>
    %294 = arith.subf %293, %285 : vector<2x32xf32>
    %295 = arith.mulf %294, %292 : vector<2x32xf32>
    %296 = arith.mulf %285, %216 : vector<2x32xf32>
    %297 = arith.addf %295, %296 : vector<2x32xf32>
    %c0_102 = arith.constant 0 : index
    %c0_103 = arith.constant 0 : index
    %298 = vector.load %arg6[%c0_102, %c0_103] : memref<32x128xbf16, #tpu.memory_space<vmem>>, vector<32x128xbf16>
    %c0_104 = arith.constant 0 : index
    %c0_105 = arith.constant 0 : index
    %299 = vector.load %arg8[%c0_104, %c0_105] : memref<1x32xf32, #tpu.memory_space<vmem>>, vector<1x32xf32>
    %300 = arith.truncf %248 : vector<2x32xf32> to vector<2x32xbf16>
    %cst_106 = arith.constant dense<0.000000e+00> : vector<2x128xf32>
    %301 = tpu.matmul %300, %298, %cst_106 {dimension_numbers = #tpu.dot_dimension_numbers<[1], [0], [0], [1], [0, 0, 1, 1], [], []>} : vector<2x32xbf16>, vector<32x128xbf16>, vector<2x128xf32> -> vector<2x128xf32>
    %302 = vector.extract_strided_slice %265 {offsets = [0, 0], sizes = [2, 32], strides = [1, 1]} : vector<2x128xf32> to vector<2x32xf32>
    %303 = vector.extract_strided_slice %301 {offsets = [0, 0], sizes = [2, 32], strides = [1, 1]} : vector<2x128xf32> to vector<2x32xf32>
    %304 = arith.addf %302, %303 : vector<2x32xf32>
    %305 = arith.negf %304 : vector<2x32xf32>
    %306 = math.exp %305 : vector<2x32xf32>
    %cst_107 = arith.constant 1.000000e+00 : f32
    %307 = vector.broadcast %cst_107 : f32 to vector<2x32xf32>
    %308 = arith.addf %307, %306 : vector<2x32xf32>
    %309 = arith.divf %307, %308 : vector<2x32xf32>
    %310 = vector.extract_strided_slice %265 {offsets = [0, 32], sizes = [2, 32], strides = [1, 1]} : vector<2x128xf32> to vector<2x32xf32>
    %311 = vector.extract_strided_slice %301 {offsets = [0, 32], sizes = [2, 32], strides = [1, 1]} : vector<2x128xf32> to vector<2x32xf32>
    %312 = arith.addf %310, %311 : vector<2x32xf32>
    %313 = arith.negf %312 : vector<2x32xf32>
    %314 = math.exp %313 : vector<2x32xf32>
    %cst_108 = arith.constant 1.000000e+00 : f32
    %315 = vector.broadcast %cst_108 : f32 to vector<2x32xf32>
    %316 = arith.addf %315, %314 : vector<2x32xf32>
    %317 = arith.divf %315, %316 : vector<2x32xf32>
    %318 = vector.extract_strided_slice %265 {offsets = [0, 64], sizes = [2, 32], strides = [1, 1]} : vector<2x128xf32> to vector<2x32xf32>
    %319 = vector.extract_strided_slice %301 {offsets = [0, 64], sizes = [2, 32], strides = [1, 1]} : vector<2x128xf32> to vector<2x32xf32>
    %320 = vector.broadcast %299 : vector<1x32xf32> to vector<2x32xf32>
    %321 = arith.addf %319, %320 : vector<2x32xf32>
    %322 = arith.mulf %309, %321 : vector<2x32xf32>
    %323 = arith.addf %318, %322 : vector<2x32xf32>
    %324 = math.tanh %323 : vector<2x32xf32>
    %cst_109 = arith.constant 1.000000e+00 : f32
    %325 = vector.broadcast %cst_109 : f32 to vector<2x32xf32>
    %326 = arith.subf %325, %317 : vector<2x32xf32>
    %327 = arith.mulf %326, %324 : vector<2x32xf32>
    %328 = arith.mulf %317, %248 : vector<2x32xf32>
    %329 = arith.addf %327, %328 : vector<2x32xf32>
    %330 = arith.index_cast %c3_i32 : i32 to index
    %c0_110 = arith.constant 0 : index
    %c0_111 = arith.constant 0 : index
    %331 = vector.load %arg9[%330, %c0_110, %c0_111] : memref<10x2x32xf32, #tpu.memory_space<vmem>>, vector<1x2x32xf32>
    %332 = vector.shape_cast %331 : vector<1x2x32xf32> to vector<2x32xf32>
    %333 = vector.shape_cast %297 : vector<2x32xf32> to vector<1x2x32xf32>
    tpu.vector_store %arg9[%330, %c0_110, %c0_111], %333 {strides = array<i32>} : memref<10x2x32xf32, #tpu.memory_space<vmem>>, vector<1x2x32xf32>,
    %334 = arith.index_cast %257 : i32 to index
    %c0_112 = arith.constant 0 : index
    %c0_113 = arith.constant 0 : index
    %335 = vector.load %arg10[%334, %c0_112, %c0_113] : memref<10x2x32xf32, #tpu.memory_space<vmem>>, vector<1x2x32xf32>
    %336 = vector.shape_cast %335 : vector<1x2x32xf32> to vector<2x32xf32>
    %337 = vector.shape_cast %329 : vector<2x32xf32> to vector<1x2x32xf32>
    tpu.vector_store %arg10[%334, %c0_112, %c0_113], %337 {strides = array<i32>} : memref<10x2x32xf32, #tpu.memory_space<vmem>>, vector<1x2x32xf32>,
    %c4_i32 = arith.constant 4 : i32
    %c9_i32_114 = arith.constant 9 : i32
    %338 = arith.subi %c9_i32_114, %c4_i32 : i32
    %c2_i32_115 = arith.constant 2 : i32
    %339 = arith.muli %c4_i32, %c2_i32_115 : i32
    %340 = tpu.assume_multiple %339, 2 : i32
    %341 = arith.index_cast %340 : i32 to index
    %c0_116 = arith.constant 0 : index
    %342 = vector.load %arg12[%341, %c0_116] : memref<20x128xf32, #tpu.memory_space<vmem>>, vector<2x128xf32>
    %c2_i32_117 = arith.constant 2 : i32
    %343 = arith.muli %338, %c2_i32_117 : i32
    %344 = tpu.assume_multiple %343, 2 : i32
    %345 = arith.index_cast %344 : i32 to index
    %c0_118 = arith.constant 0 : index
    %346 = vector.load %arg13[%345, %c0_118] : memref<20x128xf32, #tpu.memory_space<vmem>>, vector<2x128xf32>
    %c0_119 = arith.constant 0 : index
    %c0_120 = arith.constant 0 : index
    %347 = vector.load %arg2[%c0_119, %c0_120] : memref<32x128xbf16, #tpu.memory_space<vmem>>, vector<32x128xbf16>
    %c0_121 = arith.constant 0 : index
    %c0_122 = arith.constant 0 : index
    %348 = vector.load %arg4[%c0_121, %c0_122] : memref<1x32xf32, #tpu.memory_space<vmem>>, vector<1x32xf32>
    %349 = arith.truncf %297 : vector<2x32xf32> to vector<2x32xbf16>
    %cst_123 = arith.constant dense<0.000000e+00> : vector<2x128xf32>
    %350 = tpu.matmul %349, %347, %cst_123 {dimension_numbers = #tpu.dot_dimension_numbers<[1], [0], [0], [1], [0, 0, 1, 1], [], []>} : vector<2x32xbf16>, vector<32x128xbf16>, vector<2x128xf32> -> vector<2x128xf32>
    %351 = vector.extract_strided_slice %342 {offsets = [0, 0], sizes = [2, 32], strides = [1, 1]} : vector<2x128xf32> to vector<2x32xf32>
    %352 = vector.extract_strided_slice %350 {offsets = [0, 0], sizes = [2, 32], strides = [1, 1]} : vector<2x128xf32> to vector<2x32xf32>
    %353 = arith.addf %351, %352 : vector<2x32xf32>
    %354 = arith.negf %353 : vector<2x32xf32>
    %355 = math.exp %354 : vector<2x32xf32>
    %cst_124 = arith.constant 1.000000e+00 : f32
    %356 = vector.broadcast %cst_124 : f32 to vector<2x32xf32>
    %357 = arith.addf %356, %355 : vector<2x32xf32>
    %358 = arith.divf %356, %357 : vector<2x32xf32>
    %359 = vector.extract_strided_slice %342 {offsets = [0, 32], sizes = [2, 32], strides = [1, 1]} : vector<2x128xf32> to vector<2x32xf32>
    %360 = vector.extract_strided_slice %350 {offsets = [0, 32], sizes = [2, 32], strides = [1, 1]} : vector<2x128xf32> to vector<2x32xf32>
    %361 = arith.addf %359, %360 : vector<2x32xf32>
    %362 = arith.negf %361 : vector<2x32xf32>
    %363 = math.exp %362 : vector<2x32xf32>
    %cst_125 = arith.constant 1.000000e+00 : f32
    %364 = vector.broadcast %cst_125 : f32 to vector<2x32xf32>
    %365 = arith.addf %364, %363 : vector<2x32xf32>
    %366 = arith.divf %364, %365 : vector<2x32xf32>
    %367 = vector.extract_strided_slice %342 {offsets = [0, 64], sizes = [2, 32], strides = [1, 1]} : vector<2x128xf32> to vector<2x32xf32>
    %368 = vector.extract_strided_slice %350 {offsets = [0, 64], sizes = [2, 32], strides = [1, 1]} : vector<2x128xf32> to vector<2x32xf32>
    %369 = vector.broadcast %348 : vector<1x32xf32> to vector<2x32xf32>
    %370 = arith.addf %368, %369 : vector<2x32xf32>
    %371 = arith.mulf %358, %370 : vector<2x32xf32>
    %372 = arith.addf %367, %371 : vector<2x32xf32>
    %373 = math.tanh %372 : vector<2x32xf32>
    %cst_126 = arith.constant 1.000000e+00 : f32
    %374 = vector.broadcast %cst_126 : f32 to vector<2x32xf32>
    %375 = arith.subf %374, %366 : vector<2x32xf32>
    %376 = arith.mulf %375, %373 : vector<2x32xf32>
    %377 = arith.mulf %366, %297 : vector<2x32xf32>
    %378 = arith.addf %376, %377 : vector<2x32xf32>
    %c0_127 = arith.constant 0 : index
    %c0_128 = arith.constant 0 : index
    %379 = vector.load %arg6[%c0_127, %c0_128] : memref<32x128xbf16, #tpu.memory_space<vmem>>, vector<32x128xbf16>
    %c0_129 = arith.constant 0 : index
    %c0_130 = arith.constant 0 : index
    %380 = vector.load %arg8[%c0_129, %c0_130] : memref<1x32xf32, #tpu.memory_space<vmem>>, vector<1x32xf32>
    %381 = arith.truncf %329 : vector<2x32xf32> to vector<2x32xbf16>
    %cst_131 = arith.constant dense<0.000000e+00> : vector<2x128xf32>
    %382 = tpu.matmul %381, %379, %cst_131 {dimension_numbers = #tpu.dot_dimension_numbers<[1], [0], [0], [1], [0, 0, 1, 1], [], []>} : vector<2x32xbf16>, vector<32x128xbf16>, vector<2x128xf32> -> vector<2x128xf32>
    %383 = vector.extract_strided_slice %346 {offsets = [0, 0], sizes = [2, 32], strides = [1, 1]} : vector<2x128xf32> to vector<2x32xf32>
    %384 = vector.extract_strided_slice %382 {offsets = [0, 0], sizes = [2, 32], strides = [1, 1]} : vector<2x128xf32> to vector<2x32xf32>
    %385 = arith.addf %383, %384 : vector<2x32xf32>
    %386 = arith.negf %385 : vector<2x32xf32>
    %387 = math.exp %386 : vector<2x32xf32>
    %cst_132 = arith.constant 1.000000e+00 : f32
    %388 = vector.broadcast %cst_132 : f32 to vector<2x32xf32>
    %389 = arith.addf %388, %387 : vector<2x32xf32>
    %390 = arith.divf %388, %389 : vector<2x32xf32>
    %391 = vector.extract_strided_slice %346 {offsets = [0, 32], sizes = [2, 32], strides = [1, 1]} : vector<2x128xf32> to vector<2x32xf32>
    %392 = vector.extract_strided_slice %382 {offsets = [0, 32], sizes = [2, 32], strides = [1, 1]} : vector<2x128xf32> to vector<2x32xf32>
    %393 = arith.addf %391, %392 : vector<2x32xf32>
    %394 = arith.negf %393 : vector<2x32xf32>
    %395 = math.exp %394 : vector<2x32xf32>
    %cst_133 = arith.constant 1.000000e+00 : f32
    %396 = vector.broadcast %cst_133 : f32 to vector<2x32xf32>
    %397 = arith.addf %396, %395 : vector<2x32xf32>
    %398 = arith.divf %396, %397 : vector<2x32xf32>
    %399 = vector.extract_strided_slice %346 {offsets = [0, 64], sizes = [2, 32], strides = [1, 1]} : vector<2x128xf32> to vector<2x32xf32>
    %400 = vector.extract_strided_slice %382 {offsets = [0, 64], sizes = [2, 32], strides = [1, 1]} : vector<2x128xf32> to vector<2x32xf32>
    %401 = vector.broadcast %380 : vector<1x32xf32> to vector<2x32xf32>
    %402 = arith.addf %400, %401 : vector<2x32xf32>
    %403 = arith.mulf %390, %402 : vector<2x32xf32>
    %404 = arith.addf %399, %403 : vector<2x32xf32>
    %405 = math.tanh %404 : vector<2x32xf32>
    %cst_134 = arith.constant 1.000000e+00 : f32
    %406 = vector.broadcast %cst_134 : f32 to vector<2x32xf32>
    %407 = arith.subf %406, %398 : vector<2x32xf32>
    %408 = arith.mulf %407, %405 : vector<2x32xf32>
    %409 = arith.mulf %398, %329 : vector<2x32xf32>
    %410 = arith.addf %408, %409 : vector<2x32xf32>
    %411 = arith.index_cast %c4_i32 : i32 to index
    %c0_135 = arith.constant 0 : index
    %c0_136 = arith.constant 0 : index
    %412 = vector.load %arg9[%411, %c0_135, %c0_136] : memref<10x2x32xf32, #tpu.memory_space<vmem>>, vector<1x2x32xf32>
    %413 = vector.shape_cast %412 : vector<1x2x32xf32> to vector<2x32xf32>
    %414 = vector.shape_cast %378 : vector<2x32xf32> to vector<1x2x32xf32>
    tpu.vector_store %arg9[%411, %c0_135, %c0_136], %414 {strides = array<i32>} : memref<10x2x32xf32, #tpu.memory_space<vmem>>, vector<1x2x32xf32>,
    %415 = arith.index_cast %338 : i32 to index
    %c0_137 = arith.constant 0 : index
    %c0_138 = arith.constant 0 : index
    %416 = vector.load %arg10[%415, %c0_137, %c0_138] : memref<10x2x32xf32, #tpu.memory_space<vmem>>, vector<1x2x32xf32>
    %417 = vector.shape_cast %416 : vector<1x2x32xf32> to vector<2x32xf32>
    %418 = vector.shape_cast %410 : vector<2x32xf32> to vector<1x2x32xf32>
    tpu.vector_store %arg10[%415, %c0_137, %c0_138], %418 {strides = array<i32>} : memref<10x2x32xf32, #tpu.memory_space<vmem>>, vector<1x2x32xf32>,
    %c5_i32 = arith.constant 5 : i32
    %c9_i32_139 = arith.constant 9 : i32
    %419 = arith.subi %c9_i32_139, %c5_i32 : i32
    %c2_i32_140 = arith.constant 2 : i32
    %420 = arith.muli %c5_i32, %c2_i32_140 : i32
    %421 = tpu.assume_multiple %420, 2 : i32
    %422 = arith.index_cast %421 : i32 to index
    %c0_141 = arith.constant 0 : index
    %423 = vector.load %arg12[%422, %c0_141] : memref<20x128xf32, #tpu.memory_space<vmem>>, vector<2x128xf32>
    %c2_i32_142 = arith.constant 2 : i32
    %424 = arith.muli %419, %c2_i32_142 : i32
    %425 = tpu.assume_multiple %424, 2 : i32
    %426 = arith.index_cast %425 : i32 to index
    %c0_143 = arith.constant 0 : index
    %427 = vector.load %arg13[%426, %c0_143] : memref<20x128xf32, #tpu.memory_space<vmem>>, vector<2x128xf32>
    %c0_144 = arith.constant 0 : index
    %c0_145 = arith.constant 0 : index
    %428 = vector.load %arg2[%c0_144, %c0_145] : memref<32x128xbf16, #tpu.memory_space<vmem>>, vector<32x128xbf16>
    %c0_146 = arith.constant 0 : index
    %c0_147 = arith.constant 0 : index
    %429 = vector.load %arg4[%c0_146, %c0_147] : memref<1x32xf32, #tpu.memory_space<vmem>>, vector<1x32xf32>
    %430 = arith.truncf %378 : vector<2x32xf32> to vector<2x32xbf16>
    %cst_148 = arith.constant dense<0.000000e+00> : vector<2x128xf32>
    %431 = tpu.matmul %430, %428, %cst_148 {dimension_numbers = #tpu.dot_dimension_numbers<[1], [0], [0], [1], [0, 0, 1, 1], [], []>} : vector<2x32xbf16>, vector<32x128xbf16>, vector<2x128xf32> -> vector<2x128xf32>
    %432 = vector.extract_strided_slice %423 {offsets = [0, 0], sizes = [2, 32], strides = [1, 1]} : vector<2x128xf32> to vector<2x32xf32>
    %433 = vector.extract_strided_slice %431 {offsets = [0, 0], sizes = [2, 32], strides = [1, 1]} : vector<2x128xf32> to vector<2x32xf32>
    %434 = arith.addf %432, %433 : vector<2x32xf32>
    %435 = arith.negf %434 : vector<2x32xf32>
    %436 = math.exp %435 : vector<2x32xf32>
    %cst_149 = arith.constant 1.000000e+00 : f32
    %437 = vector.broadcast %cst_149 : f32 to vector<2x32xf32>
    %438 = arith.addf %437, %436 : vector<2x32xf32>
    %439 = arith.divf %437, %438 : vector<2x32xf32>
    %440 = vector.extract_strided_slice %423 {offsets = [0, 32], sizes = [2, 32], strides = [1, 1]} : vector<2x128xf32> to vector<2x32xf32>
    %441 = vector.extract_strided_slice %431 {offsets = [0, 32], sizes = [2, 32], strides = [1, 1]} : vector<2x128xf32> to vector<2x32xf32>
    %442 = arith.addf %440, %441 : vector<2x32xf32>
    %443 = arith.negf %442 : vector<2x32xf32>
    %444 = math.exp %443 : vector<2x32xf32>
    %cst_150 = arith.constant 1.000000e+00 : f32
    %445 = vector.broadcast %cst_150 : f32 to vector<2x32xf32>
    %446 = arith.addf %445, %444 : vector<2x32xf32>
    %447 = arith.divf %445, %446 : vector<2x32xf32>
    %448 = vector.extract_strided_slice %423 {offsets = [0, 64], sizes = [2, 32], strides = [1, 1]} : vector<2x128xf32> to vector<2x32xf32>
    %449 = vector.extract_strided_slice %431 {offsets = [0, 64], sizes = [2, 32], strides = [1, 1]} : vector<2x128xf32> to vector<2x32xf32>
    %450 = vector.broadcast %429 : vector<1x32xf32> to vector<2x32xf32>
    %451 = arith.addf %449, %450 : vector<2x32xf32>
    %452 = arith.mulf %439, %451 : vector<2x32xf32>
    %453 = arith.addf %448, %452 : vector<2x32xf32>
    %454 = math.tanh %453 : vector<2x32xf32>
    %cst_151 = arith.constant 1.000000e+00 : f32
    %455 = vector.broadcast %cst_151 : f32 to vector<2x32xf32>
    %456 = arith.subf %455, %447 : vector<2x32xf32>
    %457 = arith.mulf %456, %454 : vector<2x32xf32>
    %458 = arith.mulf %447, %378 : vector<2x32xf32>
    %459 = arith.addf %457, %458 : vector<2x32xf32>
    %c0_152 = arith.constant 0 : index
    %c0_153 = arith.constant 0 : index
    %460 = vector.load %arg6[%c0_152, %c0_153] : memref<32x128xbf16, #tpu.memory_space<vmem>>, vector<32x128xbf16>
    %c0_154 = arith.constant 0 : index
    %c0_155 = arith.constant 0 : index
    %461 = vector.load %arg8[%c0_154, %c0_155] : memref<1x32xf32, #tpu.memory_space<vmem>>, vector<1x32xf32>
    %462 = arith.truncf %410 : vector<2x32xf32> to vector<2x32xbf16>
    %cst_156 = arith.constant dense<0.000000e+00> : vector<2x128xf32>
    %463 = tpu.matmul %462, %460, %cst_156 {dimension_numbers = #tpu.dot_dimension_numbers<[1], [0], [0], [1], [0, 0, 1, 1], [], []>} : vector<2x32xbf16>, vector<32x128xbf16>, vector<2x128xf32> -> vector<2x128xf32>
    %464 = vector.extract_strided_slice %427 {offsets = [0, 0], sizes = [2, 32], strides = [1, 1]} : vector<2x128xf32> to vector<2x32xf32>
    %465 = vector.extract_strided_slice %463 {offsets = [0, 0], sizes = [2, 32], strides = [1, 1]} : vector<2x128xf32> to vector<2x32xf32>
    %466 = arith.addf %464, %465 : vector<2x32xf32>
    %467 = arith.negf %466 : vector<2x32xf32>
    %468 = math.exp %467 : vector<2x32xf32>
    %cst_157 = arith.constant 1.000000e+00 : f32
    %469 = vector.broadcast %cst_157 : f32 to vector<2x32xf32>
    %470 = arith.addf %469, %468 : vector<2x32xf32>
    %471 = arith.divf %469, %470 : vector<2x32xf32>
    %472 = vector.extract_strided_slice %427 {offsets = [0, 32], sizes = [2, 32], strides = [1, 1]} : vector<2x128xf32> to vector<2x32xf32>
    %473 = vector.extract_strided_slice %463 {offsets = [0, 32], sizes = [2, 32], strides = [1, 1]} : vector<2x128xf32> to vector<2x32xf32>
    %474 = arith.addf %472, %473 : vector<2x32xf32>
    %475 = arith.negf %474 : vector<2x32xf32>
    %476 = math.exp %475 : vector<2x32xf32>
    %cst_158 = arith.constant 1.000000e+00 : f32
    %477 = vector.broadcast %cst_158 : f32 to vector<2x32xf32>
    %478 = arith.addf %477, %476 : vector<2x32xf32>
    %479 = arith.divf %477, %478 : vector<2x32xf32>
    %480 = vector.extract_strided_slice %427 {offsets = [0, 64], sizes = [2, 32], strides = [1, 1]} : vector<2x128xf32> to vector<2x32xf32>
    %481 = vector.extract_strided_slice %463 {offsets = [0, 64], sizes = [2, 32], strides = [1, 1]} : vector<2x128xf32> to vector<2x32xf32>
    %482 = vector.broadcast %461 : vector<1x32xf32> to vector<2x32xf32>
    %483 = arith.addf %481, %482 : vector<2x32xf32>
    %484 = arith.mulf %471, %483 : vector<2x32xf32>
    %485 = arith.addf %480, %484 : vector<2x32xf32>
    %486 = math.tanh %485 : vector<2x32xf32>
    %cst_159 = arith.constant 1.000000e+00 : f32
    %487 = vector.broadcast %cst_159 : f32 to vector<2x32xf32>
    %488 = arith.subf %487, %479 : vector<2x32xf32>
    %489 = arith.mulf %488, %486 : vector<2x32xf32>
    %490 = arith.mulf %479, %410 : vector<2x32xf32>
    %491 = arith.addf %489, %490 : vector<2x32xf32>
    %492 = arith.index_cast %c5_i32 : i32 to index
    %c0_160 = arith.constant 0 : index
    %c0_161 = arith.constant 0 : index
    %493 = vector.load %arg9[%492, %c0_160, %c0_161] : memref<10x2x32xf32, #tpu.memory_space<vmem>>, vector<1x2x32xf32>
    %494 = vector.shape_cast %493 : vector<1x2x32xf32> to vector<2x32xf32>
    %495 = vector.shape_cast %459 : vector<2x32xf32> to vector<1x2x32xf32>
    tpu.vector_store %arg9[%492, %c0_160, %c0_161], %495 {strides = array<i32>} : memref<10x2x32xf32, #tpu.memory_space<vmem>>, vector<1x2x32xf32>,
    %496 = arith.index_cast %419 : i32 to index
    %c0_162 = arith.constant 0 : index
    %c0_163 = arith.constant 0 : index
    %497 = vector.load %arg10[%496, %c0_162, %c0_163] : memref<10x2x32xf32, #tpu.memory_space<vmem>>, vector<1x2x32xf32>
    %498 = vector.shape_cast %497 : vector<1x2x32xf32> to vector<2x32xf32>
    %499 = vector.shape_cast %491 : vector<2x32xf32> to vector<1x2x32xf32>
    tpu.vector_store %arg10[%496, %c0_162, %c0_163], %499 {strides = array<i32>} : memref<10x2x32xf32, #tpu.memory_space<vmem>>, vector<1x2x32xf32>,
    %c6_i32 = arith.constant 6 : i32
    %c9_i32_164 = arith.constant 9 : i32
    %500 = arith.subi %c9_i32_164, %c6_i32 : i32
    %c2_i32_165 = arith.constant 2 : i32
    %501 = arith.muli %c6_i32, %c2_i32_165 : i32
    %502 = tpu.assume_multiple %501, 2 : i32
    %503 = arith.index_cast %502 : i32 to index
    %c0_166 = arith.constant 0 : index
    %504 = vector.load %arg12[%503, %c0_166] : memref<20x128xf32, #tpu.memory_space<vmem>>, vector<2x128xf32>
    %c2_i32_167 = arith.constant 2 : i32
    %505 = arith.muli %500, %c2_i32_167 : i32
    %506 = tpu.assume_multiple %505, 2 : i32
    %507 = arith.index_cast %506 : i32 to index
    %c0_168 = arith.constant 0 : index
    %508 = vector.load %arg13[%507, %c0_168] : memref<20x128xf32, #tpu.memory_space<vmem>>, vector<2x128xf32>
    %c0_169 = arith.constant 0 : index
    %c0_170 = arith.constant 0 : index
    %509 = vector.load %arg2[%c0_169, %c0_170] : memref<32x128xbf16, #tpu.memory_space<vmem>>, vector<32x128xbf16>
    %c0_171 = arith.constant 0 : index
    %c0_172 = arith.constant 0 : index
    %510 = vector.load %arg4[%c0_171, %c0_172] : memref<1x32xf32, #tpu.memory_space<vmem>>, vector<1x32xf32>
    %511 = arith.truncf %459 : vector<2x32xf32> to vector<2x32xbf16>
    %cst_173 = arith.constant dense<0.000000e+00> : vector<2x128xf32>
    %512 = tpu.matmul %511, %509, %cst_173 {dimension_numbers = #tpu.dot_dimension_numbers<[1], [0], [0], [1], [0, 0, 1, 1], [], []>} : vector<2x32xbf16>, vector<32x128xbf16>, vector<2x128xf32> -> vector<2x128xf32>
    %513 = vector.extract_strided_slice %504 {offsets = [0, 0], sizes = [2, 32], strides = [1, 1]} : vector<2x128xf32> to vector<2x32xf32>
    %514 = vector.extract_strided_slice %512 {offsets = [0, 0], sizes = [2, 32], strides = [1, 1]} : vector<2x128xf32> to vector<2x32xf32>
    %515 = arith.addf %513, %514 : vector<2x32xf32>
    %516 = arith.negf %515 : vector<2x32xf32>
    %517 = math.exp %516 : vector<2x32xf32>
    %cst_174 = arith.constant 1.000000e+00 : f32
    %518 = vector.broadcast %cst_174 : f32 to vector<2x32xf32>
    %519 = arith.addf %518, %517 : vector<2x32xf32>
    %520 = arith.divf %518, %519 : vector<2x32xf32>
    %521 = vector.extract_strided_slice %504 {offsets = [0, 32], sizes = [2, 32], strides = [1, 1]} : vector<2x128xf32> to vector<2x32xf32>
    %522 = vector.extract_strided_slice %512 {offsets = [0, 32], sizes = [2, 32], strides = [1, 1]} : vector<2x128xf32> to vector<2x32xf32>
    %523 = arith.addf %521, %522 : vector<2x32xf32>
    %524 = arith.negf %523 : vector<2x32xf32>
    %525 = math.exp %524 : vector<2x32xf32>
    %cst_175 = arith.constant 1.000000e+00 : f32
    %526 = vector.broadcast %cst_175 : f32 to vector<2x32xf32>
    %527 = arith.addf %526, %525 : vector<2x32xf32>
    %528 = arith.divf %526, %527 : vector<2x32xf32>
    %529 = vector.extract_strided_slice %504 {offsets = [0, 64], sizes = [2, 32], strides = [1, 1]} : vector<2x128xf32> to vector<2x32xf32>
    %530 = vector.extract_strided_slice %512 {offsets = [0, 64], sizes = [2, 32], strides = [1, 1]} : vector<2x128xf32> to vector<2x32xf32>
    %531 = vector.broadcast %510 : vector<1x32xf32> to vector<2x32xf32>
    %532 = arith.addf %530, %531 : vector<2x32xf32>
    %533 = arith.mulf %520, %532 : vector<2x32xf32>
    %534 = arith.addf %529, %533 : vector<2x32xf32>
    %535 = math.tanh %534 : vector<2x32xf32>
    %cst_176 = arith.constant 1.000000e+00 : f32
    %536 = vector.broadcast %cst_176 : f32 to vector<2x32xf32>
    %537 = arith.subf %536, %528 : vector<2x32xf32>
    %538 = arith.mulf %537, %535 : vector<2x32xf32>
    %539 = arith.mulf %528, %459 : vector<2x32xf32>
    %540 = arith.addf %538, %539 : vector<2x32xf32>
    %c0_177 = arith.constant 0 : index
    %c0_178 = arith.constant 0 : index
    %541 = vector.load %arg6[%c0_177, %c0_178] : memref<32x128xbf16, #tpu.memory_space<vmem>>, vector<32x128xbf16>
    %c0_179 = arith.constant 0 : index
    %c0_180 = arith.constant 0 : index
    %542 = vector.load %arg8[%c0_179, %c0_180] : memref<1x32xf32, #tpu.memory_space<vmem>>, vector<1x32xf32>
    %543 = arith.truncf %491 : vector<2x32xf32> to vector<2x32xbf16>
    %cst_181 = arith.constant dense<0.000000e+00> : vector<2x128xf32>
    %544 = tpu.matmul %543, %541, %cst_181 {dimension_numbers = #tpu.dot_dimension_numbers<[1], [0], [0], [1], [0, 0, 1, 1], [], []>} : vector<2x32xbf16>, vector<32x128xbf16>, vector<2x128xf32> -> vector<2x128xf32>
    %545 = vector.extract_strided_slice %508 {offsets = [0, 0], sizes = [2, 32], strides = [1, 1]} : vector<2x128xf32> to vector<2x32xf32>
    %546 = vector.extract_strided_slice %544 {offsets = [0, 0], sizes = [2, 32], strides = [1, 1]} : vector<2x128xf32> to vector<2x32xf32>
    %547 = arith.addf %545, %546 : vector<2x32xf32>
    %548 = arith.negf %547 : vector<2x32xf32>
    %549 = math.exp %548 : vector<2x32xf32>
    %cst_182 = arith.constant 1.000000e+00 : f32
    %550 = vector.broadcast %cst_182 : f32 to vector<2x32xf32>
    %551 = arith.addf %550, %549 : vector<2x32xf32>
    %552 = arith.divf %550, %551 : vector<2x32xf32>
    %553 = vector.extract_strided_slice %508 {offsets = [0, 32], sizes = [2, 32], strides = [1, 1]} : vector<2x128xf32> to vector<2x32xf32>
    %554 = vector.extract_strided_slice %544 {offsets = [0, 32], sizes = [2, 32], strides = [1, 1]} : vector<2x128xf32> to vector<2x32xf32>
    %555 = arith.addf %553, %554 : vector<2x32xf32>
    %556 = arith.negf %555 : vector<2x32xf32>
    %557 = math.exp %556 : vector<2x32xf32>
    %cst_183 = arith.constant 1.000000e+00 : f32
    %558 = vector.broadcast %cst_183 : f32 to vector<2x32xf32>
    %559 = arith.addf %558, %557 : vector<2x32xf32>
    %560 = arith.divf %558, %559 : vector<2x32xf32>
    %561 = vector.extract_strided_slice %508 {offsets = [0, 64], sizes = [2, 32], strides = [1, 1]} : vector<2x128xf32> to vector<2x32xf32>
    %562 = vector.extract_strided_slice %544 {offsets = [0, 64], sizes = [2, 32], strides = [1, 1]} : vector<2x128xf32> to vector<2x32xf32>
    %563 = vector.broadcast %542 : vector<1x32xf32> to vector<2x32xf32>
    %564 = arith.addf %562, %563 : vector<2x32xf32>
    %565 = arith.mulf %552, %564 : vector<2x32xf32>
    %566 = arith.addf %561, %565 : vector<2x32xf32>
    %567 = math.tanh %566 : vector<2x32xf32>
    %cst_184 = arith.constant 1.000000e+00 : f32
    %568 = vector.broadcast %cst_184 : f32 to vector<2x32xf32>
    %569 = arith.subf %568, %560 : vector<2x32xf32>
    %570 = arith.mulf %569, %567 : vector<2x32xf32>
    %571 = arith.mulf %560, %491 : vector<2x32xf32>
    %572 = arith.addf %570, %571 : vector<2x32xf32>
    %573 = arith.index_cast %c6_i32 : i32 to index
    %c0_185 = arith.constant 0 : index
    %c0_186 = arith.constant 0 : index
    %574 = vector.load %arg9[%573, %c0_185, %c0_186] : memref<10x2x32xf32, #tpu.memory_space<vmem>>, vector<1x2x32xf32>
    %575 = vector.shape_cast %574 : vector<1x2x32xf32> to vector<2x32xf32>
    %576 = vector.shape_cast %540 : vector<2x32xf32> to vector<1x2x32xf32>
    tpu.vector_store %arg9[%573, %c0_185, %c0_186], %576 {strides = array<i32>} : memref<10x2x32xf32, #tpu.memory_space<vmem>>, vector<1x2x32xf32>,
    %577 = arith.index_cast %500 : i32 to index
    %c0_187 = arith.constant 0 : index
    %c0_188 = arith.constant 0 : index
    %578 = vector.load %arg10[%577, %c0_187, %c0_188] : memref<10x2x32xf32, #tpu.memory_space<vmem>>, vector<1x2x32xf32>
    %579 = vector.shape_cast %578 : vector<1x2x32xf32> to vector<2x32xf32>
    %580 = vector.shape_cast %572 : vector<2x32xf32> to vector<1x2x32xf32>
    tpu.vector_store %arg10[%577, %c0_187, %c0_188], %580 {strides = array<i32>} : memref<10x2x32xf32, #tpu.memory_space<vmem>>, vector<1x2x32xf32>,
    %c7_i32 = arith.constant 7 : i32
    %c9_i32_189 = arith.constant 9 : i32
    %581 = arith.subi %c9_i32_189, %c7_i32 : i32
    %c2_i32_190 = arith.constant 2 : i32
    %582 = arith.muli %c7_i32, %c2_i32_190 : i32
    %583 = tpu.assume_multiple %582, 2 : i32
    %584 = arith.index_cast %583 : i32 to index
    %c0_191 = arith.constant 0 : index
    %585 = vector.load %arg12[%584, %c0_191] : memref<20x128xf32, #tpu.memory_space<vmem>>, vector<2x128xf32>
    %c2_i32_192 = arith.constant 2 : i32
    %586 = arith.muli %581, %c2_i32_192 : i32
    %587 = tpu.assume_multiple %586, 2 : i32
    %588 = arith.index_cast %587 : i32 to index
    %c0_193 = arith.constant 0 : index
    %589 = vector.load %arg13[%588, %c0_193] : memref<20x128xf32, #tpu.memory_space<vmem>>, vector<2x128xf32>
    %c0_194 = arith.constant 0 : index
    %c0_195 = arith.constant 0 : index
    %590 = vector.load %arg2[%c0_194, %c0_195] : memref<32x128xbf16, #tpu.memory_space<vmem>>, vector<32x128xbf16>
    %c0_196 = arith.constant 0 : index
    %c0_197 = arith.constant 0 : index
    %591 = vector.load %arg4[%c0_196, %c0_197] : memref<1x32xf32, #tpu.memory_space<vmem>>, vector<1x32xf32>
    %592 = arith.truncf %540 : vector<2x32xf32> to vector<2x32xbf16>
    %cst_198 = arith.constant dense<0.000000e+00> : vector<2x128xf32>
    %593 = tpu.matmul %592, %590, %cst_198 {dimension_numbers = #tpu.dot_dimension_numbers<[1], [0], [0], [1], [0, 0, 1, 1], [], []>} : vector<2x32xbf16>, vector<32x128xbf16>, vector<2x128xf32> -> vector<2x128xf32>
    %594 = vector.extract_strided_slice %585 {offsets = [0, 0], sizes = [2, 32], strides = [1, 1]} : vector<2x128xf32> to vector<2x32xf32>
    %595 = vector.extract_strided_slice %593 {offsets = [0, 0], sizes = [2, 32], strides = [1, 1]} : vector<2x128xf32> to vector<2x32xf32>
    %596 = arith.addf %594, %595 : vector<2x32xf32>
    %597 = arith.negf %596 : vector<2x32xf32>
    %598 = math.exp %597 : vector<2x32xf32>
    %cst_199 = arith.constant 1.000000e+00 : f32
    %599 = vector.broadcast %cst_199 : f32 to vector<2x32xf32>
    %600 = arith.addf %599, %598 : vector<2x32xf32>
    %601 = arith.divf %599, %600 : vector<2x32xf32>
    %602 = vector.extract_strided_slice %585 {offsets = [0, 32], sizes = [2, 32], strides = [1, 1]} : vector<2x128xf32> to vector<2x32xf32>
    %603 = vector.extract_strided_slice %593 {offsets = [0, 32], sizes = [2, 32], strides = [1, 1]} : vector<2x128xf32> to vector<2x32xf32>
    %604 = arith.addf %602, %603 : vector<2x32xf32>
    %605 = arith.negf %604 : vector<2x32xf32>
    %606 = math.exp %605 : vector<2x32xf32>
    %cst_200 = arith.constant 1.000000e+00 : f32
    %607 = vector.broadcast %cst_200 : f32 to vector<2x32xf32>
    %608 = arith.addf %607, %606 : vector<2x32xf32>
    %609 = arith.divf %607, %608 : vector<2x32xf32>
    %610 = vector.extract_strided_slice %585 {offsets = [0, 64], sizes = [2, 32], strides = [1, 1]} : vector<2x128xf32> to vector<2x32xf32>
    %611 = vector.extract_strided_slice %593 {offsets = [0, 64], sizes = [2, 32], strides = [1, 1]} : vector<2x128xf32> to vector<2x32xf32>
    %612 = vector.broadcast %591 : vector<1x32xf32> to vector<2x32xf32>
    %613 = arith.addf %611, %612 : vector<2x32xf32>
    %614 = arith.mulf %601, %613 : vector<2x32xf32>
    %615 = arith.addf %610, %614 : vector<2x32xf32>
    %616 = math.tanh %615 : vector<2x32xf32>
    %cst_201 = arith.constant 1.000000e+00 : f32
    %617 = vector.broadcast %cst_201 : f32 to vector<2x32xf32>
    %618 = arith.subf %617, %609 : vector<2x32xf32>
    %619 = arith.mulf %618, %616 : vector<2x32xf32>
    %620 = arith.mulf %609, %540 : vector<2x32xf32>
    %621 = arith.addf %619, %620 : vector<2x32xf32>
    %c0_202 = arith.constant 0 : index
    %c0_203 = arith.constant 0 : index
    %622 = vector.load %arg6[%c0_202, %c0_203] : memref<32x128xbf16, #tpu.memory_space<vmem>>, vector<32x128xbf16>
    %c0_204 = arith.constant 0 : index
    %c0_205 = arith.constant 0 : index
    %623 = vector.load %arg8[%c0_204, %c0_205] : memref<1x32xf32, #tpu.memory_space<vmem>>, vector<1x32xf32>
    %624 = arith.truncf %572 : vector<2x32xf32> to vector<2x32xbf16>
    %cst_206 = arith.constant dense<0.000000e+00> : vector<2x128xf32>
    %625 = tpu.matmul %624, %622, %cst_206 {dimension_numbers = #tpu.dot_dimension_numbers<[1], [0], [0], [1], [0, 0, 1, 1], [], []>} : vector<2x32xbf16>, vector<32x128xbf16>, vector<2x128xf32> -> vector<2x128xf32>
    %626 = vector.extract_strided_slice %589 {offsets = [0, 0], sizes = [2, 32], strides = [1, 1]} : vector<2x128xf32> to vector<2x32xf32>
    %627 = vector.extract_strided_slice %625 {offsets = [0, 0], sizes = [2, 32], strides = [1, 1]} : vector<2x128xf32> to vector<2x32xf32>
    %628 = arith.addf %626, %627 : vector<2x32xf32>
    %629 = arith.negf %628 : vector<2x32xf32>
    %630 = math.exp %629 : vector<2x32xf32>
    %cst_207 = arith.constant 1.000000e+00 : f32
    %631 = vector.broadcast %cst_207 : f32 to vector<2x32xf32>
    %632 = arith.addf %631, %630 : vector<2x32xf32>
    %633 = arith.divf %631, %632 : vector<2x32xf32>
    %634 = vector.extract_strided_slice %589 {offsets = [0, 32], sizes = [2, 32], strides = [1, 1]} : vector<2x128xf32> to vector<2x32xf32>
    %635 = vector.extract_strided_slice %625 {offsets = [0, 32], sizes = [2, 32], strides = [1, 1]} : vector<2x128xf32> to vector<2x32xf32>
    %636 = arith.addf %634, %635 : vector<2x32xf32>
    %637 = arith.negf %636 : vector<2x32xf32>
    %638 = math.exp %637 : vector<2x32xf32>
    %cst_208 = arith.constant 1.000000e+00 : f32
    %639 = vector.broadcast %cst_208 : f32 to vector<2x32xf32>
    %640 = arith.addf %639, %638 : vector<2x32xf32>
    %641 = arith.divf %639, %640 : vector<2x32xf32>
    %642 = vector.extract_strided_slice %589 {offsets = [0, 64], sizes = [2, 32], strides = [1, 1]} : vector<2x128xf32> to vector<2x32xf32>
    %643 = vector.extract_strided_slice %625 {offsets = [0, 64], sizes = [2, 32], strides = [1, 1]} : vector<2x128xf32> to vector<2x32xf32>
    %644 = vector.broadcast %623 : vector<1x32xf32> to vector<2x32xf32>
    %645 = arith.addf %643, %644 : vector<2x32xf32>
    %646 = arith.mulf %633, %645 : vector<2x32xf32>
    %647 = arith.addf %642, %646 : vector<2x32xf32>
    %648 = math.tanh %647 : vector<2x32xf32>
    %cst_209 = arith.constant 1.000000e+00 : f32
    %649 = vector.broadcast %cst_209 : f32 to vector<2x32xf32>
    %650 = arith.subf %649, %641 : vector<2x32xf32>
    %651 = arith.mulf %650, %648 : vector<2x32xf32>
    %652 = arith.mulf %641, %572 : vector<2x32xf32>
    %653 = arith.addf %651, %652 : vector<2x32xf32>
    %654 = arith.index_cast %c7_i32 : i32 to index
    %c0_210 = arith.constant 0 : index
    %c0_211 = arith.constant 0 : index
    %655 = vector.load %arg9[%654, %c0_210, %c0_211] : memref<10x2x32xf32, #tpu.memory_space<vmem>>, vector<1x2x32xf32>
    %656 = vector.shape_cast %655 : vector<1x2x32xf32> to vector<2x32xf32>
    %657 = vector.shape_cast %621 : vector<2x32xf32> to vector<1x2x32xf32>
    tpu.vector_store %arg9[%654, %c0_210, %c0_211], %657 {strides = array<i32>} : memref<10x2x32xf32, #tpu.memory_space<vmem>>, vector<1x2x32xf32>,
    %658 = arith.index_cast %581 : i32 to index
    %c0_212 = arith.constant 0 : index
    %c0_213 = arith.constant 0 : index
    %659 = vector.load %arg10[%658, %c0_212, %c0_213] : memref<10x2x32xf32, #tpu.memory_space<vmem>>, vector<1x2x32xf32>
    %660 = vector.shape_cast %659 : vector<1x2x32xf32> to vector<2x32xf32>
    %661 = vector.shape_cast %653 : vector<2x32xf32> to vector<1x2x32xf32>
    tpu.vector_store %arg10[%658, %c0_212, %c0_213], %661 {strides = array<i32>} : memref<10x2x32xf32, #tpu.memory_space<vmem>>, vector<1x2x32xf32>,
    %c8_i32 = arith.constant 8 : i32
    %c9_i32_214 = arith.constant 9 : i32
    %662 = arith.subi %c9_i32_214, %c8_i32 : i32
    %c2_i32_215 = arith.constant 2 : i32
    %663 = arith.muli %c8_i32, %c2_i32_215 : i32
    %664 = tpu.assume_multiple %663, 2 : i32
    %665 = arith.index_cast %664 : i32 to index
    %c0_216 = arith.constant 0 : index
    %666 = vector.load %arg12[%665, %c0_216] : memref<20x128xf32, #tpu.memory_space<vmem>>, vector<2x128xf32>
    %c2_i32_217 = arith.constant 2 : i32
    %667 = arith.muli %662, %c2_i32_217 : i32
    %668 = tpu.assume_multiple %667, 2 : i32
    %669 = arith.index_cast %668 : i32 to index
    %c0_218 = arith.constant 0 : index
    %670 = vector.load %arg13[%669, %c0_218] : memref<20x128xf32, #tpu.memory_space<vmem>>, vector<2x128xf32>
    %c0_219 = arith.constant 0 : index
    %c0_220 = arith.constant 0 : index
    %671 = vector.load %arg2[%c0_219, %c0_220] : memref<32x128xbf16, #tpu.memory_space<vmem>>, vector<32x128xbf16>
    %c0_221 = arith.constant 0 : index
    %c0_222 = arith.constant 0 : index
    %672 = vector.load %arg4[%c0_221, %c0_222] : memref<1x32xf32, #tpu.memory_space<vmem>>, vector<1x32xf32>
    %673 = arith.truncf %621 : vector<2x32xf32> to vector<2x32xbf16>
    %cst_223 = arith.constant dense<0.000000e+00> : vector<2x128xf32>
    %674 = tpu.matmul %673, %671, %cst_223 {dimension_numbers = #tpu.dot_dimension_numbers<[1], [0], [0], [1], [0, 0, 1, 1], [], []>} : vector<2x32xbf16>, vector<32x128xbf16>, vector<2x128xf32> -> vector<2x128xf32>
    %675 = vector.extract_strided_slice %666 {offsets = [0, 0], sizes = [2, 32], strides = [1, 1]} : vector<2x128xf32> to vector<2x32xf32>
    %676 = vector.extract_strided_slice %674 {offsets = [0, 0], sizes = [2, 32], strides = [1, 1]} : vector<2x128xf32> to vector<2x32xf32>
    %677 = arith.addf %675, %676 : vector<2x32xf32>
    %678 = arith.negf %677 : vector<2x32xf32>
    %679 = math.exp %678 : vector<2x32xf32>
    %cst_224 = arith.constant 1.000000e+00 : f32
    %680 = vector.broadcast %cst_224 : f32 to vector<2x32xf32>
    %681 = arith.addf %680, %679 : vector<2x32xf32>
    %682 = arith.divf %680, %681 : vector<2x32xf32>
    %683 = vector.extract_strided_slice %666 {offsets = [0, 32], sizes = [2, 32], strides = [1, 1]} : vector<2x128xf32> to vector<2x32xf32>
    %684 = vector.extract_strided_slice %674 {offsets = [0, 32], sizes = [2, 32], strides = [1, 1]} : vector<2x128xf32> to vector<2x32xf32>
    %685 = arith.addf %683, %684 : vector<2x32xf32>
    %686 = arith.negf %685 : vector<2x32xf32>
    %687 = math.exp %686 : vector<2x32xf32>
    %cst_225 = arith.constant 1.000000e+00 : f32
    %688 = vector.broadcast %cst_225 : f32 to vector<2x32xf32>
    %689 = arith.addf %688, %687 : vector<2x32xf32>
    %690 = arith.divf %688, %689 : vector<2x32xf32>
    %691 = vector.extract_strided_slice %666 {offsets = [0, 64], sizes = [2, 32], strides = [1, 1]} : vector<2x128xf32> to vector<2x32xf32>
    %692 = vector.extract_strided_slice %674 {offsets = [0, 64], sizes = [2, 32], strides = [1, 1]} : vector<2x128xf32> to vector<2x32xf32>
    %693 = vector.broadcast %672 : vector<1x32xf32> to vector<2x32xf32>
    %694 = arith.addf %692, %693 : vector<2x32xf32>
    %695 = arith.mulf %682, %694 : vector<2x32xf32>
    %696 = arith.addf %691, %695 : vector<2x32xf32>
    %697 = math.tanh %696 : vector<2x32xf32>
    %cst_226 = arith.constant 1.000000e+00 : f32
    %698 = vector.broadcast %cst_226 : f32 to vector<2x32xf32>
    %699 = arith.subf %698, %690 : vector<2x32xf32>
    %700 = arith.mulf %699, %697 : vector<2x32xf32>
    %701 = arith.mulf %690, %621 : vector<2x32xf32>
    %702 = arith.addf %700, %701 : vector<2x32xf32>
    %c0_227 = arith.constant 0 : index
    %c0_228 = arith.constant 0 : index
    %703 = vector.load %arg6[%c0_227, %c0_228] : memref<32x128xbf16, #tpu.memory_space<vmem>>, vector<32x128xbf16>
    %c0_229 = arith.constant 0 : index
    %c0_230 = arith.constant 0 : index
    %704 = vector.load %arg8[%c0_229, %c0_230] : memref<1x32xf32, #tpu.memory_space<vmem>>, vector<1x32xf32>
    %705 = arith.truncf %653 : vector<2x32xf32> to vector<2x32xbf16>
    %cst_231 = arith.constant dense<0.000000e+00> : vector<2x128xf32>
    %706 = tpu.matmul %705, %703, %cst_231 {dimension_numbers = #tpu.dot_dimension_numbers<[1], [0], [0], [1], [0, 0, 1, 1], [], []>} : vector<2x32xbf16>, vector<32x128xbf16>, vector<2x128xf32> -> vector<2x128xf32>
    %707 = vector.extract_strided_slice %670 {offsets = [0, 0], sizes = [2, 32], strides = [1, 1]} : vector<2x128xf32> to vector<2x32xf32>
    %708 = vector.extract_strided_slice %706 {offsets = [0, 0], sizes = [2, 32], strides = [1, 1]} : vector<2x128xf32> to vector<2x32xf32>
    %709 = arith.addf %707, %708 : vector<2x32xf32>
    %710 = arith.negf %709 : vector<2x32xf32>
    %711 = math.exp %710 : vector<2x32xf32>
    %cst_232 = arith.constant 1.000000e+00 : f32
    %712 = vector.broadcast %cst_232 : f32 to vector<2x32xf32>
    %713 = arith.addf %712, %711 : vector<2x32xf32>
    %714 = arith.divf %712, %713 : vector<2x32xf32>
    %715 = vector.extract_strided_slice %670 {offsets = [0, 32], sizes = [2, 32], strides = [1, 1]} : vector<2x128xf32> to vector<2x32xf32>
    %716 = vector.extract_strided_slice %706 {offsets = [0, 32], sizes = [2, 32], strides = [1, 1]} : vector<2x128xf32> to vector<2x32xf32>
    %717 = arith.addf %715, %716 : vector<2x32xf32>
    %718 = arith.negf %717 : vector<2x32xf32>
    %719 = math.exp %718 : vector<2x32xf32>
    %cst_233 = arith.constant 1.000000e+00 : f32
    %720 = vector.broadcast %cst_233 : f32 to vector<2x32xf32>
    %721 = arith.addf %720, %719 : vector<2x32xf32>
    %722 = arith.divf %720, %721 : vector<2x32xf32>
    %723 = vector.extract_strided_slice %670 {offsets = [0, 64], sizes = [2, 32], strides = [1, 1]} : vector<2x128xf32> to vector<2x32xf32>
    %724 = vector.extract_strided_slice %706 {offsets = [0, 64], sizes = [2, 32], strides = [1, 1]} : vector<2x128xf32> to vector<2x32xf32>
    %725 = vector.broadcast %704 : vector<1x32xf32> to vector<2x32xf32>
    %726 = arith.addf %724, %725 : vector<2x32xf32>
    %727 = arith.mulf %714, %726 : vector<2x32xf32>
    %728 = arith.addf %723, %727 : vector<2x32xf32>
    %729 = math.tanh %728 : vector<2x32xf32>
    %cst_234 = arith.constant 1.000000e+00 : f32
    %730 = vector.broadcast %cst_234 : f32 to vector<2x32xf32>
    %731 = arith.subf %730, %722 : vector<2x32xf32>
    %732 = arith.mulf %731, %729 : vector<2x32xf32>
    %733 = arith.mulf %722, %653 : vector<2x32xf32>
    %734 = arith.addf %732, %733 : vector<2x32xf32>
    %735 = arith.index_cast %c8_i32 : i32 to index
    %c0_235 = arith.constant 0 : index
    %c0_236 = arith.constant 0 : index
    %736 = vector.load %arg9[%735, %c0_235, %c0_236] : memref<10x2x32xf32, #tpu.memory_space<vmem>>, vector<1x2x32xf32>
    %737 = vector.shape_cast %736 : vector<1x2x32xf32> to vector<2x32xf32>
    %738 = vector.shape_cast %702 : vector<2x32xf32> to vector<1x2x32xf32>
    tpu.vector_store %arg9[%735, %c0_235, %c0_236], %738 {strides = array<i32>} : memref<10x2x32xf32, #tpu.memory_space<vmem>>, vector<1x2x32xf32>,
    %739 = arith.index_cast %662 : i32 to index
    %c0_237 = arith.constant 0 : index
    %c0_238 = arith.constant 0 : index
    %740 = vector.load %arg10[%739, %c0_237, %c0_238] : memref<10x2x32xf32, #tpu.memory_space<vmem>>, vector<1x2x32xf32>
    %741 = vector.shape_cast %740 : vector<1x2x32xf32> to vector<2x32xf32>
    %742 = vector.shape_cast %734 : vector<2x32xf32> to vector<1x2x32xf32>
    tpu.vector_store %arg10[%739, %c0_237, %c0_238], %742 {strides = array<i32>} : memref<10x2x32xf32, #tpu.memory_space<vmem>>, vector<1x2x32xf32>,
    %c9_i32_239 = arith.constant 9 : i32
    %c9_i32_240 = arith.constant 9 : i32
    %743 = arith.subi %c9_i32_240, %c9_i32_239 : i32
    %c2_i32_241 = arith.constant 2 : i32
    %744 = arith.muli %c9_i32_239, %c2_i32_241 : i32
    %745 = tpu.assume_multiple %744, 2 : i32
    %746 = arith.index_cast %745 : i32 to index
    %c0_242 = arith.constant 0 : index
    %747 = vector.load %arg12[%746, %c0_242] : memref<20x128xf32, #tpu.memory_space<vmem>>, vector<2x128xf32>
    %c2_i32_243 = arith.constant 2 : i32
    %748 = arith.muli %743, %c2_i32_243 : i32
    %749 = tpu.assume_multiple %748, 2 : i32
    %750 = arith.index_cast %749 : i32 to index
    %c0_244 = arith.constant 0 : index
    %751 = vector.load %arg13[%750, %c0_244] : memref<20x128xf32, #tpu.memory_space<vmem>>, vector<2x128xf32>
    %c0_245 = arith.constant 0 : index
    %c0_246 = arith.constant 0 : index
    %752 = vector.load %arg2[%c0_245, %c0_246] : memref<32x128xbf16, #tpu.memory_space<vmem>>, vector<32x128xbf16>
    %c0_247 = arith.constant 0 : index
    %c0_248 = arith.constant 0 : index
    %753 = vector.load %arg4[%c0_247, %c0_248] : memref<1x32xf32, #tpu.memory_space<vmem>>, vector<1x32xf32>
    %754 = arith.truncf %702 : vector<2x32xf32> to vector<2x32xbf16>
    %cst_249 = arith.constant dense<0.000000e+00> : vector<2x128xf32>
    %755 = tpu.matmul %754, %752, %cst_249 {dimension_numbers = #tpu.dot_dimension_numbers<[1], [0], [0], [1], [0, 0, 1, 1], [], []>} : vector<2x32xbf16>, vector<32x128xbf16>, vector<2x128xf32> -> vector<2x128xf32>
    %756 = vector.extract_strided_slice %747 {offsets = [0, 0], sizes = [2, 32], strides = [1, 1]} : vector<2x128xf32> to vector<2x32xf32>
    %757 = vector.extract_strided_slice %755 {offsets = [0, 0], sizes = [2, 32], strides = [1, 1]} : vector<2x128xf32> to vector<2x32xf32>
    %758 = arith.addf %756, %757 : vector<2x32xf32>
    %759 = arith.negf %758 : vector<2x32xf32>
    %760 = math.exp %759 : vector<2x32xf32>
    %cst_250 = arith.constant 1.000000e+00 : f32
    %761 = vector.broadcast %cst_250 : f32 to vector<2x32xf32>
    %762 = arith.addf %761, %760 : vector<2x32xf32>
    %763 = arith.divf %761, %762 : vector<2x32xf32>
    %764 = vector.extract_strided_slice %747 {offsets = [0, 32], sizes = [2, 32], strides = [1, 1]} : vector<2x128xf32> to vector<2x32xf32>
    %765 = vector.extract_strided_slice %755 {offsets = [0, 32], sizes = [2, 32], strides = [1, 1]} : vector<2x128xf32> to vector<2x32xf32>
    %766 = arith.addf %764, %765 : vector<2x32xf32>
    %767 = arith.negf %766 : vector<2x32xf32>
    %768 = math.exp %767 : vector<2x32xf32>
    %cst_251 = arith.constant 1.000000e+00 : f32
    %769 = vector.broadcast %cst_251 : f32 to vector<2x32xf32>
    %770 = arith.addf %769, %768 : vector<2x32xf32>
    %771 = arith.divf %769, %770 : vector<2x32xf32>
    %772 = vector.extract_strided_slice %747 {offsets = [0, 64], sizes = [2, 32], strides = [1, 1]} : vector<2x128xf32> to vector<2x32xf32>
    %773 = vector.extract_strided_slice %755 {offsets = [0, 64], sizes = [2, 32], strides = [1, 1]} : vector<2x128xf32> to vector<2x32xf32>
    %774 = vector.broadcast %753 : vector<1x32xf32> to vector<2x32xf32>
    %775 = arith.addf %773, %774 : vector<2x32xf32>
    %776 = arith.mulf %763, %775 : vector<2x32xf32>
    %777 = arith.addf %772, %776 : vector<2x32xf32>
    %778 = math.tanh %777 : vector<2x32xf32>
    %cst_252 = arith.constant 1.000000e+00 : f32
    %779 = vector.broadcast %cst_252 : f32 to vector<2x32xf32>
    %780 = arith.subf %779, %771 : vector<2x32xf32>
    %781 = arith.mulf %780, %778 : vector<2x32xf32>
    %782 = arith.mulf %771, %702 : vector<2x32xf32>
    %783 = arith.addf %781, %782 : vector<2x32xf32>
    %c0_253 = arith.constant 0 : index
    %c0_254 = arith.constant 0 : index
    %784 = vector.load %arg6[%c0_253, %c0_254] : memref<32x128xbf16, #tpu.memory_space<vmem>>, vector<32x128xbf16>
    %c0_255 = arith.constant 0 : index
    %c0_256 = arith.constant 0 : index
    %785 = vector.load %arg8[%c0_255, %c0_256] : memref<1x32xf32, #tpu.memory_space<vmem>>, vector<1x32xf32>
    %786 = arith.truncf %734 : vector<2x32xf32> to vector<2x32xbf16>
    %cst_257 = arith.constant dense<0.000000e+00> : vector<2x128xf32>
    %787 = tpu.matmul %786, %784, %cst_257 {dimension_numbers = #tpu.dot_dimension_numbers<[1], [0], [0], [1], [0, 0, 1, 1], [], []>} : vector<2x32xbf16>, vector<32x128xbf16>, vector<2x128xf32> -> vector<2x128xf32>
    %788 = vector.extract_strided_slice %751 {offsets = [0, 0], sizes = [2, 32], strides = [1, 1]} : vector<2x128xf32> to vector<2x32xf32>
    %789 = vector.extract_strided_slice %787 {offsets = [0, 0], sizes = [2, 32], strides = [1, 1]} : vector<2x128xf32> to vector<2x32xf32>
    %790 = arith.addf %788, %789 : vector<2x32xf32>
    %791 = arith.negf %790 : vector<2x32xf32>
    %792 = math.exp %791 : vector<2x32xf32>
    %cst_258 = arith.constant 1.000000e+00 : f32
    %793 = vector.broadcast %cst_258 : f32 to vector<2x32xf32>
    %794 = arith.addf %793, %792 : vector<2x32xf32>
    %795 = arith.divf %793, %794 : vector<2x32xf32>
    %796 = vector.extract_strided_slice %751 {offsets = [0, 32], sizes = [2, 32], strides = [1, 1]} : vector<2x128xf32> to vector<2x32xf32>
    %797 = vector.extract_strided_slice %787 {offsets = [0, 32], sizes = [2, 32], strides = [1, 1]} : vector<2x128xf32> to vector<2x32xf32>
    %798 = arith.addf %796, %797 : vector<2x32xf32>
    %799 = arith.negf %798 : vector<2x32xf32>
    %800 = math.exp %799 : vector<2x32xf32>
    %cst_259 = arith.constant 1.000000e+00 : f32
    %801 = vector.broadcast %cst_259 : f32 to vector<2x32xf32>
    %802 = arith.addf %801, %800 : vector<2x32xf32>
    %803 = arith.divf %801, %802 : vector<2x32xf32>
    %804 = vector.extract_strided_slice %751 {offsets = [0, 64], sizes = [2, 32], strides = [1, 1]} : vector<2x128xf32> to vector<2x32xf32>
    %805 = vector.extract_strided_slice %787 {offsets = [0, 64], sizes = [2, 32], strides = [1, 1]} : vector<2x128xf32> to vector<2x32xf32>
    %806 = vector.broadcast %785 : vector<1x32xf32> to vector<2x32xf32>
    %807 = arith.addf %805, %806 : vector<2x32xf32>
    %808 = arith.mulf %795, %807 : vector<2x32xf32>
    %809 = arith.addf %804, %808 : vector<2x32xf32>
    %810 = math.tanh %809 : vector<2x32xf32>
    %cst_260 = arith.constant 1.000000e+00 : f32
    %811 = vector.broadcast %cst_260 : f32 to vector<2x32xf32>
    %812 = arith.subf %811, %803 : vector<2x32xf32>
    %813 = arith.mulf %812, %810 : vector<2x32xf32>
    %814 = arith.mulf %803, %734 : vector<2x32xf32>
    %815 = arith.addf %813, %814 : vector<2x32xf32>
    %816 = arith.index_cast %c9_i32_239 : i32 to index
    %c0_261 = arith.constant 0 : index
    %c0_262 = arith.constant 0 : index
    %817 = vector.load %arg9[%816, %c0_261, %c0_262] : memref<10x2x32xf32, #tpu.memory_space<vmem>>, vector<1x2x32xf32>
    %818 = vector.shape_cast %817 : vector<1x2x32xf32> to vector<2x32xf32>
    %819 = vector.shape_cast %783 : vector<2x32xf32> to vector<1x2x32xf32>
    tpu.vector_store %arg9[%816, %c0_261, %c0_262], %819 {strides = array<i32>} : memref<10x2x32xf32, #tpu.memory_space<vmem>>, vector<1x2x32xf32>,
    %820 = arith.index_cast %743 : i32 to index
    %c0_263 = arith.constant 0 : index
    %c0_264 = arith.constant 0 : index
    %821 = vector.load %arg10[%820, %c0_263, %c0_264] : memref<10x2x32xf32, #tpu.memory_space<vmem>>, vector<1x2x32xf32>
    %822 = vector.shape_cast %821 : vector<1x2x32xf32> to vector<2x32xf32>
    %823 = vector.shape_cast %815 : vector<2x32xf32> to vector<1x2x32xf32>
    tpu.vector_store %arg10[%820, %c0_263, %c0_264], %823 {strides = array<i32>} : memref<10x2x32xf32, #tpu.memory_space<vmem>>, vector<1x2x32xf32>,
    %c10_i32 = arith.constant 10 : i32
    %c0_265 = arith.constant 0 : index
    %c0_266 = arith.constant 0 : index
    %824 = vector.load %arg11[%c0_265, %c0_266] : memref<2x64xf32, #tpu.memory_space<vmem>>, vector<2x32xf32>
    tpu.vector_store %arg11[%c0_265, %c0_266], %783 {strides = array<i32>} : memref<2x64xf32, #tpu.memory_space<vmem>>, vector<2x32xf32>,
    %c0_267 = arith.constant 0 : index
    %c32 = arith.constant 32 : index
    %825 = vector.load %arg11[%c0_267, %c32] : memref<2x64xf32, #tpu.memory_space<vmem>>, vector<2x32xf32>
    tpu.vector_store %arg11[%c0_267, %c32], %815 {strides = array<i32>} : memref<2x64xf32, #tpu.memory_space<vmem>>, vector<2x32xf32>,
    return
  }
}

module attributes {stable_mosaic.version = 11 : i64} {
  func.func @_decoder_kernel(%arg0: memref<8xi32, #tpu.memory_space<smem>>, %arg1: memref<8x2x16xf32, #tpu.memory_space<vmem>>, %arg2: memref<2x64xf32, #tpu.memory_space<vmem>>, %arg3: memref<10x128xbf16, #tpu.memory_space<vmem>>, %arg4: memref<64x32xbf16, #tpu.memory_space<vmem>>, %arg5: memref<1x32xf32, #tpu.memory_space<vmem>>, %arg6: memref<32x32xbf16, #tpu.memory_space<vmem>>, %arg7: memref<64x32xbf16, #tpu.memory_space<vmem>>, %arg8: memref<1x32xf32, #tpu.memory_space<vmem>>, %arg9: memref<1x32xf32, #tpu.memory_space<vmem>>, %arg10: memref<24x16xbf16, #tpu.memory_space<vmem>>, %arg11: memref<112x128xbf16, #tpu.memory_space<vmem>>, %arg12: memref<1x128xf32, #tpu.memory_space<vmem>>, %arg13: memref<80x128xbf16, #tpu.memory_space<vmem>>, %arg14: memref<32x128xbf16, #tpu.memory_space<vmem>>, %arg15: memref<1x128xf32, #tpu.memory_space<vmem>>, %arg16: memref<1x32xf32, #tpu.memory_space<vmem>>, %arg17: memref<32x128xbf16, #tpu.memory_space<vmem>>, %arg18: memref<32x128xbf16, #tpu.memory_space<vmem>>, %arg19: memref<1x128xf32, #tpu.memory_space<vmem>>, %arg20: memref<1x32xf32, #tpu.memory_space<vmem>>, %arg21: memref<8x2x128xf32, #tpu.memory_space<vmem>>, %arg22: memref<2x10x32xf32, #tpu.memory_space<vmem>>, %arg23: memref<2x16xf32, #tpu.memory_space<vmem>>) attributes {dimension_semantics = [], scalar_prefetch = 0 : i64, scratch_operands = 2 : i64, tpu.core_type = #tpu.core_type<tc>} {
    %cst = arith.constant 0.000000e+00 : f32
    %0 = vector.broadcast %cst : f32 to vector<8x2x128xf32>
    %c0 = arith.constant 0 : index
    %c0_0 = arith.constant 0 : index
    %c0_1 = arith.constant 0 : index
    %1 = vector.load %arg21[%c0, %c0_0, %c0_1] : memref<8x2x128xf32, #tpu.memory_space<vmem>>, vector<8x2x128xf32>
    tpu.vector_store %arg21[%c0, %c0_0, %c0_1], %0 {strides = array<i32>} : memref<8x2x128xf32, #tpu.memory_space<vmem>>, vector<8x2x128xf32>,
    %c0_2 = arith.constant 0 : index
    %c0_3 = arith.constant 0 : index
    %2 = vector.load %arg2[%c0_2, %c0_3] : memref<2x64xf32, #tpu.memory_space<vmem>>, vector<2x64xf32>
    %3 = arith.truncf %2 : vector<2x64xf32> to vector<2x64xbf16>
    %c0_4 = arith.constant 0 : index
    %c0_5 = arith.constant 0 : index
    %4 = vector.load %arg4[%c0_4, %c0_5] : memref<64x32xbf16, #tpu.memory_space<vmem>>, vector<64x32xbf16>
    %cst_6 = arith.constant dense<0.000000e+00> : vector<2x32xf32>
    %5 = tpu.matmul %3, %4, %cst_6 {dimension_numbers = #tpu.dot_dimension_numbers<[1], [0], [0], [1], [0, 0, 1, 1], [], []>} : vector<2x64xbf16>, vector<64x32xbf16>, vector<2x32xf32> -> vector<2x32xf32>
    %c0_7 = arith.constant 0 : index
    %c0_8 = arith.constant 0 : index
    %6 = vector.load %arg5[%c0_7, %c0_8] : memref<1x32xf32, #tpu.memory_space<vmem>>, vector<1x32xf32>
    %7 = vector.broadcast %6 : vector<1x32xf32> to vector<2x32xf32>
    %8 = arith.addf %5, %7 : vector<2x32xf32>
    %9 = math.tanh %8 : vector<2x32xf32>
    %c0_9 = arith.constant 0 : index
    %c0_10 = arith.constant 0 : index
    %10 = vector.load %arg3[%c0_9, %c0_10] : memref<10x128xbf16, #tpu.memory_space<vmem>>, vector<10x64xbf16>
    %c0_11 = arith.constant 0 : index
    %c0_12 = arith.constant 0 : index
    %11 = vector.load %arg7[%c0_11, %c0_12] : memref<64x32xbf16, #tpu.memory_space<vmem>>, vector<64x32xbf16>
    %cst_13 = arith.constant dense<0.000000e+00> : vector<10x32xf32>
    %12 = tpu.matmul %10, %11, %cst_13 {dimension_numbers = #tpu.dot_dimension_numbers<[1], [0], [0], [1], [0, 0, 1, 1], [], []>} : vector<10x64xbf16>, vector<64x32xbf16>, vector<10x32xf32> -> vector<10x32xf32>
    %c0_14 = arith.constant 0 : index
    %c0_15 = arith.constant 0 : index
    %c0_16 = arith.constant 0 : index
    %13 = vector.load %arg22[%c0_14, %c0_15, %c0_16] : memref<2x10x32xf32, #tpu.memory_space<vmem>>, vector<1x10x32xf32>
    %14 = vector.shape_cast %13 : vector<1x10x32xf32> to vector<10x32xf32>
    %15 = vector.shape_cast %12 : vector<10x32xf32> to vector<1x10x32xf32>
    tpu.vector_store %arg22[%c0_14, %c0_15, %c0_16], %15 {strides = array<i32>} : memref<2x10x32xf32, #tpu.memory_space<vmem>>, vector<1x10x32xf32>,
    %c0_17 = arith.constant 0 : index
    %c64 = arith.constant 64 : index
    %16 = vector.load %arg3[%c0_17, %c64] : memref<10x128xbf16, #tpu.memory_space<vmem>>, vector<10x64xbf16>
    %c0_18 = arith.constant 0 : index
    %c0_19 = arith.constant 0 : index
    %17 = vector.load %arg7[%c0_18, %c0_19] : memref<64x32xbf16, #tpu.memory_space<vmem>>, vector<64x32xbf16>
    %cst_20 = arith.constant dense<0.000000e+00> : vector<10x32xf32>
    %18 = tpu.matmul %16, %17, %cst_20 {dimension_numbers = #tpu.dot_dimension_numbers<[1], [0], [0], [1], [0, 0, 1, 1], [], []>} : vector<10x64xbf16>, vector<64x32xbf16>, vector<10x32xf32> -> vector<10x32xf32>
    %c1 = arith.constant 1 : index
    %c0_21 = arith.constant 0 : index
    %c0_22 = arith.constant 0 : index
    %19 = vector.load %arg22[%c1, %c0_21, %c0_22] : memref<2x10x32xf32, #tpu.memory_space<vmem>>, vector<1x10x32xf32>
    %20 = vector.shape_cast %19 : vector<1x10x32xf32> to vector<10x32xf32>
    %21 = vector.shape_cast %18 : vector<10x32xf32> to vector<1x10x32xf32>
    tpu.vector_store %arg22[%c1, %c0_21, %c0_22], %21 {strides = array<i32>} : memref<2x10x32xf32, #tpu.memory_space<vmem>>, vector<1x10x32xf32>,
    %c0_23 = arith.constant 0 : index
    %c0_24 = arith.constant 0 : index
    %c0_25 = arith.constant 0 : index
    %22 = vector.load %arg22[%c0_23, %c0_24, %c0_25] : memref<2x10x32xf32, #tpu.memory_space<vmem>>, vector<2x10x32xf32>
    %c0_26 = arith.constant 0 : index
    %c0_27 = arith.constant 0 : index
    %23 = vector.load %arg8[%c0_26, %c0_27] : memref<1x32xf32, #tpu.memory_space<vmem>>, vector<1x32xf32>
    %24 = vector.shape_cast %23 : vector<1x32xf32> to vector<1x1x32xf32>
    %25 = vector.broadcast %24 : vector<1x1x32xf32> to vector<2x10x32xf32>
    %26 = arith.addf %22, %25 : vector<2x10x32xf32>
    %27 = tpu.iota {dimensions = array<i32: 1>} : vector<2x24xi32>
    %28 = tpu.iota {dimensions = array<i32: 0>} : vector<2x64xi32>
    %c0_28 = arith.constant 0 : index
    %c0_29 = arith.constant 0 : index
    %c0_30 = arith.constant 0 : index
    %29 = vector.load %arg1[%c0_28, %c0_29, %c0_30] : memref<8x2x16xf32, #tpu.memory_space<vmem>>, vector<1x2x16xf32>
    %30 = vector.shape_cast %29 : vector<1x2x16xf32> to vector<2x16xf32>
    %c1_i32 = arith.constant 1 : i32
    %31 = arith.truncf %9 : vector<2x32xf32> to vector<2x32xbf16>
    %c0_31 = arith.constant 0 : index
    %c0_32 = arith.constant 0 : index
    %32 = vector.load %arg6[%c0_31, %c0_32] : memref<32x32xbf16, #tpu.memory_space<vmem>>, vector<32x32xbf16>
    %cst_33 = arith.constant dense<0.000000e+00> : vector<2x32xf32>
    %33 = tpu.matmul %31, %32, %cst_33 {dimension_numbers = #tpu.dot_dimension_numbers<[1], [0], [0], [1], [0, 0, 1, 1], [], []>} : vector<2x32xbf16>, vector<32x32xbf16>, vector<2x32xf32> -> vector<2x32xf32>
    %34 = vector.shape_cast %33 : vector<2x32xf32> to vector<2x1x32xf32>
    %35 = vector.broadcast %34 : vector<2x1x32xf32> to vector<2x10x32xf32>
    %36 = arith.addf %26, %35 : vector<2x10x32xf32>
    %37 = math.tanh %36 : vector<2x10x32xf32>
    %c0_34 = arith.constant 0 : index
    %c0_35 = arith.constant 0 : index
    %38 = vector.load %arg9[%c0_34, %c0_35] : memref<1x32xf32, #tpu.memory_space<vmem>>, vector<1x32xf32>
    %39 = vector.shape_cast %38 : vector<1x32xf32> to vector<1x1x32xf32>
    %40 = vector.broadcast %39 : vector<1x1x32xf32> to vector<2x10x32xf32>
    %41 = arith.mulf %37, %40 : vector<2x10x32xf32>
    %cst_36 = arith.constant dense<0.000000e+00> : vector<2x10xf32>
    %42 = vector.multi_reduction <add>, %41, %cst_36 [2] : vector<2x10x32xf32> to vector<2x10xf32>
    %cst_37 = arith.constant dense<0xFF800000> : vector<2xf32>
    %43 = vector.multi_reduction <maximumf>, %42, %cst_37 [1] : vector<2x10xf32> to vector<2xf32>
    %44 = vector.shape_cast %43 : vector<2xf32> to vector<2x1xf32>
    %45 = vector.broadcast %44 : vector<2x1xf32> to vector<2x10xf32>
    %46 = arith.subf %42, %45 : vector<2x10xf32>
    %47 = math.exp %46 : vector<2x10xf32>
    %cst_38 = arith.constant dense<0.000000e+00> : vector<2xf32>
    %48 = vector.multi_reduction <add>, %47, %cst_38 [1] : vector<2x10xf32> to vector<2xf32>
    %49 = vector.shape_cast %48 : vector<2xf32> to vector<2x1xf32>
    %50 = tpu.reciprocal %49 {approx = true} : vector<2x1xf32> -> vector<2x1xf32>
    %51 = vector.broadcast %50 : vector<2x1xf32> to vector<2x10xf32>
    %52 = arith.mulf %47, %51 : vector<2x10xf32>
    %53 = arith.truncf %52 : vector<2x10xf32> to vector<2x10xbf16>
    %c0_39 = arith.constant 0 : index
    %c0_40 = arith.constant 0 : index
    %54 = vector.load %arg3[%c0_39, %c0_40] : memref<10x128xbf16, #tpu.memory_space<vmem>>, vector<10x128xbf16>
    %cst_41 = arith.constant dense<0.000000e+00> : vector<2x128xf32>
    %55 = tpu.matmul %53, %54, %cst_41 {dimension_numbers = #tpu.dot_dimension_numbers<[1], [0], [0], [1], [0, 0, 1, 1], [], []>} : vector<2x10xbf16>, vector<10x128xbf16>, vector<2x128xf32> -> vector<2x128xf32>
    %56 = vector.extract_strided_slice %55 {offsets = [0, 0], sizes = [2, 64], strides = [1, 1]} : vector<2x128xf32> to vector<2x64xf32>
    %c1_i32_42 = arith.constant 1 : i32
    %57 = vector.broadcast %c1_i32_42 : i32 to vector<2x64xi32>
    %58 = arith.cmpi eq, %28, %57 : vector<2x64xi32>
    %59 = vector.extract_strided_slice %55 {offsets = [0, 64], sizes = [2, 64], strides = [1, 1]} : vector<2x128xf32> to vector<2x64xf32>
    %60 = arith.select %58, %59, %56 : vector<2x64xi1>, vector<2x64xf32>
    %61 = tpu.concatenate %30, %60 in 1 : vector<2x16xf32>, vector<2x64xf32> -> vector<2x80xf32>
    %c0_43 = arith.constant 0 : index
    %c0_44 = arith.constant 0 : index
    %62 = vector.load %arg13[%c0_43, %c0_44] : memref<80x128xbf16, #tpu.memory_space<vmem>>, vector<80x128xbf16>
    %c0_45 = arith.constant 0 : index
    %c0_46 = arith.constant 0 : index
    %63 = vector.load %arg14[%c0_45, %c0_46] : memref<32x128xbf16, #tpu.memory_space<vmem>>, vector<32x128xbf16>
    %c0_47 = arith.constant 0 : index
    %c0_48 = arith.constant 0 : index
    %64 = vector.load %arg15[%c0_47, %c0_48] : memref<1x128xf32, #tpu.memory_space<vmem>>, vector<1x128xf32>
    %c0_49 = arith.constant 0 : index
    %c0_50 = arith.constant 0 : index
    %65 = vector.load %arg16[%c0_49, %c0_50] : memref<1x32xf32, #tpu.memory_space<vmem>>, vector<1x32xf32>
    %66 = arith.truncf %61 : vector<2x80xf32> to vector<2x80xbf16>
    %cst_51 = arith.constant dense<0.000000e+00> : vector<2x128xf32>
    %67 = tpu.matmul %66, %62, %cst_51 {dimension_numbers = #tpu.dot_dimension_numbers<[1], [0], [0], [1], [0, 0, 1, 1], [], []>} : vector<2x80xbf16>, vector<80x128xbf16>, vector<2x128xf32> -> vector<2x128xf32>
    %68 = vector.broadcast %64 : vector<1x128xf32> to vector<2x128xf32>
    %69 = arith.addf %67, %68 : vector<2x128xf32>
    %70 = arith.truncf %9 : vector<2x32xf32> to vector<2x32xbf16>
    %cst_52 = arith.constant dense<0.000000e+00> : vector<2x128xf32>
    %71 = tpu.matmul %70, %63, %cst_52 {dimension_numbers = #tpu.dot_dimension_numbers<[1], [0], [0], [1], [0, 0, 1, 1], [], []>} : vector<2x32xbf16>, vector<32x128xbf16>, vector<2x128xf32> -> vector<2x128xf32>
    %72 = vector.extract_strided_slice %69 {offsets = [0, 0], sizes = [2, 32], strides = [1, 1]} : vector<2x128xf32> to vector<2x32xf32>
    %73 = vector.extract_strided_slice %71 {offsets = [0, 0], sizes = [2, 32], strides = [1, 1]} : vector<2x128xf32> to vector<2x32xf32>
    %74 = arith.addf %72, %73 : vector<2x32xf32>
    %75 = arith.negf %74 : vector<2x32xf32>
    %76 = math.exp %75 : vector<2x32xf32>
    %cst_53 = arith.constant 1.000000e+00 : f32
    %77 = vector.broadcast %cst_53 : f32 to vector<2x32xf32>
    %78 = arith.addf %77, %76 : vector<2x32xf32>
    %79 = arith.divf %77, %78 : vector<2x32xf32>
    %80 = vector.extract_strided_slice %69 {offsets = [0, 32], sizes = [2, 32], strides = [1, 1]} : vector<2x128xf32> to vector<2x32xf32>
    %81 = vector.extract_strided_slice %71 {offsets = [0, 32], sizes = [2, 32], strides = [1, 1]} : vector<2x128xf32> to vector<2x32xf32>
    %82 = arith.addf %80, %81 : vector<2x32xf32>
    %83 = arith.negf %82 : vector<2x32xf32>
    %84 = math.exp %83 : vector<2x32xf32>
    %cst_54 = arith.constant 1.000000e+00 : f32
    %85 = vector.broadcast %cst_54 : f32 to vector<2x32xf32>
    %86 = arith.addf %85, %84 : vector<2x32xf32>
    %87 = arith.divf %85, %86 : vector<2x32xf32>
    %88 = vector.extract_strided_slice %69 {offsets = [0, 64], sizes = [2, 32], strides = [1, 1]} : vector<2x128xf32> to vector<2x32xf32>
    %89 = vector.extract_strided_slice %71 {offsets = [0, 64], sizes = [2, 32], strides = [1, 1]} : vector<2x128xf32> to vector<2x32xf32>
    %90 = vector.broadcast %65 : vector<1x32xf32> to vector<2x32xf32>
    %91 = arith.addf %89, %90 : vector<2x32xf32>
    %92 = arith.mulf %79, %91 : vector<2x32xf32>
    %93 = arith.addf %88, %92 : vector<2x32xf32>
    %94 = math.tanh %93 : vector<2x32xf32>
    %cst_55 = arith.constant 1.000000e+00 : f32
    %95 = vector.broadcast %cst_55 : f32 to vector<2x32xf32>
    %96 = arith.subf %95, %87 : vector<2x32xf32>
    %97 = arith.mulf %96, %94 : vector<2x32xf32>
    %98 = arith.mulf %87, %9 : vector<2x32xf32>
    %99 = arith.addf %97, %98 : vector<2x32xf32>
    %c0_56 = arith.constant 0 : index
    %c0_57 = arith.constant 0 : index
    %100 = vector.load %arg17[%c0_56, %c0_57] : memref<32x128xbf16, #tpu.memory_space<vmem>>, vector<32x128xbf16>
    %c0_58 = arith.constant 0 : index
    %c0_59 = arith.constant 0 : index
    %101 = vector.load %arg18[%c0_58, %c0_59] : memref<32x128xbf16, #tpu.memory_space<vmem>>, vector<32x128xbf16>
    %c0_60 = arith.constant 0 : index
    %c0_61 = arith.constant 0 : index
    %102 = vector.load %arg19[%c0_60, %c0_61] : memref<1x128xf32, #tpu.memory_space<vmem>>, vector<1x128xf32>
    %c0_62 = arith.constant 0 : index
    %c0_63 = arith.constant 0 : index
    %103 = vector.load %arg20[%c0_62, %c0_63] : memref<1x32xf32, #tpu.memory_space<vmem>>, vector<1x32xf32>
    %104 = arith.truncf %99 : vector<2x32xf32> to vector<2x32xbf16>
    %cst_64 = arith.constant dense<0.000000e+00> : vector<2x128xf32>
    %105 = tpu.matmul %104, %100, %cst_64 {dimension_numbers = #tpu.dot_dimension_numbers<[1], [0], [0], [1], [0, 0, 1, 1], [], []>} : vector<2x32xbf16>, vector<32x128xbf16>, vector<2x128xf32> -> vector<2x128xf32>
    %106 = vector.broadcast %102 : vector<1x128xf32> to vector<2x128xf32>
    %107 = arith.addf %105, %106 : vector<2x128xf32>
    %108 = arith.truncf %9 : vector<2x32xf32> to vector<2x32xbf16>
    %cst_65 = arith.constant dense<0.000000e+00> : vector<2x128xf32>
    %109 = tpu.matmul %108, %101, %cst_65 {dimension_numbers = #tpu.dot_dimension_numbers<[1], [0], [0], [1], [0, 0, 1, 1], [], []>} : vector<2x32xbf16>, vector<32x128xbf16>, vector<2x128xf32> -> vector<2x128xf32>
    %110 = vector.extract_strided_slice %107 {offsets = [0, 0], sizes = [2, 32], strides = [1, 1]} : vector<2x128xf32> to vector<2x32xf32>
    %111 = vector.extract_strided_slice %109 {offsets = [0, 0], sizes = [2, 32], strides = [1, 1]} : vector<2x128xf32> to vector<2x32xf32>
    %112 = arith.addf %110, %111 : vector<2x32xf32>
    %113 = arith.negf %112 : vector<2x32xf32>
    %114 = math.exp %113 : vector<2x32xf32>
    %cst_66 = arith.constant 1.000000e+00 : f32
    %115 = vector.broadcast %cst_66 : f32 to vector<2x32xf32>
    %116 = arith.addf %115, %114 : vector<2x32xf32>
    %117 = arith.divf %115, %116 : vector<2x32xf32>
    %118 = vector.extract_strided_slice %107 {offsets = [0, 32], sizes = [2, 32], strides = [1, 1]} : vector<2x128xf32> to vector<2x32xf32>
    %119 = vector.extract_strided_slice %109 {offsets = [0, 32], sizes = [2, 32], strides = [1, 1]} : vector<2x128xf32> to vector<2x32xf32>
    %120 = arith.addf %118, %119 : vector<2x32xf32>
    %121 = arith.negf %120 : vector<2x32xf32>
    %122 = math.exp %121 : vector<2x32xf32>
    %cst_67 = arith.constant 1.000000e+00 : f32
    %123 = vector.broadcast %cst_67 : f32 to vector<2x32xf32>
    %124 = arith.addf %123, %122 : vector<2x32xf32>
    %125 = arith.divf %123, %124 : vector<2x32xf32>
    %126 = vector.extract_strided_slice %107 {offsets = [0, 64], sizes = [2, 32], strides = [1, 1]} : vector<2x128xf32> to vector<2x32xf32>
    %127 = vector.extract_strided_slice %109 {offsets = [0, 64], sizes = [2, 32], strides = [1, 1]} : vector<2x128xf32> to vector<2x32xf32>
    %128 = vector.broadcast %103 : vector<1x32xf32> to vector<2x32xf32>
    %129 = arith.addf %127, %128 : vector<2x32xf32>
    %130 = arith.mulf %117, %129 : vector<2x32xf32>
    %131 = arith.addf %126, %130 : vector<2x32xf32>
    %132 = math.tanh %131 : vector<2x32xf32>
    %cst_68 = arith.constant 1.000000e+00 : f32
    %133 = vector.broadcast %cst_68 : f32 to vector<2x32xf32>
    %134 = arith.subf %133, %125 : vector<2x32xf32>
    %135 = arith.mulf %134, %132 : vector<2x32xf32>
    %136 = arith.mulf %125, %9 : vector<2x32xf32>
    %137 = arith.addf %135, %136 : vector<2x32xf32>
    %138 = tpu.concatenate %137, %60, %30 in 1 : vector<2x32xf32>, vector<2x64xf32>, vector<2x16xf32> -> vector<2x112xf32>
    %139 = arith.truncf %138 : vector<2x112xf32> to vector<2x112xbf16>
    %c0_69 = arith.constant 0 : index
    %c0_70 = arith.constant 0 : index
    %140 = vector.load %arg11[%c0_69, %c0_70] : memref<112x128xbf16, #tpu.memory_space<vmem>>, vector<112x128xbf16>
    %cst_71 = arith.constant dense<0.000000e+00> : vector<2x128xf32>
    %141 = tpu.matmul %139, %140, %cst_71 {dimension_numbers = #tpu.dot_dimension_numbers<[1], [0], [0], [1], [0, 0, 1, 1], [], []>} : vector<2x112xbf16>, vector<112x128xbf16>, vector<2x128xf32> -> vector<2x128xf32>
    %c0_72 = arith.constant 0 : index
    %c0_73 = arith.constant 0 : index
    %142 = vector.load %arg12[%c0_72, %c0_73] : memref<1x128xf32, #tpu.memory_space<vmem>>, vector<1x128xf32>
    %143 = vector.broadcast %142 : vector<1x128xf32> to vector<2x128xf32>
    %144 = arith.addf %141, %143 : vector<2x128xf32>
    %145 = arith.index_cast %c1_i32 : i32 to index
    %c0_74 = arith.constant 0 : index
    %c0_75 = arith.constant 0 : index
    %146 = vector.load %arg21[%145, %c0_74, %c0_75] : memref<8x2x128xf32, #tpu.memory_space<vmem>>, vector<1x2x128xf32>
    %147 = vector.shape_cast %146 : vector<1x2x128xf32> to vector<2x128xf32>
    %148 = vector.shape_cast %144 : vector<2x128xf32> to vector<1x2x128xf32>
    tpu.vector_store %arg21[%145, %c0_74, %c0_75], %148 {strides = array<i32>} : memref<8x2x128xf32, #tpu.memory_space<vmem>>, vector<1x2x128xf32>,
    %149 = arith.index_cast %c1_i32 : i32 to index
    %c0_76 = arith.constant 0 : index
    %c0_77 = arith.constant 0 : index
    %150 = vector.load %arg1[%149, %c0_76, %c0_77] : memref<8x2x16xf32, #tpu.memory_space<vmem>>, vector<1x2x16xf32>
    %151 = vector.shape_cast %150 : vector<1x2x16xf32> to vector<2x16xf32>
    %c0_78 = arith.constant 0 : index
    %c0_79 = arith.constant 0 : index
    %152 = vector.load %arg23[%c0_78, %c0_79] : memref<2x16xf32, #tpu.memory_space<vmem>>, vector<2x16xf32>
    tpu.vector_store %arg23[%c0_78, %c0_79], %151 {strides = array<i32>} : memref<2x16xf32, #tpu.memory_space<vmem>>, vector<2x16xf32>,
    %153 = arith.index_cast %c1_i32 : i32 to index
    %154 = memref.load %arg0[%153] : memref<8xi32, #tpu.memory_space<smem>>
    %c0_i32 = arith.constant 0 : i32
    %155 = arith.cmpi eq, %154, %c0_i32 : i32
    %156 = arith.extui %155 : i1 to i32
    %c0_i32_80 = arith.constant 0 : i32
    %157 = arith.cmpi ne, %156, %c0_i32_80 : i32
    scf.if %157 {
      %927 = vector.extract_strided_slice %144 {offsets = [0, 0], sizes = [2, 24], strides = [1, 1]} : vector<2x128xf32> to vector<2x24xf32>
      %cst_402 = arith.constant dense<0xFF800000> : vector<2xf32>
      %928 = vector.multi_reduction <maximumf>, %927, %cst_402 [1] : vector<2x24xf32> to vector<2xf32>
      %929 = vector.shape_cast %928 : vector<2xf32> to vector<2x1xf32>
      %930 = vector.broadcast %929 : vector<2x1xf32> to vector<2x24xf32>
      %931 = arith.cmpf oeq, %927, %930 : vector<2x24xf32>
      %c24_i32 = arith.constant 24 : i32
      %932 = vector.broadcast %c24_i32 : i32 to vector<2x24xi32>
      %933 = arith.select %931, %27, %932 : vector<2x24xi1>, vector<2x24xi32>
      %cst_403 = arith.constant dense<2147483647> : vector<2xi32>
      %934 = vector.multi_reduction <minsi>, %933, %cst_403 [1] : vector<2x24xi32> to vector<2xi32>
      %935 = vector.shape_cast %934 : vector<2xi32> to vector<2x1xi32>
      %936 = vector.broadcast %935 : vector<2x1xi32> to vector<2x24xi32>
      %937 = arith.cmpi eq, %27, %936 : vector<2x24xi32>
      %938 = arith.extui %937 : vector<2x24xi1> to vector<2x24xi32>
      %939 = arith.sitofp %938 : vector<2x24xi32> to vector<2x24xf32>
      %940 = arith.truncf %939 : vector<2x24xf32> to vector<2x24xbf16>
      %c0_404 = arith.constant 0 : index
      %c0_405 = arith.constant 0 : index
      %941 = vector.load %arg10[%c0_404, %c0_405] : memref<24x16xbf16, #tpu.memory_space<vmem>>, vector<24x16xbf16>
      %cst_406 = arith.constant dense<0.000000e+00> : vector<2x16xf32>
      %942 = tpu.matmul %940, %941, %cst_406 {dimension_numbers = #tpu.dot_dimension_numbers<[1], [0], [0], [1], [0, 0, 1, 1], [], []>} : vector<2x24xbf16>, vector<24x16xbf16>, vector<2x16xf32> -> vector<2x16xf32>
      %c0_407 = arith.constant 0 : index
      %c0_408 = arith.constant 0 : index
      %943 = vector.load %arg23[%c0_407, %c0_408] : memref<2x16xf32, #tpu.memory_space<vmem>>, vector<2x16xf32>
      tpu.vector_store %arg23[%c0_407, %c0_408], %942 {strides = array<i32>} : memref<2x16xf32, #tpu.memory_space<vmem>>, vector<2x16xf32>,
    } else {
    }
    %c0_81 = arith.constant 0 : index
    %c0_82 = arith.constant 0 : index
    %158 = vector.load %arg23[%c0_81, %c0_82] : memref<2x16xf32, #tpu.memory_space<vmem>>, vector<2x16xf32>
    %c2_i32 = arith.constant 2 : i32
    %159 = arith.truncf %137 : vector<2x32xf32> to vector<2x32xbf16>
    %c0_83 = arith.constant 0 : index
    %c0_84 = arith.constant 0 : index
    %160 = vector.load %arg6[%c0_83, %c0_84] : memref<32x32xbf16, #tpu.memory_space<vmem>>, vector<32x32xbf16>
    %cst_85 = arith.constant dense<0.000000e+00> : vector<2x32xf32>
    %161 = tpu.matmul %159, %160, %cst_85 {dimension_numbers = #tpu.dot_dimension_numbers<[1], [0], [0], [1], [0, 0, 1, 1], [], []>} : vector<2x32xbf16>, vector<32x32xbf16>, vector<2x32xf32> -> vector<2x32xf32>
    %162 = vector.shape_cast %161 : vector<2x32xf32> to vector<2x1x32xf32>
    %163 = vector.broadcast %162 : vector<2x1x32xf32> to vector<2x10x32xf32>
    %164 = arith.addf %26, %163 : vector<2x10x32xf32>
    %165 = math.tanh %164 : vector<2x10x32xf32>
    %c0_86 = arith.constant 0 : index
    %c0_87 = arith.constant 0 : index
    %166 = vector.load %arg9[%c0_86, %c0_87] : memref<1x32xf32, #tpu.memory_space<vmem>>, vector<1x32xf32>
    %167 = vector.shape_cast %166 : vector<1x32xf32> to vector<1x1x32xf32>
    %168 = vector.broadcast %167 : vector<1x1x32xf32> to vector<2x10x32xf32>
    %169 = arith.mulf %165, %168 : vector<2x10x32xf32>
    %cst_88 = arith.constant dense<0.000000e+00> : vector<2x10xf32>
    %170 = vector.multi_reduction <add>, %169, %cst_88 [2] : vector<2x10x32xf32> to vector<2x10xf32>
    %cst_89 = arith.constant dense<0xFF800000> : vector<2xf32>
    %171 = vector.multi_reduction <maximumf>, %170, %cst_89 [1] : vector<2x10xf32> to vector<2xf32>
    %172 = vector.shape_cast %171 : vector<2xf32> to vector<2x1xf32>
    %173 = vector.broadcast %172 : vector<2x1xf32> to vector<2x10xf32>
    %174 = arith.subf %170, %173 : vector<2x10xf32>
    %175 = math.exp %174 : vector<2x10xf32>
    %cst_90 = arith.constant dense<0.000000e+00> : vector<2xf32>
    %176 = vector.multi_reduction <add>, %175, %cst_90 [1] : vector<2x10xf32> to vector<2xf32>
    %177 = vector.shape_cast %176 : vector<2xf32> to vector<2x1xf32>
    %178 = tpu.reciprocal %177 {approx = true} : vector<2x1xf32> -> vector<2x1xf32>
    %179 = vector.broadcast %178 : vector<2x1xf32> to vector<2x10xf32>
    %180 = arith.mulf %175, %179 : vector<2x10xf32>
    %181 = arith.truncf %180 : vector<2x10xf32> to vector<2x10xbf16>
    %c0_91 = arith.constant 0 : index
    %c0_92 = arith.constant 0 : index
    %182 = vector.load %arg3[%c0_91, %c0_92] : memref<10x128xbf16, #tpu.memory_space<vmem>>, vector<10x128xbf16>
    %cst_93 = arith.constant dense<0.000000e+00> : vector<2x128xf32>
    %183 = tpu.matmul %181, %182, %cst_93 {dimension_numbers = #tpu.dot_dimension_numbers<[1], [0], [0], [1], [0, 0, 1, 1], [], []>} : vector<2x10xbf16>, vector<10x128xbf16>, vector<2x128xf32> -> vector<2x128xf32>
    %184 = vector.extract_strided_slice %183 {offsets = [0, 0], sizes = [2, 64], strides = [1, 1]} : vector<2x128xf32> to vector<2x64xf32>
    %c1_i32_94 = arith.constant 1 : i32
    %185 = vector.broadcast %c1_i32_94 : i32 to vector<2x64xi32>
    %186 = arith.cmpi eq, %28, %185 : vector<2x64xi32>
    %187 = vector.extract_strided_slice %183 {offsets = [0, 64], sizes = [2, 64], strides = [1, 1]} : vector<2x128xf32> to vector<2x64xf32>
    %188 = arith.select %186, %187, %184 : vector<2x64xi1>, vector<2x64xf32>
    %189 = tpu.concatenate %158, %188 in 1 : vector<2x16xf32>, vector<2x64xf32> -> vector<2x80xf32>
    %c0_95 = arith.constant 0 : index
    %c0_96 = arith.constant 0 : index
    %190 = vector.load %arg13[%c0_95, %c0_96] : memref<80x128xbf16, #tpu.memory_space<vmem>>, vector<80x128xbf16>
    %c0_97 = arith.constant 0 : index
    %c0_98 = arith.constant 0 : index
    %191 = vector.load %arg14[%c0_97, %c0_98] : memref<32x128xbf16, #tpu.memory_space<vmem>>, vector<32x128xbf16>
    %c0_99 = arith.constant 0 : index
    %c0_100 = arith.constant 0 : index
    %192 = vector.load %arg15[%c0_99, %c0_100] : memref<1x128xf32, #tpu.memory_space<vmem>>, vector<1x128xf32>
    %c0_101 = arith.constant 0 : index
    %c0_102 = arith.constant 0 : index
    %193 = vector.load %arg16[%c0_101, %c0_102] : memref<1x32xf32, #tpu.memory_space<vmem>>, vector<1x32xf32>
    %194 = arith.truncf %189 : vector<2x80xf32> to vector<2x80xbf16>
    %cst_103 = arith.constant dense<0.000000e+00> : vector<2x128xf32>
    %195 = tpu.matmul %194, %190, %cst_103 {dimension_numbers = #tpu.dot_dimension_numbers<[1], [0], [0], [1], [0, 0, 1, 1], [], []>} : vector<2x80xbf16>, vector<80x128xbf16>, vector<2x128xf32> -> vector<2x128xf32>
    %196 = vector.broadcast %192 : vector<1x128xf32> to vector<2x128xf32>
    %197 = arith.addf %195, %196 : vector<2x128xf32>
    %198 = arith.truncf %99 : vector<2x32xf32> to vector<2x32xbf16>
    %cst_104 = arith.constant dense<0.000000e+00> : vector<2x128xf32>
    %199 = tpu.matmul %198, %191, %cst_104 {dimension_numbers = #tpu.dot_dimension_numbers<[1], [0], [0], [1], [0, 0, 1, 1], [], []>} : vector<2x32xbf16>, vector<32x128xbf16>, vector<2x128xf32> -> vector<2x128xf32>
    %200 = vector.extract_strided_slice %197 {offsets = [0, 0], sizes = [2, 32], strides = [1, 1]} : vector<2x128xf32> to vector<2x32xf32>
    %201 = vector.extract_strided_slice %199 {offsets = [0, 0], sizes = [2, 32], strides = [1, 1]} : vector<2x128xf32> to vector<2x32xf32>
    %202 = arith.addf %200, %201 : vector<2x32xf32>
    %203 = arith.negf %202 : vector<2x32xf32>
    %204 = math.exp %203 : vector<2x32xf32>
    %cst_105 = arith.constant 1.000000e+00 : f32
    %205 = vector.broadcast %cst_105 : f32 to vector<2x32xf32>
    %206 = arith.addf %205, %204 : vector<2x32xf32>
    %207 = arith.divf %205, %206 : vector<2x32xf32>
    %208 = vector.extract_strided_slice %197 {offsets = [0, 32], sizes = [2, 32], strides = [1, 1]} : vector<2x128xf32> to vector<2x32xf32>
    %209 = vector.extract_strided_slice %199 {offsets = [0, 32], sizes = [2, 32], strides = [1, 1]} : vector<2x128xf32> to vector<2x32xf32>
    %210 = arith.addf %208, %209 : vector<2x32xf32>
    %211 = arith.negf %210 : vector<2x32xf32>
    %212 = math.exp %211 : vector<2x32xf32>
    %cst_106 = arith.constant 1.000000e+00 : f32
    %213 = vector.broadcast %cst_106 : f32 to vector<2x32xf32>
    %214 = arith.addf %213, %212 : vector<2x32xf32>
    %215 = arith.divf %213, %214 : vector<2x32xf32>
    %216 = vector.extract_strided_slice %197 {offsets = [0, 64], sizes = [2, 32], strides = [1, 1]} : vector<2x128xf32> to vector<2x32xf32>
    %217 = vector.extract_strided_slice %199 {offsets = [0, 64], sizes = [2, 32], strides = [1, 1]} : vector<2x128xf32> to vector<2x32xf32>
    %218 = vector.broadcast %193 : vector<1x32xf32> to vector<2x32xf32>
    %219 = arith.addf %217, %218 : vector<2x32xf32>
    %220 = arith.mulf %207, %219 : vector<2x32xf32>
    %221 = arith.addf %216, %220 : vector<2x32xf32>
    %222 = math.tanh %221 : vector<2x32xf32>
    %cst_107 = arith.constant 1.000000e+00 : f32
    %223 = vector.broadcast %cst_107 : f32 to vector<2x32xf32>
    %224 = arith.subf %223, %215 : vector<2x32xf32>
    %225 = arith.mulf %224, %222 : vector<2x32xf32>
    %226 = arith.mulf %215, %99 : vector<2x32xf32>
    %227 = arith.addf %225, %226 : vector<2x32xf32>
    %c0_108 = arith.constant 0 : index
    %c0_109 = arith.constant 0 : index
    %228 = vector.load %arg17[%c0_108, %c0_109] : memref<32x128xbf16, #tpu.memory_space<vmem>>, vector<32x128xbf16>
    %c0_110 = arith.constant 0 : index
    %c0_111 = arith.constant 0 : index
    %229 = vector.load %arg18[%c0_110, %c0_111] : memref<32x128xbf16, #tpu.memory_space<vmem>>, vector<32x128xbf16>
    %c0_112 = arith.constant 0 : index
    %c0_113 = arith.constant 0 : index
    %230 = vector.load %arg19[%c0_112, %c0_113] : memref<1x128xf32, #tpu.memory_space<vmem>>, vector<1x128xf32>
    %c0_114 = arith.constant 0 : index
    %c0_115 = arith.constant 0 : index
    %231 = vector.load %arg20[%c0_114, %c0_115] : memref<1x32xf32, #tpu.memory_space<vmem>>, vector<1x32xf32>
    %232 = arith.truncf %227 : vector<2x32xf32> to vector<2x32xbf16>
    %cst_116 = arith.constant dense<0.000000e+00> : vector<2x128xf32>
    %233 = tpu.matmul %232, %228, %cst_116 {dimension_numbers = #tpu.dot_dimension_numbers<[1], [0], [0], [1], [0, 0, 1, 1], [], []>} : vector<2x32xbf16>, vector<32x128xbf16>, vector<2x128xf32> -> vector<2x128xf32>
    %234 = vector.broadcast %230 : vector<1x128xf32> to vector<2x128xf32>
    %235 = arith.addf %233, %234 : vector<2x128xf32>
    %236 = arith.truncf %137 : vector<2x32xf32> to vector<2x32xbf16>
    %cst_117 = arith.constant dense<0.000000e+00> : vector<2x128xf32>
    %237 = tpu.matmul %236, %229, %cst_117 {dimension_numbers = #tpu.dot_dimension_numbers<[1], [0], [0], [1], [0, 0, 1, 1], [], []>} : vector<2x32xbf16>, vector<32x128xbf16>, vector<2x128xf32> -> vector<2x128xf32>
    %238 = vector.extract_strided_slice %235 {offsets = [0, 0], sizes = [2, 32], strides = [1, 1]} : vector<2x128xf32> to vector<2x32xf32>
    %239 = vector.extract_strided_slice %237 {offsets = [0, 0], sizes = [2, 32], strides = [1, 1]} : vector<2x128xf32> to vector<2x32xf32>
    %240 = arith.addf %238, %239 : vector<2x32xf32>
    %241 = arith.negf %240 : vector<2x32xf32>
    %242 = math.exp %241 : vector<2x32xf32>
    %cst_118 = arith.constant 1.000000e+00 : f32
    %243 = vector.broadcast %cst_118 : f32 to vector<2x32xf32>
    %244 = arith.addf %243, %242 : vector<2x32xf32>
    %245 = arith.divf %243, %244 : vector<2x32xf32>
    %246 = vector.extract_strided_slice %235 {offsets = [0, 32], sizes = [2, 32], strides = [1, 1]} : vector<2x128xf32> to vector<2x32xf32>
    %247 = vector.extract_strided_slice %237 {offsets = [0, 32], sizes = [2, 32], strides = [1, 1]} : vector<2x128xf32> to vector<2x32xf32>
    %248 = arith.addf %246, %247 : vector<2x32xf32>
    %249 = arith.negf %248 : vector<2x32xf32>
    %250 = math.exp %249 : vector<2x32xf32>
    %cst_119 = arith.constant 1.000000e+00 : f32
    %251 = vector.broadcast %cst_119 : f32 to vector<2x32xf32>
    %252 = arith.addf %251, %250 : vector<2x32xf32>
    %253 = arith.divf %251, %252 : vector<2x32xf32>
    %254 = vector.extract_strided_slice %235 {offsets = [0, 64], sizes = [2, 32], strides = [1, 1]} : vector<2x128xf32> to vector<2x32xf32>
    %255 = vector.extract_strided_slice %237 {offsets = [0, 64], sizes = [2, 32], strides = [1, 1]} : vector<2x128xf32> to vector<2x32xf32>
    %256 = vector.broadcast %231 : vector<1x32xf32> to vector<2x32xf32>
    %257 = arith.addf %255, %256 : vector<2x32xf32>
    %258 = arith.mulf %245, %257 : vector<2x32xf32>
    %259 = arith.addf %254, %258 : vector<2x32xf32>
    %260 = math.tanh %259 : vector<2x32xf32>
    %cst_120 = arith.constant 1.000000e+00 : f32
    %261 = vector.broadcast %cst_120 : f32 to vector<2x32xf32>
    %262 = arith.subf %261, %253 : vector<2x32xf32>
    %263 = arith.mulf %262, %260 : vector<2x32xf32>
    %264 = arith.mulf %253, %137 : vector<2x32xf32>
    %265 = arith.addf %263, %264 : vector<2x32xf32>
    %266 = tpu.concatenate %265, %188, %158 in 1 : vector<2x32xf32>, vector<2x64xf32>, vector<2x16xf32> -> vector<2x112xf32>
    %267 = arith.truncf %266 : vector<2x112xf32> to vector<2x112xbf16>
    %c0_121 = arith.constant 0 : index
    %c0_122 = arith.constant 0 : index
    %268 = vector.load %arg11[%c0_121, %c0_122] : memref<112x128xbf16, #tpu.memory_space<vmem>>, vector<112x128xbf16>
    %cst_123 = arith.constant dense<0.000000e+00> : vector<2x128xf32>
    %269 = tpu.matmul %267, %268, %cst_123 {dimension_numbers = #tpu.dot_dimension_numbers<[1], [0], [0], [1], [0, 0, 1, 1], [], []>} : vector<2x112xbf16>, vector<112x128xbf16>, vector<2x128xf32> -> vector<2x128xf32>
    %c0_124 = arith.constant 0 : index
    %c0_125 = arith.constant 0 : index
    %270 = vector.load %arg12[%c0_124, %c0_125] : memref<1x128xf32, #tpu.memory_space<vmem>>, vector<1x128xf32>
    %271 = vector.broadcast %270 : vector<1x128xf32> to vector<2x128xf32>
    %272 = arith.addf %269, %271 : vector<2x128xf32>
    %273 = arith.index_cast %c2_i32 : i32 to index
    %c0_126 = arith.constant 0 : index
    %c0_127 = arith.constant 0 : index
    %274 = vector.load %arg21[%273, %c0_126, %c0_127] : memref<8x2x128xf32, #tpu.memory_space<vmem>>, vector<1x2x128xf32>
    %275 = vector.shape_cast %274 : vector<1x2x128xf32> to vector<2x128xf32>
    %276 = vector.shape_cast %272 : vector<2x128xf32> to vector<1x2x128xf32>
    tpu.vector_store %arg21[%273, %c0_126, %c0_127], %276 {strides = array<i32>} : memref<8x2x128xf32, #tpu.memory_space<vmem>>, vector<1x2x128xf32>,
    %277 = arith.index_cast %c2_i32 : i32 to index
    %c0_128 = arith.constant 0 : index
    %c0_129 = arith.constant 0 : index
    %278 = vector.load %arg1[%277, %c0_128, %c0_129] : memref<8x2x16xf32, #tpu.memory_space<vmem>>, vector<1x2x16xf32>
    %279 = vector.shape_cast %278 : vector<1x2x16xf32> to vector<2x16xf32>
    %c0_130 = arith.constant 0 : index
    %c0_131 = arith.constant 0 : index
    %280 = vector.load %arg23[%c0_130, %c0_131] : memref<2x16xf32, #tpu.memory_space<vmem>>, vector<2x16xf32>
    tpu.vector_store %arg23[%c0_130, %c0_131], %279 {strides = array<i32>} : memref<2x16xf32, #tpu.memory_space<vmem>>, vector<2x16xf32>,
    %281 = arith.index_cast %c2_i32 : i32 to index
    %282 = memref.load %arg0[%281] : memref<8xi32, #tpu.memory_space<smem>>
    %c0_i32_132 = arith.constant 0 : i32
    %283 = arith.cmpi eq, %282, %c0_i32_132 : i32
    %284 = arith.extui %283 : i1 to i32
    %c0_i32_133 = arith.constant 0 : i32
    %285 = arith.cmpi ne, %284, %c0_i32_133 : i32
    scf.if %285 {
      %927 = vector.extract_strided_slice %272 {offsets = [0, 0], sizes = [2, 24], strides = [1, 1]} : vector<2x128xf32> to vector<2x24xf32>
      %cst_402 = arith.constant dense<0xFF800000> : vector<2xf32>
      %928 = vector.multi_reduction <maximumf>, %927, %cst_402 [1] : vector<2x24xf32> to vector<2xf32>
      %929 = vector.shape_cast %928 : vector<2xf32> to vector<2x1xf32>
      %930 = vector.broadcast %929 : vector<2x1xf32> to vector<2x24xf32>
      %931 = arith.cmpf oeq, %927, %930 : vector<2x24xf32>
      %c24_i32 = arith.constant 24 : i32
      %932 = vector.broadcast %c24_i32 : i32 to vector<2x24xi32>
      %933 = arith.select %931, %27, %932 : vector<2x24xi1>, vector<2x24xi32>
      %cst_403 = arith.constant dense<2147483647> : vector<2xi32>
      %934 = vector.multi_reduction <minsi>, %933, %cst_403 [1] : vector<2x24xi32> to vector<2xi32>
      %935 = vector.shape_cast %934 : vector<2xi32> to vector<2x1xi32>
      %936 = vector.broadcast %935 : vector<2x1xi32> to vector<2x24xi32>
      %937 = arith.cmpi eq, %27, %936 : vector<2x24xi32>
      %938 = arith.extui %937 : vector<2x24xi1> to vector<2x24xi32>
      %939 = arith.sitofp %938 : vector<2x24xi32> to vector<2x24xf32>
      %940 = arith.truncf %939 : vector<2x24xf32> to vector<2x24xbf16>
      %c0_404 = arith.constant 0 : index
      %c0_405 = arith.constant 0 : index
      %941 = vector.load %arg10[%c0_404, %c0_405] : memref<24x16xbf16, #tpu.memory_space<vmem>>, vector<24x16xbf16>
      %cst_406 = arith.constant dense<0.000000e+00> : vector<2x16xf32>
      %942 = tpu.matmul %940, %941, %cst_406 {dimension_numbers = #tpu.dot_dimension_numbers<[1], [0], [0], [1], [0, 0, 1, 1], [], []>} : vector<2x24xbf16>, vector<24x16xbf16>, vector<2x16xf32> -> vector<2x16xf32>
      %c0_407 = arith.constant 0 : index
      %c0_408 = arith.constant 0 : index
      %943 = vector.load %arg23[%c0_407, %c0_408] : memref<2x16xf32, #tpu.memory_space<vmem>>, vector<2x16xf32>
      tpu.vector_store %arg23[%c0_407, %c0_408], %942 {strides = array<i32>} : memref<2x16xf32, #tpu.memory_space<vmem>>, vector<2x16xf32>,
    } else {
    }
    %c0_134 = arith.constant 0 : index
    %c0_135 = arith.constant 0 : index
    %286 = vector.load %arg23[%c0_134, %c0_135] : memref<2x16xf32, #tpu.memory_space<vmem>>, vector<2x16xf32>
    %c3_i32 = arith.constant 3 : i32
    %287 = arith.truncf %265 : vector<2x32xf32> to vector<2x32xbf16>
    %c0_136 = arith.constant 0 : index
    %c0_137 = arith.constant 0 : index
    %288 = vector.load %arg6[%c0_136, %c0_137] : memref<32x32xbf16, #tpu.memory_space<vmem>>, vector<32x32xbf16>
    %cst_138 = arith.constant dense<0.000000e+00> : vector<2x32xf32>
    %289 = tpu.matmul %287, %288, %cst_138 {dimension_numbers = #tpu.dot_dimension_numbers<[1], [0], [0], [1], [0, 0, 1, 1], [], []>} : vector<2x32xbf16>, vector<32x32xbf16>, vector<2x32xf32> -> vector<2x32xf32>
    %290 = vector.shape_cast %289 : vector<2x32xf32> to vector<2x1x32xf32>
    %291 = vector.broadcast %290 : vector<2x1x32xf32> to vector<2x10x32xf32>
    %292 = arith.addf %26, %291 : vector<2x10x32xf32>
    %293 = math.tanh %292 : vector<2x10x32xf32>
    %c0_139 = arith.constant 0 : index
    %c0_140 = arith.constant 0 : index
    %294 = vector.load %arg9[%c0_139, %c0_140] : memref<1x32xf32, #tpu.memory_space<vmem>>, vector<1x32xf32>
    %295 = vector.shape_cast %294 : vector<1x32xf32> to vector<1x1x32xf32>
    %296 = vector.broadcast %295 : vector<1x1x32xf32> to vector<2x10x32xf32>
    %297 = arith.mulf %293, %296 : vector<2x10x32xf32>
    %cst_141 = arith.constant dense<0.000000e+00> : vector<2x10xf32>
    %298 = vector.multi_reduction <add>, %297, %cst_141 [2] : vector<2x10x32xf32> to vector<2x10xf32>
    %cst_142 = arith.constant dense<0xFF800000> : vector<2xf32>
    %299 = vector.multi_reduction <maximumf>, %298, %cst_142 [1] : vector<2x10xf32> to vector<2xf32>
    %300 = vector.shape_cast %299 : vector<2xf32> to vector<2x1xf32>
    %301 = vector.broadcast %300 : vector<2x1xf32> to vector<2x10xf32>
    %302 = arith.subf %298, %301 : vector<2x10xf32>
    %303 = math.exp %302 : vector<2x10xf32>
    %cst_143 = arith.constant dense<0.000000e+00> : vector<2xf32>
    %304 = vector.multi_reduction <add>, %303, %cst_143 [1] : vector<2x10xf32> to vector<2xf32>
    %305 = vector.shape_cast %304 : vector<2xf32> to vector<2x1xf32>
    %306 = tpu.reciprocal %305 {approx = true} : vector<2x1xf32> -> vector<2x1xf32>
    %307 = vector.broadcast %306 : vector<2x1xf32> to vector<2x10xf32>
    %308 = arith.mulf %303, %307 : vector<2x10xf32>
    %309 = arith.truncf %308 : vector<2x10xf32> to vector<2x10xbf16>
    %c0_144 = arith.constant 0 : index
    %c0_145 = arith.constant 0 : index
    %310 = vector.load %arg3[%c0_144, %c0_145] : memref<10x128xbf16, #tpu.memory_space<vmem>>, vector<10x128xbf16>
    %cst_146 = arith.constant dense<0.000000e+00> : vector<2x128xf32>
    %311 = tpu.matmul %309, %310, %cst_146 {dimension_numbers = #tpu.dot_dimension_numbers<[1], [0], [0], [1], [0, 0, 1, 1], [], []>} : vector<2x10xbf16>, vector<10x128xbf16>, vector<2x128xf32> -> vector<2x128xf32>
    %312 = vector.extract_strided_slice %311 {offsets = [0, 0], sizes = [2, 64], strides = [1, 1]} : vector<2x128xf32> to vector<2x64xf32>
    %c1_i32_147 = arith.constant 1 : i32
    %313 = vector.broadcast %c1_i32_147 : i32 to vector<2x64xi32>
    %314 = arith.cmpi eq, %28, %313 : vector<2x64xi32>
    %315 = vector.extract_strided_slice %311 {offsets = [0, 64], sizes = [2, 64], strides = [1, 1]} : vector<2x128xf32> to vector<2x64xf32>
    %316 = arith.select %314, %315, %312 : vector<2x64xi1>, vector<2x64xf32>
    %317 = tpu.concatenate %286, %316 in 1 : vector<2x16xf32>, vector<2x64xf32> -> vector<2x80xf32>
    %c0_148 = arith.constant 0 : index
    %c0_149 = arith.constant 0 : index
    %318 = vector.load %arg13[%c0_148, %c0_149] : memref<80x128xbf16, #tpu.memory_space<vmem>>, vector<80x128xbf16>
    %c0_150 = arith.constant 0 : index
    %c0_151 = arith.constant 0 : index
    %319 = vector.load %arg14[%c0_150, %c0_151] : memref<32x128xbf16, #tpu.memory_space<vmem>>, vector<32x128xbf16>
    %c0_152 = arith.constant 0 : index
    %c0_153 = arith.constant 0 : index
    %320 = vector.load %arg15[%c0_152, %c0_153] : memref<1x128xf32, #tpu.memory_space<vmem>>, vector<1x128xf32>
    %c0_154 = arith.constant 0 : index
    %c0_155 = arith.constant 0 : index
    %321 = vector.load %arg16[%c0_154, %c0_155] : memref<1x32xf32, #tpu.memory_space<vmem>>, vector<1x32xf32>
    %322 = arith.truncf %317 : vector<2x80xf32> to vector<2x80xbf16>
    %cst_156 = arith.constant dense<0.000000e+00> : vector<2x128xf32>
    %323 = tpu.matmul %322, %318, %cst_156 {dimension_numbers = #tpu.dot_dimension_numbers<[1], [0], [0], [1], [0, 0, 1, 1], [], []>} : vector<2x80xbf16>, vector<80x128xbf16>, vector<2x128xf32> -> vector<2x128xf32>
    %324 = vector.broadcast %320 : vector<1x128xf32> to vector<2x128xf32>
    %325 = arith.addf %323, %324 : vector<2x128xf32>
    %326 = arith.truncf %227 : vector<2x32xf32> to vector<2x32xbf16>
    %cst_157 = arith.constant dense<0.000000e+00> : vector<2x128xf32>
    %327 = tpu.matmul %326, %319, %cst_157 {dimension_numbers = #tpu.dot_dimension_numbers<[1], [0], [0], [1], [0, 0, 1, 1], [], []>} : vector<2x32xbf16>, vector<32x128xbf16>, vector<2x128xf32> -> vector<2x128xf32>
    %328 = vector.extract_strided_slice %325 {offsets = [0, 0], sizes = [2, 32], strides = [1, 1]} : vector<2x128xf32> to vector<2x32xf32>
    %329 = vector.extract_strided_slice %327 {offsets = [0, 0], sizes = [2, 32], strides = [1, 1]} : vector<2x128xf32> to vector<2x32xf32>
    %330 = arith.addf %328, %329 : vector<2x32xf32>
    %331 = arith.negf %330 : vector<2x32xf32>
    %332 = math.exp %331 : vector<2x32xf32>
    %cst_158 = arith.constant 1.000000e+00 : f32
    %333 = vector.broadcast %cst_158 : f32 to vector<2x32xf32>
    %334 = arith.addf %333, %332 : vector<2x32xf32>
    %335 = arith.divf %333, %334 : vector<2x32xf32>
    %336 = vector.extract_strided_slice %325 {offsets = [0, 32], sizes = [2, 32], strides = [1, 1]} : vector<2x128xf32> to vector<2x32xf32>
    %337 = vector.extract_strided_slice %327 {offsets = [0, 32], sizes = [2, 32], strides = [1, 1]} : vector<2x128xf32> to vector<2x32xf32>
    %338 = arith.addf %336, %337 : vector<2x32xf32>
    %339 = arith.negf %338 : vector<2x32xf32>
    %340 = math.exp %339 : vector<2x32xf32>
    %cst_159 = arith.constant 1.000000e+00 : f32
    %341 = vector.broadcast %cst_159 : f32 to vector<2x32xf32>
    %342 = arith.addf %341, %340 : vector<2x32xf32>
    %343 = arith.divf %341, %342 : vector<2x32xf32>
    %344 = vector.extract_strided_slice %325 {offsets = [0, 64], sizes = [2, 32], strides = [1, 1]} : vector<2x128xf32> to vector<2x32xf32>
    %345 = vector.extract_strided_slice %327 {offsets = [0, 64], sizes = [2, 32], strides = [1, 1]} : vector<2x128xf32> to vector<2x32xf32>
    %346 = vector.broadcast %321 : vector<1x32xf32> to vector<2x32xf32>
    %347 = arith.addf %345, %346 : vector<2x32xf32>
    %348 = arith.mulf %335, %347 : vector<2x32xf32>
    %349 = arith.addf %344, %348 : vector<2x32xf32>
    %350 = math.tanh %349 : vector<2x32xf32>
    %cst_160 = arith.constant 1.000000e+00 : f32
    %351 = vector.broadcast %cst_160 : f32 to vector<2x32xf32>
    %352 = arith.subf %351, %343 : vector<2x32xf32>
    %353 = arith.mulf %352, %350 : vector<2x32xf32>
    %354 = arith.mulf %343, %227 : vector<2x32xf32>
    %355 = arith.addf %353, %354 : vector<2x32xf32>
    %c0_161 = arith.constant 0 : index
    %c0_162 = arith.constant 0 : index
    %356 = vector.load %arg17[%c0_161, %c0_162] : memref<32x128xbf16, #tpu.memory_space<vmem>>, vector<32x128xbf16>
    %c0_163 = arith.constant 0 : index
    %c0_164 = arith.constant 0 : index
    %357 = vector.load %arg18[%c0_163, %c0_164] : memref<32x128xbf16, #tpu.memory_space<vmem>>, vector<32x128xbf16>
    %c0_165 = arith.constant 0 : index
    %c0_166 = arith.constant 0 : index
    %358 = vector.load %arg19[%c0_165, %c0_166] : memref<1x128xf32, #tpu.memory_space<vmem>>, vector<1x128xf32>
    %c0_167 = arith.constant 0 : index
    %c0_168 = arith.constant 0 : index
    %359 = vector.load %arg20[%c0_167, %c0_168] : memref<1x32xf32, #tpu.memory_space<vmem>>, vector<1x32xf32>
    %360 = arith.truncf %355 : vector<2x32xf32> to vector<2x32xbf16>
    %cst_169 = arith.constant dense<0.000000e+00> : vector<2x128xf32>
    %361 = tpu.matmul %360, %356, %cst_169 {dimension_numbers = #tpu.dot_dimension_numbers<[1], [0], [0], [1], [0, 0, 1, 1], [], []>} : vector<2x32xbf16>, vector<32x128xbf16>, vector<2x128xf32> -> vector<2x128xf32>
    %362 = vector.broadcast %358 : vector<1x128xf32> to vector<2x128xf32>
    %363 = arith.addf %361, %362 : vector<2x128xf32>
    %364 = arith.truncf %265 : vector<2x32xf32> to vector<2x32xbf16>
    %cst_170 = arith.constant dense<0.000000e+00> : vector<2x128xf32>
    %365 = tpu.matmul %364, %357, %cst_170 {dimension_numbers = #tpu.dot_dimension_numbers<[1], [0], [0], [1], [0, 0, 1, 1], [], []>} : vector<2x32xbf16>, vector<32x128xbf16>, vector<2x128xf32> -> vector<2x128xf32>
    %366 = vector.extract_strided_slice %363 {offsets = [0, 0], sizes = [2, 32], strides = [1, 1]} : vector<2x128xf32> to vector<2x32xf32>
    %367 = vector.extract_strided_slice %365 {offsets = [0, 0], sizes = [2, 32], strides = [1, 1]} : vector<2x128xf32> to vector<2x32xf32>
    %368 = arith.addf %366, %367 : vector<2x32xf32>
    %369 = arith.negf %368 : vector<2x32xf32>
    %370 = math.exp %369 : vector<2x32xf32>
    %cst_171 = arith.constant 1.000000e+00 : f32
    %371 = vector.broadcast %cst_171 : f32 to vector<2x32xf32>
    %372 = arith.addf %371, %370 : vector<2x32xf32>
    %373 = arith.divf %371, %372 : vector<2x32xf32>
    %374 = vector.extract_strided_slice %363 {offsets = [0, 32], sizes = [2, 32], strides = [1, 1]} : vector<2x128xf32> to vector<2x32xf32>
    %375 = vector.extract_strided_slice %365 {offsets = [0, 32], sizes = [2, 32], strides = [1, 1]} : vector<2x128xf32> to vector<2x32xf32>
    %376 = arith.addf %374, %375 : vector<2x32xf32>
    %377 = arith.negf %376 : vector<2x32xf32>
    %378 = math.exp %377 : vector<2x32xf32>
    %cst_172 = arith.constant 1.000000e+00 : f32
    %379 = vector.broadcast %cst_172 : f32 to vector<2x32xf32>
    %380 = arith.addf %379, %378 : vector<2x32xf32>
    %381 = arith.divf %379, %380 : vector<2x32xf32>
    %382 = vector.extract_strided_slice %363 {offsets = [0, 64], sizes = [2, 32], strides = [1, 1]} : vector<2x128xf32> to vector<2x32xf32>
    %383 = vector.extract_strided_slice %365 {offsets = [0, 64], sizes = [2, 32], strides = [1, 1]} : vector<2x128xf32> to vector<2x32xf32>
    %384 = vector.broadcast %359 : vector<1x32xf32> to vector<2x32xf32>
    %385 = arith.addf %383, %384 : vector<2x32xf32>
    %386 = arith.mulf %373, %385 : vector<2x32xf32>
    %387 = arith.addf %382, %386 : vector<2x32xf32>
    %388 = math.tanh %387 : vector<2x32xf32>
    %cst_173 = arith.constant 1.000000e+00 : f32
    %389 = vector.broadcast %cst_173 : f32 to vector<2x32xf32>
    %390 = arith.subf %389, %381 : vector<2x32xf32>
    %391 = arith.mulf %390, %388 : vector<2x32xf32>
    %392 = arith.mulf %381, %265 : vector<2x32xf32>
    %393 = arith.addf %391, %392 : vector<2x32xf32>
    %394 = tpu.concatenate %393, %316, %286 in 1 : vector<2x32xf32>, vector<2x64xf32>, vector<2x16xf32> -> vector<2x112xf32>
    %395 = arith.truncf %394 : vector<2x112xf32> to vector<2x112xbf16>
    %c0_174 = arith.constant 0 : index
    %c0_175 = arith.constant 0 : index
    %396 = vector.load %arg11[%c0_174, %c0_175] : memref<112x128xbf16, #tpu.memory_space<vmem>>, vector<112x128xbf16>
    %cst_176 = arith.constant dense<0.000000e+00> : vector<2x128xf32>
    %397 = tpu.matmul %395, %396, %cst_176 {dimension_numbers = #tpu.dot_dimension_numbers<[1], [0], [0], [1], [0, 0, 1, 1], [], []>} : vector<2x112xbf16>, vector<112x128xbf16>, vector<2x128xf32> -> vector<2x128xf32>
    %c0_177 = arith.constant 0 : index
    %c0_178 = arith.constant 0 : index
    %398 = vector.load %arg12[%c0_177, %c0_178] : memref<1x128xf32, #tpu.memory_space<vmem>>, vector<1x128xf32>
    %399 = vector.broadcast %398 : vector<1x128xf32> to vector<2x128xf32>
    %400 = arith.addf %397, %399 : vector<2x128xf32>
    %401 = arith.index_cast %c3_i32 : i32 to index
    %c0_179 = arith.constant 0 : index
    %c0_180 = arith.constant 0 : index
    %402 = vector.load %arg21[%401, %c0_179, %c0_180] : memref<8x2x128xf32, #tpu.memory_space<vmem>>, vector<1x2x128xf32>
    %403 = vector.shape_cast %402 : vector<1x2x128xf32> to vector<2x128xf32>
    %404 = vector.shape_cast %400 : vector<2x128xf32> to vector<1x2x128xf32>
    tpu.vector_store %arg21[%401, %c0_179, %c0_180], %404 {strides = array<i32>} : memref<8x2x128xf32, #tpu.memory_space<vmem>>, vector<1x2x128xf32>,
    %405 = arith.index_cast %c3_i32 : i32 to index
    %c0_181 = arith.constant 0 : index
    %c0_182 = arith.constant 0 : index
    %406 = vector.load %arg1[%405, %c0_181, %c0_182] : memref<8x2x16xf32, #tpu.memory_space<vmem>>, vector<1x2x16xf32>
    %407 = vector.shape_cast %406 : vector<1x2x16xf32> to vector<2x16xf32>
    %c0_183 = arith.constant 0 : index
    %c0_184 = arith.constant 0 : index
    %408 = vector.load %arg23[%c0_183, %c0_184] : memref<2x16xf32, #tpu.memory_space<vmem>>, vector<2x16xf32>
    tpu.vector_store %arg23[%c0_183, %c0_184], %407 {strides = array<i32>} : memref<2x16xf32, #tpu.memory_space<vmem>>, vector<2x16xf32>,
    %409 = arith.index_cast %c3_i32 : i32 to index
    %410 = memref.load %arg0[%409] : memref<8xi32, #tpu.memory_space<smem>>
    %c0_i32_185 = arith.constant 0 : i32
    %411 = arith.cmpi eq, %410, %c0_i32_185 : i32
    %412 = arith.extui %411 : i1 to i32
    %c0_i32_186 = arith.constant 0 : i32
    %413 = arith.cmpi ne, %412, %c0_i32_186 : i32
    scf.if %413 {
      %927 = vector.extract_strided_slice %400 {offsets = [0, 0], sizes = [2, 24], strides = [1, 1]} : vector<2x128xf32> to vector<2x24xf32>
      %cst_402 = arith.constant dense<0xFF800000> : vector<2xf32>
      %928 = vector.multi_reduction <maximumf>, %927, %cst_402 [1] : vector<2x24xf32> to vector<2xf32>
      %929 = vector.shape_cast %928 : vector<2xf32> to vector<2x1xf32>
      %930 = vector.broadcast %929 : vector<2x1xf32> to vector<2x24xf32>
      %931 = arith.cmpf oeq, %927, %930 : vector<2x24xf32>
      %c24_i32 = arith.constant 24 : i32
      %932 = vector.broadcast %c24_i32 : i32 to vector<2x24xi32>
      %933 = arith.select %931, %27, %932 : vector<2x24xi1>, vector<2x24xi32>
      %cst_403 = arith.constant dense<2147483647> : vector<2xi32>
      %934 = vector.multi_reduction <minsi>, %933, %cst_403 [1] : vector<2x24xi32> to vector<2xi32>
      %935 = vector.shape_cast %934 : vector<2xi32> to vector<2x1xi32>
      %936 = vector.broadcast %935 : vector<2x1xi32> to vector<2x24xi32>
      %937 = arith.cmpi eq, %27, %936 : vector<2x24xi32>
      %938 = arith.extui %937 : vector<2x24xi1> to vector<2x24xi32>
      %939 = arith.sitofp %938 : vector<2x24xi32> to vector<2x24xf32>
      %940 = arith.truncf %939 : vector<2x24xf32> to vector<2x24xbf16>
      %c0_404 = arith.constant 0 : index
      %c0_405 = arith.constant 0 : index
      %941 = vector.load %arg10[%c0_404, %c0_405] : memref<24x16xbf16, #tpu.memory_space<vmem>>, vector<24x16xbf16>
      %cst_406 = arith.constant dense<0.000000e+00> : vector<2x16xf32>
      %942 = tpu.matmul %940, %941, %cst_406 {dimension_numbers = #tpu.dot_dimension_numbers<[1], [0], [0], [1], [0, 0, 1, 1], [], []>} : vector<2x24xbf16>, vector<24x16xbf16>, vector<2x16xf32> -> vector<2x16xf32>
      %c0_407 = arith.constant 0 : index
      %c0_408 = arith.constant 0 : index
      %943 = vector.load %arg23[%c0_407, %c0_408] : memref<2x16xf32, #tpu.memory_space<vmem>>, vector<2x16xf32>
      tpu.vector_store %arg23[%c0_407, %c0_408], %942 {strides = array<i32>} : memref<2x16xf32, #tpu.memory_space<vmem>>, vector<2x16xf32>,
    } else {
    }
    %c0_187 = arith.constant 0 : index
    %c0_188 = arith.constant 0 : index
    %414 = vector.load %arg23[%c0_187, %c0_188] : memref<2x16xf32, #tpu.memory_space<vmem>>, vector<2x16xf32>
    %c4_i32 = arith.constant 4 : i32
    %415 = arith.truncf %393 : vector<2x32xf32> to vector<2x32xbf16>
    %c0_189 = arith.constant 0 : index
    %c0_190 = arith.constant 0 : index
    %416 = vector.load %arg6[%c0_189, %c0_190] : memref<32x32xbf16, #tpu.memory_space<vmem>>, vector<32x32xbf16>
    %cst_191 = arith.constant dense<0.000000e+00> : vector<2x32xf32>
    %417 = tpu.matmul %415, %416, %cst_191 {dimension_numbers = #tpu.dot_dimension_numbers<[1], [0], [0], [1], [0, 0, 1, 1], [], []>} : vector<2x32xbf16>, vector<32x32xbf16>, vector<2x32xf32> -> vector<2x32xf32>
    %418 = vector.shape_cast %417 : vector<2x32xf32> to vector<2x1x32xf32>
    %419 = vector.broadcast %418 : vector<2x1x32xf32> to vector<2x10x32xf32>
    %420 = arith.addf %26, %419 : vector<2x10x32xf32>
    %421 = math.tanh %420 : vector<2x10x32xf32>
    %c0_192 = arith.constant 0 : index
    %c0_193 = arith.constant 0 : index
    %422 = vector.load %arg9[%c0_192, %c0_193] : memref<1x32xf32, #tpu.memory_space<vmem>>, vector<1x32xf32>
    %423 = vector.shape_cast %422 : vector<1x32xf32> to vector<1x1x32xf32>
    %424 = vector.broadcast %423 : vector<1x1x32xf32> to vector<2x10x32xf32>
    %425 = arith.mulf %421, %424 : vector<2x10x32xf32>
    %cst_194 = arith.constant dense<0.000000e+00> : vector<2x10xf32>
    %426 = vector.multi_reduction <add>, %425, %cst_194 [2] : vector<2x10x32xf32> to vector<2x10xf32>
    %cst_195 = arith.constant dense<0xFF800000> : vector<2xf32>
    %427 = vector.multi_reduction <maximumf>, %426, %cst_195 [1] : vector<2x10xf32> to vector<2xf32>
    %428 = vector.shape_cast %427 : vector<2xf32> to vector<2x1xf32>
    %429 = vector.broadcast %428 : vector<2x1xf32> to vector<2x10xf32>
    %430 = arith.subf %426, %429 : vector<2x10xf32>
    %431 = math.exp %430 : vector<2x10xf32>
    %cst_196 = arith.constant dense<0.000000e+00> : vector<2xf32>
    %432 = vector.multi_reduction <add>, %431, %cst_196 [1] : vector<2x10xf32> to vector<2xf32>
    %433 = vector.shape_cast %432 : vector<2xf32> to vector<2x1xf32>
    %434 = tpu.reciprocal %433 {approx = true} : vector<2x1xf32> -> vector<2x1xf32>
    %435 = vector.broadcast %434 : vector<2x1xf32> to vector<2x10xf32>
    %436 = arith.mulf %431, %435 : vector<2x10xf32>
    %437 = arith.truncf %436 : vector<2x10xf32> to vector<2x10xbf16>
    %c0_197 = arith.constant 0 : index
    %c0_198 = arith.constant 0 : index
    %438 = vector.load %arg3[%c0_197, %c0_198] : memref<10x128xbf16, #tpu.memory_space<vmem>>, vector<10x128xbf16>
    %cst_199 = arith.constant dense<0.000000e+00> : vector<2x128xf32>
    %439 = tpu.matmul %437, %438, %cst_199 {dimension_numbers = #tpu.dot_dimension_numbers<[1], [0], [0], [1], [0, 0, 1, 1], [], []>} : vector<2x10xbf16>, vector<10x128xbf16>, vector<2x128xf32> -> vector<2x128xf32>
    %440 = vector.extract_strided_slice %439 {offsets = [0, 0], sizes = [2, 64], strides = [1, 1]} : vector<2x128xf32> to vector<2x64xf32>
    %c1_i32_200 = arith.constant 1 : i32
    %441 = vector.broadcast %c1_i32_200 : i32 to vector<2x64xi32>
    %442 = arith.cmpi eq, %28, %441 : vector<2x64xi32>
    %443 = vector.extract_strided_slice %439 {offsets = [0, 64], sizes = [2, 64], strides = [1, 1]} : vector<2x128xf32> to vector<2x64xf32>
    %444 = arith.select %442, %443, %440 : vector<2x64xi1>, vector<2x64xf32>
    %445 = tpu.concatenate %414, %444 in 1 : vector<2x16xf32>, vector<2x64xf32> -> vector<2x80xf32>
    %c0_201 = arith.constant 0 : index
    %c0_202 = arith.constant 0 : index
    %446 = vector.load %arg13[%c0_201, %c0_202] : memref<80x128xbf16, #tpu.memory_space<vmem>>, vector<80x128xbf16>
    %c0_203 = arith.constant 0 : index
    %c0_204 = arith.constant 0 : index
    %447 = vector.load %arg14[%c0_203, %c0_204] : memref<32x128xbf16, #tpu.memory_space<vmem>>, vector<32x128xbf16>
    %c0_205 = arith.constant 0 : index
    %c0_206 = arith.constant 0 : index
    %448 = vector.load %arg15[%c0_205, %c0_206] : memref<1x128xf32, #tpu.memory_space<vmem>>, vector<1x128xf32>
    %c0_207 = arith.constant 0 : index
    %c0_208 = arith.constant 0 : index
    %449 = vector.load %arg16[%c0_207, %c0_208] : memref<1x32xf32, #tpu.memory_space<vmem>>, vector<1x32xf32>
    %450 = arith.truncf %445 : vector<2x80xf32> to vector<2x80xbf16>
    %cst_209 = arith.constant dense<0.000000e+00> : vector<2x128xf32>
    %451 = tpu.matmul %450, %446, %cst_209 {dimension_numbers = #tpu.dot_dimension_numbers<[1], [0], [0], [1], [0, 0, 1, 1], [], []>} : vector<2x80xbf16>, vector<80x128xbf16>, vector<2x128xf32> -> vector<2x128xf32>
    %452 = vector.broadcast %448 : vector<1x128xf32> to vector<2x128xf32>
    %453 = arith.addf %451, %452 : vector<2x128xf32>
    %454 = arith.truncf %355 : vector<2x32xf32> to vector<2x32xbf16>
    %cst_210 = arith.constant dense<0.000000e+00> : vector<2x128xf32>
    %455 = tpu.matmul %454, %447, %cst_210 {dimension_numbers = #tpu.dot_dimension_numbers<[1], [0], [0], [1], [0, 0, 1, 1], [], []>} : vector<2x32xbf16>, vector<32x128xbf16>, vector<2x128xf32> -> vector<2x128xf32>
    %456 = vector.extract_strided_slice %453 {offsets = [0, 0], sizes = [2, 32], strides = [1, 1]} : vector<2x128xf32> to vector<2x32xf32>
    %457 = vector.extract_strided_slice %455 {offsets = [0, 0], sizes = [2, 32], strides = [1, 1]} : vector<2x128xf32> to vector<2x32xf32>
    %458 = arith.addf %456, %457 : vector<2x32xf32>
    %459 = arith.negf %458 : vector<2x32xf32>
    %460 = math.exp %459 : vector<2x32xf32>
    %cst_211 = arith.constant 1.000000e+00 : f32
    %461 = vector.broadcast %cst_211 : f32 to vector<2x32xf32>
    %462 = arith.addf %461, %460 : vector<2x32xf32>
    %463 = arith.divf %461, %462 : vector<2x32xf32>
    %464 = vector.extract_strided_slice %453 {offsets = [0, 32], sizes = [2, 32], strides = [1, 1]} : vector<2x128xf32> to vector<2x32xf32>
    %465 = vector.extract_strided_slice %455 {offsets = [0, 32], sizes = [2, 32], strides = [1, 1]} : vector<2x128xf32> to vector<2x32xf32>
    %466 = arith.addf %464, %465 : vector<2x32xf32>
    %467 = arith.negf %466 : vector<2x32xf32>
    %468 = math.exp %467 : vector<2x32xf32>
    %cst_212 = arith.constant 1.000000e+00 : f32
    %469 = vector.broadcast %cst_212 : f32 to vector<2x32xf32>
    %470 = arith.addf %469, %468 : vector<2x32xf32>
    %471 = arith.divf %469, %470 : vector<2x32xf32>
    %472 = vector.extract_strided_slice %453 {offsets = [0, 64], sizes = [2, 32], strides = [1, 1]} : vector<2x128xf32> to vector<2x32xf32>
    %473 = vector.extract_strided_slice %455 {offsets = [0, 64], sizes = [2, 32], strides = [1, 1]} : vector<2x128xf32> to vector<2x32xf32>
    %474 = vector.broadcast %449 : vector<1x32xf32> to vector<2x32xf32>
    %475 = arith.addf %473, %474 : vector<2x32xf32>
    %476 = arith.mulf %463, %475 : vector<2x32xf32>
    %477 = arith.addf %472, %476 : vector<2x32xf32>
    %478 = math.tanh %477 : vector<2x32xf32>
    %cst_213 = arith.constant 1.000000e+00 : f32
    %479 = vector.broadcast %cst_213 : f32 to vector<2x32xf32>
    %480 = arith.subf %479, %471 : vector<2x32xf32>
    %481 = arith.mulf %480, %478 : vector<2x32xf32>
    %482 = arith.mulf %471, %355 : vector<2x32xf32>
    %483 = arith.addf %481, %482 : vector<2x32xf32>
    %c0_214 = arith.constant 0 : index
    %c0_215 = arith.constant 0 : index
    %484 = vector.load %arg17[%c0_214, %c0_215] : memref<32x128xbf16, #tpu.memory_space<vmem>>, vector<32x128xbf16>
    %c0_216 = arith.constant 0 : index
    %c0_217 = arith.constant 0 : index
    %485 = vector.load %arg18[%c0_216, %c0_217] : memref<32x128xbf16, #tpu.memory_space<vmem>>, vector<32x128xbf16>
    %c0_218 = arith.constant 0 : index
    %c0_219 = arith.constant 0 : index
    %486 = vector.load %arg19[%c0_218, %c0_219] : memref<1x128xf32, #tpu.memory_space<vmem>>, vector<1x128xf32>
    %c0_220 = arith.constant 0 : index
    %c0_221 = arith.constant 0 : index
    %487 = vector.load %arg20[%c0_220, %c0_221] : memref<1x32xf32, #tpu.memory_space<vmem>>, vector<1x32xf32>
    %488 = arith.truncf %483 : vector<2x32xf32> to vector<2x32xbf16>
    %cst_222 = arith.constant dense<0.000000e+00> : vector<2x128xf32>
    %489 = tpu.matmul %488, %484, %cst_222 {dimension_numbers = #tpu.dot_dimension_numbers<[1], [0], [0], [1], [0, 0, 1, 1], [], []>} : vector<2x32xbf16>, vector<32x128xbf16>, vector<2x128xf32> -> vector<2x128xf32>
    %490 = vector.broadcast %486 : vector<1x128xf32> to vector<2x128xf32>
    %491 = arith.addf %489, %490 : vector<2x128xf32>
    %492 = arith.truncf %393 : vector<2x32xf32> to vector<2x32xbf16>
    %cst_223 = arith.constant dense<0.000000e+00> : vector<2x128xf32>
    %493 = tpu.matmul %492, %485, %cst_223 {dimension_numbers = #tpu.dot_dimension_numbers<[1], [0], [0], [1], [0, 0, 1, 1], [], []>} : vector<2x32xbf16>, vector<32x128xbf16>, vector<2x128xf32> -> vector<2x128xf32>
    %494 = vector.extract_strided_slice %491 {offsets = [0, 0], sizes = [2, 32], strides = [1, 1]} : vector<2x128xf32> to vector<2x32xf32>
    %495 = vector.extract_strided_slice %493 {offsets = [0, 0], sizes = [2, 32], strides = [1, 1]} : vector<2x128xf32> to vector<2x32xf32>
    %496 = arith.addf %494, %495 : vector<2x32xf32>
    %497 = arith.negf %496 : vector<2x32xf32>
    %498 = math.exp %497 : vector<2x32xf32>
    %cst_224 = arith.constant 1.000000e+00 : f32
    %499 = vector.broadcast %cst_224 : f32 to vector<2x32xf32>
    %500 = arith.addf %499, %498 : vector<2x32xf32>
    %501 = arith.divf %499, %500 : vector<2x32xf32>
    %502 = vector.extract_strided_slice %491 {offsets = [0, 32], sizes = [2, 32], strides = [1, 1]} : vector<2x128xf32> to vector<2x32xf32>
    %503 = vector.extract_strided_slice %493 {offsets = [0, 32], sizes = [2, 32], strides = [1, 1]} : vector<2x128xf32> to vector<2x32xf32>
    %504 = arith.addf %502, %503 : vector<2x32xf32>
    %505 = arith.negf %504 : vector<2x32xf32>
    %506 = math.exp %505 : vector<2x32xf32>
    %cst_225 = arith.constant 1.000000e+00 : f32
    %507 = vector.broadcast %cst_225 : f32 to vector<2x32xf32>
    %508 = arith.addf %507, %506 : vector<2x32xf32>
    %509 = arith.divf %507, %508 : vector<2x32xf32>
    %510 = vector.extract_strided_slice %491 {offsets = [0, 64], sizes = [2, 32], strides = [1, 1]} : vector<2x128xf32> to vector<2x32xf32>
    %511 = vector.extract_strided_slice %493 {offsets = [0, 64], sizes = [2, 32], strides = [1, 1]} : vector<2x128xf32> to vector<2x32xf32>
    %512 = vector.broadcast %487 : vector<1x32xf32> to vector<2x32xf32>
    %513 = arith.addf %511, %512 : vector<2x32xf32>
    %514 = arith.mulf %501, %513 : vector<2x32xf32>
    %515 = arith.addf %510, %514 : vector<2x32xf32>
    %516 = math.tanh %515 : vector<2x32xf32>
    %cst_226 = arith.constant 1.000000e+00 : f32
    %517 = vector.broadcast %cst_226 : f32 to vector<2x32xf32>
    %518 = arith.subf %517, %509 : vector<2x32xf32>
    %519 = arith.mulf %518, %516 : vector<2x32xf32>
    %520 = arith.mulf %509, %393 : vector<2x32xf32>
    %521 = arith.addf %519, %520 : vector<2x32xf32>
    %522 = tpu.concatenate %521, %444, %414 in 1 : vector<2x32xf32>, vector<2x64xf32>, vector<2x16xf32> -> vector<2x112xf32>
    %523 = arith.truncf %522 : vector<2x112xf32> to vector<2x112xbf16>
    %c0_227 = arith.constant 0 : index
    %c0_228 = arith.constant 0 : index
    %524 = vector.load %arg11[%c0_227, %c0_228] : memref<112x128xbf16, #tpu.memory_space<vmem>>, vector<112x128xbf16>
    %cst_229 = arith.constant dense<0.000000e+00> : vector<2x128xf32>
    %525 = tpu.matmul %523, %524, %cst_229 {dimension_numbers = #tpu.dot_dimension_numbers<[1], [0], [0], [1], [0, 0, 1, 1], [], []>} : vector<2x112xbf16>, vector<112x128xbf16>, vector<2x128xf32> -> vector<2x128xf32>
    %c0_230 = arith.constant 0 : index
    %c0_231 = arith.constant 0 : index
    %526 = vector.load %arg12[%c0_230, %c0_231] : memref<1x128xf32, #tpu.memory_space<vmem>>, vector<1x128xf32>
    %527 = vector.broadcast %526 : vector<1x128xf32> to vector<2x128xf32>
    %528 = arith.addf %525, %527 : vector<2x128xf32>
    %529 = arith.index_cast %c4_i32 : i32 to index
    %c0_232 = arith.constant 0 : index
    %c0_233 = arith.constant 0 : index
    %530 = vector.load %arg21[%529, %c0_232, %c0_233] : memref<8x2x128xf32, #tpu.memory_space<vmem>>, vector<1x2x128xf32>
    %531 = vector.shape_cast %530 : vector<1x2x128xf32> to vector<2x128xf32>
    %532 = vector.shape_cast %528 : vector<2x128xf32> to vector<1x2x128xf32>
    tpu.vector_store %arg21[%529, %c0_232, %c0_233], %532 {strides = array<i32>} : memref<8x2x128xf32, #tpu.memory_space<vmem>>, vector<1x2x128xf32>,
    %533 = arith.index_cast %c4_i32 : i32 to index
    %c0_234 = arith.constant 0 : index
    %c0_235 = arith.constant 0 : index
    %534 = vector.load %arg1[%533, %c0_234, %c0_235] : memref<8x2x16xf32, #tpu.memory_space<vmem>>, vector<1x2x16xf32>
    %535 = vector.shape_cast %534 : vector<1x2x16xf32> to vector<2x16xf32>
    %c0_236 = arith.constant 0 : index
    %c0_237 = arith.constant 0 : index
    %536 = vector.load %arg23[%c0_236, %c0_237] : memref<2x16xf32, #tpu.memory_space<vmem>>, vector<2x16xf32>
    tpu.vector_store %arg23[%c0_236, %c0_237], %535 {strides = array<i32>} : memref<2x16xf32, #tpu.memory_space<vmem>>, vector<2x16xf32>,
    %537 = arith.index_cast %c4_i32 : i32 to index
    %538 = memref.load %arg0[%537] : memref<8xi32, #tpu.memory_space<smem>>
    %c0_i32_238 = arith.constant 0 : i32
    %539 = arith.cmpi eq, %538, %c0_i32_238 : i32
    %540 = arith.extui %539 : i1 to i32
    %c0_i32_239 = arith.constant 0 : i32
    %541 = arith.cmpi ne, %540, %c0_i32_239 : i32
    scf.if %541 {
      %927 = vector.extract_strided_slice %528 {offsets = [0, 0], sizes = [2, 24], strides = [1, 1]} : vector<2x128xf32> to vector<2x24xf32>
      %cst_402 = arith.constant dense<0xFF800000> : vector<2xf32>
      %928 = vector.multi_reduction <maximumf>, %927, %cst_402 [1] : vector<2x24xf32> to vector<2xf32>
      %929 = vector.shape_cast %928 : vector<2xf32> to vector<2x1xf32>
      %930 = vector.broadcast %929 : vector<2x1xf32> to vector<2x24xf32>
      %931 = arith.cmpf oeq, %927, %930 : vector<2x24xf32>
      %c24_i32 = arith.constant 24 : i32
      %932 = vector.broadcast %c24_i32 : i32 to vector<2x24xi32>
      %933 = arith.select %931, %27, %932 : vector<2x24xi1>, vector<2x24xi32>
      %cst_403 = arith.constant dense<2147483647> : vector<2xi32>
      %934 = vector.multi_reduction <minsi>, %933, %cst_403 [1] : vector<2x24xi32> to vector<2xi32>
      %935 = vector.shape_cast %934 : vector<2xi32> to vector<2x1xi32>
      %936 = vector.broadcast %935 : vector<2x1xi32> to vector<2x24xi32>
      %937 = arith.cmpi eq, %27, %936 : vector<2x24xi32>
      %938 = arith.extui %937 : vector<2x24xi1> to vector<2x24xi32>
      %939 = arith.sitofp %938 : vector<2x24xi32> to vector<2x24xf32>
      %940 = arith.truncf %939 : vector<2x24xf32> to vector<2x24xbf16>
      %c0_404 = arith.constant 0 : index
      %c0_405 = arith.constant 0 : index
      %941 = vector.load %arg10[%c0_404, %c0_405] : memref<24x16xbf16, #tpu.memory_space<vmem>>, vector<24x16xbf16>
      %cst_406 = arith.constant dense<0.000000e+00> : vector<2x16xf32>
      %942 = tpu.matmul %940, %941, %cst_406 {dimension_numbers = #tpu.dot_dimension_numbers<[1], [0], [0], [1], [0, 0, 1, 1], [], []>} : vector<2x24xbf16>, vector<24x16xbf16>, vector<2x16xf32> -> vector<2x16xf32>
      %c0_407 = arith.constant 0 : index
      %c0_408 = arith.constant 0 : index
      %943 = vector.load %arg23[%c0_407, %c0_408] : memref<2x16xf32, #tpu.memory_space<vmem>>, vector<2x16xf32>
      tpu.vector_store %arg23[%c0_407, %c0_408], %942 {strides = array<i32>} : memref<2x16xf32, #tpu.memory_space<vmem>>, vector<2x16xf32>,
    } else {
    }
    %c0_240 = arith.constant 0 : index
    %c0_241 = arith.constant 0 : index
    %542 = vector.load %arg23[%c0_240, %c0_241] : memref<2x16xf32, #tpu.memory_space<vmem>>, vector<2x16xf32>
    %c5_i32 = arith.constant 5 : i32
    %543 = arith.truncf %521 : vector<2x32xf32> to vector<2x32xbf16>
    %c0_242 = arith.constant 0 : index
    %c0_243 = arith.constant 0 : index
    %544 = vector.load %arg6[%c0_242, %c0_243] : memref<32x32xbf16, #tpu.memory_space<vmem>>, vector<32x32xbf16>
    %cst_244 = arith.constant dense<0.000000e+00> : vector<2x32xf32>
    %545 = tpu.matmul %543, %544, %cst_244 {dimension_numbers = #tpu.dot_dimension_numbers<[1], [0], [0], [1], [0, 0, 1, 1], [], []>} : vector<2x32xbf16>, vector<32x32xbf16>, vector<2x32xf32> -> vector<2x32xf32>
    %546 = vector.shape_cast %545 : vector<2x32xf32> to vector<2x1x32xf32>
    %547 = vector.broadcast %546 : vector<2x1x32xf32> to vector<2x10x32xf32>
    %548 = arith.addf %26, %547 : vector<2x10x32xf32>
    %549 = math.tanh %548 : vector<2x10x32xf32>
    %c0_245 = arith.constant 0 : index
    %c0_246 = arith.constant 0 : index
    %550 = vector.load %arg9[%c0_245, %c0_246] : memref<1x32xf32, #tpu.memory_space<vmem>>, vector<1x32xf32>
    %551 = vector.shape_cast %550 : vector<1x32xf32> to vector<1x1x32xf32>
    %552 = vector.broadcast %551 : vector<1x1x32xf32> to vector<2x10x32xf32>
    %553 = arith.mulf %549, %552 : vector<2x10x32xf32>
    %cst_247 = arith.constant dense<0.000000e+00> : vector<2x10xf32>
    %554 = vector.multi_reduction <add>, %553, %cst_247 [2] : vector<2x10x32xf32> to vector<2x10xf32>
    %cst_248 = arith.constant dense<0xFF800000> : vector<2xf32>
    %555 = vector.multi_reduction <maximumf>, %554, %cst_248 [1] : vector<2x10xf32> to vector<2xf32>
    %556 = vector.shape_cast %555 : vector<2xf32> to vector<2x1xf32>
    %557 = vector.broadcast %556 : vector<2x1xf32> to vector<2x10xf32>
    %558 = arith.subf %554, %557 : vector<2x10xf32>
    %559 = math.exp %558 : vector<2x10xf32>
    %cst_249 = arith.constant dense<0.000000e+00> : vector<2xf32>
    %560 = vector.multi_reduction <add>, %559, %cst_249 [1] : vector<2x10xf32> to vector<2xf32>
    %561 = vector.shape_cast %560 : vector<2xf32> to vector<2x1xf32>
    %562 = tpu.reciprocal %561 {approx = true} : vector<2x1xf32> -> vector<2x1xf32>
    %563 = vector.broadcast %562 : vector<2x1xf32> to vector<2x10xf32>
    %564 = arith.mulf %559, %563 : vector<2x10xf32>
    %565 = arith.truncf %564 : vector<2x10xf32> to vector<2x10xbf16>
    %c0_250 = arith.constant 0 : index
    %c0_251 = arith.constant 0 : index
    %566 = vector.load %arg3[%c0_250, %c0_251] : memref<10x128xbf16, #tpu.memory_space<vmem>>, vector<10x128xbf16>
    %cst_252 = arith.constant dense<0.000000e+00> : vector<2x128xf32>
    %567 = tpu.matmul %565, %566, %cst_252 {dimension_numbers = #tpu.dot_dimension_numbers<[1], [0], [0], [1], [0, 0, 1, 1], [], []>} : vector<2x10xbf16>, vector<10x128xbf16>, vector<2x128xf32> -> vector<2x128xf32>
    %568 = vector.extract_strided_slice %567 {offsets = [0, 0], sizes = [2, 64], strides = [1, 1]} : vector<2x128xf32> to vector<2x64xf32>
    %c1_i32_253 = arith.constant 1 : i32
    %569 = vector.broadcast %c1_i32_253 : i32 to vector<2x64xi32>
    %570 = arith.cmpi eq, %28, %569 : vector<2x64xi32>
    %571 = vector.extract_strided_slice %567 {offsets = [0, 64], sizes = [2, 64], strides = [1, 1]} : vector<2x128xf32> to vector<2x64xf32>
    %572 = arith.select %570, %571, %568 : vector<2x64xi1>, vector<2x64xf32>
    %573 = tpu.concatenate %542, %572 in 1 : vector<2x16xf32>, vector<2x64xf32> -> vector<2x80xf32>
    %c0_254 = arith.constant 0 : index
    %c0_255 = arith.constant 0 : index
    %574 = vector.load %arg13[%c0_254, %c0_255] : memref<80x128xbf16, #tpu.memory_space<vmem>>, vector<80x128xbf16>
    %c0_256 = arith.constant 0 : index
    %c0_257 = arith.constant 0 : index
    %575 = vector.load %arg14[%c0_256, %c0_257] : memref<32x128xbf16, #tpu.memory_space<vmem>>, vector<32x128xbf16>
    %c0_258 = arith.constant 0 : index
    %c0_259 = arith.constant 0 : index
    %576 = vector.load %arg15[%c0_258, %c0_259] : memref<1x128xf32, #tpu.memory_space<vmem>>, vector<1x128xf32>
    %c0_260 = arith.constant 0 : index
    %c0_261 = arith.constant 0 : index
    %577 = vector.load %arg16[%c0_260, %c0_261] : memref<1x32xf32, #tpu.memory_space<vmem>>, vector<1x32xf32>
    %578 = arith.truncf %573 : vector<2x80xf32> to vector<2x80xbf16>
    %cst_262 = arith.constant dense<0.000000e+00> : vector<2x128xf32>
    %579 = tpu.matmul %578, %574, %cst_262 {dimension_numbers = #tpu.dot_dimension_numbers<[1], [0], [0], [1], [0, 0, 1, 1], [], []>} : vector<2x80xbf16>, vector<80x128xbf16>, vector<2x128xf32> -> vector<2x128xf32>
    %580 = vector.broadcast %576 : vector<1x128xf32> to vector<2x128xf32>
    %581 = arith.addf %579, %580 : vector<2x128xf32>
    %582 = arith.truncf %483 : vector<2x32xf32> to vector<2x32xbf16>
    %cst_263 = arith.constant dense<0.000000e+00> : vector<2x128xf32>
    %583 = tpu.matmul %582, %575, %cst_263 {dimension_numbers = #tpu.dot_dimension_numbers<[1], [0], [0], [1], [0, 0, 1, 1], [], []>} : vector<2x32xbf16>, vector<32x128xbf16>, vector<2x128xf32> -> vector<2x128xf32>
    %584 = vector.extract_strided_slice %581 {offsets = [0, 0], sizes = [2, 32], strides = [1, 1]} : vector<2x128xf32> to vector<2x32xf32>
    %585 = vector.extract_strided_slice %583 {offsets = [0, 0], sizes = [2, 32], strides = [1, 1]} : vector<2x128xf32> to vector<2x32xf32>
    %586 = arith.addf %584, %585 : vector<2x32xf32>
    %587 = arith.negf %586 : vector<2x32xf32>
    %588 = math.exp %587 : vector<2x32xf32>
    %cst_264 = arith.constant 1.000000e+00 : f32
    %589 = vector.broadcast %cst_264 : f32 to vector<2x32xf32>
    %590 = arith.addf %589, %588 : vector<2x32xf32>
    %591 = arith.divf %589, %590 : vector<2x32xf32>
    %592 = vector.extract_strided_slice %581 {offsets = [0, 32], sizes = [2, 32], strides = [1, 1]} : vector<2x128xf32> to vector<2x32xf32>
    %593 = vector.extract_strided_slice %583 {offsets = [0, 32], sizes = [2, 32], strides = [1, 1]} : vector<2x128xf32> to vector<2x32xf32>
    %594 = arith.addf %592, %593 : vector<2x32xf32>
    %595 = arith.negf %594 : vector<2x32xf32>
    %596 = math.exp %595 : vector<2x32xf32>
    %cst_265 = arith.constant 1.000000e+00 : f32
    %597 = vector.broadcast %cst_265 : f32 to vector<2x32xf32>
    %598 = arith.addf %597, %596 : vector<2x32xf32>
    %599 = arith.divf %597, %598 : vector<2x32xf32>
    %600 = vector.extract_strided_slice %581 {offsets = [0, 64], sizes = [2, 32], strides = [1, 1]} : vector<2x128xf32> to vector<2x32xf32>
    %601 = vector.extract_strided_slice %583 {offsets = [0, 64], sizes = [2, 32], strides = [1, 1]} : vector<2x128xf32> to vector<2x32xf32>
    %602 = vector.broadcast %577 : vector<1x32xf32> to vector<2x32xf32>
    %603 = arith.addf %601, %602 : vector<2x32xf32>
    %604 = arith.mulf %591, %603 : vector<2x32xf32>
    %605 = arith.addf %600, %604 : vector<2x32xf32>
    %606 = math.tanh %605 : vector<2x32xf32>
    %cst_266 = arith.constant 1.000000e+00 : f32
    %607 = vector.broadcast %cst_266 : f32 to vector<2x32xf32>
    %608 = arith.subf %607, %599 : vector<2x32xf32>
    %609 = arith.mulf %608, %606 : vector<2x32xf32>
    %610 = arith.mulf %599, %483 : vector<2x32xf32>
    %611 = arith.addf %609, %610 : vector<2x32xf32>
    %c0_267 = arith.constant 0 : index
    %c0_268 = arith.constant 0 : index
    %612 = vector.load %arg17[%c0_267, %c0_268] : memref<32x128xbf16, #tpu.memory_space<vmem>>, vector<32x128xbf16>
    %c0_269 = arith.constant 0 : index
    %c0_270 = arith.constant 0 : index
    %613 = vector.load %arg18[%c0_269, %c0_270] : memref<32x128xbf16, #tpu.memory_space<vmem>>, vector<32x128xbf16>
    %c0_271 = arith.constant 0 : index
    %c0_272 = arith.constant 0 : index
    %614 = vector.load %arg19[%c0_271, %c0_272] : memref<1x128xf32, #tpu.memory_space<vmem>>, vector<1x128xf32>
    %c0_273 = arith.constant 0 : index
    %c0_274 = arith.constant 0 : index
    %615 = vector.load %arg20[%c0_273, %c0_274] : memref<1x32xf32, #tpu.memory_space<vmem>>, vector<1x32xf32>
    %616 = arith.truncf %611 : vector<2x32xf32> to vector<2x32xbf16>
    %cst_275 = arith.constant dense<0.000000e+00> : vector<2x128xf32>
    %617 = tpu.matmul %616, %612, %cst_275 {dimension_numbers = #tpu.dot_dimension_numbers<[1], [0], [0], [1], [0, 0, 1, 1], [], []>} : vector<2x32xbf16>, vector<32x128xbf16>, vector<2x128xf32> -> vector<2x128xf32>
    %618 = vector.broadcast %614 : vector<1x128xf32> to vector<2x128xf32>
    %619 = arith.addf %617, %618 : vector<2x128xf32>
    %620 = arith.truncf %521 : vector<2x32xf32> to vector<2x32xbf16>
    %cst_276 = arith.constant dense<0.000000e+00> : vector<2x128xf32>
    %621 = tpu.matmul %620, %613, %cst_276 {dimension_numbers = #tpu.dot_dimension_numbers<[1], [0], [0], [1], [0, 0, 1, 1], [], []>} : vector<2x32xbf16>, vector<32x128xbf16>, vector<2x128xf32> -> vector<2x128xf32>
    %622 = vector.extract_strided_slice %619 {offsets = [0, 0], sizes = [2, 32], strides = [1, 1]} : vector<2x128xf32> to vector<2x32xf32>
    %623 = vector.extract_strided_slice %621 {offsets = [0, 0], sizes = [2, 32], strides = [1, 1]} : vector<2x128xf32> to vector<2x32xf32>
    %624 = arith.addf %622, %623 : vector<2x32xf32>
    %625 = arith.negf %624 : vector<2x32xf32>
    %626 = math.exp %625 : vector<2x32xf32>
    %cst_277 = arith.constant 1.000000e+00 : f32
    %627 = vector.broadcast %cst_277 : f32 to vector<2x32xf32>
    %628 = arith.addf %627, %626 : vector<2x32xf32>
    %629 = arith.divf %627, %628 : vector<2x32xf32>
    %630 = vector.extract_strided_slice %619 {offsets = [0, 32], sizes = [2, 32], strides = [1, 1]} : vector<2x128xf32> to vector<2x32xf32>
    %631 = vector.extract_strided_slice %621 {offsets = [0, 32], sizes = [2, 32], strides = [1, 1]} : vector<2x128xf32> to vector<2x32xf32>
    %632 = arith.addf %630, %631 : vector<2x32xf32>
    %633 = arith.negf %632 : vector<2x32xf32>
    %634 = math.exp %633 : vector<2x32xf32>
    %cst_278 = arith.constant 1.000000e+00 : f32
    %635 = vector.broadcast %cst_278 : f32 to vector<2x32xf32>
    %636 = arith.addf %635, %634 : vector<2x32xf32>
    %637 = arith.divf %635, %636 : vector<2x32xf32>
    %638 = vector.extract_strided_slice %619 {offsets = [0, 64], sizes = [2, 32], strides = [1, 1]} : vector<2x128xf32> to vector<2x32xf32>
    %639 = vector.extract_strided_slice %621 {offsets = [0, 64], sizes = [2, 32], strides = [1, 1]} : vector<2x128xf32> to vector<2x32xf32>
    %640 = vector.broadcast %615 : vector<1x32xf32> to vector<2x32xf32>
    %641 = arith.addf %639, %640 : vector<2x32xf32>
    %642 = arith.mulf %629, %641 : vector<2x32xf32>
    %643 = arith.addf %638, %642 : vector<2x32xf32>
    %644 = math.tanh %643 : vector<2x32xf32>
    %cst_279 = arith.constant 1.000000e+00 : f32
    %645 = vector.broadcast %cst_279 : f32 to vector<2x32xf32>
    %646 = arith.subf %645, %637 : vector<2x32xf32>
    %647 = arith.mulf %646, %644 : vector<2x32xf32>
    %648 = arith.mulf %637, %521 : vector<2x32xf32>
    %649 = arith.addf %647, %648 : vector<2x32xf32>
    %650 = tpu.concatenate %649, %572, %542 in 1 : vector<2x32xf32>, vector<2x64xf32>, vector<2x16xf32> -> vector<2x112xf32>
    %651 = arith.truncf %650 : vector<2x112xf32> to vector<2x112xbf16>
    %c0_280 = arith.constant 0 : index
    %c0_281 = arith.constant 0 : index
    %652 = vector.load %arg11[%c0_280, %c0_281] : memref<112x128xbf16, #tpu.memory_space<vmem>>, vector<112x128xbf16>
    %cst_282 = arith.constant dense<0.000000e+00> : vector<2x128xf32>
    %653 = tpu.matmul %651, %652, %cst_282 {dimension_numbers = #tpu.dot_dimension_numbers<[1], [0], [0], [1], [0, 0, 1, 1], [], []>} : vector<2x112xbf16>, vector<112x128xbf16>, vector<2x128xf32> -> vector<2x128xf32>
    %c0_283 = arith.constant 0 : index
    %c0_284 = arith.constant 0 : index
    %654 = vector.load %arg12[%c0_283, %c0_284] : memref<1x128xf32, #tpu.memory_space<vmem>>, vector<1x128xf32>
    %655 = vector.broadcast %654 : vector<1x128xf32> to vector<2x128xf32>
    %656 = arith.addf %653, %655 : vector<2x128xf32>
    %657 = arith.index_cast %c5_i32 : i32 to index
    %c0_285 = arith.constant 0 : index
    %c0_286 = arith.constant 0 : index
    %658 = vector.load %arg21[%657, %c0_285, %c0_286] : memref<8x2x128xf32, #tpu.memory_space<vmem>>, vector<1x2x128xf32>
    %659 = vector.shape_cast %658 : vector<1x2x128xf32> to vector<2x128xf32>
    %660 = vector.shape_cast %656 : vector<2x128xf32> to vector<1x2x128xf32>
    tpu.vector_store %arg21[%657, %c0_285, %c0_286], %660 {strides = array<i32>} : memref<8x2x128xf32, #tpu.memory_space<vmem>>, vector<1x2x128xf32>,
    %661 = arith.index_cast %c5_i32 : i32 to index
    %c0_287 = arith.constant 0 : index
    %c0_288 = arith.constant 0 : index
    %662 = vector.load %arg1[%661, %c0_287, %c0_288] : memref<8x2x16xf32, #tpu.memory_space<vmem>>, vector<1x2x16xf32>
    %663 = vector.shape_cast %662 : vector<1x2x16xf32> to vector<2x16xf32>
    %c0_289 = arith.constant 0 : index
    %c0_290 = arith.constant 0 : index
    %664 = vector.load %arg23[%c0_289, %c0_290] : memref<2x16xf32, #tpu.memory_space<vmem>>, vector<2x16xf32>
    tpu.vector_store %arg23[%c0_289, %c0_290], %663 {strides = array<i32>} : memref<2x16xf32, #tpu.memory_space<vmem>>, vector<2x16xf32>,
    %665 = arith.index_cast %c5_i32 : i32 to index
    %666 = memref.load %arg0[%665] : memref<8xi32, #tpu.memory_space<smem>>
    %c0_i32_291 = arith.constant 0 : i32
    %667 = arith.cmpi eq, %666, %c0_i32_291 : i32
    %668 = arith.extui %667 : i1 to i32
    %c0_i32_292 = arith.constant 0 : i32
    %669 = arith.cmpi ne, %668, %c0_i32_292 : i32
    scf.if %669 {
      %927 = vector.extract_strided_slice %656 {offsets = [0, 0], sizes = [2, 24], strides = [1, 1]} : vector<2x128xf32> to vector<2x24xf32>
      %cst_402 = arith.constant dense<0xFF800000> : vector<2xf32>
      %928 = vector.multi_reduction <maximumf>, %927, %cst_402 [1] : vector<2x24xf32> to vector<2xf32>
      %929 = vector.shape_cast %928 : vector<2xf32> to vector<2x1xf32>
      %930 = vector.broadcast %929 : vector<2x1xf32> to vector<2x24xf32>
      %931 = arith.cmpf oeq, %927, %930 : vector<2x24xf32>
      %c24_i32 = arith.constant 24 : i32
      %932 = vector.broadcast %c24_i32 : i32 to vector<2x24xi32>
      %933 = arith.select %931, %27, %932 : vector<2x24xi1>, vector<2x24xi32>
      %cst_403 = arith.constant dense<2147483647> : vector<2xi32>
      %934 = vector.multi_reduction <minsi>, %933, %cst_403 [1] : vector<2x24xi32> to vector<2xi32>
      %935 = vector.shape_cast %934 : vector<2xi32> to vector<2x1xi32>
      %936 = vector.broadcast %935 : vector<2x1xi32> to vector<2x24xi32>
      %937 = arith.cmpi eq, %27, %936 : vector<2x24xi32>
      %938 = arith.extui %937 : vector<2x24xi1> to vector<2x24xi32>
      %939 = arith.sitofp %938 : vector<2x24xi32> to vector<2x24xf32>
      %940 = arith.truncf %939 : vector<2x24xf32> to vector<2x24xbf16>
      %c0_404 = arith.constant 0 : index
      %c0_405 = arith.constant 0 : index
      %941 = vector.load %arg10[%c0_404, %c0_405] : memref<24x16xbf16, #tpu.memory_space<vmem>>, vector<24x16xbf16>
      %cst_406 = arith.constant dense<0.000000e+00> : vector<2x16xf32>
      %942 = tpu.matmul %940, %941, %cst_406 {dimension_numbers = #tpu.dot_dimension_numbers<[1], [0], [0], [1], [0, 0, 1, 1], [], []>} : vector<2x24xbf16>, vector<24x16xbf16>, vector<2x16xf32> -> vector<2x16xf32>
      %c0_407 = arith.constant 0 : index
      %c0_408 = arith.constant 0 : index
      %943 = vector.load %arg23[%c0_407, %c0_408] : memref<2x16xf32, #tpu.memory_space<vmem>>, vector<2x16xf32>
      tpu.vector_store %arg23[%c0_407, %c0_408], %942 {strides = array<i32>} : memref<2x16xf32, #tpu.memory_space<vmem>>, vector<2x16xf32>,
    } else {
    }
    %c0_293 = arith.constant 0 : index
    %c0_294 = arith.constant 0 : index
    %670 = vector.load %arg23[%c0_293, %c0_294] : memref<2x16xf32, #tpu.memory_space<vmem>>, vector<2x16xf32>
    %c6_i32 = arith.constant 6 : i32
    %671 = arith.truncf %649 : vector<2x32xf32> to vector<2x32xbf16>
    %c0_295 = arith.constant 0 : index
    %c0_296 = arith.constant 0 : index
    %672 = vector.load %arg6[%c0_295, %c0_296] : memref<32x32xbf16, #tpu.memory_space<vmem>>, vector<32x32xbf16>
    %cst_297 = arith.constant dense<0.000000e+00> : vector<2x32xf32>
    %673 = tpu.matmul %671, %672, %cst_297 {dimension_numbers = #tpu.dot_dimension_numbers<[1], [0], [0], [1], [0, 0, 1, 1], [], []>} : vector<2x32xbf16>, vector<32x32xbf16>, vector<2x32xf32> -> vector<2x32xf32>
    %674 = vector.shape_cast %673 : vector<2x32xf32> to vector<2x1x32xf32>
    %675 = vector.broadcast %674 : vector<2x1x32xf32> to vector<2x10x32xf32>
    %676 = arith.addf %26, %675 : vector<2x10x32xf32>
    %677 = math.tanh %676 : vector<2x10x32xf32>
    %c0_298 = arith.constant 0 : index
    %c0_299 = arith.constant 0 : index
    %678 = vector.load %arg9[%c0_298, %c0_299] : memref<1x32xf32, #tpu.memory_space<vmem>>, vector<1x32xf32>
    %679 = vector.shape_cast %678 : vector<1x32xf32> to vector<1x1x32xf32>
    %680 = vector.broadcast %679 : vector<1x1x32xf32> to vector<2x10x32xf32>
    %681 = arith.mulf %677, %680 : vector<2x10x32xf32>
    %cst_300 = arith.constant dense<0.000000e+00> : vector<2x10xf32>
    %682 = vector.multi_reduction <add>, %681, %cst_300 [2] : vector<2x10x32xf32> to vector<2x10xf32>
    %cst_301 = arith.constant dense<0xFF800000> : vector<2xf32>
    %683 = vector.multi_reduction <maximumf>, %682, %cst_301 [1] : vector<2x10xf32> to vector<2xf32>
    %684 = vector.shape_cast %683 : vector<2xf32> to vector<2x1xf32>
    %685 = vector.broadcast %684 : vector<2x1xf32> to vector<2x10xf32>
    %686 = arith.subf %682, %685 : vector<2x10xf32>
    %687 = math.exp %686 : vector<2x10xf32>
    %cst_302 = arith.constant dense<0.000000e+00> : vector<2xf32>
    %688 = vector.multi_reduction <add>, %687, %cst_302 [1] : vector<2x10xf32> to vector<2xf32>
    %689 = vector.shape_cast %688 : vector<2xf32> to vector<2x1xf32>
    %690 = tpu.reciprocal %689 {approx = true} : vector<2x1xf32> -> vector<2x1xf32>
    %691 = vector.broadcast %690 : vector<2x1xf32> to vector<2x10xf32>
    %692 = arith.mulf %687, %691 : vector<2x10xf32>
    %693 = arith.truncf %692 : vector<2x10xf32> to vector<2x10xbf16>
    %c0_303 = arith.constant 0 : index
    %c0_304 = arith.constant 0 : index
    %694 = vector.load %arg3[%c0_303, %c0_304] : memref<10x128xbf16, #tpu.memory_space<vmem>>, vector<10x128xbf16>
    %cst_305 = arith.constant dense<0.000000e+00> : vector<2x128xf32>
    %695 = tpu.matmul %693, %694, %cst_305 {dimension_numbers = #tpu.dot_dimension_numbers<[1], [0], [0], [1], [0, 0, 1, 1], [], []>} : vector<2x10xbf16>, vector<10x128xbf16>, vector<2x128xf32> -> vector<2x128xf32>
    %696 = vector.extract_strided_slice %695 {offsets = [0, 0], sizes = [2, 64], strides = [1, 1]} : vector<2x128xf32> to vector<2x64xf32>
    %c1_i32_306 = arith.constant 1 : i32
    %697 = vector.broadcast %c1_i32_306 : i32 to vector<2x64xi32>
    %698 = arith.cmpi eq, %28, %697 : vector<2x64xi32>
    %699 = vector.extract_strided_slice %695 {offsets = [0, 64], sizes = [2, 64], strides = [1, 1]} : vector<2x128xf32> to vector<2x64xf32>
    %700 = arith.select %698, %699, %696 : vector<2x64xi1>, vector<2x64xf32>
    %701 = tpu.concatenate %670, %700 in 1 : vector<2x16xf32>, vector<2x64xf32> -> vector<2x80xf32>
    %c0_307 = arith.constant 0 : index
    %c0_308 = arith.constant 0 : index
    %702 = vector.load %arg13[%c0_307, %c0_308] : memref<80x128xbf16, #tpu.memory_space<vmem>>, vector<80x128xbf16>
    %c0_309 = arith.constant 0 : index
    %c0_310 = arith.constant 0 : index
    %703 = vector.load %arg14[%c0_309, %c0_310] : memref<32x128xbf16, #tpu.memory_space<vmem>>, vector<32x128xbf16>
    %c0_311 = arith.constant 0 : index
    %c0_312 = arith.constant 0 : index
    %704 = vector.load %arg15[%c0_311, %c0_312] : memref<1x128xf32, #tpu.memory_space<vmem>>, vector<1x128xf32>
    %c0_313 = arith.constant 0 : index
    %c0_314 = arith.constant 0 : index
    %705 = vector.load %arg16[%c0_313, %c0_314] : memref<1x32xf32, #tpu.memory_space<vmem>>, vector<1x32xf32>
    %706 = arith.truncf %701 : vector<2x80xf32> to vector<2x80xbf16>
    %cst_315 = arith.constant dense<0.000000e+00> : vector<2x128xf32>
    %707 = tpu.matmul %706, %702, %cst_315 {dimension_numbers = #tpu.dot_dimension_numbers<[1], [0], [0], [1], [0, 0, 1, 1], [], []>} : vector<2x80xbf16>, vector<80x128xbf16>, vector<2x128xf32> -> vector<2x128xf32>
    %708 = vector.broadcast %704 : vector<1x128xf32> to vector<2x128xf32>
    %709 = arith.addf %707, %708 : vector<2x128xf32>
    %710 = arith.truncf %611 : vector<2x32xf32> to vector<2x32xbf16>
    %cst_316 = arith.constant dense<0.000000e+00> : vector<2x128xf32>
    %711 = tpu.matmul %710, %703, %cst_316 {dimension_numbers = #tpu.dot_dimension_numbers<[1], [0], [0], [1], [0, 0, 1, 1], [], []>} : vector<2x32xbf16>, vector<32x128xbf16>, vector<2x128xf32> -> vector<2x128xf32>
    %712 = vector.extract_strided_slice %709 {offsets = [0, 0], sizes = [2, 32], strides = [1, 1]} : vector<2x128xf32> to vector<2x32xf32>
    %713 = vector.extract_strided_slice %711 {offsets = [0, 0], sizes = [2, 32], strides = [1, 1]} : vector<2x128xf32> to vector<2x32xf32>
    %714 = arith.addf %712, %713 : vector<2x32xf32>
    %715 = arith.negf %714 : vector<2x32xf32>
    %716 = math.exp %715 : vector<2x32xf32>
    %cst_317 = arith.constant 1.000000e+00 : f32
    %717 = vector.broadcast %cst_317 : f32 to vector<2x32xf32>
    %718 = arith.addf %717, %716 : vector<2x32xf32>
    %719 = arith.divf %717, %718 : vector<2x32xf32>
    %720 = vector.extract_strided_slice %709 {offsets = [0, 32], sizes = [2, 32], strides = [1, 1]} : vector<2x128xf32> to vector<2x32xf32>
    %721 = vector.extract_strided_slice %711 {offsets = [0, 32], sizes = [2, 32], strides = [1, 1]} : vector<2x128xf32> to vector<2x32xf32>
    %722 = arith.addf %720, %721 : vector<2x32xf32>
    %723 = arith.negf %722 : vector<2x32xf32>
    %724 = math.exp %723 : vector<2x32xf32>
    %cst_318 = arith.constant 1.000000e+00 : f32
    %725 = vector.broadcast %cst_318 : f32 to vector<2x32xf32>
    %726 = arith.addf %725, %724 : vector<2x32xf32>
    %727 = arith.divf %725, %726 : vector<2x32xf32>
    %728 = vector.extract_strided_slice %709 {offsets = [0, 64], sizes = [2, 32], strides = [1, 1]} : vector<2x128xf32> to vector<2x32xf32>
    %729 = vector.extract_strided_slice %711 {offsets = [0, 64], sizes = [2, 32], strides = [1, 1]} : vector<2x128xf32> to vector<2x32xf32>
    %730 = vector.broadcast %705 : vector<1x32xf32> to vector<2x32xf32>
    %731 = arith.addf %729, %730 : vector<2x32xf32>
    %732 = arith.mulf %719, %731 : vector<2x32xf32>
    %733 = arith.addf %728, %732 : vector<2x32xf32>
    %734 = math.tanh %733 : vector<2x32xf32>
    %cst_319 = arith.constant 1.000000e+00 : f32
    %735 = vector.broadcast %cst_319 : f32 to vector<2x32xf32>
    %736 = arith.subf %735, %727 : vector<2x32xf32>
    %737 = arith.mulf %736, %734 : vector<2x32xf32>
    %738 = arith.mulf %727, %611 : vector<2x32xf32>
    %739 = arith.addf %737, %738 : vector<2x32xf32>
    %c0_320 = arith.constant 0 : index
    %c0_321 = arith.constant 0 : index
    %740 = vector.load %arg17[%c0_320, %c0_321] : memref<32x128xbf16, #tpu.memory_space<vmem>>, vector<32x128xbf16>
    %c0_322 = arith.constant 0 : index
    %c0_323 = arith.constant 0 : index
    %741 = vector.load %arg18[%c0_322, %c0_323] : memref<32x128xbf16, #tpu.memory_space<vmem>>, vector<32x128xbf16>
    %c0_324 = arith.constant 0 : index
    %c0_325 = arith.constant 0 : index
    %742 = vector.load %arg19[%c0_324, %c0_325] : memref<1x128xf32, #tpu.memory_space<vmem>>, vector<1x128xf32>
    %c0_326 = arith.constant 0 : index
    %c0_327 = arith.constant 0 : index
    %743 = vector.load %arg20[%c0_326, %c0_327] : memref<1x32xf32, #tpu.memory_space<vmem>>, vector<1x32xf32>
    %744 = arith.truncf %739 : vector<2x32xf32> to vector<2x32xbf16>
    %cst_328 = arith.constant dense<0.000000e+00> : vector<2x128xf32>
    %745 = tpu.matmul %744, %740, %cst_328 {dimension_numbers = #tpu.dot_dimension_numbers<[1], [0], [0], [1], [0, 0, 1, 1], [], []>} : vector<2x32xbf16>, vector<32x128xbf16>, vector<2x128xf32> -> vector<2x128xf32>
    %746 = vector.broadcast %742 : vector<1x128xf32> to vector<2x128xf32>
    %747 = arith.addf %745, %746 : vector<2x128xf32>
    %748 = arith.truncf %649 : vector<2x32xf32> to vector<2x32xbf16>
    %cst_329 = arith.constant dense<0.000000e+00> : vector<2x128xf32>
    %749 = tpu.matmul %748, %741, %cst_329 {dimension_numbers = #tpu.dot_dimension_numbers<[1], [0], [0], [1], [0, 0, 1, 1], [], []>} : vector<2x32xbf16>, vector<32x128xbf16>, vector<2x128xf32> -> vector<2x128xf32>
    %750 = vector.extract_strided_slice %747 {offsets = [0, 0], sizes = [2, 32], strides = [1, 1]} : vector<2x128xf32> to vector<2x32xf32>
    %751 = vector.extract_strided_slice %749 {offsets = [0, 0], sizes = [2, 32], strides = [1, 1]} : vector<2x128xf32> to vector<2x32xf32>
    %752 = arith.addf %750, %751 : vector<2x32xf32>
    %753 = arith.negf %752 : vector<2x32xf32>
    %754 = math.exp %753 : vector<2x32xf32>
    %cst_330 = arith.constant 1.000000e+00 : f32
    %755 = vector.broadcast %cst_330 : f32 to vector<2x32xf32>
    %756 = arith.addf %755, %754 : vector<2x32xf32>
    %757 = arith.divf %755, %756 : vector<2x32xf32>
    %758 = vector.extract_strided_slice %747 {offsets = [0, 32], sizes = [2, 32], strides = [1, 1]} : vector<2x128xf32> to vector<2x32xf32>
    %759 = vector.extract_strided_slice %749 {offsets = [0, 32], sizes = [2, 32], strides = [1, 1]} : vector<2x128xf32> to vector<2x32xf32>
    %760 = arith.addf %758, %759 : vector<2x32xf32>
    %761 = arith.negf %760 : vector<2x32xf32>
    %762 = math.exp %761 : vector<2x32xf32>
    %cst_331 = arith.constant 1.000000e+00 : f32
    %763 = vector.broadcast %cst_331 : f32 to vector<2x32xf32>
    %764 = arith.addf %763, %762 : vector<2x32xf32>
    %765 = arith.divf %763, %764 : vector<2x32xf32>
    %766 = vector.extract_strided_slice %747 {offsets = [0, 64], sizes = [2, 32], strides = [1, 1]} : vector<2x128xf32> to vector<2x32xf32>
    %767 = vector.extract_strided_slice %749 {offsets = [0, 64], sizes = [2, 32], strides = [1, 1]} : vector<2x128xf32> to vector<2x32xf32>
    %768 = vector.broadcast %743 : vector<1x32xf32> to vector<2x32xf32>
    %769 = arith.addf %767, %768 : vector<2x32xf32>
    %770 = arith.mulf %757, %769 : vector<2x32xf32>
    %771 = arith.addf %766, %770 : vector<2x32xf32>
    %772 = math.tanh %771 : vector<2x32xf32>
    %cst_332 = arith.constant 1.000000e+00 : f32
    %773 = vector.broadcast %cst_332 : f32 to vector<2x32xf32>
    %774 = arith.subf %773, %765 : vector<2x32xf32>
    %775 = arith.mulf %774, %772 : vector<2x32xf32>
    %776 = arith.mulf %765, %649 : vector<2x32xf32>
    %777 = arith.addf %775, %776 : vector<2x32xf32>
    %778 = tpu.concatenate %777, %700, %670 in 1 : vector<2x32xf32>, vector<2x64xf32>, vector<2x16xf32> -> vector<2x112xf32>
    %779 = arith.truncf %778 : vector<2x112xf32> to vector<2x112xbf16>
    %c0_333 = arith.constant 0 : index
    %c0_334 = arith.constant 0 : index
    %780 = vector.load %arg11[%c0_333, %c0_334] : memref<112x128xbf16, #tpu.memory_space<vmem>>, vector<112x128xbf16>
    %cst_335 = arith.constant dense<0.000000e+00> : vector<2x128xf32>
    %781 = tpu.matmul %779, %780, %cst_335 {dimension_numbers = #tpu.dot_dimension_numbers<[1], [0], [0], [1], [0, 0, 1, 1], [], []>} : vector<2x112xbf16>, vector<112x128xbf16>, vector<2x128xf32> -> vector<2x128xf32>
    %c0_336 = arith.constant 0 : index
    %c0_337 = arith.constant 0 : index
    %782 = vector.load %arg12[%c0_336, %c0_337] : memref<1x128xf32, #tpu.memory_space<vmem>>, vector<1x128xf32>
    %783 = vector.broadcast %782 : vector<1x128xf32> to vector<2x128xf32>
    %784 = arith.addf %781, %783 : vector<2x128xf32>
    %785 = arith.index_cast %c6_i32 : i32 to index
    %c0_338 = arith.constant 0 : index
    %c0_339 = arith.constant 0 : index
    %786 = vector.load %arg21[%785, %c0_338, %c0_339] : memref<8x2x128xf32, #tpu.memory_space<vmem>>, vector<1x2x128xf32>
    %787 = vector.shape_cast %786 : vector<1x2x128xf32> to vector<2x128xf32>
    %788 = vector.shape_cast %784 : vector<2x128xf32> to vector<1x2x128xf32>
    tpu.vector_store %arg21[%785, %c0_338, %c0_339], %788 {strides = array<i32>} : memref<8x2x128xf32, #tpu.memory_space<vmem>>, vector<1x2x128xf32>,
    %789 = arith.index_cast %c6_i32 : i32 to index
    %c0_340 = arith.constant 0 : index
    %c0_341 = arith.constant 0 : index
    %790 = vector.load %arg1[%789, %c0_340, %c0_341] : memref<8x2x16xf32, #tpu.memory_space<vmem>>, vector<1x2x16xf32>
    %791 = vector.shape_cast %790 : vector<1x2x16xf32> to vector<2x16xf32>
    %c0_342 = arith.constant 0 : index
    %c0_343 = arith.constant 0 : index
    %792 = vector.load %arg23[%c0_342, %c0_343] : memref<2x16xf32, #tpu.memory_space<vmem>>, vector<2x16xf32>
    tpu.vector_store %arg23[%c0_342, %c0_343], %791 {strides = array<i32>} : memref<2x16xf32, #tpu.memory_space<vmem>>, vector<2x16xf32>,
    %793 = arith.index_cast %c6_i32 : i32 to index
    %794 = memref.load %arg0[%793] : memref<8xi32, #tpu.memory_space<smem>>
    %c0_i32_344 = arith.constant 0 : i32
    %795 = arith.cmpi eq, %794, %c0_i32_344 : i32
    %796 = arith.extui %795 : i1 to i32
    %c0_i32_345 = arith.constant 0 : i32
    %797 = arith.cmpi ne, %796, %c0_i32_345 : i32
    scf.if %797 {
      %927 = vector.extract_strided_slice %784 {offsets = [0, 0], sizes = [2, 24], strides = [1, 1]} : vector<2x128xf32> to vector<2x24xf32>
      %cst_402 = arith.constant dense<0xFF800000> : vector<2xf32>
      %928 = vector.multi_reduction <maximumf>, %927, %cst_402 [1] : vector<2x24xf32> to vector<2xf32>
      %929 = vector.shape_cast %928 : vector<2xf32> to vector<2x1xf32>
      %930 = vector.broadcast %929 : vector<2x1xf32> to vector<2x24xf32>
      %931 = arith.cmpf oeq, %927, %930 : vector<2x24xf32>
      %c24_i32 = arith.constant 24 : i32
      %932 = vector.broadcast %c24_i32 : i32 to vector<2x24xi32>
      %933 = arith.select %931, %27, %932 : vector<2x24xi1>, vector<2x24xi32>
      %cst_403 = arith.constant dense<2147483647> : vector<2xi32>
      %934 = vector.multi_reduction <minsi>, %933, %cst_403 [1] : vector<2x24xi32> to vector<2xi32>
      %935 = vector.shape_cast %934 : vector<2xi32> to vector<2x1xi32>
      %936 = vector.broadcast %935 : vector<2x1xi32> to vector<2x24xi32>
      %937 = arith.cmpi eq, %27, %936 : vector<2x24xi32>
      %938 = arith.extui %937 : vector<2x24xi1> to vector<2x24xi32>
      %939 = arith.sitofp %938 : vector<2x24xi32> to vector<2x24xf32>
      %940 = arith.truncf %939 : vector<2x24xf32> to vector<2x24xbf16>
      %c0_404 = arith.constant 0 : index
      %c0_405 = arith.constant 0 : index
      %941 = vector.load %arg10[%c0_404, %c0_405] : memref<24x16xbf16, #tpu.memory_space<vmem>>, vector<24x16xbf16>
      %cst_406 = arith.constant dense<0.000000e+00> : vector<2x16xf32>
      %942 = tpu.matmul %940, %941, %cst_406 {dimension_numbers = #tpu.dot_dimension_numbers<[1], [0], [0], [1], [0, 0, 1, 1], [], []>} : vector<2x24xbf16>, vector<24x16xbf16>, vector<2x16xf32> -> vector<2x16xf32>
      %c0_407 = arith.constant 0 : index
      %c0_408 = arith.constant 0 : index
      %943 = vector.load %arg23[%c0_407, %c0_408] : memref<2x16xf32, #tpu.memory_space<vmem>>, vector<2x16xf32>
      tpu.vector_store %arg23[%c0_407, %c0_408], %942 {strides = array<i32>} : memref<2x16xf32, #tpu.memory_space<vmem>>, vector<2x16xf32>,
    } else {
    }
    %c0_346 = arith.constant 0 : index
    %c0_347 = arith.constant 0 : index
    %798 = vector.load %arg23[%c0_346, %c0_347] : memref<2x16xf32, #tpu.memory_space<vmem>>, vector<2x16xf32>
    %c7_i32 = arith.constant 7 : i32
    %799 = arith.truncf %777 : vector<2x32xf32> to vector<2x32xbf16>
    %c0_348 = arith.constant 0 : index
    %c0_349 = arith.constant 0 : index
    %800 = vector.load %arg6[%c0_348, %c0_349] : memref<32x32xbf16, #tpu.memory_space<vmem>>, vector<32x32xbf16>
    %cst_350 = arith.constant dense<0.000000e+00> : vector<2x32xf32>
    %801 = tpu.matmul %799, %800, %cst_350 {dimension_numbers = #tpu.dot_dimension_numbers<[1], [0], [0], [1], [0, 0, 1, 1], [], []>} : vector<2x32xbf16>, vector<32x32xbf16>, vector<2x32xf32> -> vector<2x32xf32>
    %802 = vector.shape_cast %801 : vector<2x32xf32> to vector<2x1x32xf32>
    %803 = vector.broadcast %802 : vector<2x1x32xf32> to vector<2x10x32xf32>
    %804 = arith.addf %26, %803 : vector<2x10x32xf32>
    %805 = math.tanh %804 : vector<2x10x32xf32>
    %c0_351 = arith.constant 0 : index
    %c0_352 = arith.constant 0 : index
    %806 = vector.load %arg9[%c0_351, %c0_352] : memref<1x32xf32, #tpu.memory_space<vmem>>, vector<1x32xf32>
    %807 = vector.shape_cast %806 : vector<1x32xf32> to vector<1x1x32xf32>
    %808 = vector.broadcast %807 : vector<1x1x32xf32> to vector<2x10x32xf32>
    %809 = arith.mulf %805, %808 : vector<2x10x32xf32>
    %cst_353 = arith.constant dense<0.000000e+00> : vector<2x10xf32>
    %810 = vector.multi_reduction <add>, %809, %cst_353 [2] : vector<2x10x32xf32> to vector<2x10xf32>
    %cst_354 = arith.constant dense<0xFF800000> : vector<2xf32>
    %811 = vector.multi_reduction <maximumf>, %810, %cst_354 [1] : vector<2x10xf32> to vector<2xf32>
    %812 = vector.shape_cast %811 : vector<2xf32> to vector<2x1xf32>
    %813 = vector.broadcast %812 : vector<2x1xf32> to vector<2x10xf32>
    %814 = arith.subf %810, %813 : vector<2x10xf32>
    %815 = math.exp %814 : vector<2x10xf32>
    %cst_355 = arith.constant dense<0.000000e+00> : vector<2xf32>
    %816 = vector.multi_reduction <add>, %815, %cst_355 [1] : vector<2x10xf32> to vector<2xf32>
    %817 = vector.shape_cast %816 : vector<2xf32> to vector<2x1xf32>
    %818 = tpu.reciprocal %817 {approx = true} : vector<2x1xf32> -> vector<2x1xf32>
    %819 = vector.broadcast %818 : vector<2x1xf32> to vector<2x10xf32>
    %820 = arith.mulf %815, %819 : vector<2x10xf32>
    %821 = arith.truncf %820 : vector<2x10xf32> to vector<2x10xbf16>
    %c0_356 = arith.constant 0 : index
    %c0_357 = arith.constant 0 : index
    %822 = vector.load %arg3[%c0_356, %c0_357] : memref<10x128xbf16, #tpu.memory_space<vmem>>, vector<10x128xbf16>
    %cst_358 = arith.constant dense<0.000000e+00> : vector<2x128xf32>
    %823 = tpu.matmul %821, %822, %cst_358 {dimension_numbers = #tpu.dot_dimension_numbers<[1], [0], [0], [1], [0, 0, 1, 1], [], []>} : vector<2x10xbf16>, vector<10x128xbf16>, vector<2x128xf32> -> vector<2x128xf32>
    %824 = vector.extract_strided_slice %823 {offsets = [0, 0], sizes = [2, 64], strides = [1, 1]} : vector<2x128xf32> to vector<2x64xf32>
    %c1_i32_359 = arith.constant 1 : i32
    %825 = vector.broadcast %c1_i32_359 : i32 to vector<2x64xi32>
    %826 = arith.cmpi eq, %28, %825 : vector<2x64xi32>
    %827 = vector.extract_strided_slice %823 {offsets = [0, 64], sizes = [2, 64], strides = [1, 1]} : vector<2x128xf32> to vector<2x64xf32>
    %828 = arith.select %826, %827, %824 : vector<2x64xi1>, vector<2x64xf32>
    %829 = tpu.concatenate %798, %828 in 1 : vector<2x16xf32>, vector<2x64xf32> -> vector<2x80xf32>
    %c0_360 = arith.constant 0 : index
    %c0_361 = arith.constant 0 : index
    %830 = vector.load %arg13[%c0_360, %c0_361] : memref<80x128xbf16, #tpu.memory_space<vmem>>, vector<80x128xbf16>
    %c0_362 = arith.constant 0 : index
    %c0_363 = arith.constant 0 : index
    %831 = vector.load %arg14[%c0_362, %c0_363] : memref<32x128xbf16, #tpu.memory_space<vmem>>, vector<32x128xbf16>
    %c0_364 = arith.constant 0 : index
    %c0_365 = arith.constant 0 : index
    %832 = vector.load %arg15[%c0_364, %c0_365] : memref<1x128xf32, #tpu.memory_space<vmem>>, vector<1x128xf32>
    %c0_366 = arith.constant 0 : index
    %c0_367 = arith.constant 0 : index
    %833 = vector.load %arg16[%c0_366, %c0_367] : memref<1x32xf32, #tpu.memory_space<vmem>>, vector<1x32xf32>
    %834 = arith.truncf %829 : vector<2x80xf32> to vector<2x80xbf16>
    %cst_368 = arith.constant dense<0.000000e+00> : vector<2x128xf32>
    %835 = tpu.matmul %834, %830, %cst_368 {dimension_numbers = #tpu.dot_dimension_numbers<[1], [0], [0], [1], [0, 0, 1, 1], [], []>} : vector<2x80xbf16>, vector<80x128xbf16>, vector<2x128xf32> -> vector<2x128xf32>
    %836 = vector.broadcast %832 : vector<1x128xf32> to vector<2x128xf32>
    %837 = arith.addf %835, %836 : vector<2x128xf32>
    %838 = arith.truncf %739 : vector<2x32xf32> to vector<2x32xbf16>
    %cst_369 = arith.constant dense<0.000000e+00> : vector<2x128xf32>
    %839 = tpu.matmul %838, %831, %cst_369 {dimension_numbers = #tpu.dot_dimension_numbers<[1], [0], [0], [1], [0, 0, 1, 1], [], []>} : vector<2x32xbf16>, vector<32x128xbf16>, vector<2x128xf32> -> vector<2x128xf32>
    %840 = vector.extract_strided_slice %837 {offsets = [0, 0], sizes = [2, 32], strides = [1, 1]} : vector<2x128xf32> to vector<2x32xf32>
    %841 = vector.extract_strided_slice %839 {offsets = [0, 0], sizes = [2, 32], strides = [1, 1]} : vector<2x128xf32> to vector<2x32xf32>
    %842 = arith.addf %840, %841 : vector<2x32xf32>
    %843 = arith.negf %842 : vector<2x32xf32>
    %844 = math.exp %843 : vector<2x32xf32>
    %cst_370 = arith.constant 1.000000e+00 : f32
    %845 = vector.broadcast %cst_370 : f32 to vector<2x32xf32>
    %846 = arith.addf %845, %844 : vector<2x32xf32>
    %847 = arith.divf %845, %846 : vector<2x32xf32>
    %848 = vector.extract_strided_slice %837 {offsets = [0, 32], sizes = [2, 32], strides = [1, 1]} : vector<2x128xf32> to vector<2x32xf32>
    %849 = vector.extract_strided_slice %839 {offsets = [0, 32], sizes = [2, 32], strides = [1, 1]} : vector<2x128xf32> to vector<2x32xf32>
    %850 = arith.addf %848, %849 : vector<2x32xf32>
    %851 = arith.negf %850 : vector<2x32xf32>
    %852 = math.exp %851 : vector<2x32xf32>
    %cst_371 = arith.constant 1.000000e+00 : f32
    %853 = vector.broadcast %cst_371 : f32 to vector<2x32xf32>
    %854 = arith.addf %853, %852 : vector<2x32xf32>
    %855 = arith.divf %853, %854 : vector<2x32xf32>
    %856 = vector.extract_strided_slice %837 {offsets = [0, 64], sizes = [2, 32], strides = [1, 1]} : vector<2x128xf32> to vector<2x32xf32>
    %857 = vector.extract_strided_slice %839 {offsets = [0, 64], sizes = [2, 32], strides = [1, 1]} : vector<2x128xf32> to vector<2x32xf32>
    %858 = vector.broadcast %833 : vector<1x32xf32> to vector<2x32xf32>
    %859 = arith.addf %857, %858 : vector<2x32xf32>
    %860 = arith.mulf %847, %859 : vector<2x32xf32>
    %861 = arith.addf %856, %860 : vector<2x32xf32>
    %862 = math.tanh %861 : vector<2x32xf32>
    %cst_372 = arith.constant 1.000000e+00 : f32
    %863 = vector.broadcast %cst_372 : f32 to vector<2x32xf32>
    %864 = arith.subf %863, %855 : vector<2x32xf32>
    %865 = arith.mulf %864, %862 : vector<2x32xf32>
    %866 = arith.mulf %855, %739 : vector<2x32xf32>
    %867 = arith.addf %865, %866 : vector<2x32xf32>
    %c0_373 = arith.constant 0 : index
    %c0_374 = arith.constant 0 : index
    %868 = vector.load %arg17[%c0_373, %c0_374] : memref<32x128xbf16, #tpu.memory_space<vmem>>, vector<32x128xbf16>
    %c0_375 = arith.constant 0 : index
    %c0_376 = arith.constant 0 : index
    %869 = vector.load %arg18[%c0_375, %c0_376] : memref<32x128xbf16, #tpu.memory_space<vmem>>, vector<32x128xbf16>
    %c0_377 = arith.constant 0 : index
    %c0_378 = arith.constant 0 : index
    %870 = vector.load %arg19[%c0_377, %c0_378] : memref<1x128xf32, #tpu.memory_space<vmem>>, vector<1x128xf32>
    %c0_379 = arith.constant 0 : index
    %c0_380 = arith.constant 0 : index
    %871 = vector.load %arg20[%c0_379, %c0_380] : memref<1x32xf32, #tpu.memory_space<vmem>>, vector<1x32xf32>
    %872 = arith.truncf %867 : vector<2x32xf32> to vector<2x32xbf16>
    %cst_381 = arith.constant dense<0.000000e+00> : vector<2x128xf32>
    %873 = tpu.matmul %872, %868, %cst_381 {dimension_numbers = #tpu.dot_dimension_numbers<[1], [0], [0], [1], [0, 0, 1, 1], [], []>} : vector<2x32xbf16>, vector<32x128xbf16>, vector<2x128xf32> -> vector<2x128xf32>
    %874 = vector.broadcast %870 : vector<1x128xf32> to vector<2x128xf32>
    %875 = arith.addf %873, %874 : vector<2x128xf32>
    %876 = arith.truncf %777 : vector<2x32xf32> to vector<2x32xbf16>
    %cst_382 = arith.constant dense<0.000000e+00> : vector<2x128xf32>
    %877 = tpu.matmul %876, %869, %cst_382 {dimension_numbers = #tpu.dot_dimension_numbers<[1], [0], [0], [1], [0, 0, 1, 1], [], []>} : vector<2x32xbf16>, vector<32x128xbf16>, vector<2x128xf32> -> vector<2x128xf32>
    %878 = vector.extract_strided_slice %875 {offsets = [0, 0], sizes = [2, 32], strides = [1, 1]} : vector<2x128xf32> to vector<2x32xf32>
    %879 = vector.extract_strided_slice %877 {offsets = [0, 0], sizes = [2, 32], strides = [1, 1]} : vector<2x128xf32> to vector<2x32xf32>
    %880 = arith.addf %878, %879 : vector<2x32xf32>
    %881 = arith.negf %880 : vector<2x32xf32>
    %882 = math.exp %881 : vector<2x32xf32>
    %cst_383 = arith.constant 1.000000e+00 : f32
    %883 = vector.broadcast %cst_383 : f32 to vector<2x32xf32>
    %884 = arith.addf %883, %882 : vector<2x32xf32>
    %885 = arith.divf %883, %884 : vector<2x32xf32>
    %886 = vector.extract_strided_slice %875 {offsets = [0, 32], sizes = [2, 32], strides = [1, 1]} : vector<2x128xf32> to vector<2x32xf32>
    %887 = vector.extract_strided_slice %877 {offsets = [0, 32], sizes = [2, 32], strides = [1, 1]} : vector<2x128xf32> to vector<2x32xf32>
    %888 = arith.addf %886, %887 : vector<2x32xf32>
    %889 = arith.negf %888 : vector<2x32xf32>
    %890 = math.exp %889 : vector<2x32xf32>
    %cst_384 = arith.constant 1.000000e+00 : f32
    %891 = vector.broadcast %cst_384 : f32 to vector<2x32xf32>
    %892 = arith.addf %891, %890 : vector<2x32xf32>
    %893 = arith.divf %891, %892 : vector<2x32xf32>
    %894 = vector.extract_strided_slice %875 {offsets = [0, 64], sizes = [2, 32], strides = [1, 1]} : vector<2x128xf32> to vector<2x32xf32>
    %895 = vector.extract_strided_slice %877 {offsets = [0, 64], sizes = [2, 32], strides = [1, 1]} : vector<2x128xf32> to vector<2x32xf32>
    %896 = vector.broadcast %871 : vector<1x32xf32> to vector<2x32xf32>
    %897 = arith.addf %895, %896 : vector<2x32xf32>
    %898 = arith.mulf %885, %897 : vector<2x32xf32>
    %899 = arith.addf %894, %898 : vector<2x32xf32>
    %900 = math.tanh %899 : vector<2x32xf32>
    %cst_385 = arith.constant 1.000000e+00 : f32
    %901 = vector.broadcast %cst_385 : f32 to vector<2x32xf32>
    %902 = arith.subf %901, %893 : vector<2x32xf32>
    %903 = arith.mulf %902, %900 : vector<2x32xf32>
    %904 = arith.mulf %893, %777 : vector<2x32xf32>
    %905 = arith.addf %903, %904 : vector<2x32xf32>
    %906 = tpu.concatenate %905, %828, %798 in 1 : vector<2x32xf32>, vector<2x64xf32>, vector<2x16xf32> -> vector<2x112xf32>
    %907 = arith.truncf %906 : vector<2x112xf32> to vector<2x112xbf16>
    %c0_386 = arith.constant 0 : index
    %c0_387 = arith.constant 0 : index
    %908 = vector.load %arg11[%c0_386, %c0_387] : memref<112x128xbf16, #tpu.memory_space<vmem>>, vector<112x128xbf16>
    %cst_388 = arith.constant dense<0.000000e+00> : vector<2x128xf32>
    %909 = tpu.matmul %907, %908, %cst_388 {dimension_numbers = #tpu.dot_dimension_numbers<[1], [0], [0], [1], [0, 0, 1, 1], [], []>} : vector<2x112xbf16>, vector<112x128xbf16>, vector<2x128xf32> -> vector<2x128xf32>
    %c0_389 = arith.constant 0 : index
    %c0_390 = arith.constant 0 : index
    %910 = vector.load %arg12[%c0_389, %c0_390] : memref<1x128xf32, #tpu.memory_space<vmem>>, vector<1x128xf32>
    %911 = vector.broadcast %910 : vector<1x128xf32> to vector<2x128xf32>
    %912 = arith.addf %909, %911 : vector<2x128xf32>
    %913 = arith.index_cast %c7_i32 : i32 to index
    %c0_391 = arith.constant 0 : index
    %c0_392 = arith.constant 0 : index
    %914 = vector.load %arg21[%913, %c0_391, %c0_392] : memref<8x2x128xf32, #tpu.memory_space<vmem>>, vector<1x2x128xf32>
    %915 = vector.shape_cast %914 : vector<1x2x128xf32> to vector<2x128xf32>
    %916 = vector.shape_cast %912 : vector<2x128xf32> to vector<1x2x128xf32>
    tpu.vector_store %arg21[%913, %c0_391, %c0_392], %916 {strides = array<i32>} : memref<8x2x128xf32, #tpu.memory_space<vmem>>, vector<1x2x128xf32>,
    %917 = arith.index_cast %c7_i32 : i32 to index
    %c0_393 = arith.constant 0 : index
    %c0_394 = arith.constant 0 : index
    %918 = vector.load %arg1[%917, %c0_393, %c0_394] : memref<8x2x16xf32, #tpu.memory_space<vmem>>, vector<1x2x16xf32>
    %919 = vector.shape_cast %918 : vector<1x2x16xf32> to vector<2x16xf32>
    %c0_395 = arith.constant 0 : index
    %c0_396 = arith.constant 0 : index
    %920 = vector.load %arg23[%c0_395, %c0_396] : memref<2x16xf32, #tpu.memory_space<vmem>>, vector<2x16xf32>
    tpu.vector_store %arg23[%c0_395, %c0_396], %919 {strides = array<i32>} : memref<2x16xf32, #tpu.memory_space<vmem>>, vector<2x16xf32>,
    %921 = arith.index_cast %c7_i32 : i32 to index
    %922 = memref.load %arg0[%921] : memref<8xi32, #tpu.memory_space<smem>>
    %c0_i32_397 = arith.constant 0 : i32
    %923 = arith.cmpi eq, %922, %c0_i32_397 : i32
    %924 = arith.extui %923 : i1 to i32
    %c0_i32_398 = arith.constant 0 : i32
    %925 = arith.cmpi ne, %924, %c0_i32_398 : i32
    scf.if %925 {
      %927 = vector.extract_strided_slice %912 {offsets = [0, 0], sizes = [2, 24], strides = [1, 1]} : vector<2x128xf32> to vector<2x24xf32>
      %cst_402 = arith.constant dense<0xFF800000> : vector<2xf32>
      %928 = vector.multi_reduction <maximumf>, %927, %cst_402 [1] : vector<2x24xf32> to vector<2xf32>
      %929 = vector.shape_cast %928 : vector<2xf32> to vector<2x1xf32>
      %930 = vector.broadcast %929 : vector<2x1xf32> to vector<2x24xf32>
      %931 = arith.cmpf oeq, %927, %930 : vector<2x24xf32>
      %c24_i32 = arith.constant 24 : i32
      %932 = vector.broadcast %c24_i32 : i32 to vector<2x24xi32>
      %933 = arith.select %931, %27, %932 : vector<2x24xi1>, vector<2x24xi32>
      %cst_403 = arith.constant dense<2147483647> : vector<2xi32>
      %934 = vector.multi_reduction <minsi>, %933, %cst_403 [1] : vector<2x24xi32> to vector<2xi32>
      %935 = vector.shape_cast %934 : vector<2xi32> to vector<2x1xi32>
      %936 = vector.broadcast %935 : vector<2x1xi32> to vector<2x24xi32>
      %937 = arith.cmpi eq, %27, %936 : vector<2x24xi32>
      %938 = arith.extui %937 : vector<2x24xi1> to vector<2x24xi32>
      %939 = arith.sitofp %938 : vector<2x24xi32> to vector<2x24xf32>
      %940 = arith.truncf %939 : vector<2x24xf32> to vector<2x24xbf16>
      %c0_404 = arith.constant 0 : index
      %c0_405 = arith.constant 0 : index
      %941 = vector.load %arg10[%c0_404, %c0_405] : memref<24x16xbf16, #tpu.memory_space<vmem>>, vector<24x16xbf16>
      %cst_406 = arith.constant dense<0.000000e+00> : vector<2x16xf32>
      %942 = tpu.matmul %940, %941, %cst_406 {dimension_numbers = #tpu.dot_dimension_numbers<[1], [0], [0], [1], [0, 0, 1, 1], [], []>} : vector<2x24xbf16>, vector<24x16xbf16>, vector<2x16xf32> -> vector<2x16xf32>
      %c0_407 = arith.constant 0 : index
      %c0_408 = arith.constant 0 : index
      %943 = vector.load %arg23[%c0_407, %c0_408] : memref<2x16xf32, #tpu.memory_space<vmem>>, vector<2x16xf32>
      tpu.vector_store %arg23[%c0_407, %c0_408], %942 {strides = array<i32>} : memref<2x16xf32, #tpu.memory_space<vmem>>, vector<2x16xf32>,
    } else {
    }
    %c0_399 = arith.constant 0 : index
    %c0_400 = arith.constant 0 : index
    %926 = vector.load %arg23[%c0_399, %c0_400] : memref<2x16xf32, #tpu.memory_space<vmem>>, vector<2x16xf32>
    %c7_i32_401 = arith.constant 7 : i32
    return
  }
}

</mosaic_0001>

<bundles_post_ra>
// kernel: seq2seq_forward.2
= control target key start
LH: loop header
LB: loop body
LE: loop exit
PB: predicated region body
PF: predicated region fallthrough
CT: control target
= control target key end

     0   :  { %vm62_vm0 = vcmask 130048   ;;  %v2861_v4 = vmov 0.0   ;;  %vm2862_vm1 = vmmov 0   ;;  %s2863_s15 = smov 64   ;;  %v2864_v11 = vmov 0   ;;  %s2865_s24 = smov 96   ;;  %s3519_s1 = inlined_call_operand.vmem [shape: bf16[16,128], index: 1, kind: input, shape index: {}]   ;;  %s3520_s5 = inlined_call_operand.vmem [shape: bf16[16,128], index: 5, kind: input, shape index: {}]   ;;  %s3521_s0 = inlined_call_operand.vmem [shape: bf16[20,16], index: 0, kind: input, shape index: {}]   ;;  %s3522_s2 = inlined_call_operand.vmem [shape: bf16[32,128], index: 2, kind: input, shape index: {}]   ;;  %s3523_s6 = inlined_call_operand.vmem [shape: bf16[32,128], index: 6, kind: input, shape index: {}]   ;;  %s3524_s4 = inlined_call_operand.vmem [shape: f32[1,32], index: 4, kind: input, shape index: {}]   ;;  %s3525_s8 = inlined_call_operand.vmem [shape: f32[1,32], index: 8, kind: input, shape index: {}]   ;;  %s3526_s3 = inlined_call_operand.vmem [shape: f32[1,128], index: 3, kind: input, shape index: {}]   ;;  %s3527_s7 = inlined_call_operand.vmem [shape: f32[1,128], index: 7, kind: input, shape index: {}]   ;;  %s3528_s10 = inlined_call_operand.vmem [shape: f32[10,2,32], index: 10, kind: output, shape index: {1}]   ;;  %s3529_s9 = inlined_call_operand.vmem [shape: f32[10,2,32], index: 9, kind: output, shape index: {0}]   ;;  %s3530_s11 = inlined_call_operand.vmem [shape: f32[2,64], index: 11, kind: output, shape index: {2}]  }
   0x1   :  { %v2697_v0 = vld [vmem:[%s3519_s1] sm:$0xff]   ;;  %v2700_v3 = vld [vmem:[%s3521_s0 + $0x8] ss:$0 sps:$4 sm:$0x33]   ;;  %vm206_vm2 = vcmask 261120   ;;  %vm381_vm3 = vcmask 254976  }
   0x2   :  { %v2698_v1 = vld [vmem:[%s3520_s5] sm:$0xff]   ;;  %2520 = vmatprep.subr.bf16.mxu0 %v2697_v0  ;;  %v2701_v5 = vld [vmem:[%s3522_s2 + $0x8] sm:$0xff]   ;;  %vm2314_vm4 = vcmask 517376  }
   0x3   :  { %2526 = vmatprep.subr.bf16.mxu1 %v2698_v1  ;;  %2521 = vmatpush3.bf16.msra.mxu0 %v2697_v0  ;;  %v2699_v2 = vld [vmem:[%s3521_s0] sm:$0xff]   ;;  %v2702_v6 = vld [vmem:[%s3523_s6 + $0x8] sm:$0xff]  }
   0x4   :  { %2527 = vmatpush3.bf16.msra.mxu1 %v2698_v1  ;;  %2532 = vmatprep.subr.bf16.mxu0 %v2861_v4  ;;  %v2703_v7 = vld [vmem:[%s3522_s2] sm:$0xff]   ;;  %v2705_v60 = vld [vmem:[%s3522_s2 + $0x8] sm:$0xff]  }
   0x5   :  { %2522 = vmatprep.mubr.msk.bf16.mxu0 %vm62_vm0, %v2699_v2  ;;  %2528 = vmatprep.mubr.msk.bf16.mxu1 %vm62_vm0, %v2699_v2  ;;  %v2956_v8 = vld [vmem:[%s3524_s4] ss:$0 sm:$0xff]  ;;  %v2707_v61 = vld [vmem:[%s3523_s6 + $0x8] sm:$0xff]  }
   0x6   :  { %2523 = vmatmul.mubr.msk.bf16.vlgmr.msra.gmra.mxu0 %vm62_vm0, %v2700_v3  ;;  %2540 = vmatprep.subr.bf16.mxu1 %v2861_v4  ;;  %v2704_v9 = vld [vmem:[%s3523_s6] sm:$0xff]  }
   0x7   :  { %2529 = vmatmul.mubr.msk.bf16.vlgmr.msra.gmra.mxu1 %vm62_vm0, %v2700_v3  ;;  %2533 = vmatpush3.bf16.msra.mxu0 %v2701_v5  ;;  %v2968_v10 = vld [vmem:[%s3525_s8] ss:$0 sm:$0xff] }
   0x8   :  { %2541 = vmatpush3.bf16.msra.mxu1 %v2702_v6  ;;  %2534 = vmatprep.subr.bf16.mxu0 %v2861_v4  ;;  %v2328_v12 = vld [vmem:[%s3526_s3] ss:$0 sm:$0xff] }
   0x9   :  { %2542 = vmatprep.subr.bf16.mxu1 %v2861_v4  ;;  %2536 = vmatprep.mubr.msk.bf16.mxu0 %vm2862_vm1, %v2861_v4  ;;  %v2334_v13 = vld [vmem:[%s3527_s7] ss:$0 sm:$0xff] }
   0xa   :  { %2544 = vmatprep.mubr.msk.bf16.mxu1 %vm2862_vm1, %v2861_v4  ;;  %262 = vrot.lane.b32.xlu0 %v2956_v8, %s2863_s15  ;;  %v2706_v63 = vld [vmem:[%s3522_s2] sm:$0xff]  }
   0xb   :  { %2535 = vmatpush3.bf16.msra.mxu0 %v2703_v7  ;;  %v2708_v1 = vld [vmem:[%s3523_s6] sm:$0xff]  }
   0xc   :  { %2543 = vmatpush3.bf16.msra.mxu1 %v2704_v9  ;;  %2548 = vmatprep.subr.bf16.mxu0 %v2861_v4 }
   0xd   :  { %2556 = vmatprep.subr.bf16.mxu1 %v2861_v4 }
   0xe   :  { %2537 = vmatmul.mubr.bf16.vlgmr.msra.gmra.mxu0 %v2864_v11  ;;  %354 = vrot.lane.b32.xlu0 %v2968_v10, %s2863_s15 }
   0xf   :  { %2545 = vmatmul.mubr.bf16.vlgmr.msra.gmra.mxu1 %v2864_v11  ;;  %2552 = vmatprep.mubr.msk.bf16.mxu0 %vm2862_vm1, %v2861_v4 }
  0x10   :  { %2560 = vmatprep.mubr.msk.bf16.mxu1 %vm2862_vm1, %v2861_v4  ;;  %2549 = vmatpush3.bf16.msra.mxu0 %v2705_v60 }
  0x11   :  { %2557 = vmatpush3.bf16.msra.mxu1 %v2707_v61  ;;  %2550 = vmatprep.subr.bf16.mxu0 %v2861_v4 }
  0x12   :  { %2558 = vmatprep.subr.bf16.mxu1 %v2861_v4 }
  0x14   :  { %2551 = vmatpush3.bf16.msra.mxu0 %v2706_v63 }
  0x15   :  { %2564 = vmatprep.subr.bf16.mxu0 %v2861_v4  ;;  %2559 = vmatpush3.bf16.msra.mxu1 %v2708_v1 }
  0x16   :  { %2572 = vmatprep.subr.bf16.mxu1 %v2861_v4 }
  0x7c   :  { %v263_v19 = vpop.permute.xlu0 %262 }
  0x80   :  { %v355_v30 = vpop.permute.xlu0 %354 }
  0xc6   :  { %v2524_v14 = vpop.f32.mrf.mxu0 }
  0xc7   :  { %v112_v15 = vadd.f32 %v2524_v14, %v2328_v12  ;;  %v2530_v16 = vpop.f32.mrf.mxu1 }
  0xc8   :  { %v178_v17 = vadd.f32 %v2530_v16, %v2334_v13  ;;  %v103_v18 = vpop.f32.mrf.mxu0 }
  0xc9   :  { %119 = vst [vmem:[#allocation2 + $0x10] sm:$0xf] %v112_v15  ;;  %v104_v20 = vadd.f32 %v2328_v12, %v103_v18  ;;  %v169_v21 = vpop.f32.mrf.mxu1 }
  0xca   :  { %185 = vst [vmem:[#allocation3 + $0x10] sm:$0xf] %v178_v17  ;;  %v170_v22 = vadd.f32 %v2334_v13, %v169_v21  ;;  %v2525_v23 = vpop.f32.mrf.mxu0 }
  0xcb   :  { %117 = vst [vmem:[#allocation2] sm:$0xff] %v104_v20  ;;  %v2531_v24 = vpop.f32.mrf.mxu1 }
  0xcc   :  { %183 = vst [vmem:[#allocation3] sm:$0xff] %v170_v22  ;;  %v106_v25 = vpop.f32.mrf.mxu0 }
  0xcd   :  { %v107_v26 = vadd.f32 %v2328_v12, %v106_v25  ;;  %v172_v27 = vpop.f32.mrf.mxu1 }
  0xce   :  { %v173_v28 = vadd.f32 %v2334_v13, %v172_v27  ;;  %v244_v29 = vpop.f32.mrf.mxu0 }
  0xcf   :  { %118 = vst [vmem:[#allocation2 + $0x8] sm:$0xff] %v107_v26  ;;  %v336_v31 = vpop.f32.mrf.mxu1  ;;  %v265_v32 = vadd.f32 %v263_v19, %v244_v29 }
  0xd0   :  { %184 = vst [vmem:[#allocation3 + $0x8] sm:$0xff] %v173_v28  ;;  %v2538_v33 = vpop.f32.mrf.mxu0  ;;  %v357_v35 = vadd.f32 %v355_v30, %v336_v31 }
  0xd1   :  { %v2546_v34 = vpop.f32.mrf.mxu1  ;;  %267 = vrot.lane.b32.xlu1 %v265_v32, %s2863_s15  ;;  %v188_v42 = vld [vmem:[#allocation3 + $0x12] sm:$0x3]  ;;  %v392_v33 = vld [vmem:[#allocation3 + $0x10] sm:$0x3] }
  0xd2   :  { %v247_v36 = vpop.f32.mrf.mxu0  ;;  %v186_v40 = vld [vmem:[#allocation2] sm:$0x3]  ;;  %v342_v44 = vadd.f32 %v336_v31, %v188_v42  ;;  %v390_v31 = vld [vmem:[#allocation2 + $0x2] sm:$0x3] }
  0xd3   :  { %v339_v37 = vpop.f32.mrf.mxu1  ;;  %v250_v41 = vadd.f32 %v244_v29, %v186_v40 }
  0xd4   :  { %v2539_v38 = vpop.f32.mrf.mxu0  ;;  %v2344_v45 = vmul.f32 -1.442695, %v342_v44 }
  0xd5   :  { %v2547_v39 = vpop.f32.mrf.mxu1  ;;  %359 = vrot.lane.b32.xlu1 %v357_v35, %s2863_s15  ;;  %v2340_v43 = vmul.f32 -1.442695, %v250_v41 }
  0xd7   :  { %2741 = vpow2.f32 %v2340_v43 }
  0xd8   :  { %2743 = vpow2.f32 %v2344_v45 }
  0xe4   :  { %v2742_v46 = vpop.eup %2741 }
  0xe5   :  { %v254_v47 = vadd.f32 1.0, %v2742_v46  ;;  %v2744_v48 = vpop.eup %2743 }
  0xe6   :  { %v346_v49 = vadd.f32 1.0, %v2744_v48 }
  0xe7   :  { %2745 = vrcp.f32 %v254_v47 }
  0xe8   :  { %2747 = vrcp.f32 %v346_v49 }
  0xf4   :  { %v2746_v50 = vpop.eup %2745 }
  0xf5   :  { %v2748_v53 = vpop.eup %2747  ;;  %v277_v2 = vsub.f32 1.0, %v2746_v50  ;;  %v283_v5 = vmul.f32 0.0, %v2746_v50 }
  0xf6   :  { %v369_v9 = vsub.f32 1.0, %v2748_v53  ;;  %v375_v12 = vmul.f32 0.0, %v2748_v53 }
 0x143   :  { %v268_v51 = vpop.permute.xlu1 %267 }
 0x144   :  { %v270_v52 = vmul.f32 %v2746_v50, %v268_v51  ;;  %v2709_v51 = vld [vmem:[%s3522_s2 + $0x8] sm:$0xff]  }
 0x146   :  { %272 = vrot.lane.b32.xlu0 %v270_v52, %s2863_s15  ;;  %v2711_v52 = vld [vmem:[%s3523_s6 + $0x8] sm:$0xff]  }
 0x147   :  { %v360_v54 = vpop.permute.xlu1 %359 }
 0x148   :  { %v362_v55 = vmul.f32 %v2748_v53, %v360_v54  ;;  %v2710_v54 = vld [vmem:[%s3522_s2] sm:$0xff]  }
 0x14a   :  { %364 = vrot.lane.b32.xlu1 %v362_v55, %s2863_s15 }
 0x1b8   :  { %v273_v56 = vpop.permute.xlu0 %272 }
 0x1b9   :  { %v275_v57 = vadd.f32 %v273_v56, %v186_v40  ;;  %v2712_v56 = vld [vmem:[%s3523_s6] sm:$0xff]  }
 0x1bb   :  { %2749 = vtanh.f32 %v275_v57 }
 0x1bc   :  { %v365_v58 = vpop.permute.xlu1 %364 }
 0x1bd   :  { %v367_v59 = vadd.f32 %v365_v58, %v188_v42 }
 0x1bf   :  { %2751 = vtanh.f32 %v367_v59 }
 0x1c8   :  { %v2750_v62 = vpop.eup %2749 }
 0x1c9   :  { %279 = vrot.lane.b32.xlu0 %v2750_v62, %s2865_s24 }
 0x1cc   :  { %v2752_v0 = vpop.eup %2751 }
 0x1cd   :  { %371 = vrot.lane.b32.xlu1 %v2752_v0, %s2865_s24 }
 0x23b   :  { %v280_v3 = vpop.permute.xlu0 %279 }
 0x23c   :  { %v282_v6 = vmul.f32 %v280_v3, %v277_v2 }
 0x23e   :  { %v3010_v7 = vadd.f32 %v283_v5, %v282_v6 }
 0x23f   :  { %v372_v11 = vpop.permute.xlu1 %371 }
 0x240   :  { %v374_v13 = vmul.f32 %v372_v11, %v369_v9  ;;  %v398_v14 = vpack.c.bf16 %v3010_v7, %v3010_v7 }
 0x242   :  { %v3014_v15 = vadd.f32 %v375_v12, %v374_v13  ;;  %400 = vrot.lane.b32.xlu0 %v398_v14, %s2865_s24 }
 0x244   :  { %v497_v16 = vpack.c.bf16 %v3014_v15, %v3014_v15 }
 0x246   :  { %499 = vrot.lane.b32.xlu1 %v497_v16, %s2865_s24  ;;  %469 = vrot.lane.b32.xlu0 %v2956_v8, %s2863_s15 }
 0x24a   :  { %568 = vrot.lane.b32.xlu1 %v2968_v10, %s2863_s15 }
 0x2b4   :  { %v401_v17 = vpop.permute.xlu0 %400 }
 0x2b5   :  { %2553 = vmatmul.mubr.msk.bf16.vlgmr.msra.gmra.mxu0 %vm206_vm2, %v401_v17 }
 0x2b6   :  { %2568 = vmatprep.mubr.msk.bf16.mxu0 %vm2862_vm1, %v2861_v4  ;;  %2565 = vmatpush3.bf16.msra.mxu0 %v2709_v51 }
 0x2b7   :  { %2566 = vmatprep.subr.bf16.mxu0 %v2861_v4 }
 0x2b8   :  { %v500_v18 = vpop.permute.xlu1 %499  ;;  %v470_v19 = vpop.permute.xlu0 %469 }
 0x2b9   :  { %2561 = vmatmul.mubr.msk.bf16.vlgmr.msra.gmra.mxu1 %vm206_vm2, %v500_v18 }
 0x2ba   :  { %2576 = vmatprep.mubr.msk.bf16.mxu1 %vm2862_vm1, %v2861_v4  ;;  %2573 = vmatpush3.bf16.msra.mxu1 %v2711_v52 }
 0x2bb   :  { %2574 = vmatprep.subr.bf16.mxu1 %v2861_v4  ;;  %2567 = vmatpush3.bf16.msra.mxu0 %v2710_v54 }
 0x2bc   :  { %v569_v23 = vpop.permute.xlu1 %568  ;;  %2580 = vmatprep.subr.bf16.mxu0 %v2861_v4 }
 0x2be   :  { %2575 = vmatpush3.bf16.msra.mxu1 %v2712_v56 }
 0x2bf   :  { %2588 = vmatprep.subr.bf16.mxu1 %v2861_v4 }
 0x375   :  { %v451_v20 = vpop.f32.mrf.mxu0 }
 0x376   :  { %v472_v21 = vadd.f32 %v470_v19, %v451_v20  ;;  %v457_v32 = vadd.f32 %v451_v20, %v390_v31 }
 0x377   :  { %v2554_v22 = vpop.f32.mrf.mxu0 }
 0x378   :  { %474 = vrot.lane.b32.xlu0 %v472_v21, %s2863_s15  ;;  %v2350_v34 = vmul.f32 -1.442695, %v457_v32 }
 0x379   :  { %v550_v24 = vpop.f32.mrf.mxu1  ;;  %v454_v25 = vpop.f32.mrf.mxu0 }
 0x37a   :  { %v571_v26 = vadd.f32 %v569_v23, %v550_v24  ;;  %v556_v35 = vadd.f32 %v550_v24, %v392_v33  ;;  %2753 = vpow2.f32 %v2350_v34  ;;  %v604_v24 = vld [vmem:[#allocation2 + $0x4] sm:$0x3] }
 0x37b   :  { %v2555_v27 = vpop.f32.mrf.mxu0  ;;  %v2562_v28 = vpop.f32.mrf.mxu1 }
 0x37c   :  { %573 = vrot.lane.b32.xlu1 %v571_v26, %s2863_s15  ;;  %v2355_v36 = vmul.f32 -1.442695, %v556_v35  ;;  %v606_v26 = vld [vmem:[#allocation3 + $0xe] sm:$0x3] }
 0x37d   :  { %v553_v29 = vpop.f32.mrf.mxu1 }
 0x37e   :  { %2755 = vpow2.f32 %v2355_v36 }
 0x37f   :  { %v2563_v30 = vpop.f32.mrf.mxu1 }
 0x387   :  { %v2754_v37 = vpop.eup %2753 }
 0x388   :  { %v461_v38 = vadd.f32 1.0, %v2754_v37 }
 0x38a   :  { %2757 = vrcp.f32 %v461_v38 }
 0x38b   :  { %v2756_v39 = vpop.eup %2755 }
 0x38c   :  { %v560_v40 = vadd.f32 1.0, %v2756_v39 }
 0x38e   :  { %2759 = vrcp.f32 %v560_v40 }
 0x397   :  { %v2758_v41 = vpop.eup %2757 }
 0x398   :  { %v484_v57 = vsub.f32 1.0, %v2758_v41  ;;  %v490_v59 = vmul.f32 %v2758_v41, %v3010_v7 }
 0x39b   :  { %v2760_v44 = vpop.eup %2759 }
 0x39c   :  { %v583_v62 = vsub.f32 1.0, %v2760_v44  ;;  %v589_v0 = vmul.f32 %v2760_v44, %v3014_v15 }
 0x3ea   :  { %v475_v42 = vpop.permute.xlu0 %474 }
 0x3eb   :  { %v477_v43 = vmul.f32 %v2758_v41, %v475_v42 }
 0x3ed   :  { %479 = vrot.lane.b32.xlu0 %v477_v43, %s2863_s15 }
 0x3ee   :  { %v574_v45 = vpop.permute.xlu1 %573 }
 0x3ef   :  { %v576_v46 = vmul.f32 %v2760_v44, %v574_v45  ;;  %v2713_v44 = vld [vmem:[%s3522_s2 + $0x8] sm:$0xff]  }
 0x3f0   :  { %v2715_v45 = vld [vmem:[%s3523_s6 + $0x8] sm:$0xff]  }
 0x3f1   :  { %578 = vrot.lane.b32.xlu1 %v576_v46, %s2863_s15 }
 0x45f   :  { %v480_v47 = vpop.permute.xlu0 %479 }
 0x460   :  { %v482_v48 = vadd.f32 %v480_v47, %v390_v31  ;;  %v2714_v47 = vld [vmem:[%s3522_s2] sm:$0xff]  }
 0x462   :  { %2761 = vtanh.f32 %v482_v48 }
 0x463   :  { %v579_v49 = vpop.permute.xlu1 %578 }
 0x464   :  { %v581_v50 = vadd.f32 %v579_v49, %v392_v33  ;;  %v2716_v49 = vld [vmem:[%s3523_s6] sm:$0xff]  }
 0x466   :  { %2763 = vtanh.f32 %v581_v50 }
 0x46f   :  { %v2762_v53 = vpop.eup %2761 }
 0x470   :  { %486 = vrot.lane.b32.xlu0 %v2762_v53, %s2865_s24 }
 0x473   :  { %v2764_v55 = vpop.eup %2763 }
 0x474   :  { %585 = vrot.lane.b32.xlu1 %v2764_v55, %s2865_s24 }
 0x4e2   :  { %v487_v58 = vpop.permute.xlu0 %486 }
 0x4e3   :  { %v489_v60 = vmul.f32 %v487_v58, %v484_v57 }
 0x4e5   :  { %v3053_v61 = vadd.f32 %v490_v59, %v489_v60 }
 0x4e6   :  { %v586_v63 = vpop.permute.xlu1 %585 }
 0x4e7   :  { %v588_v1 = vmul.f32 %v586_v63, %v583_v62  ;;  %v612_v2 = vpack.c.bf16 %v3053_v61, %v3053_v61 }
 0x4e9   :  { %v3058_v3 = vadd.f32 %v589_v0, %v588_v1  ;;  %614 = vrot.lane.b32.xlu0 %v612_v2, %s2865_s24 }
 0x4eb   :  { %v711_v5 = vpack.c.bf16 %v3058_v3, %v3058_v3 }
 0x4ed   :  { %713 = vrot.lane.b32.xlu1 %v711_v5, %s2865_s24  ;;  %683 = vrot.lane.b32.xlu0 %v2956_v8, %s2863_s15 }
 0x4f1   :  { %782 = vrot.lane.b32.xlu1 %v2968_v10, %s2863_s15 }
 0x55b   :  { %v615_v6 = vpop.permute.xlu0 %614 }
 0x55c   :  { %2569 = vmatmul.mubr.msk.bf16.vlgmr.msra.gmra.mxu0 %vm206_vm2, %v615_v6 }
 0x55d   :  { %2584 = vmatprep.mubr.msk.bf16.mxu0 %vm2862_vm1, %v2861_v4  ;;  %2581 = vmatpush3.bf16.msra.mxu0 %v2713_v44  ;;  %v2720_v44 = vld [vmem:[%s3523_s6] sm:$0xff]  }
 0x55e   :  { %2582 = vmatprep.subr.bf16.mxu0 %v2861_v4 }
 0x55f   :  { %v714_v9 = vpop.permute.xlu1 %713  ;;  %v684_v11 = vpop.permute.xlu0 %683 }
 0x560   :  { %2577 = vmatmul.mubr.msk.bf16.vlgmr.msra.gmra.mxu1 %vm206_vm2, %v714_v9 }
 0x561   :  { %2592 = vmatprep.mubr.msk.bf16.mxu1 %vm2862_vm1, %v2861_v4  ;;  %2589 = vmatpush3.bf16.msra.mxu1 %v2715_v45 }
 0x562   :  { %2590 = vmatprep.subr.bf16.mxu1 %v2861_v4  ;;  %2583 = vmatpush3.bf16.msra.mxu0 %v2714_v47 }
 0x563   :  { %v783_v16 = vpop.permute.xlu1 %782  ;;  %2596 = vmatprep.subr.bf16.mxu0 %v2861_v4 }
 0x565   :  { %2591 = vmatpush3.bf16.msra.mxu1 %v2716_v49 }
 0x566   :  { %2604 = vmatprep.subr.bf16.mxu1 %v2861_v4 }
 0x61c   :  { %v665_v12 = vpop.f32.mrf.mxu0 }
 0x61d   :  { %v686_v13 = vadd.f32 %v684_v11, %v665_v12  ;;  %v671_v25 = vadd.f32 %v665_v12, %v604_v24 }
 0x61e   :  { %v2570_v14 = vpop.f32.mrf.mxu0 }
 0x61f   :  { %688 = vrot.lane.b32.xlu0 %v686_v13, %s2863_s15  ;;  %v2362_v27 = vmul.f32 -1.442695, %v671_v25 }
 0x620   :  { %v764_v17 = vpop.f32.mrf.mxu1  ;;  %v668_v18 = vpop.f32.mrf.mxu0 }
 0x621   :  { %v785_v19 = vadd.f32 %v783_v16, %v764_v17  ;;  %v770_v28 = vadd.f32 %v764_v17, %v606_v26  ;;  %2765 = vpow2.f32 %v2362_v27 }
 0x622   :  { %v2571_v20 = vpop.f32.mrf.mxu0  ;;  %v2578_v21 = vpop.f32.mrf.mxu1 }
 0x623   :  { %787 = vrot.lane.b32.xlu1 %v785_v19, %s2863_s15  ;;  %v2367_v29 = vmul.f32 -1.442695, %v770_v28  ;;  %v818_v19 = vld [vmem:[#allocation2 + $0x6] sm:$0x3]  ;;  %v820_v21 = vld [vmem:[#allocation3 + $0xc] sm:$0x3] }
 0x624   :  { %v767_v22 = vpop.f32.mrf.mxu1 }
 0x625   :  { %2767 = vpow2.f32 %v2367_v29 }
 0x626   :  { %v2579_v23 = vpop.f32.mrf.mxu1 }
 0x62e   :  { %v2766_v30 = vpop.eup %2765 }
 0x62f   :  { %v675_v31 = vadd.f32 1.0, %v2766_v30 }
 0x631   :  { %2769 = vrcp.f32 %v675_v31 }
 0x632   :  { %v2768_v32 = vpop.eup %2767 }
 0x633   :  { %v774_v33 = vadd.f32 1.0, %v2768_v32 }
 0x635   :  { %2771 = vrcp.f32 %v774_v33 }
 0x63e   :  { %v2770_v34 = vpop.eup %2769 }
 0x63f   :  { %v698_v50 = vsub.f32 1.0, %v2770_v34  ;;  %v704_v52 = vmul.f32 %v2770_v34, %v3053_v61 }
 0x642   :  { %v2772_v37 = vpop.eup %2771 }
 0x643   :  { %v797_v55 = vsub.f32 1.0, %v2772_v37  ;;  %v803_v57 = vmul.f32 %v2772_v37, %v3058_v3 }
 0x691   :  { %v689_v35 = vpop.permute.xlu0 %688 }
 0x692   :  { %v691_v36 = vmul.f32 %v2770_v34, %v689_v35 }
 0x694   :  { %693 = vrot.lane.b32.xlu0 %v691_v36, %s2863_s15 }
 0x695   :  { %v788_v38 = vpop.permute.xlu1 %787 }
 0x696   :  { %v790_v39 = vmul.f32 %v2772_v37, %v788_v38 }
 0x698   :  { %792 = vrot.lane.b32.xlu1 %v790_v39, %s2863_s15  ;;  %v2717_v39 = vld [vmem:[%s3522_s2 + $0x8] sm:$0xff]  }
 0x706   :  { %v694_v40 = vpop.permute.xlu0 %693 }
 0x707   :  { %v696_v41 = vadd.f32 %v694_v40, %v604_v24  ;;  %v2719_v40 = vld [vmem:[%s3523_s6 + $0x8] sm:$0xff]  }
 0x709   :  { %2773 = vtanh.f32 %v696_v41 }
 0x70a   :  { %v793_v42 = vpop.permute.xlu1 %792 }
 0x70b   :  { %v795_v43 = vadd.f32 %v793_v42, %v606_v26  ;;  %v2718_v42 = vld [vmem:[%s3522_s2] sm:$0xff]  }
 0x70d   :  { %2775 = vtanh.f32 %v795_v43 }
 0x716   :  { %v2774_v46 = vpop.eup %2773 }
 0x717   :  { %700 = vrot.lane.b32.xlu0 %v2774_v46, %s2865_s24 }
 0x71a   :  { %v2776_v48 = vpop.eup %2775 }
 0x71b   :  { %799 = vrot.lane.b32.xlu1 %v2776_v48, %s2865_s24 }
 0x789   :  { %v701_v51 = vpop.permute.xlu0 %700 }
 0x78a   :  { %v703_v53 = vmul.f32 %v701_v51, %v698_v50 }
 0x78c   :  { %v3097_v54 = vadd.f32 %v704_v52, %v703_v53 }
 0x78d   :  { %v800_v56 = vpop.permute.xlu1 %799 }
 0x78e   :  { %v802_v58 = vmul.f32 %v800_v56, %v797_v55  ;;  %v826_v59 = vpack.c.bf16 %v3097_v54, %v3097_v54 }
 0x790   :  { %v3102_v60 = vadd.f32 %v803_v57, %v802_v58  ;;  %828 = vrot.lane.b32.xlu0 %v826_v59, %s2865_s24 }
 0x792   :  { %v925_v62 = vpack.c.bf16 %v3102_v60, %v3102_v60 }
 0x794   :  { %927 = vrot.lane.b32.xlu1 %v925_v62, %s2865_s24  ;;  %897 = vrot.lane.b32.xlu0 %v2956_v8, %s2863_s15 }
 0x798   :  { %996 = vrot.lane.b32.xlu1 %v2968_v10, %s2863_s15 }
 0x802   :  { %v829_v63 = vpop.permute.xlu0 %828 }
 0x803   :  { %2585 = vmatmul.mubr.msk.bf16.vlgmr.msra.gmra.mxu0 %vm206_vm2, %v829_v63 }
 0x804   :  { %2600 = vmatprep.mubr.msk.bf16.mxu0 %vm2862_vm1, %v2861_v4  ;;  %2597 = vmatpush3.bf16.msra.mxu0 %v2717_v39  ;;  %v2722_v39 = vld [vmem:[%s3522_s2] sm:$0xff]  }
 0x805   :  { %2598 = vmatprep.subr.bf16.mxu0 %v2861_v4 }
 0x806   :  { %v928_v0 = vpop.permute.xlu1 %927  ;;  %v898_v1 = vpop.permute.xlu0 %897 }
 0x807   :  { %2593 = vmatmul.mubr.msk.bf16.vlgmr.msra.gmra.mxu1 %vm206_vm2, %v928_v0 }
 0x808   :  { %2608 = vmatprep.mubr.msk.bf16.mxu1 %vm2862_vm1, %v2861_v4  ;;  %2605 = vmatpush3.bf16.msra.mxu1 %v2719_v40 }
 0x809   :  { %2606 = vmatprep.subr.bf16.mxu1 %v2861_v4  ;;  %2599 = vmatpush3.bf16.msra.mxu0 %v2718_v42 }
 0x80a   :  { %v997_v9 = vpop.permute.xlu1 %996  ;;  %2612 = vmatprep.subr.bf16.mxu0 %v2861_v4 }
 0x80c   :  { %2607 = vmatpush3.bf16.msra.mxu1 %v2720_v44 }
 0x80d   :  { %2620 = vmatprep.subr.bf16.mxu1 %v2861_v4 }
 0x8c3   :  { %v879_v2 = vpop.f32.mrf.mxu0 }
 0x8c4   :  { %v900_v5 = vadd.f32 %v898_v1, %v879_v2  ;;  %v885_v20 = vadd.f32 %v879_v2, %v818_v19 }
 0x8c5   :  { %v2586_v6 = vpop.f32.mrf.mxu0 }
 0x8c6   :  { %902 = vrot.lane.b32.xlu0 %v900_v5, %s2863_s15  ;;  %v2374_v22 = vmul.f32 -1.442695, %v885_v20 }
 0x8c7   :  { %v978_v11 = vpop.f32.mrf.mxu1  ;;  %v882_v12 = vpop.f32.mrf.mxu0 }
 0x8c8   :  { %v999_v13 = vadd.f32 %v997_v9, %v978_v11  ;;  %v984_v23 = vadd.f32 %v978_v11, %v820_v21  ;;  %2777 = vpow2.f32 %v2374_v22 }
 0x8c9   :  { %v2587_v14 = vpop.f32.mrf.mxu0  ;;  %v2594_v16 = vpop.f32.mrf.mxu1 }
 0x8ca   :  { %1001 = vrot.lane.b32.xlu1 %v999_v13, %s2863_s15  ;;  %v2379_v24 = vmul.f32 -1.442695, %v984_v23  ;;  %v1032_v16 = vld [vmem:[#allocation2 + $0x8] sm:$0x3] }
 0x8cb   :  { %v981_v17 = vpop.f32.mrf.mxu1 }
 0x8cc   :  { %2779 = vpow2.f32 %v2379_v24 }
 0x8cd   :  { %v2595_v18 = vpop.f32.mrf.mxu1 }
 0x8ce   :  { %v1034_v18 = vld [vmem:[#allocation3 + $0xa] sm:$0x3] }
 0x8d5   :  { %v2778_v25 = vpop.eup %2777 }
 0x8d6   :  { %v889_v26 = vadd.f32 1.0, %v2778_v25 }
 0x8d8   :  { %2781 = vrcp.f32 %v889_v26 }
 0x8d9   :  { %v2780_v27 = vpop.eup %2779 }
 0x8da   :  { %v988_v28 = vadd.f32 1.0, %v2780_v27 }
 0x8dc   :  { %2783 = vrcp.f32 %v988_v28 }
 0x8e5   :  { %v2782_v29 = vpop.eup %2781 }
 0x8e6   :  { %v912_v45 = vsub.f32 1.0, %v2782_v29  ;;  %v918_v47 = vmul.f32 %v2782_v29, %v3097_v54 }
 0x8e9   :  { %v2784_v32 = vpop.eup %2783 }
 0x8ea   :  { %v1011_v50 = vsub.f32 1.0, %v2784_v32  ;;  %v1017_v52 = vmul.f32 %v2784_v32, %v3102_v60 }
 0x938   :  { %v903_v30 = vpop.permute.xlu0 %902 }
 0x939   :  { %v905_v31 = vmul.f32 %v2782_v29, %v903_v30 }
 0x93b   :  { %907 = vrot.lane.b32.xlu0 %v905_v31, %s2863_s15 }
 0x93c   :  { %v1002_v33 = vpop.permute.xlu1 %1001 }
 0x93d   :  { %v1004_v34 = vmul.f32 %v2784_v32, %v1002_v33 }
 0x93f   :  { %1006 = vrot.lane.b32.xlu1 %v1004_v34, %s2863_s15 }
 0x9ad   :  { %v908_v35 = vpop.permute.xlu0 %907 }
 0x9ae   :  { %v910_v36 = vadd.f32 %v908_v35, %v818_v19 }
 0x9b0   :  { %2785 = vtanh.f32 %v910_v36  ;;  %v2721_v36 = vld [vmem:[%s3522_s2 + $0x8] sm:$0xff]  }
 0x9b1   :  { %v1007_v37 = vpop.permute.xlu1 %1006 }
 0x9b2   :  { %v1009_v38 = vadd.f32 %v1007_v37, %v820_v21  ;;  %v2723_v37 = vld [vmem:[%s3523_s6 + $0x8] sm:$0xff]  }
 0x9b4   :  { %2787 = vtanh.f32 %v1009_v38 }
 0x9bd   :  { %v2786_v41 = vpop.eup %2785 }
 0x9be   :  { %914 = vrot.lane.b32.xlu0 %v2786_v41, %s2865_s24  ;;  %v2724_v41 = vld [vmem:[%s3523_s6] sm:$0xff]  }
 0x9c1   :  { %v2788_v43 = vpop.eup %2787 }
 0x9c2   :  { %1013 = vrot.lane.b32.xlu1 %v2788_v43, %s2865_s24 }
 0xa30   :  { %v915_v46 = vpop.permute.xlu0 %914 }
 0xa31   :  { %v917_v48 = vmul.f32 %v915_v46, %v912_v45 }
 0xa33   :  { %v3141_v49 = vadd.f32 %v918_v47, %v917_v48 }
 0xa34   :  { %v1014_v51 = vpop.permute.xlu1 %1013 }
 0xa35   :  { %v1016_v53 = vmul.f32 %v1014_v51, %v1011_v50  ;;  %v1040_v55 = vpack.c.bf16 %v3141_v49, %v3141_v49 }
 0xa37   :  { %v3146_v56 = vadd.f32 %v1017_v52, %v1016_v53  ;;  %1042 = vrot.lane.b32.xlu0 %v1040_v55, %s2865_s24 }
 0xa39   :  { %v1139_v57 = vpack.c.bf16 %v3146_v56, %v3146_v56 }
 0xa3b   :  { %1141 = vrot.lane.b32.xlu1 %v1139_v57, %s2865_s24  ;;  %1111 = vrot.lane.b32.xlu0 %v2956_v8, %s2863_s15 }
 0xa3f   :  { %1210 = vrot.lane.b32.xlu1 %v2968_v10, %s2863_s15 }
 0xaa9   :  { %v1043_v58 = vpop.permute.xlu0 %1042 }
 0xaaa   :  { %2601 = vmatmul.mubr.msk.bf16.vlgmr.msra.gmra.mxu0 %vm206_vm2, %v1043_v58 }
 0xaab   :  { %2616 = vmatprep.mubr.msk.bf16.mxu0 %vm2862_vm1, %v2861_v4  ;;  %2613 = vmatpush3.bf16.msra.mxu0 %v2721_v36  ;;  %v2726_v36 = vld [vmem:[%s3522_s2] sm:$0xff]  }
 0xaac   :  { %2614 = vmatprep.subr.bf16.mxu0 %v2861_v4 }
 0xaad   :  { %v1142_v59 = vpop.permute.xlu1 %1141  ;;  %v1112_v62 = vpop.permute.xlu0 %1111 }
 0xaae   :  { %2609 = vmatmul.mubr.msk.bf16.vlgmr.msra.gmra.mxu1 %vm206_vm2, %v1142_v59 }
 0xaaf   :  { %2624 = vmatprep.mubr.msk.bf16.mxu1 %vm2862_vm1, %v2861_v4  ;;  %2621 = vmatpush3.bf16.msra.mxu1 %v2723_v37 }
 0xab0   :  { %2622 = vmatprep.subr.bf16.mxu1 %v2861_v4  ;;  %2615 = vmatpush3.bf16.msra.mxu0 %v2722_v39 }
 0xab1   :  { %v1211_v2 = vpop.permute.xlu1 %1210  ;;  %2628 = vmatprep.subr.bf16.mxu0 %v2861_v4 }
 0xab3   :  { %2623 = vmatpush3.bf16.msra.mxu1 %v2724_v41 }
 0xab4   :  { %2636 = vmatprep.subr.bf16.mxu1 %v2861_v4 }
 0xb6a   :  { %v1093_v63 = vpop.f32.mrf.mxu0 }
 0xb6b   :  { %v1114_v0 = vadd.f32 %v1112_v62, %v1093_v63  ;;  %v1099_v17 = vadd.f32 %v1093_v63, %v1032_v16 }
 0xb6c   :  { %v2602_v1 = vpop.f32.mrf.mxu0 }
 0xb6d   :  { %1116 = vrot.lane.b32.xlu0 %v1114_v0, %s2863_s15  ;;  %v2386_v19 = vmul.f32 -1.442695, %v1099_v17 }
 0xb6e   :  { %v1192_v5 = vpop.f32.mrf.mxu1  ;;  %v1096_v6 = vpop.f32.mrf.mxu0 }
 0xb6f   :  { %v1213_v9 = vadd.f32 %v1211_v2, %v1192_v5  ;;  %v1198_v20 = vadd.f32 %v1192_v5, %v1034_v18  ;;  %2789 = vpow2.f32 %v2386_v19 }
 0xb70   :  { %v2603_v11 = vpop.f32.mrf.mxu0  ;;  %v2610_v12 = vpop.f32.mrf.mxu1 }
 0xb71   :  { %1215 = vrot.lane.b32.xlu1 %v1213_v9, %s2863_s15  ;;  %v2391_v21 = vmul.f32 -1.442695, %v1198_v20  ;;  %v1246_v12 = vld [vmem:[#allocation2 + $0xa] sm:$0x3] }
 0xb72   :  { %v1195_v13 = vpop.f32.mrf.mxu1 }
 0xb73   :  { %2791 = vpow2.f32 %v2391_v21 }
 0xb74   :  { %v2611_v14 = vpop.f32.mrf.mxu1 }
 0xb75   :  { %v1248_v14 = vld [vmem:[#allocation3 + $0x8] sm:$0x3] }
 0xb7c   :  { %v2790_v22 = vpop.eup %2789 }
 0xb7d   :  { %v1103_v23 = vadd.f32 1.0, %v2790_v22 }
 0xb7f   :  { %2793 = vrcp.f32 %v1103_v23 }
 0xb80   :  { %v2792_v24 = vpop.eup %2791 }
 0xb81   :  { %v1202_v25 = vadd.f32 1.0, %v2792_v24 }
 0xb83   :  { %2795 = vrcp.f32 %v1202_v25 }
 0xb8c   :  { %v2794_v26 = vpop.eup %2793 }
 0xb8d   :  { %v1126_v42 = vsub.f32 1.0, %v2794_v26  ;;  %v1132_v44 = vmul.f32 %v2794_v26, %v3141_v49 }
 0xb90   :  { %v2796_v29 = vpop.eup %2795 }
 0xb91   :  { %v1225_v47 = vsub.f32 1.0, %v2796_v29  ;;  %v1231_v50 = vmul.f32 %v2796_v29, %v3146_v56 }
 0xbdf   :  { %v1117_v27 = vpop.permute.xlu0 %1116 }
 0xbe0   :  { %v1119_v28 = vmul.f32 %v2794_v26, %v1117_v27 }
 0xbe2   :  { %1121 = vrot.lane.b32.xlu0 %v1119_v28, %s2863_s15 }
 0xbe3   :  { %v1216_v30 = vpop.permute.xlu1 %1215 }
 0xbe4   :  { %v1218_v31 = vmul.f32 %v2796_v29, %v1216_v30 }
 0xbe6   :  { %1220 = vrot.lane.b32.xlu1 %v1218_v31, %s2863_s15 }
 0xc54   :  { %v1122_v32 = vpop.permute.xlu0 %1121 }
 0xc55   :  { %v1124_v33 = vadd.f32 %v1122_v32, %v1032_v16 }
 0xc57   :  { %2797 = vtanh.f32 %v1124_v33  ;;  %v2725_v33 = vld [vmem:[%s3522_s2 + $0x8] sm:$0xff]  }
 0xc58   :  { %v1221_v34 = vpop.permute.xlu1 %1220 }
 0xc59   :  { %v1223_v35 = vadd.f32 %v1221_v34, %v1034_v18  ;;  %v2727_v34 = vld [vmem:[%s3523_s6 + $0x8] sm:$0xff]  }
 0xc5b   :  { %2799 = vtanh.f32 %v1223_v35 }
 0xc64   :  { %v2798_v38 = vpop.eup %2797 }
 0xc65   :  { %1128 = vrot.lane.b32.xlu0 %v2798_v38, %s2865_s24  ;;  %v2728_v38 = vld [vmem:[%s3523_s6] sm:$0xff]  }
 0xc68   :  { %v2800_v40 = vpop.eup %2799 }
 0xc69   :  { %1227 = vrot.lane.b32.xlu1 %v2800_v40, %s2865_s24 }
 0xcd7   :  { %v1129_v43 = vpop.permute.xlu0 %1128 }
 0xcd8   :  { %v1131_v45 = vmul.f32 %v1129_v43, %v1126_v42 }
 0xcda   :  { %v3185_v46 = vadd.f32 %v1132_v44, %v1131_v45 }
 0xcdb   :  { %v1228_v48 = vpop.permute.xlu1 %1227 }
 0xcdc   :  { %v1230_v51 = vmul.f32 %v1228_v48, %v1225_v47  ;;  %v1254_v52 = vpack.c.bf16 %v3185_v46, %v3185_v46 }
 0xcde   :  { %v3190_v53 = vadd.f32 %v1231_v50, %v1230_v51  ;;  %1256 = vrot.lane.b32.xlu0 %v1254_v52, %s2865_s24  ;;  %v3240_v52 = vld [vmem:[%s3524_s4] ss:$0 sm:$0xff] }
 0xce0   :  { %v1353_v55 = vpack.c.bf16 %v3190_v53, %v3190_v53 }
 0xce2   :  { %1355 = vrot.lane.b32.xlu1 %v1353_v55, %s2865_s24  ;;  %1325 = vrot.lane.b32.xlu0 %v2956_v8, %s2863_s15 }
 0xce6   :  { %1424 = vrot.lane.b32.xlu1 %v2968_v10, %s2863_s15 }
 0xd50   :  { %v1257_v57 = vpop.permute.xlu0 %1256 }
 0xd51   :  { %2617 = vmatmul.mubr.msk.bf16.vlgmr.msra.gmra.mxu0 %vm206_vm2, %v1257_v57  ;;  %v3250_v57 = vld [vmem:[%s3525_s8] ss:$0 sm:$0xff] }
 0xd52   :  { %2632 = vmatprep.mubr.msk.bf16.mxu0 %vm2862_vm1, %v2861_v4  ;;  %2629 = vmatpush3.bf16.msra.mxu0 %v2725_v33 }
 0xd53   :  { %2630 = vmatprep.subr.bf16.mxu0 %v2861_v4 }
 0xd54   :  { %v1356_v58 = vpop.permute.xlu1 %1355  ;;  %v1326_v59 = vpop.permute.xlu0 %1325 }
 0xd55   :  { %2625 = vmatmul.mubr.msk.bf16.vlgmr.msra.gmra.mxu1 %vm206_vm2, %v1356_v58 }
 0xd56   :  { %2640 = vmatprep.mubr.msk.bf16.mxu1 %vm2862_vm1, %v2861_v4  ;;  %2637 = vmatpush3.bf16.msra.mxu1 %v2727_v34  ;;  %v2729_v34 = vld [vmem:[%s3522_s2 + $0x8] sm:$0xff]  }
 0xd57   :  { %2638 = vmatprep.subr.bf16.mxu1 %v2861_v4  ;;  %2631 = vmatpush3.bf16.msra.mxu0 %v2726_v36 }
 0xd58   :  { %v1425_v8 = vpop.permute.xlu1 %1424  ;;  %2644 = vmatprep.subr.bf16.mxu0 %v2861_v4 }
 0xd5a   :  { %2639 = vmatpush3.bf16.msra.mxu1 %v2728_v38 }
 0xd5b   :  { %2652 = vmatprep.subr.bf16.mxu1 %v2861_v4 }
 0xe11   :  { %v1307_v62 = vpop.f32.mrf.mxu0 }
 0xe12   :  { %v1328_v63 = vadd.f32 %v1326_v59, %v1307_v62  ;;  %v1313_v13 = vadd.f32 %v1307_v62, %v1246_v12 }
 0xe13   :  { %v2618_v0 = vpop.f32.mrf.mxu0 }
 0xe14   :  { %1330 = vrot.lane.b32.xlu0 %v1328_v63, %s2863_s15  ;;  %v2398_v16 = vmul.f32 -1.442695, %v1313_v13  ;;  %v1460_v13 = vld [vmem:[#allocation2 + $0xc] sm:$0x3] }
 0xe15   :  { %v1406_v10 = vpop.f32.mrf.mxu1  ;;  %v1310_v1 = vpop.f32.mrf.mxu0 }
 0xe16   :  { %v1427_v2 = vadd.f32 %v1425_v8, %v1406_v10  ;;  %v1412_v17 = vadd.f32 %v1406_v10, %v1248_v14  ;;  %2801 = vpow2.f32 %v2398_v16  ;;  %v1462_v16 = vld [vmem:[#allocation3 + $0x6] sm:$0x3] }
 0xe17   :  { %v2619_v5 = vpop.f32.mrf.mxu0  ;;  %v2626_v6 = vpop.f32.mrf.mxu1 }
 0xe18   :  { %1429 = vrot.lane.b32.xlu1 %v1427_v2, %s2863_s15  ;;  %v2403_v18 = vmul.f32 -1.442695, %v1412_v17 }
 0xe19   :  { %v1409_v9 = vpop.f32.mrf.mxu1 }
 0xe1a   :  { %2803 = vpow2.f32 %v2403_v18 }
 0xe1b   :  { %v2627_v11 = vpop.f32.mrf.mxu1 }
 0xe23   :  { %v2802_v19 = vpop.eup %2801 }
 0xe24   :  { %v1317_v20 = vadd.f32 1.0, %v2802_v19 }
 0xe26   :  { %2805 = vrcp.f32 %v1317_v20 }
 0xe27   :  { %v2804_v21 = vpop.eup %2803 }
 0xe28   :  { %v1416_v22 = vadd.f32 1.0, %v2804_v21 }
 0xe2a   :  { %2807 = vrcp.f32 %v1416_v22 }
 0xe33   :  { %v2806_v23 = vpop.eup %2805 }
 0xe34   :  { %v1340_v39 = vsub.f32 1.0, %v2806_v23  ;;  %v1346_v41 = vmul.f32 %v2806_v23, %v3185_v46 }
 0xe37   :  { %v2808_v26 = vpop.eup %2807 }
 0xe38   :  { %v1439_v44 = vsub.f32 1.0, %v2808_v26  ;;  %v1445_v47 = vmul.f32 %v2808_v26, %v3190_v53 }
 0xe86   :  { %v1331_v24 = vpop.permute.xlu0 %1330 }
 0xe87   :  { %v1333_v25 = vmul.f32 %v2806_v23, %v1331_v24 }
 0xe89   :  { %1335 = vrot.lane.b32.xlu0 %v1333_v25, %s2863_s15 }
 0xe8a   :  { %v1430_v27 = vpop.permute.xlu1 %1429 }
 0xe8b   :  { %v1432_v28 = vmul.f32 %v2808_v26, %v1430_v27 }
 0xe8d   :  { %1434 = vrot.lane.b32.xlu1 %v1432_v28, %s2863_s15 }
 0xefb   :  { %v1336_v29 = vpop.permute.xlu0 %1335 }
 0xefc   :  { %v1338_v30 = vadd.f32 %v1336_v29, %v1246_v12 }
 0xefe   :  { %2809 = vtanh.f32 %v1338_v30 }
 0xeff   :  { %v1435_v31 = vpop.permute.xlu1 %1434 }
 0xf00   :  { %v1437_v32 = vadd.f32 %v1435_v31, %v1248_v14 }
 0xf02   :  { %2811 = vtanh.f32 %v1437_v32 }
 0xf0b   :  { %v2810_v35 = vpop.eup %2809 }
 0xf0c   :  { %1342 = vrot.lane.b32.xlu0 %v2810_v35, %s2865_s24  ;;  %v2731_v35 = vld [vmem:[%s3523_s6 + $0x8] sm:$0xff]  }
 0xf0f   :  { %v2812_v37 = vpop.eup %2811 }
 0xf10   :  { %1441 = vrot.lane.b32.xlu1 %v2812_v37, %s2865_s24  ;;  %v2730_v37 = vld [vmem:[%s3522_s2] sm:$0xff]  }
 0xf7e   :  { %v1343_v40 = vpop.permute.xlu0 %1342 }
 0xf7f   :  { %v1345_v42 = vmul.f32 %v1343_v40, %v1340_v39  ;;  %v2732_v39 = vld [vmem:[%s3523_s6] sm:$0xff]  }
 0xf81   :  { %v3229_v43 = vadd.f32 %v1346_v41, %v1345_v42 }
 0xf82   :  { %v1442_v45 = vpop.permute.xlu1 %1441 }
 0xf83   :  { %v1444_v48 = vmul.f32 %v1442_v45, %v1439_v44  ;;  %v1468_v50 = vpack.c.bf16 %v3229_v43, %v3229_v43 }
 0xf85   :  { %v3234_v51 = vadd.f32 %v1445_v47, %v1444_v48  ;;  %1470 = vrot.lane.b32.xlu0 %v1468_v50, %s2865_s24 }
 0xf87   :  { %v1567_v55 = vpack.c.bf16 %v3234_v51, %v3234_v51 }
 0xf89   :  { %1569 = vrot.lane.b32.xlu1 %v1567_v55, %s2865_s24  ;;  %1539 = vrot.lane.b32.xlu0 %v3240_v52, %s2863_s15 }
 0xf8d   :  { %1638 = vrot.lane.b32.xlu1 %v3250_v57, %s2863_s15 }
 0xff7   :  { %v1471_v58 = vpop.permute.xlu0 %1470 }
 0xff8   :  { %2633 = vmatmul.mubr.msk.bf16.vlgmr.msra.gmra.mxu0 %vm206_vm2, %v1471_v58 }
 0xff9   :  { %2648 = vmatprep.mubr.msk.bf16.mxu0 %vm2862_vm1, %v2861_v4  ;;  %2645 = vmatpush3.bf16.msra.mxu0 %v2729_v34 }
 0xffa   :  { %2646 = vmatprep.subr.bf16.mxu0 %v2861_v4 }
 0xffb   :  { %v1570_v59 = vpop.permute.xlu1 %1569  ;;  %v1540_v62 = vpop.permute.xlu0 %1539 }
 0xffc   :  { %2641 = vmatmul.mubr.msk.bf16.vlgmr.msra.gmra.mxu1 %vm206_vm2, %v1570_v59 }
 0xffd   :  { %2656 = vmatprep.mubr.msk.bf16.mxu1 %vm2862_vm1, %v2861_v4  ;;  %2653 = vmatpush3.bf16.msra.mxu1 %v2731_v35 }
 0xffe   :  { %2654 = vmatprep.subr.bf16.mxu1 %v2861_v4  ;;  %2647 = vmatpush3.bf16.msra.mxu0 %v2730_v37  ;;  %v2733_v37 = vld [vmem:[%s3522_s2 + $0x8] sm:$0xff]  }
 0xfff   :  { %v1639_v10 = vpop.permute.xlu1 %1638  ;;  %2660 = vmatprep.subr.bf16.mxu0 %v2861_v4 }
0x1001   :  { %2655 = vmatpush3.bf16.msra.mxu1 %v2732_v39 }
0x1002   :  { %2668 = vmatprep.subr.bf16.mxu1 %v2861_v4 }
0x10b8   :  { %v1521_v63 = vpop.f32.mrf.mxu0 }
0x10b9   :  { %v1542_v0 = vadd.f32 %v1540_v62, %v1521_v63  ;;  %v1527_v14 = vadd.f32 %v1521_v63, %v1460_v13 }
0x10ba   :  { %v2634_v8 = vpop.f32.mrf.mxu0 }
0x10bb   :  { %1544 = vrot.lane.b32.xlu0 %v1542_v0, %s2863_s15  ;;  %v2410_v17 = vmul.f32 -1.442695, %v1527_v14 }
0x10bc   :  { %v1620_v1 = vpop.f32.mrf.mxu1  ;;  %v1524_v2 = vpop.f32.mrf.mxu0 }
0x10bd   :  { %v1641_v5 = vadd.f32 %v1639_v10, %v1620_v1  ;;  %v1626_v18 = vadd.f32 %v1620_v1, %v1462_v16  ;;  %2813 = vpow2.f32 %v2410_v17  ;;  %v1674_v17 = vld [vmem:[#allocation2 + $0xe] sm:$0x3] }
0x10be   :  { %v2635_v6 = vpop.f32.mrf.mxu0  ;;  %v2642_v9 = vpop.f32.mrf.mxu1 }
0x10bf   :  { %1643 = vrot.lane.b32.xlu1 %v1641_v5, %s2863_s15  ;;  %v2415_v19 = vmul.f32 -1.442695, %v1626_v18 }
0x10c0   :  { %v1623_v11 = vpop.f32.mrf.mxu1 }
0x10c1   :  { %2815 = vpow2.f32 %v2415_v19  ;;  %v1676_v19 = vld [vmem:[#allocation3 + $0x4] sm:$0x3] }
0x10c2   :  { %v2643_v12 = vpop.f32.mrf.mxu1 }
0x10ca   :  { %v2814_v20 = vpop.eup %2813 }
0x10cb   :  { %v1531_v21 = vadd.f32 1.0, %v2814_v20 }
0x10cd   :  { %2817 = vrcp.f32 %v1531_v21 }
0x10ce   :  { %v2816_v22 = vpop.eup %2815 }
0x10cf   :  { %v1630_v23 = vadd.f32 1.0, %v2816_v22 }
0x10d1   :  { %2819 = vrcp.f32 %v1630_v23 }
0x10da   :  { %v2818_v24 = vpop.eup %2817 }
0x10db   :  { %v1554_v40 = vsub.f32 1.0, %v2818_v24  ;;  %v1560_v42 = vmul.f32 %v2818_v24, %v3229_v43 }
0x10de   :  { %v2820_v27 = vpop.eup %2819 }
0x10df   :  { %v1653_v47 = vsub.f32 1.0, %v2820_v27  ;;  %v1659_v50 = vmul.f32 %v2820_v27, %v3234_v51 }
0x112d   :  { %v1545_v25 = vpop.permute.xlu0 %1544 }
0x112e   :  { %v1547_v26 = vmul.f32 %v2818_v24, %v1545_v25 }
0x1130   :  { %1549 = vrot.lane.b32.xlu0 %v1547_v26, %s2863_s15 }
0x1131   :  { %v1644_v28 = vpop.permute.xlu1 %1643 }
0x1132   :  { %v1646_v29 = vmul.f32 %v2820_v27, %v1644_v28 }
0x1134   :  { %1648 = vrot.lane.b32.xlu1 %v1646_v29, %s2863_s15 }
0x11a2   :  { %v1550_v30 = vpop.permute.xlu0 %1549 }
0x11a3   :  { %v1552_v31 = vadd.f32 %v1550_v30, %v1460_v13 }
0x11a5   :  { %2821 = vtanh.f32 %v1552_v31 }
0x11a6   :  { %v1649_v32 = vpop.permute.xlu1 %1648 }
0x11a7   :  { %v1651_v33 = vadd.f32 %v1649_v32, %v1462_v16 }
0x11a9   :  { %2823 = vtanh.f32 %v1651_v33 }
0x11b2   :  { %v2822_v36 = vpop.eup %2821 }
0x11b3   :  { %1556 = vrot.lane.b32.xlu0 %v2822_v36, %s2865_s24 }
0x11b6   :  { %v2824_v38 = vpop.eup %2823 }
0x11b7   :  { %1655 = vrot.lane.b32.xlu1 %v2824_v38, %s2865_s24  ;;  %v2735_v38 = vld [vmem:[%s3523_s6 + $0x8] sm:$0xff]  }
0x1225   :  { %v1557_v41 = vpop.permute.xlu0 %1556 }
0x1226   :  { %v1559_v44 = vmul.f32 %v1557_v41, %v1554_v40  ;;  %v2734_v40 = vld [vmem:[%s3522_s2] sm:$0xff]  }
0x1228   :  { %v3283_v45 = vadd.f32 %v1560_v42, %v1559_v44  ;;  %v2736_v42 = vld [vmem:[%s3523_s6] sm:$0xff]  }
0x1229   :  { %v1656_v48 = vpop.permute.xlu1 %1655 }
0x122a   :  { %v1658_v55 = vmul.f32 %v1656_v48, %v1653_v47  ;;  %v1682_v58 = vpack.c.bf16 %v3283_v45, %v3283_v45 }
0x122c   :  { %v3288_v59 = vadd.f32 %v1659_v50, %v1658_v55  ;;  %1684 = vrot.lane.b32.xlu0 %v1682_v58, %s2865_s24 }
0x122e   :  { %v1781_v62 = vpack.c.bf16 %v3288_v59, %v3288_v59 }
0x1230   :  { %1783 = vrot.lane.b32.xlu1 %v1781_v62, %s2865_s24  ;;  %1753 = vrot.lane.b32.xlu0 %v3240_v52, %s2863_s15 }
0x1234   :  { %1852 = vrot.lane.b32.xlu1 %v3250_v57, %s2863_s15 }
0x129e   :  { %v1685_v63 = vpop.permute.xlu0 %1684 }
0x129f   :  { %2649 = vmatmul.mubr.msk.bf16.vlgmr.msra.gmra.mxu0 %vm206_vm2, %v1685_v63 }
0x12a0   :  { %2664 = vmatprep.mubr.msk.bf16.mxu0 %vm2862_vm1, %v2861_v4  ;;  %2661 = vmatpush3.bf16.msra.mxu0 %v2733_v37 }
0x12a1   :  { %2662 = vmatprep.subr.bf16.mxu0 %v2861_v4 }
0x12a2   :  { %v1784_v0 = vpop.permute.xlu1 %1783  ;;  %v1754_v8 = vpop.permute.xlu0 %1753 }
0x12a3   :  { %2657 = vmatmul.mubr.msk.bf16.vlgmr.msra.gmra.mxu1 %vm206_vm2, %v1784_v0 }
0x12a4   :  { %2672 = vmatprep.mubr.msk.bf16.mxu1 %vm2862_vm1, %v2861_v4  ;;  %2669 = vmatpush3.bf16.msra.mxu1 %v2735_v38 }
0x12a5   :  { %2670 = vmatprep.subr.bf16.mxu1 %v2861_v4  ;;  %2663 = vmatpush3.bf16.msra.mxu0 %v2734_v40 }
0x12a6   :  { %v1853_v5 = vpop.permute.xlu1 %1852  ;;  %2676 = vmatprep.subr.bf16.mxu0 %v2861_v4 }
0x12a8   :  { %2671 = vmatpush3.bf16.msra.mxu1 %v2736_v42  ;;  %v2737_v42 = vld [vmem:[%s3522_s2 + $0x8] sm:$0xff]  }
0x12a9   :  { %2684 = vmatprep.subr.bf16.mxu1 %v2861_v4 }
0x135f   :  { %v1735_v10 = vpop.f32.mrf.mxu0 }
0x1360   :  { %v1756_v1 = vadd.f32 %v1754_v8, %v1735_v10  ;;  %v1741_v18 = vadd.f32 %v1735_v10, %v1674_v17 }
0x1361   :  { %v2650_v2 = vpop.f32.mrf.mxu0 }
0x1362   :  { %1758 = vrot.lane.b32.xlu0 %v1756_v1, %s2863_s15  ;;  %v2422_v20 = vmul.f32 -1.442695, %v1741_v18 }
0x1363   :  { %v1834_v6 = vpop.f32.mrf.mxu1  ;;  %v1738_v9 = vpop.f32.mrf.mxu0 }
0x1364   :  { %v1855_v11 = vadd.f32 %v1853_v5, %v1834_v6  ;;  %v1840_v21 = vadd.f32 %v1834_v6, %v1676_v19  ;;  %2825 = vpow2.f32 %v2422_v20 }
0x1365   :  { %v2651_v12 = vpop.f32.mrf.mxu0  ;;  %v2658_v13 = vpop.f32.mrf.mxu1 }
0x1366   :  { %1857 = vrot.lane.b32.xlu1 %v1855_v11, %s2863_s15  ;;  %v2427_v22 = vmul.f32 -1.442695, %v1840_v21 }
0x1367   :  { %v1837_v14 = vpop.f32.mrf.mxu1 }
0x1368   :  { %2827 = vpow2.f32 %v2427_v22  ;;  %v1888_v22 = vld [vmem:[#allocation2 + $0x10] sm:$0x3] }
0x1369   :  { %v2659_v16 = vpop.f32.mrf.mxu1 }
0x1371   :  { %v2826_v23 = vpop.eup %2825 }
0x1372   :  { %v1745_v24 = vadd.f32 1.0, %v2826_v23 }
0x1374   :  { %2829 = vrcp.f32 %v1745_v24  ;;  %v1890_v24 = vld [vmem:[#allocation3 + $0x2] sm:$0x3] }
0x1375   :  { %v2828_v25 = vpop.eup %2827 }
0x1376   :  { %v1844_v26 = vadd.f32 1.0, %v2828_v25 }
0x1378   :  { %2831 = vrcp.f32 %v1844_v26 }
0x1381   :  { %v2830_v27 = vpop.eup %2829 }
0x1382   :  { %v1768_v44 = vsub.f32 1.0, %v2830_v27  ;;  %v1774_v48 = vmul.f32 %v2830_v27, %v3283_v45 }
0x1385   :  { %v2832_v30 = vpop.eup %2831 }
0x1386   :  { %v1867_v58 = vsub.f32 1.0, %v2832_v30  ;;  %v1873_v63 = vmul.f32 %v2832_v30, %v3288_v59 }
0x13d4   :  { %v1759_v28 = vpop.permute.xlu0 %1758 }
0x13d5   :  { %v1761_v29 = vmul.f32 %v2830_v27, %v1759_v28 }
0x13d7   :  { %1763 = vrot.lane.b32.xlu0 %v1761_v29, %s2863_s15 }
0x13d8   :  { %v1858_v31 = vpop.permute.xlu1 %1857 }
0x13d9   :  { %v1860_v32 = vmul.f32 %v2832_v30, %v1858_v31 }
0x13db   :  { %1862 = vrot.lane.b32.xlu1 %v1860_v32, %s2863_s15 }
0x1449   :  { %v1764_v33 = vpop.permute.xlu0 %1763 }
0x144a   :  { %v1766_v34 = vadd.f32 %v1764_v33, %v1674_v17 }
0x144c   :  { %2833 = vtanh.f32 %v1766_v34 }
0x144d   :  { %v1863_v35 = vpop.permute.xlu1 %1862 }
0x144e   :  { %v1865_v36 = vadd.f32 %v1863_v35, %v1676_v19 }
0x1450   :  { %2835 = vtanh.f32 %v1865_v36 }
0x1459   :  { %v2834_v39 = vpop.eup %2833 }
0x145a   :  { %1770 = vrot.lane.b32.xlu0 %v2834_v39, %s2865_s24 }
0x145d   :  { %v2836_v41 = vpop.eup %2835 }
0x145e   :  { %1869 = vrot.lane.b32.xlu1 %v2836_v41, %s2865_s24 }
0x14cc   :  { %v1771_v47 = vpop.permute.xlu0 %1770 }
0x14cd   :  { %v1773_v50 = vmul.f32 %v1771_v47, %v1768_v44  ;;  %v2739_v44 = vld [vmem:[%s3523_s6 + $0x8] sm:$0xff]  }
0x14cf   :  { %v3327_v55 = vadd.f32 %v1774_v48, %v1773_v50  ;;  %v2738_v48 = vld [vmem:[%s3522_s2] sm:$0xff]  }
0x14d0   :  { %v1870_v62 = vpop.permute.xlu1 %1869 }
0x14d1   :  { %v1872_v0 = vmul.f32 %v1870_v62, %v1867_v58  ;;  %v1896_v8 = vpack.c.bf16 %v3327_v55, %v3327_v55  ;;  %v2740_v58 = vld [vmem:[%s3523_s6] sm:$0xff]  }
0x14d3   :  { %v3332_v10 = vadd.f32 %v1873_v63, %v1872_v0  ;;  %1898 = vrot.lane.b32.xlu0 %v1896_v8, %s2865_s24 }
0x14d5   :  { %v1995_v1 = vpack.c.bf16 %v3332_v10, %v3332_v10 }
0x14d7   :  { %1997 = vrot.lane.b32.xlu1 %v1995_v1, %s2865_s24  ;;  %1967 = vrot.lane.b32.xlu0 %v3240_v52, %s2863_s15 }
0x14db   :  { %2066 = vrot.lane.b32.xlu1 %v3250_v57, %s2863_s15 }
0x1545   :  { %v1899_v2 = vpop.permute.xlu0 %1898 }
0x1546   :  { %2665 = vmatmul.mubr.msk.bf16.vlgmr.msra.gmra.mxu0 %vm206_vm2, %v1899_v2 }
0x1547   :  { %2680 = vmatprep.mubr.msk.bf16.mxu0 %vm2862_vm1, %v2861_v4  ;;  %2677 = vmatpush3.bf16.msra.mxu0 %v2737_v42 }
0x1548   :  { %2678 = vmatprep.subr.bf16.mxu0 %v2861_v4 }
0x1549   :  { %v1998_v5 = vpop.permute.xlu1 %1997  ;;  %v1968_v6 = vpop.permute.xlu0 %1967 }
0x154a   :  { %2673 = vmatmul.mubr.msk.bf16.vlgmr.msra.gmra.mxu1 %vm206_vm2, %v1998_v5 }
0x154b   :  { %2688 = vmatprep.mubr.msk.bf16.mxu1 %vm2862_vm1, %v2861_v4  ;;  %2685 = vmatpush3.bf16.msra.mxu1 %v2739_v44 }
0x154c   :  { %2686 = vmatprep.subr.bf16.mxu1 %v2861_v4  ;;  %2679 = vmatpush3.bf16.msra.mxu0 %v2738_v48 }
0x154d   :  { %v2067_v13 = vpop.permute.xlu1 %2066 }
0x154f   :  { %2687 = vmatpush3.bf16.msra.mxu1 %v2740_v58 }
0x1606   :  { %v1949_v9 = vpop.f32.mrf.mxu0 }
0x1607   :  { %v1970_v11 = vadd.f32 %v1968_v6, %v1949_v9  ;;  %v1955_v23 = vadd.f32 %v1949_v9, %v1888_v22 }
0x1608   :  { %v2666_v12 = vpop.f32.mrf.mxu0 }
0x1609   :  { %1972 = vrot.lane.b32.xlu0 %v1970_v11, %s2863_s15  ;;  %v2434_v25 = vmul.f32 -1.442695, %v1955_v23 }
0x160a   :  { %v2048_v14 = vpop.f32.mrf.mxu1  ;;  %v1952_v16 = vpop.f32.mrf.mxu0 }
0x160b   :  { %v2069_v17 = vadd.f32 %v2067_v13, %v2048_v14  ;;  %v2054_v26 = vadd.f32 %v2048_v14, %v1890_v24  ;;  %2837 = vpow2.f32 %v2434_v25 }
0x160c   :  { %v2667_v18 = vpop.f32.mrf.mxu0  ;;  %v2674_v19 = vpop.f32.mrf.mxu1 }
0x160d   :  { %2071 = vrot.lane.b32.xlu1 %v2069_v17, %s2863_s15  ;;  %v2439_v27 = vmul.f32 -1.442695, %v2054_v26  ;;  %v2102_v26 = vld [vmem:[#allocation2 + $0x12] sm:$0x3] }
0x160e   :  { %v2051_v20 = vpop.f32.mrf.mxu1 }
0x160f   :  { %2839 = vpow2.f32 %v2439_v27 }
0x1610   :  { %v2675_v21 = vpop.f32.mrf.mxu1 }
0x1618   :  { %v2838_v28 = vpop.eup %2837 }
0x1619   :  { %v1959_v29 = vadd.f32 1.0, %v2838_v28  ;;  %v2103_v28 = vld [vmem:[#allocation3] sm:$0x3] }
0x161b   :  { %2841 = vrcp.f32 %v1959_v29 }
0x161c   :  { %v2840_v30 = vpop.eup %2839 }
0x161d   :  { %v2058_v31 = vadd.f32 1.0, %v2840_v30 }
0x161f   :  { %2843 = vrcp.f32 %v2058_v31 }
0x1628   :  { %v2842_v32 = vpop.eup %2841 }
0x1629   :  { %v1982_v62 = vsub.f32 1.0, %v2842_v32  ;;  %v1988_v0 = vmul.f32 %v2842_v32, %v3327_v55 }
0x162c   :  { %v2844_v35 = vpop.eup %2843 }
0x162d   :  { %v2081_v2 = vsub.f32 1.0, %v2844_v35  ;;  %v2087_v4 = vmul.f32 %v2844_v35, %v3332_v10 }
0x167b   :  { %v1973_v33 = vpop.permute.xlu0 %1972 }
0x167c   :  { %v1975_v34 = vmul.f32 %v2842_v32, %v1973_v33 }
0x167e   :  { %1977 = vrot.lane.b32.xlu0 %v1975_v34, %s2863_s15 }
0x167f   :  { %v2072_v36 = vpop.permute.xlu1 %2071 }
0x1680   :  { %v2074_v37 = vmul.f32 %v2844_v35, %v2072_v36 }
0x1682   :  { %2076 = vrot.lane.b32.xlu1 %v2074_v37, %s2863_s15 }
0x16f0   :  { %v1978_v38 = vpop.permute.xlu0 %1977 }
0x16f1   :  { %v1980_v39 = vadd.f32 %v1978_v38, %v1888_v22 }
0x16f3   :  { %2845 = vtanh.f32 %v1980_v39 }
0x16f4   :  { %v2077_v40 = vpop.permute.xlu1 %2076 }
0x16f5   :  { %v2079_v41 = vadd.f32 %v2077_v40, %v1890_v24 }
0x16f7   :  { %2847 = vtanh.f32 %v2079_v41 }
0x1700   :  { %v2846_v47 = vpop.eup %2845 }
0x1701   :  { %1984 = vrot.lane.b32.xlu0 %v2846_v47, %s2865_s24 }
0x1704   :  { %v2848_v50 = vpop.eup %2847 }
0x1705   :  { %2083 = vrot.lane.b32.xlu1 %v2848_v50, %s2865_s24 }
0x1773   :  { %v1985_v63 = vpop.permute.xlu0 %1984 }
0x1774   :  { %v1987_v8 = vmul.f32 %v1985_v63, %v1982_v62 }
0x1776   :  { %v3369_v1 = vadd.f32 %v1988_v0, %v1987_v8 }
0x1777   :  { %v2084_v5 = vpop.permute.xlu1 %2083 }
0x1778   :  { %v2086_v6 = vmul.f32 %v2084_v5, %v2081_v2  ;;  %v2109_v9 = vpack.c.bf16 %v3369_v1, %v3369_v1 }
0x177a   :  { %v3374_v11 = vadd.f32 %v2087_v4, %v2086_v6  ;;  %2111 = vrot.lane.b32.xlu0 %v2109_v9, %s2865_s24 }
0x177c   :  { %v2208_v12 = vpack.c.bf16 %v3374_v11, %v3374_v11 }
0x177e   :  { %2210 = vrot.lane.b32.xlu1 %v2208_v12, %s2865_s24  ;;  %2180 = vrot.lane.b32.xlu0 %v3240_v52, %s2863_s15 }
0x1782   :  { %2279 = vrot.lane.b32.xlu1 %v3250_v57, %s2863_s15 }
0x17ec   :  { %v2112_v13 = vpop.permute.xlu0 %2111 }
0x17ed   :  { %2681 = vmatmul.mubr.msk.bf16.vlgmr.msra.gmra.mxu0 %vm206_vm2, %v2112_v13 }
0x17f0   :  { %v2211_v14 = vpop.permute.xlu1 %2210  ;;  %v2181_v16 = vpop.permute.xlu0 %2180 }
0x17f1   :  { %2689 = vmatmul.mubr.msk.bf16.vlgmr.msra.gmra.mxu1 %vm206_vm2, %v2211_v14 }
0x17f4   :  { %v2280_v20 = vpop.permute.xlu1 %2279 }
0x18ad   :  { %v2162_v17 = vpop.f32.mrf.mxu0 }
0x18ae   :  { %v2183_v18 = vadd.f32 %v2181_v16, %v2162_v17  ;;  %v2168_v27 = vadd.f32 %v2162_v17, %v2102_v26 }
0x18af   :  { %v2682_v19 = vpop.f32.mrf.mxu0 }
0x18b0   :  { %2185 = vrot.lane.b32.xlu0 %v2183_v18, %s2863_s15  ;;  %v2446_v29 = vmul.f32 -1.442695, %v2168_v27 }
0x18b1   :  { %v2261_v21 = vpop.f32.mrf.mxu1  ;;  %v2165_v22 = vpop.f32.mrf.mxu0 }
0x18b2   :  { %v2282_v23 = vadd.f32 %v2280_v20, %v2261_v21  ;;  %v2267_v30 = vadd.f32 %v2261_v21, %v2103_v28  ;;  %2849 = vpow2.f32 %v2446_v29 }
0x18b3   :  { %v2683_v52 = vpop.f32.mrf.mxu0  ;;  %v2690_v24 = vpop.f32.mrf.mxu1 }
0x18b4   :  { %2284 = vrot.lane.b32.xlu1 %v2282_v23, %s2863_s15  ;;  %v2451_v31 = vmul.f32 -1.442695, %v2267_v30 }
0x18b5   :  { %v2264_v57 = vpop.f32.mrf.mxu1 }
0x18b6   :  { %2851 = vpow2.f32 %v2451_v31 }
0x18b7   :  { %v2691_v25 = vpop.f32.mrf.mxu1 }
0x18bf   :  { %v2850_v32 = vpop.eup %2849 }
0x18c0   :  { %v2172_v33 = vadd.f32 1.0, %v2850_v32 }
0x18c2   :  { %2853 = vrcp.f32 %v2172_v33 }
0x18c3   :  { %v2852_v34 = vpop.eup %2851 }
0x18c4   :  { %v2271_v35 = vadd.f32 1.0, %v2852_v34 }
0x18c6   :  { %2855 = vrcp.f32 %v2271_v35 }
0x18cf   :  { %v2854_v36 = vpop.eup %2853 }
0x18d3   :  { %v2856_v39 = vpop.eup %2855 }
0x1922   :  { %v2186_v37 = vpop.permute.xlu0 %2185 }
0x1923   :  { %v2188_v38 = vmul.f32 %v2854_v36, %v2186_v37 }
0x1925   :  { %2190 = vrot.lane.b32.xlu0 %v2188_v38, %s2863_s15 }
0x1926   :  { %v2285_v40 = vpop.permute.xlu1 %2284 }
0x1927   :  { %v2287_v41 = vmul.f32 %v2856_v39, %v2285_v40 }
0x1929   :  { %2289 = vrot.lane.b32.xlu1 %v2287_v41, %s2863_s15 }
0x1997   :  { %v2191_v42 = vpop.permute.xlu0 %2190 }
0x1998   :  { %v2193_v44 = vadd.f32 %v2191_v42, %v2102_v26 }
0x199a   :  { %2857 = vtanh.f32 %v2193_v44 }
0x199b   :  { %v2290_v47 = vpop.permute.xlu1 %2289 }
0x199c   :  { %v2292_v48 = vadd.f32 %v2290_v47, %v2103_v28 }
0x199e   :  { %2859 = vtanh.f32 %v2292_v48 }
0x19a7   :  { %v2858_v50 = vpop.eup %2857 }
0x19a8   :  { %2197 = vrot.lane.b32.xlu0 %v2858_v50, %s2865_s24 }
0x19ab   :  { %v2860_v58 = vpop.eup %2859 }
0x19ac   :  { %2296 = vrot.lane.b32.xlu1 %v2860_v58, %s2865_s24  ;;  %384 = vrot.lane.b32.xlu0 %v3014_v15, %s2865_s24 }
0x19b0   :  { %378 = vrot.lane.b32.xlu1 %v3010_v7, %s2865_s24  ;;  %598 = vrot.lane.b32.xlu0 %v3058_v3, %s2865_s24  ;;  %v2195_v7 = vsub.f32 1.0, %v2854_v36 }
0x19b4   :  { %592 = vrot.lane.b32.xlu1 %v3053_v61, %s2865_s24  ;;  %812 = vrot.lane.b32.xlu0 %v3102_v60, %s2865_s24  ;;  %v2201_v61 = vmul.f32 %v2854_v36, %v3369_v1  ;;  %v2294_v60 = vsub.f32 1.0, %v2856_v39 }
0x19b8   :  { %806 = vrot.lane.b32.xlu1 %v3097_v54, %s2865_s24  ;;  %1026 = vrot.lane.b32.xlu0 %v3146_v56, %s2865_s24 }
0x19bc   :  { %1020 = vrot.lane.b32.xlu1 %v3141_v49, %s2865_s24  ;;  %1240 = vrot.lane.b32.xlu0 %v3190_v53, %s2865_s24 }
0x19c0   :  { %1234 = vrot.lane.b32.xlu1 %v3185_v46, %s2865_s24  ;;  %1454 = vrot.lane.b32.xlu0 %v3234_v51, %s2865_s24  ;;  %v2300_v46 = vmul.f32 %v2856_v39, %v3374_v11 }
0x19c4   :  { %1448 = vrot.lane.b32.xlu1 %v3229_v43, %s2865_s24  ;;  %1668 = vrot.lane.b32.xlu0 %v3288_v59, %s2865_s24 }
0x19c8   :  { %1662 = vrot.lane.b32.xlu1 %v3283_v45, %s2865_s24  ;;  %1882 = vrot.lane.b32.xlu0 %v3332_v10, %s2865_s24 }
0x19cc   :  { %1876 = vrot.lane.b32.xlu1 %v3327_v55, %s2865_s24 }
0x19d0   :  { %2090 = vrot.lane.b32.xlu1 %v3369_v1, %s2865_s24 }
0x1a1a   :  { %v2198_v15 = vpop.permute.xlu0 %2197 }
0x1a1b   :  { %v2200_v3 = vmul.f32 %v2198_v15, %v2195_v7 }
0x1a1d   :  { %v2202_v54 = vadd.f32 %v2201_v61, %v2200_v3 }
0x1a1e   :  { %v2297_v49 = vpop.permute.xlu1 %2296  ;;  %v385_v56 = vpop.permute.xlu0 %384 }
0x1a1f   :  { %v2299_v53 = vmul.f32 %v2297_v49, %v2294_v60  ;;  %2346 = vst.msk [vmem:[%s3528_s10 + $0x12] sm:$0x3] %vm381_vm3, %v385_v56  ;;  %2303 = vrot.lane.b32.xlu0 %v2202_v54, %s2865_s24 }
0x1a21   :  { %v2301_v43 = vadd.f32 %v2300_v46, %v2299_v53 }
0x1a22   :  { %v379_v51 = vpop.permute.xlu1 %378  ;;  %v599_v45 = vpop.permute.xlu0 %598 }
0x1a23   :  { %382 = vst.msk [vmem:[%s3529_s9] sm:$0x3] %vm381_vm3, %v379_v51  ;;  %2358 = vst.msk [vmem:[%s3528_s10 + $0x10] sm:$0x3] %vm381_vm3, %v599_v45  ;;  %2309 = vrot.lane.b32.xlu1 %v2301_v43, %s2865_s24  ;;  %2096 = vrot.lane.b32.xlu0 %v3374_v11, %s2865_s24 }
0x1a26   :  { %v593_v59 = vpop.permute.xlu1 %592  ;;  %v813_v55 = vpop.permute.xlu0 %812 }
0x1a27   :  { %2357 = vst.msk [vmem:[%s3529_s9 + $0x2] sm:$0x3] %vm381_vm3, %v593_v59  ;;  %2370 = vst.msk [vmem:[%s3528_s10 + $0xe] sm:$0x3] %vm381_vm3, %v813_v55 }
0x1a2a   :  { %v807_v10 = vpop.permute.xlu1 %806  ;;  %v1027_v62 = vpop.permute.xlu0 %1026 }
0x1a2b   :  { %2369 = vst.msk [vmem:[%s3529_s9 + $0x4] sm:$0x3] %vm381_vm3, %v807_v10  ;;  %2382 = vst.msk [vmem:[%s3528_s10 + $0xc] sm:$0x3] %vm381_vm3, %v1027_v62 }
0x1a2e   :  { %v1021_v63 = vpop.permute.xlu1 %1020  ;;  %v1241_v0 = vpop.permute.xlu0 %1240 }
0x1a2f   :  { %2381 = vst.msk [vmem:[%s3529_s9 + $0x6] sm:$0x3] %vm381_vm3, %v1021_v63  ;;  %2394 = vst.msk [vmem:[%s3528_s10 + $0xa] sm:$0x3] %vm381_vm3, %v1241_v0 }
0x1a32   :  { %v1235_v8 = vpop.permute.xlu1 %1234  ;;  %v1455_v1 = vpop.permute.xlu0 %1454 }
0x1a33   :  { %2393 = vst.msk [vmem:[%s3529_s9 + $0x8] sm:$0x3] %vm381_vm3, %v1235_v8  ;;  %2406 = vst.msk [vmem:[%s3528_s10 + $0x8] sm:$0x3] %vm381_vm3, %v1455_v1 }
0x1a36   :  { %v1449_v2 = vpop.permute.xlu1 %1448  ;;  %v1669_v5 = vpop.permute.xlu0 %1668 }
0x1a37   :  { %2405 = vst.msk [vmem:[%s3529_s9 + $0xa] sm:$0x3] %vm381_vm3, %v1449_v2  ;;  %2418 = vst.msk [vmem:[%s3528_s10 + $0x6] sm:$0x3] %vm381_vm3, %v1669_v5 }
0x1a3a   :  { %v1663_v4 = vpop.permute.xlu1 %1662  ;;  %v1883_v6 = vpop.permute.xlu0 %1882 }
0x1a3b   :  { %2417 = vst.msk [vmem:[%s3529_s9 + $0xc] sm:$0x3] %vm381_vm3, %v1663_v4  ;;  %2430 = vst.msk [vmem:[%s3528_s10 + $0x4] sm:$0x3] %vm381_vm3, %v1883_v6 }
0x1a3e   :  { %v1877_v9 = vpop.permute.xlu1 %1876 }
0x1a3f   :  { %2429 = vst.msk [vmem:[%s3529_s9 + $0xe] sm:$0x3] %vm381_vm3, %v1877_v9 }
0x1a42   :  { %v2091_v11 = vpop.permute.xlu1 %2090 }
0x1a43   :  { %2441 = vst.msk [vmem:[%s3529_s9 + $0x10] sm:$0x3] %vm381_vm3, %v2091_v11 }
0x1a91   :  { %v2304_v12 = vpop.permute.xlu0 %2303 }
0x1a92   :  { %2453 = vst.msk [vmem:[%s3529_s9 + $0x12] sm:$0x3] %vm381_vm3, %v2304_v12  ;;  %2313 = vst.msk [vmem:[%s3530_s11] sm:$0x3] %vm381_vm3, %v2304_v12 }
0x1a93   :  { %2315 = vst.msk [vmem:[%s3530_s11] sm:$0x3] %vm2314_vm4, %v2301_v43 }
0x1a95   :  { %v2310_v13 = vpop.permute.xlu1 %2309  ;;  %v2097_v14 = vpop.permute.xlu0 %2096 }
0x1a96   :  { %2312 = vst.msk [vmem:[%s3528_s10] sm:$0x3] %vm381_vm3, %v2310_v13  ;;  %2442 = vst.msk [vmem:[%s3528_s10 + $0x2] sm:$0x3] %vm381_vm3, %v2097_v14 }

// kernel: seq2seq_forward.3
= control target key start
LH: loop header
LB: loop body
LE: loop exit
PB: predicated region body
PF: predicated region fallthrough
CT: control target
= control target key end

     0   :  { %s10149_s0 = inlined_call_operand.vmem [shape: s32[8], index: 0, kind: input, shape index: {}]   ;;  %s10150_s1 = inlined_call_operand.vmem [shape: f32[8,2,16], index: 1, kind: input, shape index: {}]   ;;  %s10151_s2 = inlined_call_operand.vmem [shape: f32[2,64], index: 2, kind: input, shape index: {}]   ;;  %s10152_s3 = inlined_call_operand.vmem [shape: bf16[10,128], index: 3, kind: input, shape index: {}]   ;;  %s10153_s4 = inlined_call_operand.vmem [shape: bf16[64,32], index: 4, kind: input, shape index: {}]   ;;  %s10154_s5 = inlined_call_operand.vmem [shape: f32[1,32], index: 5, kind: input, shape index: {}]   ;;  %s10155_s6 = inlined_call_operand.vmem [shape: bf16[32,32], index: 6, kind: input, shape index: {}]   ;;  %s10156_s7 = inlined_call_operand.vmem [shape: bf16[64,32], index: 7, kind: input, shape index: {}]   ;;  %s10157_s8 = inlined_call_operand.vmem [shape: f32[1,32], index: 8, kind: input, shape index: {}]   ;;  %s10158_s9 = inlined_call_operand.vmem [shape: f32[1,32], index: 9, kind: input, shape index: {}]   ;;  %s10159_s10 = inlined_call_operand.vmem [shape: bf16[24,16], index: 10, kind: input, shape index: {}]   ;;  %s10160_s11 = inlined_call_operand.vmem [shape: bf16[112,128], index: 11, kind: input, shape index: {}]   ;;  %s10161_s12 = inlined_call_operand.vmem [shape: f32[1,128], index: 12, kind: input, shape index: {}]   ;;  %s10162_s13 = inlined_call_operand.vmem [shape: bf16[80,128], index: 13, kind: input, shape index: {}]   ;;  %s10163_s14 = inlined_call_operand.vmem [shape: bf16[32,128], index: 14, kind: input, shape index: {}]   ;;  %s10164_s15 = inlined_call_operand.vmem [shape: f32[1,128], index: 15, kind: input, shape index: {}]   ;;  %s10165_s16 = inlined_call_operand.vmem [shape: f32[1,32], index: 16, kind: input, shape index: {}]   ;;  %s10166_s17 = inlined_call_operand.vmem [shape: bf16[32,128], index: 17, kind: input, shape index: {}]   ;;  %s10167_s18 = inlined_call_operand.vmem [shape: bf16[32,128], index: 18, kind: input, shape index: {}]   ;;  %s10168_s19 = inlined_call_operand.vmem [shape: f32[1,128], index: 19, kind: input, shape index: {}]   ;;  %s10169_s20 = inlined_call_operand.vmem [shape: f32[1,32], index: 20, kind: input, shape index: {}]   ;;  %s10170_s21 = inlined_call_operand.vmem [shape: f32[8,2,128], index: 21, kind: output, shape index: {}]  }
   0x1   :  { %10176 = sst [smem:[#allocation7_spill]] %s10149_s0 }
   0x2   :  { %10177 = sst [smem:[#allocation8_spill]] %s10150_s1 }
   0x3   :  { %10178 = sst [smem:[#allocation9_spill]] %s10151_s2 }
   0x4   :  { %10179 = sst [smem:[#allocation10_spill]] %s10152_s3 }
   0x5   :  { %10180 = sst [smem:[#allocation11_spill]] %s10153_s4 }
   0x6   :  { %10181 = sst [smem:[#allocation12_spill]] %s10154_s5 }
   0x7   :  { %26 = vsyncpa [#allocation5], 0  ;;  %s10182_s26 = sld [smem:[#allocation7_spill]] }
   0xd   :  { %s33_s27 = sshll.u32 %s10182_s26, 4  ;;  %s34_s27 = int_to_ptr.vmem [resolvable:$true] %s33_s27 }
   0xe   :  { %s8267_s3 = scalar_lea.vmem %s34_s27, 16  ;;  %p8272_p1 = scmp.lt.s32.totalorder %s34_s27, %s34_s27 }
   0xf   :  { %p8268_p0 = scmp.ne.s32.totalorder %s34_s27, %s8267_s3  ;;  %p8273_p2 = scmp.lt.s32.totalorder %s8267_s3, %s8267_s3 }
  0x11   :  { %p8274_p3 = por %p8273_p2, %p8272_p1 }
  0x13   :  { %p8275_p4 = pnand %p8274_p3, %p8268_p0 }
  0x15   :  { %8278 = shalt.err (!%p8275_p4)
}
  0x16   :  { %s8281_s28 = smov [#allocation4]  }
  0x17   :  { %36 = dma.vmem_to_smem %s34_s27, 16, %s8281_s28, [#allocation5]  }
  0x18   :  { %8279 = dma.done.wait [#allocation5], 16  }
  0x19   :  { %8280 = vsyncadd [#allocation5], 4294967280 }
  0x1a   :  { %80 = sfence }
  0x1b   :  { %s10183_s4 = sld [smem:[#allocation11_spill]]  ;;  %v8282_v1 = vmov 0.0   ;;  %vm8283_vm0 = vmmov 0   ;;  %s8284_s27 = smov 64   ;;  %vm131_vm1 = vcmask 523264   ;;  %v7846_v7 = vld [vmem:[%s10156_s7 + $0x18] sm:$0xff]   ;;  %v366_v36 = vlaneseq }
  0x1c   :  { %82 = vst [vmem:[%s10170_s21] sm:$0x3] %v8282_v1  ;;  %84 = vst [vmem:[%s10170_s21 + $0x4] sm:$0x3] %v8282_v1  ;;  %7226 = vmatprep.subr.bf16.mxu1 %v8282_v1  ;;  %7250 = vmatprep.subr.bf16.mxu0 %v8282_v1  ;;  %s10184_s2 = sld [smem:[#allocation10_spill]]  ;;  %v7843_v8 = vld [vmem:[%s10156_s7 + $0x18] sm:$0xff]   ;;  %v7844_v10 = vld [vmem:[%s10156_s7 + $0x10] sm:$0xff]  }
  0x1d   :  { %85 = vst [vmem:[%s10170_s21 + $0x6] sm:$0x3] %v8282_v1  ;;  %86 = vst [vmem:[%s10170_s21 + $0x8] sm:$0x3] %v8282_v1  ;;  %7234 = vmatprep.mubr.msk.bf16.mxu1 %vm8283_vm0, %v8282_v1  ;;  %7258 = vmatprep.mubr.msk.bf16.mxu0 %vm8283_vm0, %v8282_v1  ;;  %s10185_s30 = sld [smem:[#allocation9_spill]]  ;;  %v7845_v11 = vld [vmem:[%s10156_s7 + $0x8] sm:$0xff]  }
  0x1e   :  { %87 = vst [vmem:[%s10170_s21 + $0xa] sm:$0x3] %v8282_v1  ;;  %88 = vst [vmem:[%s10170_s21 + $0xc] sm:$0x3] %v8282_v1  ;;  %7251 = vmatpush3.bf16.msra.mxu0 %v7846_v7  ;;  %v7847_v12 = vld [vmem:[%s10156_s7] sm:$0xff]   ;;  %v7848_v13 = vld [vmem:[%s10156_s7 + $0x10] sm:$0xff]  }
  0x1f   :  { %89 = vst [vmem:[%s10170_s21 + $0xe] sm:$0x3] %v8282_v1  ;;  %83 = vst [vmem:[%s10170_s21 + $0x2] sm:$0x3] %v8282_v1  ;;  %7252 = vmatprep.subr.bf16.mxu0 %v8282_v1  ;;  %v7850_v15 = vld [vmem:[%s10156_s7 + $0x8] sm:$0xff]   ;;  %v7851_v16 = vld [vmem:[%s10156_s7] sm:$0xff]  }
  0x20   :  { %v7852_v17 = vld [vmem:[%s10155_s6 + $0x8] sm:$0xff]   ;;  %v7853_v18 = vld [vmem:[%s10155_s6] sm:$0xff]   ;;  %s10186_s29 = sld [smem:[#allocation12_spill]]  ;;  %vm259_vm2 = vcmask 261120   ;;  %vm261_vm3 = vcmask 254976   ;;  %v8547_v39 = vshrl.u32 %v366_v36, 7 }
  0x21   :  { %v7838_v0 = vld [vmem:[%s10183_s4 + $0x18] sm:$0xff]   ;;  %v7839_v2 = vld [vmem:[%s10183_s4 + $0x10] sm:$0xff]   ;;  %v7840_v4 = vld [vmem:[%s10183_s4 + $0x8] sm:$0xff]   ;;  %v8285_v37 = vmov 1966171168   ;;  %vm508_vm4 = vcmask 130112  }
  0x22   :  { %7227 = vmatpush3.bf16.msra.mxu1 %v7838_v0  ;;  %v7842_v3 = vld [vmem:[%s10184_s2] sm:$0x1f]   ;;  %7253 = vmatpush3.bf16.msra.mxu0 %v7848_v13  ;;  %v433_v38 = vunpack.c.l.s4 %v8285_v37  ;;  %v8557_v46 = vsub.s32 0, %v8547_v39  ;;  %vm519_vm5 = vcmask 1041409   ;;  %vm522_vm6 = vcmask 74752   ;;  %s10187_s24 = sld [smem:[#allocation8_spill]] }
  0x23   :  { %7228 = vmatprep.subr.bf16.mxu1 %v8282_v1  ;;  %278 = vrot.lane.b32.xlu0 %v7842_v3, %s8284_s27  ;;  %v7841_v5 = vld [vmem:[%s10183_s4] sm:$0xff]   ;;  %vm655_vm7 = vcmask 1044480   ;;  %vm651_vm8 = vcmask 80896   ;;  %vm699_vm9 = vcmp.eq.s32.totalorder %v8547_v39, 1  ;;  %vm709_vm10 = vcmask 130048   ;;  %s8288_s3 = smov 32  }
  0x24   :  { %v90_v6 = vld [vmem:[%s10185_s30] sm:$0x3]  ;;  %7254 = vmatprep.subr.bf16.mxu0 %v8282_v1  ;;  %v434_v40 = vunpack.c.0.s8 %v433_v38  ;;  %vm764_vm11 = vcmask 654336   ;;  %s8289_s30 = smov 96   ;;  %vm10175_vm12 = vcmask 785408   ;;  %vm10174_vm13 = vcmask 916480  }
  0x25   :  { %v91_v9 = vpack.c.bf16 %v90_v6, %v90_v6  ;;  %v7849_v14 = vld [vmem:[%s10184_s2] sm:$0x1f]   ;;  %vm1187_vm14 = vcmask 123904  }
  0x26   :  { %7229 = vmatpush3.bf16.msra.mxu1 %v7839_v2  ;;  %7255 = vmatpush3.bf16.msra.mxu0 %v7850_v15  ;;  %v6667_v20 = vld [vmem:[%s10186_s29] ss:$0 sm:$0xff]  ;;  %v8550_v41 = vsub.s32 %v434_v40, %v8547_v39  ;;  %s6724_s29 = sld [smem:[#allocation4 + $0x1]] }
  0x27   :  { %7230 = vmatprep.subr.bf16.mxu1 %v8282_v1  ;;  %7256 = vmatprep.subr.bf16.mxu0 %v8282_v1  ;;  %v6685_v44 = vld [vmem:[%s10157_s8] ss:$0 sm:$0xff] }
  0x28   :  { %v6689_v3 = vld [vmem:[%s10158_s9] ss:$0 sm:$0xff] }
  0x2a   :  { %7231 = vmatpush3.bf16.msra.mxu1 %v7840_v4  ;;  %7257 = vmatpush3.bf16.msra.mxu0 %v7851_v16  ;;  %v8582_v16 = vand.u32 127, %v366_v36 }
  0x2b   :  { %7232 = vmatprep.subr.bf16.mxu1 %v8282_v1  ;;  %7276 = vmatprep.subr.bf16.mxu0 %v8282_v1 }
  0x2c   :  { %p6725_p5 = scmp.ne.s32.totalorder %s6724_s29, 0 }
  0x2e   :  { %7233 = vmatpush3.bf16.msra.mxu1 %v7841_v5 }
  0x2f   :  { %7238 = vmatprep.subr.bf16.mxu1 %v8282_v1 }
  0x31   :  { %7235 = vmatmul.mubr.msk.bf16.vlgmr.msra.gmra.mxu1 %vm131_vm1, %v91_v9 }
  0x32   :  { %7239 = vmatpush3.bf16.msra.mxu1 %v7843_v8  ;;  %7246 = vmatprep.mubr.msk.bf16.mxu1 %vm8283_vm0, %v8282_v1 }
  0x33   :  { %7240 = vmatprep.subr.bf16.mxu1 %v8282_v1 }
  0x36   :  { %7241 = vmatpush3.bf16.msra.mxu1 %v7844_v10 }
  0x37   :  { %7242 = vmatprep.subr.bf16.mxu1 %v8282_v1 }
  0x3a   :  { %7243 = vmatpush3.bf16.msra.mxu1 %v7845_v11 }
  0x3b   :  { %7244 = vmatprep.subr.bf16.mxu1 %v8282_v1 }
  0x3e   :  { %7245 = vmatpush3.bf16.msra.mxu1 %v7847_v12 }
  0x3f   :  { %7262 = vmatprep.subr.bf16.mxu1 %v8282_v1 }
  0x41   :  { %7247 = vmatmul.mubr.msk.bf16.vlgmr.msra.gmra.mxu1 %vm131_vm1, %v7849_v14 }
  0x42   :  { %7266 = vmatprep.mubr.msk.bf16.mxu1 %vm8283_vm0, %v8282_v1  ;;  %7263 = vmatpush3.bf16.msra.mxu1 %v7852_v17  ;;  %v503_v17 = vadd.s32 4294967288, %v8582_v16 }
  0x43   :  { %7264 = vmatprep.subr.bf16.mxu1 %v8282_v1 }
  0x46   :  { %7265 = vmatpush3.bf16.msra.mxu1 %v7853_v18 }
  0x47   :  { %7270 = vmatprep.subr.bf16.mxu1 %v8282_v1 }
  0x95   :  { %v279_v19 = vpop.permute.xlu0 %278 }
  0x96   :  { %7259 = vmatmul.mubr.msk.bf16.vlgmr.msra.gmra.mxu0 %vm131_vm1, %v279_v19  ;;  %v8586_v19 = vsub.s32 %v503_v17, %v8547_v39 }
  0x97   :  { %7286 = vmatprep.mubr.msk.bf16.mxu0 %vm8283_vm0, %v8282_v1 }
  0xf1   :  { %v169_v21 = vpop.f32.mrf.mxu1 }
  0xf2   :  { %v170_v22 = vadd.f32 %v6667_v20, %v169_v21  ;;  %v8590_v20 = vsub.s32 %v8582_v16, %v8547_v39 }
  0xf3   :  { %v7236_v23 = vpop.f32.mrf.mxu1 }
  0xf4   :  { %7873 = vtanh.f32 %v170_v22 }
  0xf5   :  { %v172_v24 = vpop.f32.mrf.mxu1 }
  0xf7   :  { %v7237_v25 = vpop.f32.mrf.mxu1 }
 0x101   :  { %v8533_v26 = vpop.eup %7873  ;;  %v252_v28 = vpop.f32.mrf.mxu1 }
 0x102   :  { %v8537_v27 = vpack.c.bf16 %v8533_v26, %v8533_v26  ;;  %260 = vst.msk [vmem:[#allocation2] sm:$0xff] %vm259_vm2, %v252_v28 }
 0x103   :  { %v7248_v29 = vpop.f32.mrf.mxu1 }
 0x104   :  { %7267 = vmatmul.mubr.msk.bf16.vlgmr.msra.gmra.mxu1 %vm259_vm2, %v8537_v27 }
 0x105   :  { %7272 = vmatprep.mubr.msk.bf16.mxu1 %vm8283_vm0, %v8282_v1  ;;  %v255_v30 = vpop.f32.mrf.mxu1 }
 0x106   :  { %262 = vst.msk [vmem:[#allocation2 + $0x8] sm:$0x3] %vm261_vm3, %v255_v30 }
 0x107   :  { %v7249_v31 = vpop.f32.mrf.mxu1 }
 0x109   :  { %v351_v43 = vld [vmem:[#allocation2] sm:$0xff] }
 0x10a   :  { %v8560_v53 = vadd.f32 %v6685_v44, %v351_v43 }
 0x10d   :  { %v352_v47 = vld [vmem:[#allocation2 + $0x8] sm:$0x3] }
 0x10e   :  { %v8562_v55 = vadd.f32 %v6685_v44, %v352_v47 }
 0x156   :  { %v341_v32 = vpop.f32.mrf.mxu0 }
 0x157   :  { %349 = vst.msk [vmem:[#allocation2 + $0x10] sm:$0xff] %vm259_vm2, %v341_v32 }
 0x158   :  { %v7260_v33 = vpop.f32.mrf.mxu0 }
 0x15a   :  { %v344_v34 = vpop.f32.mrf.mxu0 }
 0x15b   :  { %350 = vst.msk [vmem:[#allocation2 + $0x18] sm:$0x3] %vm261_vm3, %v344_v34  ;;  %v8286_v34 = vmov 0  }
 0x15c   :  { %v7261_v35 = vpop.f32.mrf.mxu0  ;;  %7832 = vset.pattern.permute.xlu0 %v8286_v34  ;;  %7831 = vset.pattern.permute.xlu1 %v8286_v34 }
 0x15d   :  { %v8603_v35 = vsub.s32 1, %v8547_v39 }
 0x15e   :  { %v353_v48 = vld [vmem:[#allocation2 + $0x10] sm:$0xff] }
 0x15f   :  { %v8564_v56 = vadd.f32 %v6685_v44, %v353_v48 }
 0x162   :  { %v354_v50 = vld [vmem:[#allocation2 + $0x18] sm:$0x3] }
 0x163   :  { %v8568_v59 = vadd.f32 %v6685_v44, %v354_v50 }
 0x1c4   :  { %v425_v42 = vpop.f32.mrf.mxu1 }
 0x1c5   :  { %v438_v45 = vrot.slane %v425_v42, %v8550_v41 }
 0x1c6   :  { %v7268_v49 = vpop.f32.mrf.mxu1 }
 0x1c7   :  { %v439_v51 = vcombine.high %v438_v45, %v438_v45  ;;  %v446_v52 = vrot.slane %v438_v45, %v8550_v41 }
 0x1c8   :  { %v428_v54 = vpop.f32.mrf.mxu1 }
 0x1c9   :  { %v453_v57 = vrot.slane %v439_v51, %v8550_v41  ;;  %v457_v58 = vrot.slane %v446_v52, %v8557_v46 }
 0x1ca   :  { %v7269_v60 = vpop.f32.mrf.mxu1 }
 0x1cb   :  { %v461_v61 = vrot.slane %v453_v57, %v8557_v46  ;;  %v464_v62 = vadd.f32 %v457_v58, %v8560_v53  ;;  %v465_v63 = vadd.f32 %v457_v58, %v8562_v55 }
 0x1cd   :  { %v466_v0 = vadd.f32 %v461_v61, %v8564_v56  ;;  %7875 = vtanh.f32 %v464_v62  ;;  %v467_v2 = vadd.f32 %v461_v61, %v8568_v59 }
 0x1ce   :  { %7877 = vtanh.f32 %v465_v63 }
 0x1cf   :  { %7879 = vtanh.f32 %v466_v0 }
 0x1d0   :  { %7881 = vtanh.f32 %v467_v2 }
 0x1da   :  { %v7876_v4 = vpop.eup %7875 }
 0x1db   :  { %v7878_v5 = vpop.eup %7877  ;;  %v479_v6 = vmul.f32 %v7876_v4, %v6689_v3 }
 0x1dc   :  { %v7880_v7 = vpop.eup %7879  ;;  %v480_v8 = vmul.f32 %v7878_v5, %v6689_v3 }
 0x1dd   :  { %v483_v9 = vsel %vm259_vm2, %v479_v6, 0.0  ;;  %v481_v11 = vmul.f32 %v7880_v7, %v6689_v3  ;;  %v7882_v12 = vpop.eup %7881 }
 0x1de   :  { %v486_v10 = vsel %vm261_vm3, %v480_v8, 0.0  ;;  %484 = vadd.xlane.f32.xlu0 %v483_v9  ;;  %v482_v14 = vmul.f32 %v7882_v12, %v6689_v3 }
 0x1df   :  { %487 = vadd.xlane.f32.xlu1 %v486_v10  ;;  %v489_v13 = vsel %vm259_vm2, %v481_v11, 0.0 }
 0x1e0   :  { %v492_v15 = vsel %vm261_vm3, %v482_v14, 0.0 }
 0x1e3   :  { %490 = vadd.xlane.f32.xlu1 %v489_v13 }
 0x1e7   :  { %493 = vadd.xlane.f32.xlu1 %v492_v15 }
 0x267   :  { %v485_v21 = vpop.xlane.xlu0 %484 }
 0x268   :  { %v488_v18 = vpop.xlane.xlu1 %487  ;;  %v502_v24 = vrot.slane %v485_v21, %v8590_v20 }
 0x269   :  { %v507_v23 = vrot.slane %v488_v18, %v8586_v19 }
 0x26b   :  { %v509_v30 = vsel %vm508_vm4, %v507_v23, %v502_v24 }
 0x26c   :  { %v491_v22 = vpop.xlane.xlu1 %490 }
 0x26d   :  { %v513_v28 = vrot.slane %v491_v22, %v8590_v20 }
 0x270   :  { %v494_v25 = vpop.xlane.xlu1 %493 }
 0x271   :  { %v517_v29 = vrot.slane %v494_v25, %v8586_v19 }
 0x273   :  { %v518_v31 = vsel %vm508_vm4, %v517_v29, %v513_v28 }
 0x274   :  { %v520_v32 = vsel %vm519_vm5, %v518_v31, %v509_v30 }
 0x275   :  { %v523_v33 = vsel %vm522_vm6, %v520_v32, -inf }
 0x276   :  { %524 = vmax.xlane.f32.xlu1 %v523_v33 }
 0x2ff   :  { %v525_v36 = vpop.xlane.xlu1 %524 }
 0x300   :  { %v530_v37 = vrot.slane %v525_v36, %v8557_v46  ;;  %v534_v38 = vrot.slane %v525_v36, %v8603_v35 }
 0x302   :  { %v537_v40 = vsub.f32 %v485_v21, %v530_v37  ;;  %v538_v42 = vsub.f32 %v488_v18, %v530_v37  ;;  %v539_v43 = vsub.f32 %v491_v22, %v534_v38  ;;  %v540_v47 = vsub.f32 %v494_v25, %v534_v38  ;;  %v7854_v22 = vld [vmem:[%s10184_s2] sm:$0x1f]   ;;  %s8287_s2 = smov 80  }
 0x303   :  { %v657_v24 = vsel %vm655_vm7, %v7854_v22, 0 }
 0x304   :  { %v541_v44 = vmul.f32 1.442695, %v537_v40  ;;  %v545_v45 = vmul.f32 1.442695, %v539_v43  ;;  %v543_v48 = vmul.f32 1.442695, %v538_v42  ;;  %7271 = vmatpush3.bf16.msra.mxu1 %v657_v24 }
 0x305   :  { %v547_v49 = vmul.f32 1.442695, %v540_v47  ;;  %7290 = vmatprep.subr.bf16.mxu1 %v8282_v1  ;;  %v7855_v43 = vld [vmem:[%s10163_s14 + $0x8] sm:$0xff]   ;;  %v7857_v47 = vld [vmem:[%s10162_s13 + $0x20] sm:$0xff]  }
 0x306   :  { %7883 = vpow2.f32 %v541_v44  ;;  %7277 = vmatpush3.bf16.msra.mxu0 %v7857_v47  ;;  %v7865_v47 = vld [vmem:[%s10167_s18] sm:$0xff]  }
 0x307   :  { %7885 = vpow2.f32 %v545_v45  ;;  %v7856_v45 = vld [vmem:[%s10163_s14] sm:$0xff]   ;;  %7278 = vmatprep.subr.bf16.mxu0 %v8282_v1 }
 0x308   :  { %7887 = vpow2.f32 %v543_v48  ;;  %v7858_v48 = vld [vmem:[%s10162_s13 + $0x18] sm:$0xff]  }
 0x309   :  { %7889 = vpow2.f32 %v547_v49 }
 0x30a   :  { %7279 = vmatpush3.bf16.msra.mxu0 %v7858_v48 }
 0x30b   :  { %7280 = vmatprep.subr.bf16.mxu0 %v8282_v1 }
 0x313   :  { %v7884_v50 = vpop.eup %7883 }
 0x314   :  { %554 = vperm.xlu1 %7831, %v7884_v50   ;;  %v7886_v51 = vpop.eup %7885 }
 0x315   :  { %560 = vperm.xlu0 %7832, %v7886_v51   ;;  %v7888_v52 = vpop.eup %7887 }
 0x316   :  { %v7890_v54 = vpop.eup %7889 }
 0x318   :  { %557 = vperm.xlu1 %7831, %v7888_v52  }
 0x31c   :  { %563 = vperm.xlu1 %7831, %v7890_v54  }
 0x38f   :  { %v555_v57 = vpop.permute.xlu1 %554 }
 0x390   :  { %v561_v60 = vpop.permute.xlu0 %560  ;;  %v568_v0 = vrot.slane %v555_v57, %v8590_v20  ;;  %v7860_v57 = vld [vmem:[%s10162_s13 + $0x8] sm:$0xff]  }
 0x391   :  { %v577_v63 = vrot.slane %v561_v60, %v8590_v20 }
 0x393   :  { %v558_v58 = vpop.permute.xlu1 %557 }
 0x394   :  { %v572_v61 = vrot.slane %v558_v58, %v8586_v19 }
 0x396   :  { %v573_v3 = vsel %vm508_vm4, %v572_v61, %v568_v0  ;;  %v7861_v0 = vld [vmem:[%s10162_s13] sm:$0xff]  }
 0x397   :  { %v564_v62 = vpop.permute.xlu1 %563 }
 0x398   :  { %v581_v2 = vrot.slane %v564_v62, %v8586_v19 }
 0x39a   :  { %v582_v4 = vsel %vm508_vm4, %v581_v2, %v577_v63 }
 0x39b   :  { %v583_v5 = vsel %vm519_vm5, %v582_v4, %v573_v3 }
 0x39c   :  { %v585_v6 = vsel %vm522_vm6, %v583_v5, 0.0 }
 0x39d   :  { %586 = vadd.xlane.f32.xlu1 %v585_v6  ;;  %v8680_v6 = vld [vmem:[%s10187_s24] sm:$0x3] }
 0x426   :  { %v587_v7 = vpop.xlane.xlu1 %586 }
 0x427   :  { %7891 = vrcp.f32 %v587_v7 }
 0x434   :  { %v7892_v8 = vpop.eup %7891 }
 0x435   :  { %v593_v9 = vrot.slane %v7892_v8, %v8557_v46  ;;  %v597_v10 = vrot.slane %v7892_v8, %v8603_v35 }
 0x437   :  { %v600_v11 = vmul.f32 %v7884_v50, %v593_v9  ;;  %v601_v12 = vmul.f32 %v7888_v52, %v593_v9  ;;  %v602_v13 = vmul.f32 %v7886_v51, %v597_v10  ;;  %v603_v14 = vmul.f32 %v7890_v54, %v597_v10  ;;  %v7859_v50 = vld [vmem:[%s10162_s13 + $0x10] sm:$0xff]   ;;  %v6703_v52 = vld [vmem:[%s10165_s16] ss:$0 sm:$0xff] }
 0x438   :  { %7281 = vmatpush3.bf16.msra.mxu0 %v7859_v50  ;;  %v6692_v10 = vld [vmem:[%s10164_s15] ss:$0 sm:$0xff] }
 0x439   :  { %v604_v15 = vpack.c.bf16 %v601_v12, %v600_v11  ;;  %v605_v21 = vpack.c.bf16 %v603_v14, %v602_v13  ;;  %7282 = vmatprep.subr.bf16.mxu0 %v8282_v1 }
 0x43b   :  { %v611_v17 = vunpack.c.h.b16 %v604_v15  ;;  %v610_v18 = vunpack.c.l.b16 %v604_v15  ;;  %v612_v23 = vunpack.c.l.b16 %v605_v21  ;;  %v613_v25 = vunpack.c.h.b16 %v605_v21 }
 0x43c   :  { %7283 = vmatpush3.bf16.msra.mxu0 %v7860_v57 }
 0x43d   :  { %618 = vperm.xlu0 %7832, %v611_v17   ;;  %615 = vperm.xlu1 %7831, %v610_v18  }
 0x43e   :  { %7284 = vmatprep.subr.bf16.mxu0 %v8282_v1 }
 0x440   :  { %7285 = vmatpush3.bf16.msra.mxu0 %v7861_v0 }
 0x441   :  { %621 = vperm.xlu0 %7832, %v612_v23   ;;  %7314 = vmatprep.subr.bf16.mxu0 %v8282_v1 }
 0x445   :  { %624 = vperm.xlu0 %7832, %v613_v25  }
 0x4b8   :  { %v619_v28 = vpop.permute.xlu0 %618  ;;  %v616_v29 = vpop.permute.xlu1 %615 }
 0x4b9   :  { %v633_v31 = vrot.slane %v619_v28, %v8586_v19  ;;  %v629_v32 = vrot.slane %v616_v29, %v8590_v20 }
 0x4bb   :  { %v634_v38 = vsel %vm508_vm4, %v633_v31, %v629_v32  ;;  %v7863_v31 = vld [vmem:[%s10166_s17] sm:$0xff]  }
 0x4bc   :  { %v622_v30 = vpop.permute.xlu0 %621 }
 0x4bd   :  { %v638_v36 = vrot.slane %v622_v30, %v8590_v20  ;;  %v7862_v30 = vld [vmem:[%s10166_s17 + $0x8] sm:$0xff]  }
 0x4c0   :  { %v625_v33 = vpop.permute.xlu0 %624 }
 0x4c1   :  { %v642_v37 = vrot.slane %v625_v33, %v8586_v19 }
 0x4c3   :  { %v643_v40 = vsel %vm508_vm4, %v642_v37, %v638_v36 }
 0x4c4   :  { %v644_v42 = vsel %vm519_vm5, %v643_v40, %v634_v38  ;;  %v6712_v40 = vld [vmem:[%s10169_s20] ss:$0 sm:$0xff] }
 0x4c5   :  { %v645_v44 = vpack.c.b16 %v644_v42, %v644_v42 }
 0x4c7   :  { %7273 = vmatmul.mubr.msk.bf16.vlgmr.msra.gmra.mxu1 %vm651_vm8, %v645_v44  ;;  %v7864_v44 = vld [vmem:[%s10167_s18 + $0x8] sm:$0xff]  }
 0x4c8   :  { %7291 = vmatpush3.bf16.msra.mxu1 %v7855_v43  ;;  %7294 = vmatprep.mubr.msk.bf16.mxu1 %vm8283_vm0, %v8282_v1 }
 0x4c9   :  { %7292 = vmatprep.subr.bf16.mxu1 %v8282_v1 }
 0x4cc   :  { %7293 = vmatpush3.bf16.msra.mxu1 %v7856_v45 }
 0x4cd   :  { %7298 = vmatprep.subr.bf16.mxu1 %v8282_v1 }
 0x4cf   :  { %7295 = vmatmul.mubr.msk.bf16.vlgmr.msra.gmra.mxu1 %vm259_vm2, %v8537_v27 }
 0x4d0   :  { %7302 = vmatprep.mubr.msk.bf16.mxu1 %vm8283_vm0, %v8282_v1  ;;  %7299 = vmatpush3.bf16.msra.mxu1 %v7862_v30 }
 0x4d1   :  { %7300 = vmatprep.subr.bf16.mxu1 %v8282_v1 }
 0x4d4   :  { %7301 = vmatpush3.bf16.msra.mxu1 %v7863_v31 }
 0x4d5   :  { %7306 = vmatprep.subr.bf16.mxu1 %v8282_v1 }
 0x587   :  { %v693_v49 = vpop.f32.mrf.mxu1 }
 0x588   :  { %701 = vrot.lane.b32.xlu0 %v693_v49, %s8284_s27 }
 0x589   :  { %v7274_v51 = vpop.f32.mrf.mxu1 }
 0x58b   :  { %v696_v54 = vpop.f32.mrf.mxu1 }
 0x58c   :  { %872 = vrot.lane.b32.xlu0 %v6703_v52, %s8284_s27 }
 0x58d   :  { %v7275_v58 = vpop.f32.mrf.mxu1 }
 0x58f   :  { %v854_v60 = vpop.f32.mrf.mxu1 }
 0x591   :  { %v7296_v61 = vpop.f32.mrf.mxu1 }
 0x593   :  { %v857_v62 = vpop.f32.mrf.mxu1 }
 0x594   :  { %v6704_v62 = vld [vmem:[%s10168_s19] ss:$0 sm:$0xff] }
 0x595   :  { %v7297_v63 = vpop.f32.mrf.mxu1 }
 0x5fa   :  { %v702_v2 = vpop.permute.xlu0 %701 }
 0x5fb   :  { %v8672_v3 = vsel %vm699_vm9, %v693_v49, %v702_v2 }
 0x5fc   :  { %706 = vrot.lane.b32.xlu1 %v8672_v3, %s8287_s2 }
 0x5fe   :  { %v873_v4 = vpop.permute.xlu0 %872 }
 0x5ff   :  { %v875_v5 = vadd.f32 %v873_v4, %v854_v60 }
 0x601   :  { %877 = vrot.lane.b32.xlu1 %v875_v5, %s8284_s27 }
 0x66e   :  { %v707_v7 = vpop.permute.xlu1 %706 }
 0x66f   :  { %v710_v8 = vsel %vm709_vm10, %v8680_v6, %v707_v7 }
 0x670   :  { %v727_v9 = vpack.c.bf16 %v710_v8, %v710_v8 }
 0x672   :  { %7287 = vmatmul.mubr.msk.bf16.vlgmr.msra.gmra.mxu0 %vm764_vm11, %v727_v9 }
 0x673   :  { %7328 = vmatprep.mubr.msk.bf16.mxu0 %vm8283_vm0, %v8282_v1  ;;  %v878_v24 = vpop.permute.xlu1 %877 }
 0x732   :  { %v802_v11 = vpop.f32.mrf.mxu0 }
 0x733   :  { %v803_v12 = vadd.f32 %v6692_v10, %v802_v11  ;;  %v7866_v11 = vld [vmem:[%s10160_s11 + $0x30] sm:$0xff]  }
 0x734   :  { %v7288_v13 = vpop.f32.mrf.mxu0  ;;  %7315 = vmatpush3.bf16.msra.mxu0 %v7866_v11 }
 0x735   :  { %v860_v14 = vadd.f32 %v854_v60, %v803_v12  ;;  %7316 = vmatprep.subr.bf16.mxu0 %v8282_v1 }
 0x736   :  { %v805_v15 = vpop.f32.mrf.mxu0 }
 0x737   :  { %v6702_v17 = vmul.f32 -1.442695, %v860_v14  ;;  %v7868_v14 = vld [vmem:[%s10160_s11 + $0x20] sm:$0xff]   ;;  %v7869_v15 = vld [vmem:[%s10160_s11 + $0x18] sm:$0xff]  }
 0x738   :  { %v7289_v18 = vpop.f32.mrf.mxu0 }
 0x739   :  { %7893 = vpow2.f32 %v6702_v17  ;;  %v7870_v17 = vld [vmem:[%s10160_s11 + $0x10] sm:$0xff]   ;;  %v7871_v18 = vld [vmem:[%s10160_s11 + $0x8] sm:$0xff]  }
 0x746   :  { %v7894_v21 = vpop.eup %7893 }
 0x747   :  { %v864_v22 = vadd.f32 1.0, %v7894_v21 }
 0x749   :  { %7895 = vrcp.f32 %v864_v22 }
 0x756   :  { %v7896_v23 = vpop.eup %7895 }
 0x757   :  { %v880_v25 = vmul.f32 %v7896_v23, %v878_v24  ;;  %v887_v33 = vsub.f32 1.0, %v7896_v23 }
 0x759   :  { %882 = vrot.lane.b32.xlu0 %v880_v25, %s8284_s27 }
 0x75d   :  { %894 = vrot.lane.b32.xlu0 %v8533_v26, %s8288_s3 }
 0x761   :  { %1038 = vrot.lane.b32.xlu0 %v6712_v40, %s8284_s27 }
 0x7cb   :  { %v883_v28 = vpop.permute.xlu0 %882 }
 0x7cc   :  { %v885_v29 = vadd.f32 %v883_v28, %v803_v12  ;;  %v7867_v12 = vld [vmem:[%s10160_s11 + $0x28] sm:$0xff]  }
 0x7cd   :  { %7317 = vmatpush3.bf16.msra.mxu0 %v7867_v12 }
 0x7ce   :  { %7897 = vtanh.f32 %v885_v29  ;;  %7318 = vmatprep.subr.bf16.mxu0 %v8282_v1 }
 0x7cf   :  { %v8701_v26 = vpop.permute.xlu0 %894 }
 0x7d0   :  { %v897_v37 = vmul.f32 %v7896_v23, %v8701_v26 }
 0x7d1   :  { %7319 = vmatpush3.bf16.msra.mxu0 %v7868_v14 }
 0x7d2   :  { %7320 = vmatprep.subr.bf16.mxu0 %v8282_v1 }
 0x7d3   :  { %v1039_v52 = vpop.permute.xlu0 %1038 }
 0x7d5   :  { %7321 = vmatpush3.bf16.msra.mxu0 %v7869_v15 }
 0x7d6   :  { %7322 = vmatprep.subr.bf16.mxu0 %v8282_v1 }
 0x7d9   :  { %7323 = vmatpush3.bf16.msra.mxu0 %v7870_v17 }
 0x7da   :  { %7324 = vmatprep.subr.bf16.mxu0 %v8282_v1 }
 0x7db   :  { %v7898_v32 = vpop.eup %7897 }
 0x7dc   :  { %889 = vrot.lane.b32.xlu1 %v7898_v32, %s8289_s30 }
 0x7dd   :  { %7325 = vmatpush3.bf16.msra.mxu0 %v7871_v18 }
 0x7de   :  { %7326 = vmatprep.subr.bf16.mxu0 %v8282_v1 }
 0x84e   :  { %v890_v36 = vpop.permute.xlu1 %889 }
 0x84f   :  { %v892_v38 = vmul.f32 %v890_v36, %v887_v33 }
 0x851   :  { %v8707_v42 = vadd.f32 %v897_v37, %v892_v38 }
 0x853   :  { %v909_v43 = vpack.c.bf16 %v8707_v42, %v8707_v42 }
 0x855   :  { %917 = vrot.lane.b32.xlu1 %v909_v43, %s8289_s30 }
 0x8c7   :  { %v8716_v45 = vpop.permute.xlu1 %917 }
 0x8c8   :  { %7303 = vmatmul.mubr.msk.bf16.vlgmr.msra.gmra.mxu1 %vm259_vm2, %v8716_v45 }
 0x8c9   :  { %7307 = vmatpush3.bf16.msra.mxu1 %v7864_v44  ;;  %7310 = vmatprep.mubr.msk.bf16.mxu1 %vm8283_vm0, %v8282_v1 }
 0x8ca   :  { %7308 = vmatprep.subr.bf16.mxu1 %v8282_v1 }
 0x8cd   :  { %7309 = vmatpush3.bf16.msra.mxu1 %v7865_v47 }
 0x8d0   :  { %7311 = vmatmul.mubr.msk.bf16.vlgmr.msra.gmra.mxu1 %vm259_vm2, %v8537_v27 }
 0x988   :  { %v968_v48 = vpop.f32.mrf.mxu1 }
 0x989   :  { %v969_v63 = vadd.f32 %v6704_v62, %v968_v48 }
 0x98a   :  { %v7304_v49 = vpop.f32.mrf.mxu1 }
 0x98c   :  { %v971_v50 = vpop.f32.mrf.mxu1 }
 0x98e   :  { %v7305_v51 = vpop.f32.mrf.mxu1 }
 0x990   :  { %v1020_v54 = vpop.f32.mrf.mxu1 }
 0x991   :  { %v1041_v57 = vadd.f32 %v1039_v52, %v1020_v54  ;;  %v1026_v0 = vadd.f32 %v1020_v54, %v969_v63 }
 0x992   :  { %v7312_v58 = vpop.f32.mrf.mxu1 }
 0x993   :  { %1043 = vrot.lane.b32.xlu1 %v1041_v57, %s8284_s27  ;;  %v6711_v2 = vmul.f32 -1.442695, %v1026_v0 }
 0x994   :  { %v1023_v60 = vpop.f32.mrf.mxu1 }
 0x995   :  { %7899 = vpow2.f32 %v6711_v2 }
 0x996   :  { %v7313_v61 = vpop.f32.mrf.mxu1 }
 0x9a2   :  { %v7900_v27 = vpop.eup %7899 }
 0x9a3   :  { %v1030_v4 = vadd.f32 1.0, %v7900_v27 }
 0x9a5   :  { %7901 = vrcp.f32 %v1030_v4 }
 0x9b2   :  { %v7902_v5 = vpop.eup %7901 }
 0x9b3   :  { %v1053_v21 = vsub.f32 1.0, %v7902_v5  ;;  %v1059_v23 = vmul.f32 %v7902_v5, %v8701_v26  ;;  %v6723_v26 = vld [vmem:[%s10187_s24 + $0x2] sm:$0x3] }
 0x9b4   :  { %1188 = vst.msk [vmem:[#allocation3] sm:$0x3] %vm1187_vm14, %v6723_v26 }
 0xa05   :  { %v1044_v7 = vpop.permute.xlu1 %1043 }
 0xa06   :  { %v1046_v8 = vmul.f32 %v7902_v5, %v1044_v7 }
 0xa08   :  { %1048 = vrot.lane.b32.xlu0 %v1046_v8, %s8284_s27 }
 0xa7a   :  { %v1049_v9 = vpop.permute.xlu0 %1048 }
 0xa7b   :  { %v1051_v10 = vadd.f32 %v1049_v9, %v969_v63 }
 0xa7d   :  { %7903 = vtanh.f32 %v1051_v10 }
 0xa8a   :  { %v7904_v13 = vpop.eup %7903 }
 0xa8b   :  { %1055 = vrot.lane.b32.xlu1 %v7904_v13, %s8289_s30 }
 0xa8f   :  { %1069 = vrot.lane.b32.xlu1 %v8680_v6, %s8289_s30  ;;  %v7872_v6 = vld [vmem:[%s10160_s11] sm:$0xff]  }
 0xa90   :  { %7327 = vmatpush3.bf16.msra.mxu0 %v7872_v6 }
 0xafd   :  { %v1056_v22 = vpop.permute.xlu1 %1055 }
 0xafe   :  { %v1058_v24 = vmul.f32 %v1056_v22, %v1053_v21 }
 0xb00   :  { %v8764_v25 = vadd.f32 %v1059_v23, %v1058_v24 }
 0xb01   :  { %v1070_v32 = vpop.permute.xlu1 %1069 }
 0xb02   :  { %v7833_v28 = vpack.i.bf16 %v8672_v3, %v8764_v25  ;;  %v6713_v3 = vld [vmem:[%s10161_s12] ss:$0 sm:$0xff] }
 0xb04   :  { %7834 = vrot.lane.b32.xlu0 %v7833_v28, %s8289_s30 }
 0xb76   :  { %v7835_v29 = vpop.permute.xlu0 %7834 }
 0xb77   :  { %v7837_v30 = vunpack.i.h.bf16 %v7835_v29  ;;  %v7836_v31 = vunpack.i.l.bf16 %v7835_v29 }
 0xb79   :  { %v1072_v33 = vsel %vm259_vm2, %v7836_v31, %v7837_v30 }
 0xb7a   :  { %v1074_v36 = vsel %vm10175_vm12, %v1072_v33, %v1070_v32 }
 0xb7b   :  { %v1075_v37 = vpack.c.bf16 %v1074_v36, %v1074_v36 }
 0xb7d   :  { %7329 = vmatmul.mubr.msk.bf16.vlgmr.msra.gmra.mxu0 %vm10174_vm13, %v1075_v37 }
 0xc3d   :  { %v1177_v38 = vpop.f32.mrf.mxu0 }
 0xc3e   :  { %v1178_v40 = vadd.f32 %v6713_v3, %v1177_v38 }
 0xc3f   :  { %v7330_v43 = vpop.f32.mrf.mxu0  ;;  %1193 = sbr.rel (%p6725_p5) target bundleno = 3772 (0xebc), region = 93 }
 0xc40   :  { %6722 = vst [vmem:[%s10170_s21 + $0x2] sm:$0x3] %v1178_v40 }
 0xc41   :  { %v1180_v44 = vpop.f32.mrf.mxu0 }
 0xc43   :  { %v7331_v47 = vpop.f32.mrf.mxu0 }
 0xc44   :  { %vm1194_vm15 = vcmask 189440   ;;  %v8290_v57 = vmov 0.0   ;;  %v7905_v63 = vld [vmem:[%s10159_s10 + $0x8] ss:$0 sps:$4 sm:$0xff]   ;;  %vm1235_vm12 = vcmask 1043456   ;;  %v7906_v2 = vld [vmem:[%s10159_s10] sm:$0xff]  }
 0xc45   :  { %v1195_v48 = vsel %vm1194_vm15, %v1178_v40, -inf  ;;  %7332 = vmatprep.subr.bf16.mxu0 %v8290_v57  ;;  %v1237_v0 = vsel %vm1235_vm12, %v7905_v63, 0 }
 0xc46   :  { %1196 = vmax.xlane.f32.xlu0 %v1195_v48  ;;  %7333 = vmatpush3.bf16.msra.mxu0 %v1237_v0 }
 0xc47   :  { %7334 = vmatprep.subr.bf16.mxu0 %v8290_v57 }
 0xc4a   :  { %7335 = vmatpush3.bf16.msra.mxu0 %v7906_v2 }
 0xccf   :  { %v1197_v49 = vpop.xlane.xlu0 %1196 }
 0xcd0   :  { %vm1198_vm1 = vcmp.eq.f32.partialorder %v1178_v40, %v1197_v49 }
 0xcd1   :  { %v1199_v50 = vsel %vm1198_vm1, %v8582_v16, 24  ;;  %vm1231_vm1 = vcmask 195584  }
 0xcd2   :  { %v1200_v51 = vsel %vm1194_vm15, %v1199_v50, 2147483647  ;;  %vm8291_vm15 = vmmov 0  }
 0xcd3   :  { %v1202_v52 = vshra.s32 %v1200_v51, 16  ;;  %v1201_v58 = vand.u32 65535, %v1200_v51  ;;  %7336 = vmatprep.mubr.msk.bf16.mxu0 %vm8291_vm15, %v8290_v57 }
 0xcd5   :  { %v1204_v54 = vcvt.s32.f32 %v1202_v52  ;;  %v1203_v61 = vcvt.s32.f32 %v1201_v58 }
 0xcd7   :  { %1205 = vmin.xlane.f32.xlu0 %v1204_v54 }
 0xd60   :  { %v1206_v60 = vpop.xlane.xlu0 %1205 }
 0xd61   :  { %vm1207_vm13 = vcmp.eq.f32.partialorder %v1204_v54, %v1206_v60  ;;  %v1212_v27 = vcvt.f32.s32 %v1206_v60 }
 0xd62   :  { %v1208_v62 = vsel %vm1207_vm13, %v1203_v61, inf }
 0xd63   :  { %1209 = vmin.xlane.f32.xlu1 %v1208_v62  ;;  %v1213_v5 = vshll.u32 %v1212_v27, 16 }
 0xdec   :  { %v1210_v4 = vpop.xlane.xlu1 %1209 }
 0xded   :  { %v1211_v7 = vcvt.f32.s32 %v1210_v4 }
 0xdef   :  { %v1214_v8 = vadd.s32 %v1213_v5, %v1211_v7 }
 0xdf1   :  { %vm1215_vm13 = vcmp.eq.s32.totalorder %v8582_v16, %v1214_v8 }
 0xdf2   :  { %v6726_v9 = vsel %vm1215_vm13, 1.0, %v8290_v57 }
 0xdf3   :  { %v1218_v10 = vpack.c.bf16 %v6726_v9, %v6726_v9 }
 0xdf5   :  { %7337 = vmatmul.mubr.msk.bf16.vlgmr.msra.gmra.mxu0 %vm1231_vm1, %v1218_v10 }
 0xeb5   :  { %v1273_v11 = vpop.f32.mrf.mxu0 }
 0xeb6   :  { %1279 = vst.msk [vmem:[#allocation3] sm:$0x3] %vm1187_vm14, %v1273_v11 }
 0xeb7   :  { %v7338_v12 = vpop.f32.mrf.mxu0 }
 0xeb9   :  { %v1276_v13 = vpop.f32.mrf.mxu0 }
 0xebb   :  { %v7339_v14 = vpop.f32.mrf.mxu0 }
 0xebc PF:  { %v1281_v15 = vpack.c.bf16 %v8764_v25, %v8764_v25  ;;  %7340 = vmatprep.subr.bf16.mxu0 %v8282_v1  ;;  %v7914_v17 = vld [vmem:[%s10155_s6 + $0x8] sm:$0xff]   ;;  %7344 = vmatprep.mubr.msk.bf16.mxu0 %vm8283_vm0, %v8282_v1  ;;  %v7915_v18 = vld [vmem:[%s10155_s6] sm:$0xff]   ;;  %s10188_s5 = sld [smem:[#allocation10_spill]]  ;;  %vm10190_vm12 = vcmask 785408   ;;  %vm10191_vm15 = vcmask 916480  }
 0xebd   :  { %7908 = vset.pattern.permute.xlu0 %v8286_v34  ;;  %7907 = vset.pattern.permute.xlu1 %v8286_v34  ;;  %v6733_v38 = vld [vmem:[%s10158_s9] ss:$0 sm:$0xff]  ;;  %s10189_s22 = sld [smem:[#allocation8_spill]] }
 0xebe   :  { %1287 = vrot.lane.b32.xlu0 %v1281_v15, %s8289_s30  ;;  %7341 = vmatpush3.bf16.msra.mxu0 %v7914_v17  ;;  %s6768_s25 = sld [smem:[#allocation4 + $0x2]] }
 0xebf   :  { %7342 = vmatprep.subr.bf16.mxu0 %v8282_v1  ;;  %7354 = vmatprep.subr.bf16.mxu1 %v8282_v1 }
 0xec0   :  { %7364 = vmatprep.mubr.msk.bf16.mxu1 %vm8283_vm0, %v8282_v1 }
 0xec2   :  { %7343 = vmatpush3.bf16.msra.mxu0 %v7915_v18 }
 0xec3   :  { %7348 = vmatprep.subr.bf16.mxu0 %v8282_v1 }
 0xec4   :  { %p6769_p6 = scmp.ne.s32.totalorder %s6768_s25, 0 }
 0xf30   :  { %v8810_v6 = vpop.permute.xlu0 %1287 }
 0xf31   :  { %7345 = vmatmul.mubr.msk.bf16.vlgmr.msra.gmra.mxu0 %vm259_vm2, %v8810_v6 }
 0xf32   :  { %7350 = vmatprep.mubr.msk.bf16.mxu0 %vm8283_vm0, %v8282_v1 }
 0xff1   :  { %v1338_v21 = vpop.f32.mrf.mxu0 }
 0xff2   :  { %v1351_v22 = vrot.slane %v1338_v21, %v8550_v41 }
 0xff3   :  { %v7346_v23 = vpop.f32.mrf.mxu0 }
 0xff4   :  { %v1352_v24 = vcombine.high %v1351_v22, %v1351_v22  ;;  %v1359_v28 = vrot.slane %v1351_v22, %v8550_v41 }
 0xff5   :  { %v1341_v29 = vpop.f32.mrf.mxu0 }
 0xff6   :  { %v1366_v30 = vrot.slane %v1352_v24, %v8550_v41  ;;  %v1370_v31 = vrot.slane %v1359_v28, %v8557_v46 }
 0xff7   :  { %v7347_v32 = vpop.f32.mrf.mxu0 }
 0xff8   :  { %v1374_v33 = vrot.slane %v1366_v30, %v8557_v46  ;;  %v1377_v36 = vadd.f32 %v1370_v31, %v8560_v53  ;;  %v1378_v37 = vadd.f32 %v1370_v31, %v8562_v55 }
 0xffa   :  { %v1379_v26 = vadd.f32 %v1374_v33, %v8564_v56  ;;  %7935 = vtanh.f32 %v1377_v36  ;;  %v1380_v3 = vadd.f32 %v1374_v33, %v8568_v59 }
 0xffb   :  { %7937 = vtanh.f32 %v1378_v37 }
 0xffc   :  { %7939 = vtanh.f32 %v1379_v26 }
 0xffd   :  { %7941 = vtanh.f32 %v1380_v3 }
0x1007   :  { %v7936_v40 = vpop.eup %7935 }
0x1008   :  { %v7938_v43 = vpop.eup %7937  ;;  %v1392_v44 = vmul.f32 %v7936_v40, %v6733_v38 }
0x1009   :  { %v7940_v47 = vpop.eup %7939  ;;  %v1393_v48 = vmul.f32 %v7938_v43, %v6733_v38 }
0x100a   :  { %v1396_v49 = vsel %vm259_vm2, %v1392_v44, 0.0  ;;  %v1394_v51 = vmul.f32 %v7940_v47, %v6733_v38  ;;  %v7942_v52 = vpop.eup %7941 }
0x100b   :  { %v1399_v50 = vsel %vm261_vm3, %v1393_v48, 0.0  ;;  %1397 = vadd.xlane.f32.xlu0 %v1396_v49  ;;  %v1395_v57 = vmul.f32 %v7942_v52, %v6733_v38 }
0x100c   :  { %1400 = vadd.xlane.f32.xlu1 %v1399_v50  ;;  %v1402_v54 = vsel %vm259_vm2, %v1394_v51, 0.0 }
0x100d   :  { %v1405_v58 = vsel %vm261_vm3, %v1395_v57, 0.0 }
0x1010   :  { %1403 = vadd.xlane.f32.xlu1 %v1402_v54 }
0x1014   :  { %1406 = vadd.xlane.f32.xlu1 %v1405_v58 }
0x1094   :  { %v1398_v61 = vpop.xlane.xlu0 %1397 }
0x1095   :  { %v1401_v60 = vpop.xlane.xlu1 %1400  ;;  %v1415_v0 = vrot.slane %v1398_v61, %v8590_v20 }
0x1096   :  { %v1419_v63 = vrot.slane %v1401_v60, %v8586_v19 }
0x1098   :  { %v1420_v5 = vsel %vm508_vm4, %v1419_v63, %v1415_v0  ;;  %v7916_v0 = vld [vmem:[%s10188_s5] sm:$0x1f]  }
0x1099   :  { %v1404_v62 = vpop.xlane.xlu1 %1403 }
0x109a   :  { %v1424_v27 = vrot.slane %v1404_v62, %v8590_v20 }
0x109d   :  { %v1407_v2 = vpop.xlane.xlu1 %1406 }
0x109e   :  { %v1428_v4 = vrot.slane %v1407_v2, %v8586_v19 }
0x10a0   :  { %v1429_v7 = vsel %vm508_vm4, %v1428_v4, %v1424_v27  ;;  %v1564_v27 = vsel %vm655_vm7, %v7916_v0, 0 }
0x10a1   :  { %v1430_v8 = vsel %vm519_vm5, %v1429_v7, %v1420_v5  ;;  %7349 = vmatpush3.bf16.msra.mxu0 %v1564_v27 }
0x10a2   :  { %v1432_v9 = vsel %vm522_vm6, %v1430_v8, -inf  ;;  %7368 = vmatprep.subr.bf16.mxu0 %v8282_v1 }
0x10a3   :  { %1433 = vmax.xlane.f32.xlu1 %v1432_v9 }
0x112c   :  { %v1434_v10 = vpop.xlane.xlu1 %1433 }
0x112d   :  { %v1439_v11 = vrot.slane %v1434_v10, %v8557_v46  ;;  %v1443_v12 = vrot.slane %v1434_v10, %v8603_v35 }
0x112f   :  { %v1446_v13 = vsub.f32 %v1398_v61, %v1439_v11  ;;  %v1447_v14 = vsub.f32 %v1401_v60, %v1439_v11  ;;  %v1448_v15 = vsub.f32 %v1404_v62, %v1443_v12  ;;  %v1449_v21 = vsub.f32 %v1407_v2, %v1443_v12 }
0x1131   :  { %v1450_v17 = vmul.f32 1.442695, %v1446_v13  ;;  %v1454_v18 = vmul.f32 1.442695, %v1448_v15  ;;  %v1452_v22 = vmul.f32 1.442695, %v1447_v14 }
0x1132   :  { %v1456_v23 = vmul.f32 1.442695, %v1449_v21  ;;  %v7917_v21 = vld [vmem:[%s10163_s14 + $0x8] sm:$0xff]  }
0x1133   :  { %7943 = vpow2.f32 %v1450_v17 }
0x1134   :  { %7945 = vpow2.f32 %v1454_v18 }
0x1135   :  { %7947 = vpow2.f32 %v1452_v22  ;;  %v7919_v22 = vld [vmem:[%s10162_s13 + $0x20] sm:$0xff]  }
0x1136   :  { %7949 = vpow2.f32 %v1456_v23  ;;  %v7918_v23 = vld [vmem:[%s10163_s14] sm:$0xff]   ;;  %7355 = vmatpush3.bf16.msra.mxu1 %v7919_v22 }
0x1137   :  { %7356 = vmatprep.subr.bf16.mxu1 %v8282_v1 }
0x1140   :  { %v7944_v24 = vpop.eup %7943 }
0x1141   :  { %1463 = vperm.xlu1 %7907, %v7944_v24   ;;  %v7946_v28 = vpop.eup %7945 }
0x1142   :  { %1469 = vperm.xlu0 %7908, %v7946_v28   ;;  %v7948_v29 = vpop.eup %7947 }
0x1143   :  { %v7950_v30 = vpop.eup %7949 }
0x1145   :  { %1466 = vperm.xlu1 %7907, %v7948_v29  }
0x1149   :  { %1472 = vperm.xlu1 %7907, %v7950_v30  }
0x11bc   :  { %v1464_v31 = vpop.permute.xlu1 %1463 }
0x11bd   :  { %v1470_v33 = vpop.permute.xlu0 %1469  ;;  %v1477_v3 = vrot.slane %v1464_v31, %v8590_v20 }
0x11be   :  { %v1486_v26 = vrot.slane %v1470_v33, %v8590_v20 }
0x11c0   :  { %v1467_v32 = vpop.permute.xlu1 %1466 }
0x11c1   :  { %v1481_v36 = vrot.slane %v1467_v32, %v8586_v19 }
0x11c3   :  { %v1482_v40 = vsel %vm508_vm4, %v1481_v36, %v1477_v3  ;;  %v8899_v36 = vld [vmem:[#allocation3] sm:$0x3] }
0x11c4   :  { %v1473_v37 = vpop.permute.xlu1 %1472 }
0x11c5   :  { %v1490_v38 = vrot.slane %v1473_v37, %v8586_v19  ;;  %v7923_v37 = vld [vmem:[%s10162_s13] sm:$0xff]  }
0x11c7   :  { %v1491_v43 = vsel %vm508_vm4, %v1490_v38, %v1486_v26  ;;  %v6747_v26 = vld [vmem:[%s10165_s16] ss:$0 sm:$0xff] }
0x11c8   :  { %v1492_v44 = vsel %vm519_vm5, %v1491_v43, %v1482_v40 }
0x11c9   :  { %v1494_v47 = vsel %vm522_vm6, %v1492_v44, 0.0 }
0x11ca   :  { %1495 = vadd.xlane.f32.xlu1 %v1494_v47 }
0x1253   :  { %v1496_v48 = vpop.xlane.xlu1 %1495 }
0x1254   :  { %7951 = vrcp.f32 %v1496_v48 }
0x1261   :  { %v7952_v49 = vpop.eup %7951 }
0x1262   :  { %v1502_v50 = vrot.slane %v7952_v49, %v8557_v46  ;;  %v1506_v51 = vrot.slane %v7952_v49, %v8603_v35 }
0x1264   :  { %v1509_v52 = vmul.f32 %v7944_v24, %v1502_v50  ;;  %v1510_v54 = vmul.f32 %v7948_v29, %v1502_v50  ;;  %v1511_v57 = vmul.f32 %v7946_v28, %v1506_v51  ;;  %v1512_v58 = vmul.f32 %v7950_v30, %v1506_v51  ;;  %v7920_v24 = vld [vmem:[%s10162_s13 + $0x18] sm:$0xff]   ;;  %v7921_v28 = vld [vmem:[%s10162_s13 + $0x10] sm:$0xff]   ;;  %v7922_v29 = vld [vmem:[%s10162_s13 + $0x8] sm:$0xff]  }
0x1265   :  { %7357 = vmatpush3.bf16.msra.mxu1 %v7920_v24 }
0x1266   :  { %v1513_v60 = vpack.c.bf16 %v1510_v54, %v1509_v52  ;;  %v1514_v63 = vpack.c.bf16 %v1512_v58, %v1511_v57  ;;  %7358 = vmatprep.subr.bf16.mxu1 %v8282_v1  ;;  %v6736_v54 = vld [vmem:[%s10164_s15] ss:$0 sm:$0xff] }
0x1268   :  { %v1520_v61 = vunpack.c.h.b16 %v1513_v60  ;;  %v1519_v62 = vunpack.c.l.b16 %v1513_v60  ;;  %v1521_v2 = vunpack.c.l.b16 %v1514_v63  ;;  %v1522_v4 = vunpack.c.h.b16 %v1514_v63 }
0x1269   :  { %7359 = vmatpush3.bf16.msra.mxu1 %v7921_v28 }
0x126a   :  { %1527 = vperm.xlu0 %7908, %v1520_v61   ;;  %1524 = vperm.xlu1 %7907, %v1519_v62  }
0x126b   :  { %7360 = vmatprep.subr.bf16.mxu1 %v8282_v1 }
0x126d   :  { %7361 = vmatpush3.bf16.msra.mxu1 %v7922_v29 }
0x126e   :  { %1530 = vperm.xlu0 %7908, %v1521_v2   ;;  %7362 = vmatprep.subr.bf16.mxu1 %v8282_v1 }
0x1271   :  { %7363 = vmatpush3.bf16.msra.mxu1 %v7923_v37 }
0x1272   :  { %1533 = vperm.xlu0 %7908, %v1522_v4   ;;  %7392 = vmatprep.subr.bf16.mxu1 %v8282_v1 }
0x12e5   :  { %v1528_v5 = vpop.permute.xlu0 %1527  ;;  %v1525_v7 = vpop.permute.xlu1 %1524 }
0x12e6   :  { %v1542_v9 = vrot.slane %v1528_v5, %v8586_v19  ;;  %v1538_v10 = vrot.slane %v1525_v7, %v8590_v20 }
0x12e8   :  { %v1543_v14 = vsel %vm508_vm4, %v1542_v9, %v1538_v10  ;;  %v7924_v10 = vld [vmem:[%s10166_s17 + $0x8] sm:$0xff]  }
0x12e9   :  { %v1531_v8 = vpop.permute.xlu0 %1530 }
0x12ea   :  { %v1547_v12 = vrot.slane %v1531_v8, %v8590_v20 }
0x12ed   :  { %v1534_v11 = vpop.permute.xlu0 %1533 }
0x12ee   :  { %v1551_v13 = vrot.slane %v1534_v11, %v8586_v19  ;;  %v7925_v11 = vld [vmem:[%s10166_s17] sm:$0xff]  }
0x12f0   :  { %v1552_v15 = vsel %vm508_vm4, %v1551_v13, %v1547_v12 }
0x12f1   :  { %v1553_v17 = vsel %vm519_vm5, %v1552_v15, %v1543_v14 }
0x12f2   :  { %v1554_v18 = vpack.c.b16 %v1553_v17, %v1553_v17 }
0x12f4   :  { %7351 = vmatmul.mubr.msk.bf16.vlgmr.msra.gmra.mxu0 %vm651_vm8, %v1554_v18  ;;  %v6756_v18 = vld [vmem:[%s10169_s20] ss:$0 sm:$0xff] }
0x12f5   :  { %7372 = vmatprep.mubr.msk.bf16.mxu0 %vm8283_vm0, %v8282_v1  ;;  %7369 = vmatpush3.bf16.msra.mxu0 %v7917_v21 }
0x12f6   :  { %7370 = vmatprep.subr.bf16.mxu0 %v8282_v1 }
0x12f9   :  { %7371 = vmatpush3.bf16.msra.mxu0 %v7918_v23  ;;  %v7926_v23 = vld [vmem:[%s10167_s18 + $0x8] sm:$0xff]  }
0x12fa   :  { %7376 = vmatprep.subr.bf16.mxu0 %v8282_v1 }
0x12fc   :  { %7373 = vmatmul.mubr.msk.bf16.vlgmr.msra.gmra.mxu0 %vm259_vm2, %v8716_v45  ;;  %v6767_v45 = vld [vmem:[%s10189_s22 + $0x4] sm:$0x3] }
0x12fd   :  { %7380 = vmatprep.mubr.msk.bf16.mxu0 %vm8283_vm0, %v8282_v1  ;;  %2085 = vst.msk [vmem:[#allocation3] sm:$0x3] %vm1187_vm14, %v6767_v45  ;;  %7377 = vmatpush3.bf16.msra.mxu0 %v7924_v10 }
0x12fe   :  { %7378 = vmatprep.subr.bf16.mxu0 %v8282_v1 }
0x1301   :  { %7379 = vmatpush3.bf16.msra.mxu0 %v7925_v11 }
0x1302   :  { %7384 = vmatprep.subr.bf16.mxu0 %v8282_v1 }
0x13b4   :  { %v1600_v30 = vpop.f32.mrf.mxu0 }
0x13b5   :  { %1607 = vrot.lane.b32.xlu0 %v1600_v30, %s8284_s27 }
0x13b6   :  { %v7352_v31 = vpop.f32.mrf.mxu0 }
0x13b8   :  { %v1603_v32 = vpop.f32.mrf.mxu0 }
0x13b9   :  { %1776 = vrot.lane.b32.xlu0 %v6747_v26, %s8284_s27 }
0x13ba   :  { %v7353_v33 = vpop.f32.mrf.mxu0 }
0x13bc   :  { %v1758_v40 = vpop.f32.mrf.mxu0 }
0x13be   :  { %v7374_v43 = vpop.f32.mrf.mxu0 }
0x13c0   :  { %v1761_v44 = vpop.f32.mrf.mxu0 }
0x13c2   :  { %v7375_v47 = vpop.f32.mrf.mxu0 }
0x1427   :  { %v1608_v3 = vpop.permute.xlu0 %1607 }
0x1428   :  { %v8912_v38 = vsel %vm699_vm9, %v1600_v30, %v1608_v3 }
0x1429   :  { %1612 = vrot.lane.b32.xlu1 %v8912_v38, %s8287_s2 }
0x142b   :  { %v1777_v48 = vpop.permute.xlu0 %1776 }
0x142c   :  { %v1779_v49 = vadd.f32 %v1777_v48, %v1758_v40 }
0x142e   :  { %1781 = vrot.lane.b32.xlu1 %v1779_v49, %s8284_s27 }
0x149b   :  { %v1613_v50 = vpop.permute.xlu1 %1612 }
0x149c   :  { %v1615_v51 = vsel %vm709_vm10, %v8899_v36, %v1613_v50 }
0x149d   :  { %v1632_v52 = vpack.c.bf16 %v1615_v51, %v1615_v51 }
0x149f   :  { %7365 = vmatmul.mubr.msk.bf16.vlgmr.msra.gmra.mxu1 %vm764_vm11, %v1632_v52 }
0x14a0   :  { %7406 = vmatprep.mubr.msk.bf16.mxu1 %vm8283_vm0, %v8282_v1  ;;  %v1782_v4 = vpop.permute.xlu1 %1781 }
0x155f   :  { %v1706_v57 = vpop.f32.mrf.mxu1 }
0x1560   :  { %v1707_v58 = vadd.f32 %v6736_v54, %v1706_v57  ;;  %v7928_v57 = vld [vmem:[%s10160_s11 + $0x30] sm:$0xff]  }
0x1561   :  { %v7366_v60 = vpop.f32.mrf.mxu1  ;;  %7393 = vmatpush3.bf16.msra.mxu1 %v7928_v57 }
0x1562   :  { %v1764_v61 = vadd.f32 %v1758_v40, %v1707_v58  ;;  %v6748_v40 = vld [vmem:[%s10168_s19] ss:$0 sm:$0xff]  ;;  %7394 = vmatprep.subr.bf16.mxu1 %v8282_v1 }
0x1563   :  { %v1709_v62 = vpop.f32.mrf.mxu1 }
0x1564   :  { %v6746_v63 = vmul.f32 -1.442695, %v1764_v61  ;;  %v7930_v61 = vld [vmem:[%s10160_s11 + $0x20] sm:$0xff]   ;;  %v7931_v62 = vld [vmem:[%s10160_s11 + $0x18] sm:$0xff]  }
0x1565   :  { %v7367_v0 = vpop.f32.mrf.mxu1 }
0x1566   :  { %7953 = vpow2.f32 %v6746_v63  ;;  %v7932_v63 = vld [vmem:[%s10160_s11 + $0x10] sm:$0xff]   ;;  %v7933_v0 = vld [vmem:[%s10160_s11 + $0x8] sm:$0xff]  }
0x1573   :  { %v7954_v2 = vpop.eup %7953 }
0x1574   :  { %v1768_v27 = vadd.f32 1.0, %v7954_v2 }
0x1576   :  { %7955 = vrcp.f32 %v1768_v27 }
0x1583   :  { %v7956_v5 = vpop.eup %7955 }
0x1584   :  { %v1784_v7 = vmul.f32 %v7956_v5, %v1782_v4  ;;  %v1791_v13 = vsub.f32 1.0, %v7956_v5  ;;  %v1797_v17 = vmul.f32 %v7956_v5, %v8707_v42  ;;  %v7927_v42 = vld [vmem:[%s10167_s18] sm:$0xff]  }
0x1586   :  { %1786 = vrot.lane.b32.xlu0 %v1784_v7, %s8284_s27 }
0x15f8   :  { %v1787_v8 = vpop.permute.xlu0 %1786 }
0x15f9   :  { %v1789_v9 = vadd.f32 %v1787_v8, %v1707_v58  ;;  %v7929_v58 = vld [vmem:[%s10160_s11 + $0x28] sm:$0xff]  }
0x15fa   :  { %7395 = vmatpush3.bf16.msra.mxu1 %v7929_v58 }
0x15fb   :  { %7957 = vtanh.f32 %v1789_v9  ;;  %7396 = vmatprep.subr.bf16.mxu1 %v8282_v1 }
0x15fe   :  { %7397 = vmatpush3.bf16.msra.mxu1 %v7930_v61 }
0x15ff   :  { %7398 = vmatprep.subr.bf16.mxu1 %v8282_v1 }
0x1602   :  { %7399 = vmatpush3.bf16.msra.mxu1 %v7931_v62 }
0x1603   :  { %7400 = vmatprep.subr.bf16.mxu1 %v8282_v1 }
0x1606   :  { %7401 = vmatpush3.bf16.msra.mxu1 %v7932_v63 }
0x1607   :  { %7402 = vmatprep.subr.bf16.mxu1 %v8282_v1 }
0x1608   :  { %v7958_v12 = vpop.eup %7957 }
0x1609   :  { %1793 = vrot.lane.b32.xlu1 %v7958_v12, %s8289_s30 }
0x160a   :  { %7403 = vmatpush3.bf16.msra.mxu1 %v7933_v0 }
0x160b   :  { %7404 = vmatprep.subr.bf16.mxu1 %v8282_v1 }
0x160d   :  { %1938 = vrot.lane.b32.xlu1 %v6756_v18, %s8284_s27 }
0x167b   :  { %v1794_v14 = vpop.permute.xlu1 %1793 }
0x167c   :  { %v1796_v15 = vmul.f32 %v1794_v14, %v1791_v13 }
0x167e   :  { %v8939_v21 = vadd.f32 %v1797_v17, %v1796_v15 }
0x167f   :  { %v1939_v32 = vpop.permute.xlu1 %1938 }
0x1680   :  { %v1809_v22 = vpack.c.bf16 %v8939_v21, %v8939_v21 }
0x1682   :  { %1817 = vrot.lane.b32.xlu0 %v1809_v22, %s8289_s30 }
0x16f4   :  { %v8948_v24 = vpop.permute.xlu0 %1817 }
0x16f5   :  { %7381 = vmatmul.mubr.msk.bf16.vlgmr.msra.gmra.mxu0 %vm259_vm2, %v8948_v24 }
0x16f6   :  { %7385 = vmatpush3.bf16.msra.mxu0 %v7926_v23  ;;  %7388 = vmatprep.mubr.msk.bf16.mxu0 %vm8283_vm0, %v8282_v1 }
0x16f7   :  { %7386 = vmatprep.subr.bf16.mxu0 %v8282_v1 }
0x16fa   :  { %7387 = vmatpush3.bf16.msra.mxu0 %v7927_v42 }
0x16fd   :  { %7389 = vmatmul.mubr.msk.bf16.vlgmr.msra.gmra.mxu0 %vm259_vm2, %v8810_v6 }
0x17b5   :  { %v1868_v28 = vpop.f32.mrf.mxu0 }
0x17b6   :  { %v1869_v43 = vadd.f32 %v6748_v40, %v1868_v28 }
0x17b7   :  { %v7382_v29 = vpop.f32.mrf.mxu0 }
0x17b9   :  { %v1871_v30 = vpop.f32.mrf.mxu0 }
0x17bb   :  { %v7383_v31 = vpop.f32.mrf.mxu0 }
0x17bd   :  { %v1920_v33 = vpop.f32.mrf.mxu0 }
0x17be   :  { %v1941_v45 = vadd.f32 %v1939_v32, %v1920_v33  ;;  %v1926_v44 = vadd.f32 %v1920_v33, %v1869_v43 }
0x17bf   :  { %v7390_v37 = vpop.f32.mrf.mxu0 }
0x17c0   :  { %1943 = vrot.lane.b32.xlu0 %v1941_v45, %s8284_s27  ;;  %v6755_v47 = vmul.f32 -1.442695, %v1926_v44 }
0x17c1   :  { %v1923_v26 = vpop.f32.mrf.mxu0 }
0x17c2   :  { %7959 = vpow2.f32 %v6755_v47 }
0x17c3   :  { %v7391_v3 = vpop.f32.mrf.mxu0 }
0x17cf   :  { %v7960_v6 = vpop.eup %7959 }
0x17d0   :  { %v1930_v48 = vadd.f32 1.0, %v7960_v6 }
0x17d2   :  { %7961 = vrcp.f32 %v1930_v48 }
0x17df   :  { %v7962_v49 = vpop.eup %7961 }
0x17e0   :  { %v1953_v2 = vsub.f32 1.0, %v7962_v49  ;;  %v1959_v4 = vmul.f32 %v7962_v49, %v8764_v25  ;;  %v6757_v25 = vld [vmem:[%s10161_s12] ss:$0 sm:$0xff] }
0x1832   :  { %v1944_v50 = vpop.permute.xlu0 %1943 }
0x1833   :  { %v1946_v51 = vmul.f32 %v7962_v49, %v1944_v50 }
0x1835   :  { %1948 = vrot.lane.b32.xlu1 %v1946_v51, %s8284_s27 }
0x18a7   :  { %v1949_v52 = vpop.permute.xlu1 %1948 }
0x18a8   :  { %v1951_v54 = vadd.f32 %v1949_v52, %v1869_v43 }
0x18aa   :  { %7963 = vtanh.f32 %v1951_v54 }
0x18b7   :  { %v7964_v60 = vpop.eup %7963 }
0x18b8   :  { %1955 = vrot.lane.b32.xlu0 %v7964_v60, %s8289_s30 }
0x18bc   :  { %1969 = vrot.lane.b32.xlu0 %v8899_v36, %s8289_s30  ;;  %v7934_v36 = vld [vmem:[%s10160_s11] sm:$0xff]  }
0x18bd   :  { %7405 = vmatpush3.bf16.msra.mxu1 %v7934_v36 }
0x192a   :  { %v1956_v27 = vpop.permute.xlu0 %1955 }
0x192b   :  { %v1958_v5 = vmul.f32 %v1956_v27, %v1953_v2 }
0x192d   :  { %v8996_v7 = vadd.f32 %v1959_v4, %v1958_v5 }
0x192e   :  { %v1970_v12 = vpop.permute.xlu0 %1969 }
0x192f   :  { %v7909_v8 = vpack.i.bf16 %v8912_v38, %v8996_v7 }
0x1931   :  { %7910 = vrot.lane.b32.xlu1 %v7909_v8, %s8289_s30 }
0x19a3   :  { %v7911_v9 = vpop.permute.xlu1 %7910 }
0x19a4   :  { %v7913_v10 = vunpack.i.h.bf16 %v7911_v9  ;;  %v7912_v11 = vunpack.i.l.bf16 %v7911_v9 }
0x19a6   :  { %v1972_v13 = vsel %vm259_vm2, %v7912_v11, %v7913_v10 }
0x19a7   :  { %v1973_v14 = vsel %vm10190_vm12, %v1972_v13, %v1970_v12 }
0x19a8   :  { %v1974_v15 = vpack.c.bf16 %v1973_v14, %v1973_v14 }
0x19aa   :  { %7407 = vmatmul.mubr.msk.bf16.vlgmr.msra.gmra.mxu1 %vm10191_vm15, %v1974_v15 }
0x1a6a   :  { %v2075_v17 = vpop.f32.mrf.mxu1 }
0x1a6b   :  { %v2076_v38 = vadd.f32 %v6757_v25, %v2075_v17 }
0x1a6c   :  { %v7408_v18 = vpop.f32.mrf.mxu1  ;;  %2090 = sbr.rel (%p6769_p6) target bundleno = 7401 (0x1ce9), region = 97 }
0x1a6d   :  { %6766 = vst [vmem:[%s10170_s21 + $0x4] sm:$0x3] %v2076_v38 }
0x1a6e   :  { %v2078_v22 = vpop.f32.mrf.mxu1 }
0x1a70   :  { %v7409_v23 = vpop.f32.mrf.mxu1 }
0x1a71   :  { %vm2091_vm13 = vcmask 189440   ;;  %v8292_v33 = vmov 0.0   ;;  %v7965_v40 = vld [vmem:[%s10159_s10 + $0x8] ss:$0 sps:$4 sm:$0xff]   ;;  %vm2132_vm15 = vcmask 1043456   ;;  %v7966_v44 = vld [vmem:[%s10159_s10] sm:$0xff]  }
0x1a72   :  { %v2092_v42 = vsel %vm2091_vm13, %v2076_v38, -inf  ;;  %7410 = vmatprep.subr.bf16.mxu0 %v8292_v33  ;;  %v2134_v43 = vsel %vm2132_vm15, %v7965_v40, 0 }
0x1a73   :  { %2093 = vmax.xlane.f32.xlu0 %v2092_v42  ;;  %7411 = vmatpush3.bf16.msra.mxu0 %v2134_v43 }
0x1a74   :  { %7412 = vmatprep.subr.bf16.mxu0 %v8292_v33 }
0x1a77   :  { %7413 = vmatpush3.bf16.msra.mxu0 %v7966_v44 }
0x1afc   :  { %v2094_v28 = vpop.xlane.xlu0 %2093 }
0x1afd   :  { %vm2095_vm1 = vcmp.eq.f32.partialorder %v2076_v38, %v2094_v28 }
0x1afe   :  { %v2096_v29 = vsel %vm2095_vm1, %v8582_v16, 24 }
0x1aff   :  { %v2097_v30 = vsel %vm2091_vm13, %v2096_v29, 2147483647  ;;  %vm8293_vm13 = vmmov 0  }
0x1b00   :  { %v2099_v31 = vshra.s32 %v2097_v30, 16  ;;  %v2098_v45 = vand.u32 65535, %v2097_v30  ;;  %7414 = vmatprep.mubr.msk.bf16.mxu0 %vm8293_vm13, %v8292_v33 }
0x1b02   :  { %v2101_v32 = vcvt.s32.f32 %v2099_v31  ;;  %v2100_v26 = vcvt.s32.f32 %v2098_v45 }
0x1b04   :  { %2102 = vmin.xlane.f32.xlu0 %v2101_v32 }
0x1b8d   :  { %v2103_v37 = vpop.xlane.xlu0 %2102 }
0x1b8e   :  { %vm2104_vm12 = vcmp.eq.f32.partialorder %v2101_v32, %v2103_v37  ;;  %v2109_v47 = vcvt.f32.s32 %v2103_v37 }
0x1b8f   :  { %v2105_v3 = vsel %vm2104_vm12, %v2100_v26, inf  ;;  %vm2128_vm12 = vcmask 195584  }
0x1b90   :  { %2106 = vmin.xlane.f32.xlu1 %v2105_v3  ;;  %v2110_v48 = vshll.u32 %v2109_v47, 16 }
0x1c19   :  { %v2107_v6 = vpop.xlane.xlu1 %2106 }
0x1c1a   :  { %v2108_v49 = vcvt.f32.s32 %v2107_v6 }
0x1c1c   :  { %v2111_v50 = vadd.s32 %v2110_v48, %v2108_v49 }
0x1c1e   :  { %vm2112_vm1 = vcmp.eq.s32.totalorder %v8582_v16, %v2111_v50 }
0x1c1f   :  { %v6770_v51 = vsel %vm2112_vm1, 1.0, %v8292_v33 }
0x1c20   :  { %v2115_v52 = vpack.c.bf16 %v6770_v51, %v6770_v51 }
0x1c22   :  { %7415 = vmatmul.mubr.msk.bf16.vlgmr.msra.gmra.mxu0 %vm2128_vm12, %v2115_v52 }
0x1ce2   :  { %v2170_v54 = vpop.f32.mrf.mxu0 }
0x1ce3   :  { %2176 = vst.msk [vmem:[#allocation3] sm:$0x3] %vm1187_vm14, %v2170_v54 }
0x1ce4   :  { %v7416_v57 = vpop.f32.mrf.mxu0 }
0x1ce6   :  { %v2173_v58 = vpop.f32.mrf.mxu0 }
0x1ce8   :  { %v7417_v60 = vpop.f32.mrf.mxu0 }
0x1ce9 PF:  { %v2178_v61 = vpack.c.bf16 %v8996_v7, %v8996_v7  ;;  %7418 = vmatprep.subr.bf16.mxu0 %v8282_v1  ;;  %v7974_v62 = vld [vmem:[%s10155_s6 + $0x8] sm:$0xff]   ;;  %7422 = vmatprep.mubr.msk.bf16.mxu0 %vm8283_vm0, %v8282_v1  ;;  %v7975_v63 = vld [vmem:[%s10155_s6] sm:$0xff]   ;;  %s10192_s7 = sld [smem:[#allocation10_spill]]  ;;  %vm10194_vm15 = vcmask 785408   ;;  %vm10195_vm13 = vcmask 916480  }
0x1cea   :  { %7968 = vset.pattern.permute.xlu0 %v8286_v34  ;;  %7967 = vset.pattern.permute.xlu1 %v8286_v34  ;;  %v6777_v17 = vld [vmem:[%s10158_s9] ss:$0 sm:$0xff]  ;;  %s10193_s28 = sld [smem:[#allocation8_spill]] }
0x1ceb   :  { %2184 = vrot.lane.b32.xlu0 %v2178_v61, %s8289_s30  ;;  %7419 = vmatpush3.bf16.msra.mxu0 %v7974_v62  ;;  %s6812_s22 = sld [smem:[#allocation4 + $0x3]] }
0x1cec   :  { %7420 = vmatprep.subr.bf16.mxu0 %v8282_v1  ;;  %7432 = vmatprep.subr.bf16.mxu1 %v8282_v1 }
0x1ced   :  { %7442 = vmatprep.mubr.msk.bf16.mxu1 %vm8283_vm0, %v8282_v1 }
0x1cef   :  { %7421 = vmatpush3.bf16.msra.mxu0 %v7975_v63 }
0x1cf0   :  { %7426 = vmatprep.subr.bf16.mxu0 %v8282_v1 }
0x1cf1   :  { %p6813_p7 = scmp.ne.s32.totalorder %s6812_s22, 0 }
0x1d5d   :  { %v9038_v0 = vpop.permute.xlu0 %2184 }
0x1d5e   :  { %7423 = vmatmul.mubr.msk.bf16.vlgmr.msra.gmra.mxu0 %vm259_vm2, %v9038_v0 }
0x1d5f   :  { %7428 = vmatprep.mubr.msk.bf16.mxu0 %vm8283_vm0, %v8282_v1 }
0x1e1e   :  { %v2235_v36 = vpop.f32.mrf.mxu0 }
0x1e1f   :  { %v2248_v2 = vrot.slane %v2235_v36, %v8550_v41 }
0x1e20   :  { %v7424_v27 = vpop.f32.mrf.mxu0 }
0x1e21   :  { %v2249_v4 = vcombine.high %v2248_v2, %v2248_v2  ;;  %v2256_v5 = vrot.slane %v2248_v2, %v8550_v41 }
0x1e22   :  { %v2238_v8 = vpop.f32.mrf.mxu0 }
0x1e23   :  { %v2263_v9 = vrot.slane %v2249_v4, %v8550_v41  ;;  %v2267_v10 = vrot.slane %v2256_v5, %v8557_v46 }
0x1e24   :  { %v7425_v11 = vpop.f32.mrf.mxu0 }
0x1e25   :  { %v2271_v12 = vrot.slane %v2263_v9, %v8557_v46  ;;  %v2274_v13 = vadd.f32 %v2267_v10, %v8560_v53  ;;  %v2275_v14 = vadd.f32 %v2267_v10, %v8562_v55 }
0x1e27   :  { %v2276_v15 = vadd.f32 %v2271_v12, %v8564_v56  ;;  %7995 = vtanh.f32 %v2274_v13  ;;  %v2277_v25 = vadd.f32 %v2271_v12, %v8568_v59 }
0x1e28   :  { %7997 = vtanh.f32 %v2275_v14 }
0x1e29   :  { %7999 = vtanh.f32 %v2276_v15 }
0x1e2a   :  { %8001 = vtanh.f32 %v2277_v25 }
0x1e34   :  { %v7996_v38 = vpop.eup %7995 }
0x1e35   :  { %v7998_v18 = vpop.eup %7997  ;;  %v2289_v22 = vmul.f32 %v7996_v38, %v6777_v17 }
0x1e36   :  { %v8000_v23 = vpop.eup %7999  ;;  %v2290_v42 = vmul.f32 %v7998_v18, %v6777_v17 }
0x1e37   :  { %v2293_v28 = vsel %vm259_vm2, %v2289_v22, 0.0  ;;  %v2291_v30 = vmul.f32 %v8000_v23, %v6777_v17  ;;  %v8002_v31 = vpop.eup %8001 }
0x1e38   :  { %v2296_v29 = vsel %vm261_vm3, %v2290_v42, 0.0  ;;  %2294 = vadd.xlane.f32.xlu0 %v2293_v28  ;;  %v2292_v33 = vmul.f32 %v8002_v31, %v6777_v17 }
0x1e39   :  { %2297 = vadd.xlane.f32.xlu1 %v2296_v29  ;;  %v2299_v32 = vsel %vm259_vm2, %v2291_v30, 0.0 }
0x1e3a   :  { %v2302_v45 = vsel %vm261_vm3, %v2292_v33, 0.0 }
0x1e3d   :  { %2300 = vadd.xlane.f32.xlu1 %v2299_v32 }
0x1e41   :  { %2303 = vadd.xlane.f32.xlu1 %v2302_v45 }
0x1ec1   :  { %v2295_v26 = vpop.xlane.xlu0 %2294 }
0x1ec2   :  { %v2298_v37 = vpop.xlane.xlu1 %2297  ;;  %v2312_v43 = vrot.slane %v2295_v26, %v8590_v20 }
0x1ec3   :  { %v2316_v40 = vrot.slane %v2298_v37, %v8586_v19 }
0x1ec5   :  { %v2317_v48 = vsel %vm508_vm4, %v2316_v40, %v2312_v43  ;;  %v7976_v43 = vld [vmem:[%s10192_s7] sm:$0x1f]  }
0x1ec6   :  { %v2301_v3 = vpop.xlane.xlu1 %2300 }
0x1ec7   :  { %v2321_v47 = vrot.slane %v2301_v3, %v8590_v20 }
0x1eca   :  { %v2304_v44 = vpop.xlane.xlu1 %2303 }
0x1ecb   :  { %v2325_v6 = vrot.slane %v2304_v44, %v8586_v19 }
0x1ecd   :  { %v2326_v49 = vsel %vm508_vm4, %v2325_v6, %v2321_v47  ;;  %v2461_v47 = vsel %vm655_vm7, %v7976_v43, 0 }
0x1ece   :  { %v2327_v50 = vsel %vm519_vm5, %v2326_v49, %v2317_v48  ;;  %7427 = vmatpush3.bf16.msra.mxu0 %v2461_v47 }
0x1ecf   :  { %v2329_v51 = vsel %vm522_vm6, %v2327_v50, -inf  ;;  %7446 = vmatprep.subr.bf16.mxu0 %v8282_v1 }
0x1ed0   :  { %2330 = vmax.xlane.f32.xlu1 %v2329_v51 }
0x1f59   :  { %v2331_v52 = vpop.xlane.xlu1 %2330 }
0x1f5a   :  { %v2336_v54 = vrot.slane %v2331_v52, %v8557_v46  ;;  %v2340_v57 = vrot.slane %v2331_v52, %v8603_v35 }
0x1f5c   :  { %v2343_v58 = vsub.f32 %v2295_v26, %v2336_v54  ;;  %v2344_v60 = vsub.f32 %v2298_v37, %v2336_v54  ;;  %v2345_v61 = vsub.f32 %v2301_v3, %v2340_v57  ;;  %v2346_v36 = vsub.f32 %v2304_v44, %v2340_v57 }
0x1f5e   :  { %v2347_v62 = vmul.f32 1.442695, %v2343_v58  ;;  %v2351_v63 = vmul.f32 1.442695, %v2345_v61  ;;  %v2349_v2 = vmul.f32 1.442695, %v2344_v60 }
0x1f5f   :  { %v2353_v27 = vmul.f32 1.442695, %v2346_v36  ;;  %v7977_v36 = vld [vmem:[%s10163_s14 + $0x8] sm:$0xff]  }
0x1f60   :  { %8003 = vpow2.f32 %v2347_v62 }
0x1f61   :  { %8005 = vpow2.f32 %v2351_v63 }
0x1f62   :  { %8007 = vpow2.f32 %v2349_v2  ;;  %v7979_v2 = vld [vmem:[%s10162_s13 + $0x20] sm:$0xff]  }
0x1f63   :  { %8009 = vpow2.f32 %v2353_v27  ;;  %v7978_v27 = vld [vmem:[%s10163_s14] sm:$0xff]   ;;  %7433 = vmatpush3.bf16.msra.mxu1 %v7979_v2 }
0x1f64   :  { %7434 = vmatprep.subr.bf16.mxu1 %v8282_v1 }
0x1f6d   :  { %v8004_v4 = vpop.eup %8003 }
0x1f6e   :  { %2360 = vperm.xlu1 %7967, %v8004_v4   ;;  %v8006_v5 = vpop.eup %8005 }
0x1f6f   :  { %2366 = vperm.xlu0 %7968, %v8006_v5   ;;  %v8008_v8 = vpop.eup %8007 }
0x1f70   :  { %v8010_v9 = vpop.eup %8009 }
0x1f72   :  { %2363 = vperm.xlu1 %7967, %v8008_v8  }
0x1f76   :  { %2369 = vperm.xlu1 %7967, %v8010_v9  }
0x1fe9   :  { %v2361_v10 = vpop.permute.xlu1 %2360 }
0x1fea   :  { %v2367_v12 = vpop.permute.xlu0 %2366  ;;  %v2374_v25 = vrot.slane %v2361_v10, %v8590_v20 }
0x1feb   :  { %v2383_v15 = vrot.slane %v2367_v12, %v8590_v20 }
0x1fed   :  { %v2364_v11 = vpop.permute.xlu1 %2363 }
0x1fee   :  { %v2378_v13 = vrot.slane %v2364_v11, %v8586_v19 }
0x1ff0   :  { %v2379_v38 = vsel %vm508_vm4, %v2378_v13, %v2374_v25  ;;  %v9127_v13 = vld [vmem:[#allocation3] sm:$0x3] }
0x1ff1   :  { %v2370_v14 = vpop.permute.xlu1 %2369 }
0x1ff2   :  { %v2387_v17 = vrot.slane %v2370_v14, %v8586_v19  ;;  %v7983_v14 = vld [vmem:[%s10162_s13] sm:$0xff]  }
0x1ff4   :  { %v2388_v18 = vsel %vm508_vm4, %v2387_v17, %v2383_v15  ;;  %v6791_v15 = vld [vmem:[%s10165_s16] ss:$0 sm:$0xff] }
0x1ff5   :  { %v2389_v22 = vsel %vm519_vm5, %v2388_v18, %v2379_v38 }
0x1ff6   :  { %v2391_v23 = vsel %vm522_vm6, %v2389_v22, 0.0 }
0x1ff7   :  { %2392 = vadd.xlane.f32.xlu1 %v2391_v23 }
0x2080   :  { %v2393_v42 = vpop.xlane.xlu1 %2392 }
0x2081   :  { %8011 = vrcp.f32 %v2393_v42 }
0x208e   :  { %v8012_v28 = vpop.eup %8011 }
0x208f   :  { %v2399_v29 = vrot.slane %v8012_v28, %v8557_v46  ;;  %v2403_v30 = vrot.slane %v8012_v28, %v8603_v35 }
0x2091   :  { %v2406_v31 = vmul.f32 %v8004_v4, %v2399_v29  ;;  %v2407_v32 = vmul.f32 %v8008_v8, %v2399_v29  ;;  %v2408_v33 = vmul.f32 %v8006_v5, %v2403_v30  ;;  %v2409_v45 = vmul.f32 %v8010_v9, %v2403_v30  ;;  %v7980_v4 = vld [vmem:[%s10162_s13 + $0x18] sm:$0xff]   ;;  %v7981_v5 = vld [vmem:[%s10162_s13 + $0x10] sm:$0xff]   ;;  %v7982_v8 = vld [vmem:[%s10162_s13 + $0x8] sm:$0xff]  }
0x2092   :  { %7435 = vmatpush3.bf16.msra.mxu1 %v7980_v4 }
0x2093   :  { %v2410_v37 = vpack.c.bf16 %v2407_v32, %v2406_v31  ;;  %v2411_v40 = vpack.c.bf16 %v2409_v45, %v2408_v33  ;;  %7436 = vmatprep.subr.bf16.mxu1 %v8282_v1  ;;  %v6780_v32 = vld [vmem:[%s10164_s15] ss:$0 sm:$0xff] }
0x2095   :  { %v2417_v26 = vunpack.c.h.b16 %v2410_v37  ;;  %v2416_v3 = vunpack.c.l.b16 %v2410_v37  ;;  %v2418_v44 = vunpack.c.l.b16 %v2411_v40  ;;  %v2419_v6 = vunpack.c.h.b16 %v2411_v40 }
0x2096   :  { %7437 = vmatpush3.bf16.msra.mxu1 %v7981_v5 }
0x2097   :  { %2424 = vperm.xlu0 %7968, %v2417_v26   ;;  %2421 = vperm.xlu1 %7967, %v2416_v3  }
0x2098   :  { %7438 = vmatprep.subr.bf16.mxu1 %v8282_v1 }
0x209a   :  { %7439 = vmatpush3.bf16.msra.mxu1 %v7982_v8 }
0x209b   :  { %2427 = vperm.xlu0 %7968, %v2418_v44   ;;  %7440 = vmatprep.subr.bf16.mxu1 %v8282_v1 }
0x209e   :  { %7441 = vmatpush3.bf16.msra.mxu1 %v7983_v14 }
0x209f   :  { %2430 = vperm.xlu0 %7968, %v2419_v6   ;;  %7470 = vmatprep.subr.bf16.mxu1 %v8282_v1 }
0x2112   :  { %v2425_v48 = vpop.permute.xlu0 %2424  ;;  %v2422_v49 = vpop.permute.xlu1 %2421 }
0x2113   :  { %v2439_v51 = vrot.slane %v2425_v48, %v8586_v19  ;;  %v2435_v52 = vrot.slane %v2422_v49, %v8590_v20 }
0x2115   :  { %v2440_v60 = vsel %vm508_vm4, %v2439_v51, %v2435_v52  ;;  %v7984_v52 = vld [vmem:[%s10166_s17 + $0x8] sm:$0xff]  }
0x2116   :  { %v2428_v50 = vpop.permute.xlu0 %2427 }
0x2117   :  { %v2444_v57 = vrot.slane %v2428_v50, %v8590_v20 }
0x211a   :  { %v2431_v54 = vpop.permute.xlu0 %2430 }
0x211b   :  { %v2448_v58 = vrot.slane %v2431_v54, %v8586_v19  ;;  %v7985_v54 = vld [vmem:[%s10166_s17] sm:$0xff]  }
0x211d   :  { %v2449_v61 = vsel %vm508_vm4, %v2448_v58, %v2444_v57 }
0x211e   :  { %v2450_v62 = vsel %vm519_vm5, %v2449_v61, %v2440_v60 }
0x211f   :  { %v2451_v63 = vpack.c.b16 %v2450_v62, %v2450_v62 }
0x2121   :  { %7429 = vmatmul.mubr.msk.bf16.vlgmr.msra.gmra.mxu0 %vm651_vm8, %v2451_v63  ;;  %v6800_v63 = vld [vmem:[%s10169_s20] ss:$0 sm:$0xff] }
0x2122   :  { %7450 = vmatprep.mubr.msk.bf16.mxu0 %vm8283_vm0, %v8282_v1  ;;  %7447 = vmatpush3.bf16.msra.mxu0 %v7977_v36 }
0x2123   :  { %7448 = vmatprep.subr.bf16.mxu0 %v8282_v1 }
0x2126   :  { %7449 = vmatpush3.bf16.msra.mxu0 %v7978_v27  ;;  %v7986_v27 = vld [vmem:[%s10167_s18 + $0x8] sm:$0xff]  }
0x2127   :  { %7454 = vmatprep.subr.bf16.mxu0 %v8282_v1 }
0x2129   :  { %7451 = vmatmul.mubr.msk.bf16.vlgmr.msra.gmra.mxu0 %vm259_vm2, %v8948_v24  ;;  %v6811_v24 = vld [vmem:[%s10193_s28 + $0x6] sm:$0x3] }
0x212a   :  { %7458 = vmatprep.mubr.msk.bf16.mxu0 %vm8283_vm0, %v8282_v1  ;;  %2982 = vst.msk [vmem:[#allocation3] sm:$0x3] %vm1187_vm14, %v6811_v24  ;;  %7455 = vmatpush3.bf16.msra.mxu0 %v7984_v52 }
0x212b   :  { %7456 = vmatprep.subr.bf16.mxu0 %v8282_v1 }
0x212e   :  { %7457 = vmatpush3.bf16.msra.mxu0 %v7985_v54 }
0x212f   :  { %7462 = vmatprep.subr.bf16.mxu0 %v8282_v1 }
0x21e1   :  { %v2497_v9 = vpop.f32.mrf.mxu0 }
0x21e2   :  { %2504 = vrot.lane.b32.xlu0 %v2497_v9, %s8284_s27 }
0x21e3   :  { %v7430_v10 = vpop.f32.mrf.mxu0 }
0x21e5   :  { %v2500_v11 = vpop.f32.mrf.mxu0 }
0x21e6   :  { %2673 = vrot.lane.b32.xlu0 %v6791_v15, %s8284_s27 }
0x21e7   :  { %v7431_v12 = vpop.f32.mrf.mxu0 }
0x21e9   :  { %v2655_v38 = vpop.f32.mrf.mxu0 }
0x21eb   :  { %v7452_v18 = vpop.f32.mrf.mxu0 }
0x21ed   :  { %v2658_v22 = vpop.f32.mrf.mxu0 }
0x21ef   :  { %v7453_v23 = vpop.f32.mrf.mxu0 }
0x2254   :  { %v2505_v25 = vpop.permute.xlu0 %2504 }
0x2255   :  { %v9140_v17 = vsel %vm699_vm9, %v2497_v9, %v2505_v25 }
0x2256   :  { %2509 = vrot.lane.b32.xlu1 %v9140_v17, %s8287_s2 }
0x2258   :  { %v2674_v42 = vpop.permute.xlu0 %2673 }
0x2259   :  { %v2676_v28 = vadd.f32 %v2674_v42, %v2655_v38 }
0x225b   :  { %2678 = vrot.lane.b32.xlu1 %v2676_v28, %s8284_s27 }
0x22c8   :  { %v2510_v29 = vpop.permute.xlu1 %2509 }
0x22c9   :  { %v2512_v30 = vsel %vm709_vm10, %v9127_v13, %v2510_v29 }
0x22ca   :  { %v2529_v31 = vpack.c.bf16 %v2512_v30, %v2512_v30 }
0x22cc   :  { %7443 = vmatmul.mubr.msk.bf16.vlgmr.msra.gmra.mxu1 %vm764_vm11, %v2529_v31 }
0x22cd   :  { %7484 = vmatprep.mubr.msk.bf16.mxu1 %vm8283_vm0, %v8282_v1  ;;  %v2679_v6 = vpop.permute.xlu1 %2678 }
0x238c   :  { %v2603_v33 = vpop.f32.mrf.mxu1 }
0x238d   :  { %v2604_v45 = vadd.f32 %v6780_v32, %v2603_v33  ;;  %v7988_v33 = vld [vmem:[%s10160_s11 + $0x30] sm:$0xff]  }
0x238e   :  { %v7444_v37 = vpop.f32.mrf.mxu1  ;;  %7471 = vmatpush3.bf16.msra.mxu1 %v7988_v33 }
0x238f   :  { %v2661_v26 = vadd.f32 %v2655_v38, %v2604_v45  ;;  %v6792_v38 = vld [vmem:[%s10168_s19] ss:$0 sm:$0xff]  ;;  %7472 = vmatprep.subr.bf16.mxu1 %v8282_v1 }
0x2390   :  { %v2606_v3 = vpop.f32.mrf.mxu1 }
0x2391   :  { %v6790_v40 = vmul.f32 -1.442695, %v2661_v26  ;;  %v7990_v26 = vld [vmem:[%s10160_s11 + $0x20] sm:$0xff]   ;;  %v7991_v3 = vld [vmem:[%s10160_s11 + $0x18] sm:$0xff]  }
0x2392   :  { %v7445_v43 = vpop.f32.mrf.mxu1 }
0x2393   :  { %8013 = vpow2.f32 %v6790_v40  ;;  %v7992_v40 = vld [vmem:[%s10160_s11 + $0x10] sm:$0xff]   ;;  %v7993_v43 = vld [vmem:[%s10160_s11 + $0x8] sm:$0xff]  }
0x23a0   :  { %v8014_v44 = vpop.eup %8013 }
0x23a1   :  { %v2665_v47 = vadd.f32 1.0, %v8014_v44 }
0x23a3   :  { %8015 = vrcp.f32 %v2665_v47 }
0x23b0   :  { %v8016_v48 = vpop.eup %8015 }
0x23b1   :  { %v2681_v49 = vmul.f32 %v8016_v48, %v2679_v6  ;;  %v2688_v58 = vsub.f32 1.0, %v8016_v48  ;;  %v2694_v62 = vmul.f32 %v8016_v48, %v8939_v21  ;;  %v7987_v21 = vld [vmem:[%s10167_s18] sm:$0xff]  }
0x23b3   :  { %2683 = vrot.lane.b32.xlu0 %v2681_v49, %s8284_s27 }
0x2425   :  { %v2684_v50 = vpop.permute.xlu0 %2683 }
0x2426   :  { %v2686_v51 = vadd.f32 %v2684_v50, %v2604_v45  ;;  %v7989_v45 = vld [vmem:[%s10160_s11 + $0x28] sm:$0xff]  }
0x2427   :  { %7473 = vmatpush3.bf16.msra.mxu1 %v7989_v45 }
0x2428   :  { %8017 = vtanh.f32 %v2686_v51  ;;  %7474 = vmatprep.subr.bf16.mxu1 %v8282_v1 }
0x242b   :  { %7475 = vmatpush3.bf16.msra.mxu1 %v7990_v26 }
0x242c   :  { %7476 = vmatprep.subr.bf16.mxu1 %v8282_v1 }
0x242f   :  { %7477 = vmatpush3.bf16.msra.mxu1 %v7991_v3 }
0x2430   :  { %7478 = vmatprep.subr.bf16.mxu1 %v8282_v1 }
0x2433   :  { %7479 = vmatpush3.bf16.msra.mxu1 %v7992_v40 }
0x2434   :  { %7480 = vmatprep.subr.bf16.mxu1 %v8282_v1 }
0x2435   :  { %v8018_v57 = vpop.eup %8017 }
0x2436   :  { %2690 = vrot.lane.b32.xlu1 %v8018_v57, %s8289_s30 }
0x2437   :  { %7481 = vmatpush3.bf16.msra.mxu1 %v7993_v43 }
0x2438   :  { %7482 = vmatprep.subr.bf16.mxu1 %v8282_v1 }
0x243a   :  { %2835 = vrot.lane.b32.xlu1 %v6800_v63, %s8284_s27 }
0x24a8   :  { %v2691_v60 = vpop.permute.xlu1 %2690 }
0x24a9   :  { %v2693_v61 = vmul.f32 %v2691_v60, %v2688_v58 }
0x24ab   :  { %v9167_v36 = vadd.f32 %v2694_v62, %v2693_v61 }
0x24ac   :  { %v2836_v11 = vpop.permute.xlu1 %2835 }
0x24ad   :  { %v2706_v2 = vpack.c.bf16 %v9167_v36, %v9167_v36 }
0x24af   :  { %2714 = vrot.lane.b32.xlu0 %v2706_v2, %s8289_s30 }
0x2521   :  { %v9176_v4 = vpop.permute.xlu0 %2714 }
0x2522   :  { %7459 = vmatmul.mubr.msk.bf16.vlgmr.msra.gmra.mxu0 %vm259_vm2, %v9176_v4 }
0x2523   :  { %7463 = vmatpush3.bf16.msra.mxu0 %v7986_v27  ;;  %7466 = vmatprep.mubr.msk.bf16.mxu0 %vm8283_vm0, %v8282_v1 }
0x2524   :  { %7464 = vmatprep.subr.bf16.mxu0 %v8282_v1 }
0x2527   :  { %7465 = vmatpush3.bf16.msra.mxu0 %v7987_v21 }
0x252a   :  { %7467 = vmatmul.mubr.msk.bf16.vlgmr.msra.gmra.mxu0 %vm259_vm2, %v9038_v0 }
0x25e2   :  { %v2765_v5 = vpop.f32.mrf.mxu0 }
0x25e3   :  { %v2766_v18 = vadd.f32 %v6792_v38, %v2765_v5 }
0x25e4   :  { %v7460_v8 = vpop.f32.mrf.mxu0 }
0x25e6   :  { %v2768_v9 = vpop.f32.mrf.mxu0 }
0x25e8   :  { %v7461_v10 = vpop.f32.mrf.mxu0 }
0x25ea   :  { %v2817_v12 = vpop.f32.mrf.mxu0 }
0x25eb   :  { %v2838_v24 = vadd.f32 %v2836_v11, %v2817_v12  ;;  %v2823_v22 = vadd.f32 %v2817_v12, %v2766_v18 }
0x25ec   :  { %v7468_v14 = vpop.f32.mrf.mxu0 }
0x25ed   :  { %2840 = vrot.lane.b32.xlu0 %v2838_v24, %s8284_s27  ;;  %v6799_v23 = vmul.f32 -1.442695, %v2823_v22 }
0x25ee   :  { %v2820_v15 = vpop.f32.mrf.mxu0 }
0x25ef   :  { %8019 = vpow2.f32 %v6799_v23 }
0x25f0   :  { %v7469_v25 = vpop.f32.mrf.mxu0 }
0x25fc   :  { %v8020_v0 = vpop.eup %8019 }
0x25fd   :  { %v2827_v42 = vadd.f32 1.0, %v8020_v0 }
0x25ff   :  { %8021 = vrcp.f32 %v2827_v42 }
0x260c   :  { %v8022_v28 = vpop.eup %8021 }
0x260d   :  { %v2850_v44 = vsub.f32 1.0, %v8022_v28  ;;  %v2856_v6 = vmul.f32 %v8022_v28, %v8996_v7  ;;  %v6801_v7 = vld [vmem:[%s10161_s12] ss:$0 sm:$0xff] }
0x265f   :  { %v2841_v29 = vpop.permute.xlu0 %2840 }
0x2660   :  { %v2843_v30 = vmul.f32 %v8022_v28, %v2841_v29 }
0x2662   :  { %2845 = vrot.lane.b32.xlu1 %v2843_v30, %s8284_s27 }
0x26d4   :  { %v2846_v31 = vpop.permute.xlu1 %2845 }
0x26d5   :  { %v2848_v32 = vadd.f32 %v2846_v31, %v2766_v18 }
0x26d7   :  { %8023 = vtanh.f32 %v2848_v32 }
0x26e4   :  { %v8024_v37 = vpop.eup %8023 }
0x26e5   :  { %2852 = vrot.lane.b32.xlu0 %v8024_v37, %s8289_s30 }
0x26e9   :  { %2866 = vrot.lane.b32.xlu0 %v9127_v13, %s8289_s30  ;;  %v7994_v13 = vld [vmem:[%s10160_s11] sm:$0xff]  }
0x26ea   :  { %7483 = vmatpush3.bf16.msra.mxu1 %v7994_v13 }
0x2757   :  { %v2853_v47 = vpop.permute.xlu0 %2852 }
0x2758   :  { %v2855_v48 = vmul.f32 %v2853_v47, %v2850_v44 }
0x275a   :  { %v9224_v49 = vadd.f32 %v2856_v6, %v2855_v48 }
0x275b   :  { %v2867_v57 = vpop.permute.xlu0 %2866 }
0x275c   :  { %v7969_v50 = vpack.i.bf16 %v9140_v17, %v9224_v49 }
0x275e   :  { %7970 = vrot.lane.b32.xlu1 %v7969_v50, %s8289_s30 }
0x27d0   :  { %v7971_v51 = vpop.permute.xlu1 %7970 }
0x27d1   :  { %v7973_v52 = vunpack.i.h.bf16 %v7971_v51  ;;  %v7972_v54 = vunpack.i.l.bf16 %v7971_v51 }
0x27d3   :  { %v2869_v58 = vsel %vm259_vm2, %v7972_v54, %v7973_v52 }
0x27d4   :  { %v2870_v60 = vsel %vm10194_vm15, %v2869_v58, %v2867_v57 }
0x27d5   :  { %v2871_v61 = vpack.c.bf16 %v2870_v60, %v2870_v60 }
0x27d7   :  { %7485 = vmatmul.mubr.msk.bf16.vlgmr.msra.gmra.mxu1 %vm10195_vm13, %v2871_v61 }
0x2897   :  { %v2972_v62 = vpop.f32.mrf.mxu1 }
0x2898   :  { %v2973_v17 = vadd.f32 %v6801_v7, %v2972_v62 }
0x2899   :  { %v7486_v63 = vpop.f32.mrf.mxu1  ;;  %2987 = sbr.rel (%p6813_p7) target bundleno = 11030 (0x2b16), region = 101 }
0x289a   :  { %6810 = vst [vmem:[%s10170_s21 + $0x6] sm:$0x3] %v2973_v17 }
0x289b   :  { %v2975_v2 = vpop.f32.mrf.mxu1 }
0x289d   :  { %v7487_v27 = vpop.f32.mrf.mxu1 }
0x289e   :  { %vm2988_vm1 = vcmask 189440   ;;  %v8294_v12 = vmov 0.0   ;;  %v8025_v38 = vld [vmem:[%s10159_s10 + $0x8] ss:$0 sps:$4 sm:$0xff]   ;;  %vm3029_vm13 = vcmask 1043456   ;;  %v8026_v22 = vld [vmem:[%s10159_s10] sm:$0xff]  }
0x289f   :  { %v2989_v21 = vsel %vm2988_vm1, %v2973_v17, -inf  ;;  %7488 = vmatprep.subr.bf16.mxu0 %v8294_v12  ;;  %v3031_v18 = vsel %vm3029_vm13, %v8025_v38, 0 }
0x28a0   :  { %2990 = vmax.xlane.f32.xlu0 %v2989_v21  ;;  %7489 = vmatpush3.bf16.msra.mxu0 %v3031_v18 }
0x28a1   :  { %7490 = vmatprep.subr.bf16.mxu0 %v8294_v12 }
0x28a4   :  { %7491 = vmatpush3.bf16.msra.mxu0 %v8026_v22 }
0x2929   :  { %v2991_v5 = vpop.xlane.xlu0 %2990 }
0x292a   :  { %vm2992_vm12 = vcmp.eq.f32.partialorder %v2973_v17, %v2991_v5 }
0x292b   :  { %v2993_v8 = vsel %vm2992_vm12, %v8582_v16, 24 }
0x292c   :  { %v2994_v9 = vsel %vm2988_vm1, %v2993_v8, 2147483647  ;;  %vm8295_vm1 = vmmov 0  }
0x292d   :  { %v2996_v10 = vshra.s32 %v2994_v9, 16  ;;  %v2995_v24 = vand.u32 65535, %v2994_v9  ;;  %7492 = vmatprep.mubr.msk.bf16.mxu0 %vm8295_vm1, %v8294_v12 }
0x292f   :  { %v2998_v11 = vcvt.s32.f32 %v2996_v10  ;;  %v2997_v15 = vcvt.s32.f32 %v2995_v24 }
0x2931   :  { %2999 = vmin.xlane.f32.xlu0 %v2998_v11 }
0x29ba   :  { %v3000_v14 = vpop.xlane.xlu0 %2999 }
0x29bb   :  { %vm3001_vm15 = vcmp.eq.f32.partialorder %v2998_v11, %v3000_v14  ;;  %v3006_v23 = vcvt.f32.s32 %v3000_v14 }
0x29bc   :  { %v3002_v25 = vsel %vm3001_vm15, %v2997_v15, inf  ;;  %vm3025_vm15 = vcmask 195584  }
0x29bd   :  { %3003 = vmin.xlane.f32.xlu1 %v3002_v25  ;;  %v3007_v42 = vshll.u32 %v3006_v23, 16 }
0x2a46   :  { %v3004_v0 = vpop.xlane.xlu1 %3003 }
0x2a47   :  { %v3005_v28 = vcvt.f32.s32 %v3004_v0 }
0x2a49   :  { %v3008_v29 = vadd.s32 %v3007_v42, %v3005_v28 }
0x2a4b   :  { %vm3009_vm12 = vcmp.eq.s32.totalorder %v8582_v16, %v3008_v29 }
0x2a4c   :  { %v6814_v30 = vsel %vm3009_vm12, 1.0, %v8294_v12 }
0x2a4d   :  { %v3012_v31 = vpack.c.bf16 %v6814_v30, %v6814_v30 }
0x2a4f   :  { %7493 = vmatmul.mubr.msk.bf16.vlgmr.msra.gmra.mxu0 %vm3025_vm15, %v3012_v31 }
0x2b0f   :  { %v3067_v32 = vpop.f32.mrf.mxu0 }
0x2b10   :  { %3073 = vst.msk [vmem:[#allocation3] sm:$0x3] %vm1187_vm14, %v3067_v32 }
0x2b11   :  { %v7494_v33 = vpop.f32.mrf.mxu0 }
0x2b13   :  { %v3070_v45 = vpop.f32.mrf.mxu0 }
0x2b15   :  { %v7495_v37 = vpop.f32.mrf.mxu0 }
0x2b16 PF:  { %v3075_v26 = vpack.c.bf16 %v9224_v49, %v9224_v49  ;;  %7496 = vmatprep.subr.bf16.mxu0 %v8282_v1  ;;  %v8034_v3 = vld [vmem:[%s10155_s6 + $0x8] sm:$0xff]   ;;  %7500 = vmatprep.mubr.msk.bf16.mxu0 %vm8283_vm0, %v8282_v1  ;;  %v8035_v40 = vld [vmem:[%s10155_s6] sm:$0xff]   ;;  %s10196_s1 = sld [smem:[#allocation10_spill]]  ;;  %vm10198_vm13 = vcmask 785408   ;;  %vm10199_vm1 = vcmask 916480  }
0x2b17   :  { %8028 = vset.pattern.permute.xlu0 %v8286_v34  ;;  %8027 = vset.pattern.permute.xlu1 %v8286_v34  ;;  %v6821_v62 = vld [vmem:[%s10158_s9] ss:$0 sm:$0xff]  ;;  %s10197_s4 = sld [smem:[#allocation8_spill]] }
0x2b18   :  { %3081 = vrot.lane.b32.xlu0 %v3075_v26, %s8289_s30  ;;  %7497 = vmatpush3.bf16.msra.mxu0 %v8034_v3  ;;  %s6856_s28 = sld [smem:[#allocation4 + $0x4]] }
0x2b19   :  { %7498 = vmatprep.subr.bf16.mxu0 %v8282_v1  ;;  %7510 = vmatprep.subr.bf16.mxu1 %v8282_v1 }
0x2b1a   :  { %7520 = vmatprep.mubr.msk.bf16.mxu1 %vm8283_vm0, %v8282_v1 }
0x2b1c   :  { %7499 = vmatpush3.bf16.msra.mxu0 %v8035_v40 }
0x2b1d   :  { %7504 = vmatprep.subr.bf16.mxu0 %v8282_v1 }
0x2b1e   :  { %p6857_p8 = scmp.ne.s32.totalorder %s6856_s28, 0 }
0x2b8a   :  { %v9266_v43 = vpop.permute.xlu0 %3081 }
0x2b8b   :  { %7501 = vmatmul.mubr.msk.bf16.vlgmr.msra.gmra.mxu0 %vm259_vm2, %v9266_v43 }
0x2b8c   :  { %7506 = vmatprep.mubr.msk.bf16.mxu0 %vm8283_vm0, %v8282_v1 }
0x2c4b   :  { %v3132_v13 = vpop.f32.mrf.mxu0 }
0x2c4c   :  { %v3145_v44 = vrot.slane %v3132_v13, %v8550_v41 }
0x2c4d   :  { %v7502_v47 = vpop.f32.mrf.mxu0 }
0x2c4e   :  { %v3146_v6 = vcombine.high %v3145_v44, %v3145_v44  ;;  %v3153_v48 = vrot.slane %v3145_v44, %v8550_v41 }
0x2c4f   :  { %v3135_v50 = vpop.f32.mrf.mxu0 }
0x2c50   :  { %v3160_v51 = vrot.slane %v3146_v6, %v8550_v41  ;;  %v3164_v52 = vrot.slane %v3153_v48, %v8557_v46 }
0x2c51   :  { %v7503_v54 = vpop.f32.mrf.mxu0 }
0x2c52   :  { %v3168_v57 = vrot.slane %v3160_v51, %v8557_v46  ;;  %v3171_v58 = vadd.f32 %v3164_v52, %v8560_v53  ;;  %v3172_v60 = vadd.f32 %v3164_v52, %v8562_v55 }
0x2c54   :  { %v3173_v61 = vadd.f32 %v3168_v57, %v8564_v56  ;;  %8055 = vtanh.f32 %v3171_v58  ;;  %v3174_v7 = vadd.f32 %v3168_v57, %v8568_v59 }
0x2c55   :  { %8057 = vtanh.f32 %v3172_v60 }
0x2c56   :  { %8059 = vtanh.f32 %v3173_v61 }
0x2c57   :  { %8061 = vtanh.f32 %v3174_v7 }
0x2c61   :  { %v8056_v17 = vpop.eup %8055 }
0x2c62   :  { %v8058_v63 = vpop.eup %8057  ;;  %v3186_v2 = vmul.f32 %v8056_v17, %v6821_v62 }
0x2c63   :  { %v8060_v27 = vpop.eup %8059  ;;  %v3187_v21 = vmul.f32 %v8058_v63, %v6821_v62 }
0x2c64   :  { %v3190_v5 = vsel %vm259_vm2, %v3186_v2, 0.0  ;;  %v3188_v9 = vmul.f32 %v8060_v27, %v6821_v62  ;;  %v8062_v10 = vpop.eup %8061 }
0x2c65   :  { %v3193_v8 = vsel %vm261_vm3, %v3187_v21, 0.0  ;;  %3191 = vadd.xlane.f32.xlu0 %v3190_v5  ;;  %v3189_v12 = vmul.f32 %v8062_v10, %v6821_v62 }
0x2c66   :  { %3194 = vadd.xlane.f32.xlu1 %v3193_v8  ;;  %v3196_v11 = vsel %vm259_vm2, %v3188_v9, 0.0 }
0x2c67   :  { %v3199_v24 = vsel %vm261_vm3, %v3189_v12, 0.0 }
0x2c6a   :  { %3197 = vadd.xlane.f32.xlu1 %v3196_v11 }
0x2c6e   :  { %3200 = vadd.xlane.f32.xlu1 %v3199_v24 }
0x2cee   :  { %v3192_v15 = vpop.xlane.xlu0 %3191 }
0x2cef   :  { %v3195_v14 = vpop.xlane.xlu1 %3194  ;;  %v3209_v18 = vrot.slane %v3192_v15, %v8590_v20 }
0x2cf0   :  { %v3213_v38 = vrot.slane %v3195_v14, %v8586_v19 }
0x2cf2   :  { %v3214_v42 = vsel %vm508_vm4, %v3213_v38, %v3209_v18  ;;  %v8036_v18 = vld [vmem:[%s10196_s1] sm:$0x1f]  }
0x2cf3   :  { %v3198_v25 = vpop.xlane.xlu1 %3197 }
0x2cf4   :  { %v3218_v23 = vrot.slane %v3198_v25, %v8590_v20 }
0x2cf7   :  { %v3201_v22 = vpop.xlane.xlu1 %3200 }
0x2cf8   :  { %v3222_v0 = vrot.slane %v3201_v22, %v8586_v19 }
0x2cfa   :  { %v3223_v28 = vsel %vm508_vm4, %v3222_v0, %v3218_v23  ;;  %v3358_v23 = vsel %vm655_vm7, %v8036_v18, 0 }
0x2cfb   :  { %v3224_v29 = vsel %vm519_vm5, %v3223_v28, %v3214_v42  ;;  %7505 = vmatpush3.bf16.msra.mxu0 %v3358_v23 }
0x2cfc   :  { %v3226_v30 = vsel %vm522_vm6, %v3224_v29, -inf  ;;  %7524 = vmatprep.subr.bf16.mxu0 %v8282_v1 }
0x2cfd   :  { %3227 = vmax.xlane.f32.xlu1 %v3226_v30 }
0x2d86   :  { %v3228_v31 = vpop.xlane.xlu1 %3227 }
0x2d87   :  { %v3233_v32 = vrot.slane %v3228_v31, %v8557_v46  ;;  %v3237_v33 = vrot.slane %v3228_v31, %v8603_v35 }
0x2d89   :  { %v3240_v45 = vsub.f32 %v3192_v15, %v3233_v32  ;;  %v3241_v37 = vsub.f32 %v3195_v14, %v3233_v32  ;;  %v3242_v26 = vsub.f32 %v3198_v25, %v3237_v33  ;;  %v3243_v13 = vsub.f32 %v3201_v22, %v3237_v33 }
0x2d8b   :  { %v3244_v3 = vmul.f32 1.442695, %v3240_v45  ;;  %v3248_v40 = vmul.f32 1.442695, %v3242_v26  ;;  %v3246_v44 = vmul.f32 1.442695, %v3241_v37 }
0x2d8c   :  { %v3250_v47 = vmul.f32 1.442695, %v3243_v13  ;;  %v8037_v13 = vld [vmem:[%s10163_s14 + $0x8] sm:$0xff]  }
0x2d8d   :  { %8063 = vpow2.f32 %v3244_v3 }
0x2d8e   :  { %8065 = vpow2.f32 %v3248_v40 }
0x2d8f   :  { %8067 = vpow2.f32 %v3246_v44  ;;  %v8039_v44 = vld [vmem:[%s10162_s13 + $0x20] sm:$0xff]  }
0x2d90   :  { %8069 = vpow2.f32 %v3250_v47  ;;  %v8038_v47 = vld [vmem:[%s10163_s14] sm:$0xff]   ;;  %7511 = vmatpush3.bf16.msra.mxu1 %v8039_v44 }
0x2d91   :  { %7512 = vmatprep.subr.bf16.mxu1 %v8282_v1 }
0x2d9a   :  { %v8064_v6 = vpop.eup %8063 }
0x2d9b   :  { %3257 = vperm.xlu1 %8027, %v8064_v6   ;;  %v8066_v48 = vpop.eup %8065 }
0x2d9c   :  { %3263 = vperm.xlu0 %8028, %v8066_v48   ;;  %v8068_v50 = vpop.eup %8067 }
0x2d9d   :  { %v8070_v51 = vpop.eup %8069 }
0x2d9f   :  { %3260 = vperm.xlu1 %8027, %v8068_v50  }
0x2da3   :  { %3266 = vperm.xlu1 %8027, %v8070_v51  }
0x2e16   :  { %v3258_v52 = vpop.permute.xlu1 %3257 }
0x2e17   :  { %v3264_v57 = vpop.permute.xlu0 %3263  ;;  %v3271_v7 = vrot.slane %v3258_v52, %v8590_v20 }
0x2e18   :  { %v3280_v61 = vrot.slane %v3264_v57, %v8590_v20 }
0x2e1a   :  { %v3261_v54 = vpop.permute.xlu1 %3260 }
0x2e1b   :  { %v3275_v58 = vrot.slane %v3261_v54, %v8586_v19 }
0x2e1d   :  { %v3276_v17 = vsel %vm508_vm4, %v3275_v58, %v3271_v7  ;;  %v9355_v58 = vld [vmem:[#allocation3] sm:$0x3] }
0x2e1e   :  { %v3267_v60 = vpop.permute.xlu1 %3266 }
0x2e1f   :  { %v3284_v62 = vrot.slane %v3267_v60, %v8586_v19  ;;  %v8043_v60 = vld [vmem:[%s10162_s13] sm:$0xff]  }
0x2e21   :  { %v3285_v63 = vsel %vm508_vm4, %v3284_v62, %v3280_v61  ;;  %v6835_v61 = vld [vmem:[%s10165_s16] ss:$0 sm:$0xff] }
0x2e22   :  { %v3286_v2 = vsel %vm519_vm5, %v3285_v63, %v3276_v17 }
0x2e23   :  { %v3288_v27 = vsel %vm522_vm6, %v3286_v2, 0.0 }
0x2e24   :  { %3289 = vadd.xlane.f32.xlu1 %v3288_v27 }
0x2ead   :  { %v3290_v21 = vpop.xlane.xlu1 %3289 }
0x2eae   :  { %8071 = vrcp.f32 %v3290_v21 }
0x2ebb   :  { %v8072_v5 = vpop.eup %8071 }
0x2ebc   :  { %v3296_v8 = vrot.slane %v8072_v5, %v8557_v46  ;;  %v3300_v9 = vrot.slane %v8072_v5, %v8603_v35 }
0x2ebe   :  { %v3303_v10 = vmul.f32 %v8064_v6, %v3296_v8  ;;  %v3304_v11 = vmul.f32 %v8068_v50, %v3296_v8  ;;  %v3305_v12 = vmul.f32 %v8066_v48, %v3300_v9  ;;  %v3306_v24 = vmul.f32 %v8070_v51, %v3300_v9  ;;  %v8040_v6 = vld [vmem:[%s10162_s13 + $0x18] sm:$0xff]   ;;  %v8041_v48 = vld [vmem:[%s10162_s13 + $0x10] sm:$0xff]   ;;  %v8042_v50 = vld [vmem:[%s10162_s13 + $0x8] sm:$0xff]  }
0x2ebf   :  { %7513 = vmatpush3.bf16.msra.mxu1 %v8040_v6 }
0x2ec0   :  { %v3307_v14 = vpack.c.bf16 %v3304_v11, %v3303_v10  ;;  %v3308_v38 = vpack.c.bf16 %v3306_v24, %v3305_v12  ;;  %7514 = vmatprep.subr.bf16.mxu1 %v8282_v1  ;;  %v6824_v11 = vld [vmem:[%s10164_s15] ss:$0 sm:$0xff] }
0x2ec2   :  { %v3314_v15 = vunpack.c.h.b16 %v3307_v14  ;;  %v3313_v25 = vunpack.c.l.b16 %v3307_v14  ;;  %v3315_v22 = vunpack.c.l.b16 %v3308_v38  ;;  %v3316_v0 = vunpack.c.h.b16 %v3308_v38 }
0x2ec3   :  { %7515 = vmatpush3.bf16.msra.mxu1 %v8041_v48 }
0x2ec4   :  { %3321 = vperm.xlu0 %8028, %v3314_v15   ;;  %3318 = vperm.xlu1 %8027, %v3313_v25  }
0x2ec5   :  { %7516 = vmatprep.subr.bf16.mxu1 %v8282_v1 }
0x2ec7   :  { %7517 = vmatpush3.bf16.msra.mxu1 %v8042_v50 }
0x2ec8   :  { %3324 = vperm.xlu0 %8028, %v3315_v22   ;;  %7518 = vmatprep.subr.bf16.mxu1 %v8282_v1 }
0x2ecb   :  { %7519 = vmatpush3.bf16.msra.mxu1 %v8043_v60 }
0x2ecc   :  { %3327 = vperm.xlu0 %8028, %v3316_v0   ;;  %7548 = vmatprep.subr.bf16.mxu1 %v8282_v1 }
0x2f3f   :  { %v3322_v42 = vpop.permute.xlu0 %3321  ;;  %v3319_v28 = vpop.permute.xlu1 %3318 }
0x2f40   :  { %v3336_v30 = vrot.slane %v3322_v42, %v8586_v19  ;;  %v3332_v31 = vrot.slane %v3319_v28, %v8590_v20 }
0x2f42   :  { %v3337_v37 = vsel %vm508_vm4, %v3336_v30, %v3332_v31  ;;  %v8044_v31 = vld [vmem:[%s10166_s17 + $0x8] sm:$0xff]  }
0x2f43   :  { %v3325_v29 = vpop.permute.xlu0 %3324 }
0x2f44   :  { %v3341_v33 = vrot.slane %v3325_v29, %v8590_v20 }
0x2f47   :  { %v3328_v32 = vpop.permute.xlu0 %3327 }
0x2f48   :  { %v3345_v45 = vrot.slane %v3328_v32, %v8586_v19  ;;  %v8045_v32 = vld [vmem:[%s10166_s17] sm:$0xff]  }
0x2f4a   :  { %v3346_v26 = vsel %vm508_vm4, %v3345_v45, %v3341_v33 }
0x2f4b   :  { %v3347_v3 = vsel %vm519_vm5, %v3346_v26, %v3337_v37 }
0x2f4c   :  { %v3348_v40 = vpack.c.b16 %v3347_v3, %v3347_v3 }
0x2f4e   :  { %7507 = vmatmul.mubr.msk.bf16.vlgmr.msra.gmra.mxu0 %vm651_vm8, %v3348_v40  ;;  %v6844_v40 = vld [vmem:[%s10169_s20] ss:$0 sm:$0xff] }
0x2f4f   :  { %7528 = vmatprep.mubr.msk.bf16.mxu0 %vm8283_vm0, %v8282_v1  ;;  %7525 = vmatpush3.bf16.msra.mxu0 %v8037_v13 }
0x2f50   :  { %7526 = vmatprep.subr.bf16.mxu0 %v8282_v1 }
0x2f53   :  { %7527 = vmatpush3.bf16.msra.mxu0 %v8038_v47  ;;  %v8046_v47 = vld [vmem:[%s10167_s18 + $0x8] sm:$0xff]  }
0x2f54   :  { %7532 = vmatprep.subr.bf16.mxu0 %v8282_v1 }
0x2f56   :  { %7529 = vmatmul.mubr.msk.bf16.vlgmr.msra.gmra.mxu0 %vm259_vm2, %v9176_v4  ;;  %v6855_v4 = vld [vmem:[%s10197_s4 + $0x8] sm:$0x3] }
0x2f57   :  { %7536 = vmatprep.mubr.msk.bf16.mxu0 %vm8283_vm0, %v8282_v1  ;;  %3879 = vst.msk [vmem:[#allocation3] sm:$0x3] %vm1187_vm14, %v6855_v4  ;;  %7533 = vmatpush3.bf16.msra.mxu0 %v8044_v31 }
0x2f58   :  { %7534 = vmatprep.subr.bf16.mxu0 %v8282_v1 }
0x2f5b   :  { %7535 = vmatpush3.bf16.msra.mxu0 %v8045_v32 }
0x2f5c   :  { %7540 = vmatprep.subr.bf16.mxu0 %v8282_v1 }
0x300e   :  { %v3394_v51 = vpop.f32.mrf.mxu0 }
0x300f   :  { %3401 = vrot.lane.b32.xlu0 %v3394_v51, %s8284_s27 }
0x3010   :  { %v7508_v52 = vpop.f32.mrf.mxu0 }
0x3012   :  { %v3397_v54 = vpop.f32.mrf.mxu0 }
0x3013   :  { %3570 = vrot.lane.b32.xlu0 %v6835_v61, %s8284_s27 }
0x3014   :  { %v7509_v57 = vpop.f32.mrf.mxu0 }
0x3016   :  { %v3552_v17 = vpop.f32.mrf.mxu0 }
0x3018   :  { %v7530_v63 = vpop.f32.mrf.mxu0 }
0x301a   :  { %v3555_v2 = vpop.f32.mrf.mxu0 }
0x301c   :  { %v7531_v27 = vpop.f32.mrf.mxu0 }
0x3081   :  { %v3402_v7 = vpop.permute.xlu0 %3401 }
0x3082   :  { %v9368_v62 = vsel %vm699_vm9, %v3394_v51, %v3402_v7 }
0x3083   :  { %3406 = vrot.lane.b32.xlu1 %v9368_v62, %s8287_s2 }
0x3085   :  { %v3571_v21 = vpop.permute.xlu0 %3570 }
0x3086   :  { %v3573_v5 = vadd.f32 %v3571_v21, %v3552_v17 }
0x3088   :  { %3575 = vrot.lane.b32.xlu1 %v3573_v5, %s8284_s27 }
0x30f5   :  { %v3407_v8 = vpop.permute.xlu1 %3406 }
0x30f6   :  { %v3409_v9 = vsel %vm709_vm10, %v9355_v58, %v3407_v8 }
0x30f7   :  { %v3426_v10 = vpack.c.bf16 %v3409_v9, %v3409_v9 }
0x30f9   :  { %7521 = vmatmul.mubr.msk.bf16.vlgmr.msra.gmra.mxu1 %vm764_vm11, %v3426_v10 }
0x30fa   :  { %7562 = vmatprep.mubr.msk.bf16.mxu1 %vm8283_vm0, %v8282_v1  ;;  %v3576_v0 = vpop.permute.xlu1 %3575 }
0x31b9   :  { %v3500_v12 = vpop.f32.mrf.mxu1 }
0x31ba   :  { %v3501_v24 = vadd.f32 %v6824_v11, %v3500_v12  ;;  %v8048_v12 = vld [vmem:[%s10160_s11 + $0x30] sm:$0xff]  }
0x31bb   :  { %v7522_v14 = vpop.f32.mrf.mxu1  ;;  %7549 = vmatpush3.bf16.msra.mxu1 %v8048_v12 }
0x31bc   :  { %v3558_v15 = vadd.f32 %v3552_v17, %v3501_v24  ;;  %v6836_v17 = vld [vmem:[%s10168_s19] ss:$0 sm:$0xff]  ;;  %7550 = vmatprep.subr.bf16.mxu1 %v8282_v1 }
0x31bd   :  { %v3503_v25 = vpop.f32.mrf.mxu1 }
0x31be   :  { %v6834_v38 = vmul.f32 -1.442695, %v3558_v15  ;;  %v8050_v15 = vld [vmem:[%s10160_s11 + $0x20] sm:$0xff]   ;;  %v8051_v25 = vld [vmem:[%s10160_s11 + $0x18] sm:$0xff]  }
0x31bf   :  { %v7523_v18 = vpop.f32.mrf.mxu1 }
0x31c0   :  { %8073 = vpow2.f32 %v6834_v38  ;;  %v8052_v38 = vld [vmem:[%s10160_s11 + $0x10] sm:$0xff]   ;;  %v8053_v18 = vld [vmem:[%s10160_s11 + $0x8] sm:$0xff]  }
0x31cd   :  { %v8074_v22 = vpop.eup %8073 }
0x31ce   :  { %v3562_v23 = vadd.f32 1.0, %v8074_v22 }
0x31d0   :  { %8075 = vrcp.f32 %v3562_v23 }
0x31dd   :  { %v8076_v42 = vpop.eup %8075 }
0x31de   :  { %v3578_v28 = vmul.f32 %v8076_v42, %v3576_v0  ;;  %v3585_v45 = vsub.f32 1.0, %v8076_v42  ;;  %v3591_v3 = vmul.f32 %v8076_v42, %v9167_v36  ;;  %v8047_v36 = vld [vmem:[%s10167_s18] sm:$0xff]  }
0x31e0   :  { %3580 = vrot.lane.b32.xlu0 %v3578_v28, %s8284_s27 }
0x3252   :  { %v3581_v29 = vpop.permute.xlu0 %3580 }
0x3253   :  { %v3583_v30 = vadd.f32 %v3581_v29, %v3501_v24  ;;  %v8049_v24 = vld [vmem:[%s10160_s11 + $0x28] sm:$0xff]  }
0x3254   :  { %7551 = vmatpush3.bf16.msra.mxu1 %v8049_v24 }
0x3255   :  { %8077 = vtanh.f32 %v3583_v30  ;;  %7552 = vmatprep.subr.bf16.mxu1 %v8282_v1 }
0x3258   :  { %7553 = vmatpush3.bf16.msra.mxu1 %v8050_v15 }
0x3259   :  { %7554 = vmatprep.subr.bf16.mxu1 %v8282_v1 }
0x325c   :  { %7555 = vmatpush3.bf16.msra.mxu1 %v8051_v25 }
0x325d   :  { %7556 = vmatprep.subr.bf16.mxu1 %v8282_v1 }
0x3260   :  { %7557 = vmatpush3.bf16.msra.mxu1 %v8052_v38 }
0x3261   :  { %7558 = vmatprep.subr.bf16.mxu1 %v8282_v1 }
0x3262   :  { %v8078_v33 = vpop.eup %8077 }
0x3263   :  { %3587 = vrot.lane.b32.xlu1 %v8078_v33, %s8289_s30 }
0x3264   :  { %7559 = vmatpush3.bf16.msra.mxu1 %v8053_v18 }
0x3265   :  { %7560 = vmatprep.subr.bf16.mxu1 %v8282_v1 }
0x3267   :  { %3732 = vrot.lane.b32.xlu1 %v6844_v40, %s8284_s27 }
0x32d5   :  { %v3588_v37 = vpop.permute.xlu1 %3587 }
0x32d6   :  { %v3590_v26 = vmul.f32 %v3588_v37, %v3585_v45 }
0x32d8   :  { %v9395_v13 = vadd.f32 %v3591_v3, %v3590_v26 }
0x32d9   :  { %v3733_v54 = vpop.permute.xlu1 %3732 }
0x32da   :  { %v3603_v44 = vpack.c.bf16 %v9395_v13, %v9395_v13 }
0x32dc   :  { %3611 = vrot.lane.b32.xlu0 %v3603_v44, %s8289_s30 }
0x334e   :  { %v9404_v6 = vpop.permute.xlu0 %3611 }
0x334f   :  { %7537 = vmatmul.mubr.msk.bf16.vlgmr.msra.gmra.mxu0 %vm259_vm2, %v9404_v6 }
0x3350   :  { %7541 = vmatpush3.bf16.msra.mxu0 %v8046_v47  ;;  %7544 = vmatprep.mubr.msk.bf16.mxu0 %vm8283_vm0, %v8282_v1 }
0x3351   :  { %7542 = vmatprep.subr.bf16.mxu0 %v8282_v1 }
0x3354   :  { %7543 = vmatpush3.bf16.msra.mxu0 %v8047_v36 }
0x3357   :  { %7545 = vmatmul.mubr.msk.bf16.vlgmr.msra.gmra.mxu0 %vm259_vm2, %v9266_v43 }
0x340f   :  { %v3662_v48 = vpop.f32.mrf.mxu0 }
0x3410   :  { %v3663_v63 = vadd.f32 %v6836_v17, %v3662_v48 }
0x3411   :  { %v7538_v50 = vpop.f32.mrf.mxu0 }
0x3413   :  { %v3665_v51 = vpop.f32.mrf.mxu0 }
0x3415   :  { %v7539_v52 = vpop.f32.mrf.mxu0 }
0x3417   :  { %v3714_v57 = vpop.f32.mrf.mxu0 }
0x3418   :  { %v3735_v4 = vadd.f32 %v3733_v54, %v3714_v57  ;;  %v3720_v2 = vadd.f32 %v3714_v57, %v3663_v63 }
0x3419   :  { %v7546_v60 = vpop.f32.mrf.mxu0 }
0x341a   :  { %3737 = vrot.lane.b32.xlu0 %v3735_v4, %s8284_s27  ;;  %v6843_v27 = vmul.f32 -1.442695, %v3720_v2 }
0x341b   :  { %v3717_v61 = vpop.f32.mrf.mxu0 }
0x341c   :  { %8079 = vpow2.f32 %v6843_v27 }
0x341d   :  { %v7547_v7 = vpop.f32.mrf.mxu0 }
0x3429   :  { %v8080_v43 = vpop.eup %8079 }
0x342a   :  { %v3724_v21 = vadd.f32 1.0, %v8080_v43 }
0x342c   :  { %8081 = vrcp.f32 %v3724_v21 }
0x3439   :  { %v8082_v5 = vpop.eup %8081 }
0x343a   :  { %v3747_v22 = vsub.f32 1.0, %v8082_v5  ;;  %v3753_v0 = vmul.f32 %v8082_v5, %v9224_v49  ;;  %v6845_v49 = vld [vmem:[%s10161_s12] ss:$0 sm:$0xff] }
0x348c   :  { %v3738_v8 = vpop.permute.xlu0 %3737 }
0x348d   :  { %v3740_v9 = vmul.f32 %v8082_v5, %v3738_v8 }
0x348f   :  { %3742 = vrot.lane.b32.xlu1 %v3740_v9, %s8284_s27 }
0x3501   :  { %v3743_v10 = vpop.permute.xlu1 %3742 }
0x3502   :  { %v3745_v11 = vadd.f32 %v3743_v10, %v3663_v63 }
0x3504   :  { %8083 = vtanh.f32 %v3745_v11 }
0x3511   :  { %v8084_v14 = vpop.eup %8083 }
0x3512   :  { %3749 = vrot.lane.b32.xlu0 %v8084_v14, %s8289_s30 }
0x3516   :  { %3763 = vrot.lane.b32.xlu0 %v9355_v58, %s8289_s30  ;;  %v8054_v58 = vld [vmem:[%s10160_s11] sm:$0xff]  }
0x3517   :  { %7561 = vmatpush3.bf16.msra.mxu1 %v8054_v58 }
0x3584   :  { %v3750_v23 = vpop.permute.xlu0 %3749 }
0x3585   :  { %v3752_v42 = vmul.f32 %v3750_v23, %v3747_v22 }
0x3587   :  { %v9452_v28 = vadd.f32 %v3753_v0, %v3752_v42 }
0x3588   :  { %v3764_v33 = vpop.permute.xlu0 %3763 }
0x3589   :  { %v8029_v29 = vpack.i.bf16 %v9368_v62, %v9452_v28 }
0x358b   :  { %8030 = vrot.lane.b32.xlu1 %v8029_v29, %s8289_s30 }
0x35fd   :  { %v8031_v30 = vpop.permute.xlu1 %8030 }
0x35fe   :  { %v8033_v31 = vunpack.i.h.bf16 %v8031_v30  ;;  %v8032_v32 = vunpack.i.l.bf16 %v8031_v30 }
0x3600   :  { %v3766_v45 = vsel %vm259_vm2, %v8032_v32, %v8033_v31 }
0x3601   :  { %v3767_v37 = vsel %vm10198_vm13, %v3766_v45, %v3764_v33 }
0x3602   :  { %v3768_v26 = vpack.c.bf16 %v3767_v37, %v3767_v37 }
0x3604   :  { %7563 = vmatmul.mubr.msk.bf16.vlgmr.msra.gmra.mxu1 %vm10199_vm1, %v3768_v26 }
0x36c4   :  { %v3869_v3 = vpop.f32.mrf.mxu1 }
0x36c5   :  { %v3870_v62 = vadd.f32 %v6845_v49, %v3869_v3 }
0x36c6   :  { %v7564_v40 = vpop.f32.mrf.mxu1  ;;  %3884 = sbr.rel (%p6857_p8) target bundleno = 14659 (0x3943), region = 105 }
0x36c7   :  { %6854 = vst [vmem:[%s10170_s21 + $0x8] sm:$0x3] %v3870_v62 }
0x36c8   :  { %v3872_v44 = vpop.f32.mrf.mxu1 }
0x36ca   :  { %v7565_v47 = vpop.f32.mrf.mxu1 }
0x36cb   :  { %vm3885_vm12 = vcmask 189440   ;;  %v8296_v57 = vmov 0.0   ;;  %v8085_v17 = vld [vmem:[%s10159_s10 + $0x8] ss:$0 sps:$4 sm:$0xff]   ;;  %vm3926_vm1 = vcmask 1043456   ;;  %v8086_v2 = vld [vmem:[%s10159_s10] sm:$0xff]  }
0x36cc   :  { %v3886_v36 = vsel %vm3885_vm12, %v3870_v62, -inf  ;;  %7566 = vmatprep.subr.bf16.mxu0 %v8296_v57  ;;  %v3928_v63 = vsel %vm3926_vm1, %v8085_v17, 0 }
0x36cd   :  { %3887 = vmax.xlane.f32.xlu0 %v3886_v36  ;;  %7567 = vmatpush3.bf16.msra.mxu0 %v3928_v63 }
0x36ce   :  { %7568 = vmatprep.subr.bf16.mxu0 %v8296_v57 }
0x36d1   :  { %7569 = vmatpush3.bf16.msra.mxu0 %v8086_v2 }
0x3756   :  { %v3888_v48 = vpop.xlane.xlu0 %3887 }
0x3757   :  { %vm3889_vm15 = vcmp.eq.f32.partialorder %v3870_v62, %v3888_v48 }
0x3758   :  { %v3890_v50 = vsel %vm3889_vm15, %v8582_v16, 24 }
0x3759   :  { %v3891_v51 = vsel %vm3885_vm12, %v3890_v50, 2147483647  ;;  %vm8297_vm12 = vmmov 0  }
0x375a   :  { %v3893_v52 = vshra.s32 %v3891_v51, 16  ;;  %v3892_v4 = vand.u32 65535, %v3891_v51  ;;  %7570 = vmatprep.mubr.msk.bf16.mxu0 %vm8297_vm12, %v8296_v57 }
0x375c   :  { %v3895_v54 = vcvt.s32.f32 %v3893_v52  ;;  %v3894_v61 = vcvt.s32.f32 %v3892_v4 }
0x375e   :  { %3896 = vmin.xlane.f32.xlu0 %v3895_v54 }
0x37e7   :  { %v3897_v60 = vpop.xlane.xlu0 %3896 }
0x37e8   :  { %vm3898_vm13 = vcmp.eq.f32.partialorder %v3895_v54, %v3897_v60  ;;  %v3903_v27 = vcvt.f32.s32 %v3897_v60 }
0x37e9   :  { %v3899_v7 = vsel %vm3898_vm13, %v3894_v61, inf  ;;  %vm3922_vm13 = vcmask 195584  }
0x37ea   :  { %3900 = vmin.xlane.f32.xlu1 %v3899_v7  ;;  %v3904_v21 = vshll.u32 %v3903_v27, 16 }
0x3873   :  { %v3901_v43 = vpop.xlane.xlu1 %3900 }
0x3874   :  { %v3902_v5 = vcvt.f32.s32 %v3901_v43 }
0x3876   :  { %v3905_v8 = vadd.s32 %v3904_v21, %v3902_v5 }
0x3878   :  { %vm3906_vm15 = vcmp.eq.s32.totalorder %v8582_v16, %v3905_v8 }
0x3879   :  { %v6858_v9 = vsel %vm3906_vm15, 1.0, %v8296_v57 }
0x387a   :  { %v3909_v10 = vpack.c.bf16 %v6858_v9, %v6858_v9 }
0x387c   :  { %7571 = vmatmul.mubr.msk.bf16.vlgmr.msra.gmra.mxu0 %vm3922_vm13, %v3909_v10 }
0x393c   :  { %v3964_v11 = vpop.f32.mrf.mxu0 }
0x393d   :  { %3970 = vst.msk [vmem:[#allocation3] sm:$0x3] %vm1187_vm14, %v3964_v11 }
0x393e   :  { %v7572_v12 = vpop.f32.mrf.mxu0 }
0x3940   :  { %v3967_v24 = vpop.f32.mrf.mxu0 }
0x3942   :  { %v7573_v14 = vpop.f32.mrf.mxu0 }
0x3943 PF:  { %v3972_v15 = vpack.c.bf16 %v9452_v28, %v9452_v28  ;;  %7574 = vmatprep.subr.bf16.mxu0 %v8282_v1  ;;  %v8094_v25 = vld [vmem:[%s10155_s6 + $0x8] sm:$0xff]   ;;  %7578 = vmatprep.mubr.msk.bf16.mxu0 %vm8283_vm0, %v8282_v1  ;;  %v8095_v38 = vld [vmem:[%s10155_s6] sm:$0xff]   ;;  %s10200_s8 = sld [smem:[#allocation10_spill]]  ;;  %vm10202_vm1 = vcmask 785408   ;;  %vm10203_vm12 = vcmask 916480  }
0x3944   :  { %8088 = vset.pattern.permute.xlu0 %v8286_v34  ;;  %8087 = vset.pattern.permute.xlu1 %v8286_v34  ;;  %v6865_v3 = vld [vmem:[%s10158_s9] ss:$0 sm:$0xff]  ;;  %s10201_s5 = sld [smem:[#allocation8_spill]] }
0x3945   :  { %3978 = vrot.lane.b32.xlu0 %v3972_v15, %s8289_s30  ;;  %7575 = vmatpush3.bf16.msra.mxu0 %v8094_v25  ;;  %s6900_s4 = sld [smem:[#allocation4 + $0x5]] }
0x3946   :  { %7576 = vmatprep.subr.bf16.mxu0 %v8282_v1  ;;  %7588 = vmatprep.subr.bf16.mxu1 %v8282_v1 }
0x3947   :  { %7598 = vmatprep.mubr.msk.bf16.mxu1 %vm8283_vm0, %v8282_v1 }
0x3949   :  { %7577 = vmatpush3.bf16.msra.mxu0 %v8095_v38 }
0x394a   :  { %7582 = vmatprep.subr.bf16.mxu0 %v8282_v1 }
0x394b   :  { %p6901_p9 = scmp.ne.s32.totalorder %s6900_s4, 0 }
0x39b7   :  { %v9494_v18 = vpop.permute.xlu0 %3978 }
0x39b8   :  { %7579 = vmatmul.mubr.msk.bf16.vlgmr.msra.gmra.mxu0 %vm259_vm2, %v9494_v18 }
0x39b9   :  { %7584 = vmatprep.mubr.msk.bf16.mxu0 %vm8283_vm0, %v8282_v1 }
0x3a78   :  { %v4029_v58 = vpop.f32.mrf.mxu0 }
0x3a79   :  { %v4042_v22 = vrot.slane %v4029_v58, %v8550_v41 }
0x3a7a   :  { %v7580_v23 = vpop.f32.mrf.mxu0 }
0x3a7b   :  { %v4043_v0 = vcombine.high %v4042_v22, %v4042_v22  ;;  %v4050_v42 = vrot.slane %v4042_v22, %v8550_v41 }
0x3a7c   :  { %v4032_v29 = vpop.f32.mrf.mxu0 }
0x3a7d   :  { %v4057_v30 = vrot.slane %v4043_v0, %v8550_v41  ;;  %v4061_v31 = vrot.slane %v4050_v42, %v8557_v46 }
0x3a7e   :  { %v7581_v32 = vpop.f32.mrf.mxu0 }
0x3a7f   :  { %v4065_v33 = vrot.slane %v4057_v30, %v8557_v46  ;;  %v4068_v45 = vadd.f32 %v4061_v31, %v8560_v53  ;;  %v4069_v37 = vadd.f32 %v4061_v31, %v8562_v55 }
0x3a81   :  { %v4070_v26 = vadd.f32 %v4065_v33, %v8564_v56  ;;  %8115 = vtanh.f32 %v4068_v45  ;;  %v4071_v49 = vadd.f32 %v4065_v33, %v8568_v59 }
0x3a82   :  { %8117 = vtanh.f32 %v4069_v37 }
0x3a83   :  { %8119 = vtanh.f32 %v4070_v26 }
0x3a84   :  { %8121 = vtanh.f32 %v4071_v49 }
0x3a8e   :  { %v8116_v62 = vpop.eup %8115 }
0x3a8f   :  { %v8118_v40 = vpop.eup %8117  ;;  %v4083_v44 = vmul.f32 %v8116_v62, %v6865_v3 }
0x3a90   :  { %v8120_v47 = vpop.eup %8119  ;;  %v4084_v36 = vmul.f32 %v8118_v40, %v6865_v3 }
0x3a91   :  { %v4087_v48 = vsel %vm259_vm2, %v4083_v44, 0.0  ;;  %v4085_v51 = vmul.f32 %v8120_v47, %v6865_v3  ;;  %v8122_v52 = vpop.eup %8121 }
0x3a92   :  { %v4090_v50 = vsel %vm261_vm3, %v4084_v36, 0.0  ;;  %4088 = vadd.xlane.f32.xlu0 %v4087_v48  ;;  %v4086_v57 = vmul.f32 %v8122_v52, %v6865_v3 }
0x3a93   :  { %4091 = vadd.xlane.f32.xlu1 %v4090_v50  ;;  %v4093_v54 = vsel %vm259_vm2, %v4085_v51, 0.0 }
0x3a94   :  { %v4096_v4 = vsel %vm261_vm3, %v4086_v57, 0.0 }
0x3a97   :  { %4094 = vadd.xlane.f32.xlu1 %v4093_v54 }
0x3a9b   :  { %4097 = vadd.xlane.f32.xlu1 %v4096_v4 }
0x3b1b   :  { %v4089_v61 = vpop.xlane.xlu0 %4088 }
0x3b1c   :  { %v4092_v60 = vpop.xlane.xlu1 %4091  ;;  %v4106_v63 = vrot.slane %v4089_v61, %v8590_v20 }
0x3b1d   :  { %v4110_v17 = vrot.slane %v4092_v60, %v8586_v19 }
0x3b1f   :  { %v4111_v21 = vsel %vm508_vm4, %v4110_v17, %v4106_v63  ;;  %v8096_v63 = vld [vmem:[%s10200_s8] sm:$0x1f]  }
0x3b20   :  { %v4095_v7 = vpop.xlane.xlu1 %4094 }
0x3b21   :  { %v4115_v27 = vrot.slane %v4095_v7, %v8590_v20 }
0x3b24   :  { %v4098_v2 = vpop.xlane.xlu1 %4097 }
0x3b25   :  { %v4119_v43 = vrot.slane %v4098_v2, %v8586_v19 }
0x3b27   :  { %v4120_v5 = vsel %vm508_vm4, %v4119_v43, %v4115_v27  ;;  %v4255_v27 = vsel %vm655_vm7, %v8096_v63, 0 }
0x3b28   :  { %v4121_v8 = vsel %vm519_vm5, %v4120_v5, %v4111_v21  ;;  %7583 = vmatpush3.bf16.msra.mxu0 %v4255_v27 }
0x3b29   :  { %v4123_v9 = vsel %vm522_vm6, %v4121_v8, -inf  ;;  %7602 = vmatprep.subr.bf16.mxu0 %v8282_v1 }
0x3b2a   :  { %4124 = vmax.xlane.f32.xlu1 %v4123_v9 }
0x3bb3   :  { %v4125_v10 = vpop.xlane.xlu1 %4124 }
0x3bb4   :  { %v4130_v11 = vrot.slane %v4125_v10, %v8557_v46  ;;  %v4134_v12 = vrot.slane %v4125_v10, %v8603_v35 }
0x3bb6   :  { %v4137_v24 = vsub.f32 %v4089_v61, %v4130_v11  ;;  %v4138_v14 = vsub.f32 %v4092_v60, %v4130_v11  ;;  %v4139_v15 = vsub.f32 %v4095_v7, %v4134_v12  ;;  %v4140_v58 = vsub.f32 %v4098_v2, %v4134_v12 }
0x3bb8   :  { %v4141_v25 = vmul.f32 1.442695, %v4137_v24  ;;  %v4145_v38 = vmul.f32 1.442695, %v4139_v15  ;;  %v4143_v22 = vmul.f32 1.442695, %v4138_v14 }
0x3bb9   :  { %v4147_v23 = vmul.f32 1.442695, %v4140_v58  ;;  %v8097_v58 = vld [vmem:[%s10163_s14 + $0x8] sm:$0xff]  }
0x3bba   :  { %8123 = vpow2.f32 %v4141_v25 }
0x3bbb   :  { %8125 = vpow2.f32 %v4145_v38 }
0x3bbc   :  { %8127 = vpow2.f32 %v4143_v22  ;;  %v8099_v22 = vld [vmem:[%s10162_s13 + $0x20] sm:$0xff]  }
0x3bbd   :  { %8129 = vpow2.f32 %v4147_v23  ;;  %v8098_v23 = vld [vmem:[%s10163_s14] sm:$0xff]   ;;  %7589 = vmatpush3.bf16.msra.mxu1 %v8099_v22 }
0x3bbe   :  { %7590 = vmatprep.subr.bf16.mxu1 %v8282_v1 }
0x3bc7   :  { %v8124_v0 = vpop.eup %8123 }
0x3bc8   :  { %4154 = vperm.xlu1 %8087, %v8124_v0   ;;  %v8126_v42 = vpop.eup %8125 }
0x3bc9   :  { %4160 = vperm.xlu0 %8088, %v8126_v42   ;;  %v8128_v29 = vpop.eup %8127 }
0x3bca   :  { %v8130_v30 = vpop.eup %8129 }
0x3bcc   :  { %4157 = vperm.xlu1 %8087, %v8128_v29  }
0x3bd0   :  { %4163 = vperm.xlu1 %8087, %v8130_v30  }
0x3c43   :  { %v4155_v31 = vpop.permute.xlu1 %4154 }
0x3c44   :  { %v4161_v33 = vpop.permute.xlu0 %4160  ;;  %v4168_v49 = vrot.slane %v4155_v31, %v8590_v20 }
0x3c45   :  { %v4177_v26 = vrot.slane %v4161_v33, %v8590_v20 }
0x3c47   :  { %v4158_v32 = vpop.permute.xlu1 %4157 }
0x3c48   :  { %v4172_v45 = vrot.slane %v4158_v32, %v8586_v19 }
0x3c4a   :  { %v4173_v62 = vsel %vm508_vm4, %v4172_v45, %v4168_v49  ;;  %v9583_v45 = vld [vmem:[#allocation3] sm:$0x3] }
0x3c4b   :  { %v4164_v37 = vpop.permute.xlu1 %4163 }
0x3c4c   :  { %v4181_v3 = vrot.slane %v4164_v37, %v8586_v19  ;;  %v8103_v37 = vld [vmem:[%s10162_s13] sm:$0xff]  }
0x3c4e   :  { %v4182_v40 = vsel %vm508_vm4, %v4181_v3, %v4177_v26  ;;  %v6879_v26 = vld [vmem:[%s10165_s16] ss:$0 sm:$0xff] }
0x3c4f   :  { %v4183_v44 = vsel %vm519_vm5, %v4182_v40, %v4173_v62 }
0x3c50   :  { %v4185_v47 = vsel %vm522_vm6, %v4183_v44, 0.0 }
0x3c51   :  { %4186 = vadd.xlane.f32.xlu1 %v4185_v47 }
0x3cda   :  { %v4187_v36 = vpop.xlane.xlu1 %4186 }
0x3cdb   :  { %8131 = vrcp.f32 %v4187_v36 }
0x3ce8   :  { %v8132_v48 = vpop.eup %8131 }
0x3ce9   :  { %v4193_v50 = vrot.slane %v8132_v48, %v8557_v46  ;;  %v4197_v51 = vrot.slane %v8132_v48, %v8603_v35 }
0x3ceb   :  { %v4200_v52 = vmul.f32 %v8124_v0, %v4193_v50  ;;  %v4201_v54 = vmul.f32 %v8128_v29, %v4193_v50  ;;  %v4202_v57 = vmul.f32 %v8126_v42, %v4197_v51  ;;  %v4203_v4 = vmul.f32 %v8130_v30, %v4197_v51  ;;  %v8100_v0 = vld [vmem:[%s10162_s13 + $0x18] sm:$0xff]   ;;  %v8101_v42 = vld [vmem:[%s10162_s13 + $0x10] sm:$0xff]   ;;  %v8102_v29 = vld [vmem:[%s10162_s13 + $0x8] sm:$0xff]  }
0x3cec   :  { %7591 = vmatpush3.bf16.msra.mxu1 %v8100_v0 }
0x3ced   :  { %v4204_v60 = vpack.c.bf16 %v4201_v54, %v4200_v52  ;;  %v4205_v17 = vpack.c.bf16 %v4203_v4, %v4202_v57  ;;  %7592 = vmatprep.subr.bf16.mxu1 %v8282_v1  ;;  %v6868_v54 = vld [vmem:[%s10164_s15] ss:$0 sm:$0xff] }
0x3cef   :  { %v4211_v61 = vunpack.c.h.b16 %v4204_v60  ;;  %v4210_v7 = vunpack.c.l.b16 %v4204_v60  ;;  %v4212_v2 = vunpack.c.l.b16 %v4205_v17  ;;  %v4213_v43 = vunpack.c.h.b16 %v4205_v17 }
0x3cf0   :  { %7593 = vmatpush3.bf16.msra.mxu1 %v8101_v42 }
0x3cf1   :  { %4218 = vperm.xlu0 %8088, %v4211_v61   ;;  %4215 = vperm.xlu1 %8087, %v4210_v7  }
0x3cf2   :  { %7594 = vmatprep.subr.bf16.mxu1 %v8282_v1 }
0x3cf4   :  { %7595 = vmatpush3.bf16.msra.mxu1 %v8102_v29 }
0x3cf5   :  { %4221 = vperm.xlu0 %8088, %v4212_v2   ;;  %7596 = vmatprep.subr.bf16.mxu1 %v8282_v1 }
0x3cf8   :  { %7597 = vmatpush3.bf16.msra.mxu1 %v8103_v37 }
0x3cf9   :  { %4224 = vperm.xlu0 %8088, %v4213_v43   ;;  %7626 = vmatprep.subr.bf16.mxu1 %v8282_v1 }
0x3d6c   :  { %v4219_v21 = vpop.permute.xlu0 %4218  ;;  %v4216_v5 = vpop.permute.xlu1 %4215 }
0x3d6d   :  { %v4233_v9 = vrot.slane %v4219_v21, %v8586_v19  ;;  %v4229_v10 = vrot.slane %v4216_v5, %v8590_v20 }
0x3d6f   :  { %v4234_v14 = vsel %vm508_vm4, %v4233_v9, %v4229_v10  ;;  %v8104_v10 = vld [vmem:[%s10166_s17 + $0x8] sm:$0xff]  }
0x3d70   :  { %v4222_v8 = vpop.permute.xlu0 %4221 }
0x3d71   :  { %v4238_v12 = vrot.slane %v4222_v8, %v8590_v20 }
0x3d74   :  { %v4225_v11 = vpop.permute.xlu0 %4224 }
0x3d75   :  { %v4242_v24 = vrot.slane %v4225_v11, %v8586_v19  ;;  %v8105_v11 = vld [vmem:[%s10166_s17] sm:$0xff]  }
0x3d77   :  { %v4243_v15 = vsel %vm508_vm4, %v4242_v24, %v4238_v12 }
0x3d78   :  { %v4244_v25 = vsel %vm519_vm5, %v4243_v15, %v4234_v14 }
0x3d79   :  { %v4245_v38 = vpack.c.b16 %v4244_v25, %v4244_v25 }
0x3d7b   :  { %7585 = vmatmul.mubr.msk.bf16.vlgmr.msra.gmra.mxu0 %vm651_vm8, %v4245_v38  ;;  %v6888_v38 = vld [vmem:[%s10169_s20] ss:$0 sm:$0xff] }
0x3d7c   :  { %7606 = vmatprep.mubr.msk.bf16.mxu0 %vm8283_vm0, %v8282_v1  ;;  %7603 = vmatpush3.bf16.msra.mxu0 %v8097_v58 }
0x3d7d   :  { %7604 = vmatprep.subr.bf16.mxu0 %v8282_v1 }
0x3d80   :  { %7605 = vmatpush3.bf16.msra.mxu0 %v8098_v23  ;;  %v8106_v23 = vld [vmem:[%s10167_s18 + $0x8] sm:$0xff]  }
0x3d81   :  { %7610 = vmatprep.subr.bf16.mxu0 %v8282_v1 }
0x3d83   :  { %7607 = vmatmul.mubr.msk.bf16.vlgmr.msra.gmra.mxu0 %vm259_vm2, %v9404_v6  ;;  %v6899_v6 = vld [vmem:[%s10201_s5 + $0xa] sm:$0x3] }
0x3d84   :  { %7614 = vmatprep.mubr.msk.bf16.mxu0 %vm8283_vm0, %v8282_v1  ;;  %4776 = vst.msk [vmem:[#allocation3] sm:$0x3] %vm1187_vm14, %v6899_v6  ;;  %7611 = vmatpush3.bf16.msra.mxu0 %v8104_v10 }
0x3d85   :  { %7612 = vmatprep.subr.bf16.mxu0 %v8282_v1 }
0x3d88   :  { %7613 = vmatpush3.bf16.msra.mxu0 %v8105_v11 }
0x3d89   :  { %7618 = vmatprep.subr.bf16.mxu0 %v8282_v1 }
0x3e3b   :  { %v4291_v30 = vpop.f32.mrf.mxu0 }
0x3e3c   :  { %4298 = vrot.lane.b32.xlu0 %v4291_v30, %s8284_s27 }
0x3e3d   :  { %v7586_v31 = vpop.f32.mrf.mxu0 }
0x3e3f   :  { %v4294_v32 = vpop.f32.mrf.mxu0 }
0x3e40   :  { %4467 = vrot.lane.b32.xlu0 %v6879_v26, %s8284_s27 }
0x3e41   :  { %v7587_v33 = vpop.f32.mrf.mxu0 }
0x3e43   :  { %v4449_v62 = vpop.f32.mrf.mxu0 }
0x3e45   :  { %v7608_v40 = vpop.f32.mrf.mxu0 }
0x3e47   :  { %v4452_v44 = vpop.f32.mrf.mxu0 }
0x3e49   :  { %v7609_v47 = vpop.f32.mrf.mxu0 }
0x3eae   :  { %v4299_v49 = vpop.permute.xlu0 %4298 }
0x3eaf   :  { %v9596_v3 = vsel %vm699_vm9, %v4291_v30, %v4299_v49 }
0x3eb0   :  { %4303 = vrot.lane.b32.xlu1 %v9596_v3, %s8287_s2 }
0x3eb2   :  { %v4468_v36 = vpop.permute.xlu0 %4467 }
0x3eb3   :  { %v4470_v48 = vadd.f32 %v4468_v36, %v4449_v62 }
0x3eb5   :  { %4472 = vrot.lane.b32.xlu1 %v4470_v48, %s8284_s27 }
0x3f22   :  { %v4304_v50 = vpop.permute.xlu1 %4303 }
0x3f23   :  { %v4306_v51 = vsel %vm709_vm10, %v9583_v45, %v4304_v50 }
0x3f24   :  { %v4323_v52 = vpack.c.bf16 %v4306_v51, %v4306_v51 }
0x3f26   :  { %7599 = vmatmul.mubr.msk.bf16.vlgmr.msra.gmra.mxu1 %vm764_vm11, %v4323_v52 }
0x3f27   :  { %7640 = vmatprep.mubr.msk.bf16.mxu1 %vm8283_vm0, %v8282_v1  ;;  %v4473_v43 = vpop.permute.xlu1 %4472 }
0x3fe6   :  { %v4397_v57 = vpop.f32.mrf.mxu1 }
0x3fe7   :  { %v4398_v4 = vadd.f32 %v6868_v54, %v4397_v57  ;;  %v8108_v57 = vld [vmem:[%s10160_s11 + $0x30] sm:$0xff]  }
0x3fe8   :  { %v7600_v60 = vpop.f32.mrf.mxu1  ;;  %7627 = vmatpush3.bf16.msra.mxu1 %v8108_v57 }
0x3fe9   :  { %v4455_v61 = vadd.f32 %v4449_v62, %v4398_v4  ;;  %v6880_v62 = vld [vmem:[%s10168_s19] ss:$0 sm:$0xff]  ;;  %7628 = vmatprep.subr.bf16.mxu1 %v8282_v1 }
0x3fea   :  { %v4400_v7 = vpop.f32.mrf.mxu1 }
0x3feb   :  { %v6878_v17 = vmul.f32 -1.442695, %v4455_v61  ;;  %v8110_v61 = vld [vmem:[%s10160_s11 + $0x20] sm:$0xff]   ;;  %v8111_v7 = vld [vmem:[%s10160_s11 + $0x18] sm:$0xff]  }
0x3fec   :  { %v7601_v63 = vpop.f32.mrf.mxu1 }
0x3fed   :  { %8133 = vpow2.f32 %v6878_v17  ;;  %v8112_v17 = vld [vmem:[%s10160_s11 + $0x10] sm:$0xff]   ;;  %v8113_v63 = vld [vmem:[%s10160_s11 + $0x8] sm:$0xff]  }
0x3ffa   :  { %v8134_v2 = vpop.eup %8133 }
0x3ffb   :  { %v4459_v27 = vadd.f32 1.0, %v8134_v2 }
0x3ffd   :  { %8135 = vrcp.f32 %v4459_v27 }
0x400a   :  { %v8136_v21 = vpop.eup %8135 }
0x400b   :  { %v4475_v5 = vmul.f32 %v8136_v21, %v4473_v43  ;;  %v4482_v24 = vsub.f32 1.0, %v8136_v21  ;;  %v4488_v25 = vmul.f32 %v8136_v21, %v9395_v13  ;;  %v8107_v13 = vld [vmem:[%s10167_s18] sm:$0xff]  }
0x400d   :  { %4477 = vrot.lane.b32.xlu0 %v4475_v5, %s8284_s27 }
0x407f   :  { %v4478_v8 = vpop.permute.xlu0 %4477 }
0x4080   :  { %v4480_v9 = vadd.f32 %v4478_v8, %v4398_v4  ;;  %v8109_v4 = vld [vmem:[%s10160_s11 + $0x28] sm:$0xff]  }
0x4081   :  { %7629 = vmatpush3.bf16.msra.mxu1 %v8109_v4 }
0x4082   :  { %8137 = vtanh.f32 %v4480_v9  ;;  %7630 = vmatprep.subr.bf16.mxu1 %v8282_v1 }
0x4085   :  { %7631 = vmatpush3.bf16.msra.mxu1 %v8110_v61 }
0x4086   :  { %7632 = vmatprep.subr.bf16.mxu1 %v8282_v1 }
0x4089   :  { %7633 = vmatpush3.bf16.msra.mxu1 %v8111_v7 }
0x408a   :  { %7634 = vmatprep.subr.bf16.mxu1 %v8282_v1 }
0x408d   :  { %7635 = vmatpush3.bf16.msra.mxu1 %v8112_v17 }
0x408e   :  { %7636 = vmatprep.subr.bf16.mxu1 %v8282_v1 }
0x408f   :  { %v8138_v12 = vpop.eup %8137 }
0x4090   :  { %4484 = vrot.lane.b32.xlu1 %v8138_v12, %s8289_s30 }
0x4091   :  { %7637 = vmatpush3.bf16.msra.mxu1 %v8113_v63 }
0x4092   :  { %7638 = vmatprep.subr.bf16.mxu1 %v8282_v1 }
0x4094   :  { %4629 = vrot.lane.b32.xlu1 %v6888_v38, %s8284_s27 }
0x4102   :  { %v4485_v14 = vpop.permute.xlu1 %4484 }
0x4103   :  { %v4487_v15 = vmul.f32 %v4485_v14, %v4482_v24 }
0x4105   :  { %v9623_v58 = vadd.f32 %v4488_v25, %v4487_v15 }
0x4106   :  { %v4630_v32 = vpop.permute.xlu1 %4629 }
0x4107   :  { %v4500_v22 = vpack.c.bf16 %v9623_v58, %v9623_v58 }
0x4109   :  { %4508 = vrot.lane.b32.xlu0 %v4500_v22, %s8289_s30 }
0x417b   :  { %v9632_v0 = vpop.permute.xlu0 %4508 }
0x417c   :  { %7615 = vmatmul.mubr.msk.bf16.vlgmr.msra.gmra.mxu0 %vm259_vm2, %v9632_v0 }
0x417d   :  { %7619 = vmatpush3.bf16.msra.mxu0 %v8106_v23  ;;  %7622 = vmatprep.mubr.msk.bf16.mxu0 %vm8283_vm0, %v8282_v1 }
0x417e   :  { %7620 = vmatprep.subr.bf16.mxu0 %v8282_v1 }
0x4181   :  { %7621 = vmatpush3.bf16.msra.mxu0 %v8107_v13 }
0x4184   :  { %7623 = vmatmul.mubr.msk.bf16.vlgmr.msra.gmra.mxu0 %vm259_vm2, %v9494_v18 }
0x423c   :  { %v4559_v42 = vpop.f32.mrf.mxu0 }
0x423d   :  { %v4560_v40 = vadd.f32 %v6880_v62, %v4559_v42 }
0x423e   :  { %v7616_v29 = vpop.f32.mrf.mxu0 }
0x4240   :  { %v4562_v30 = vpop.f32.mrf.mxu0 }
0x4242   :  { %v7617_v31 = vpop.f32.mrf.mxu0 }
0x4244   :  { %v4611_v33 = vpop.f32.mrf.mxu0 }
0x4245   :  { %v4632_v6 = vadd.f32 %v4630_v32, %v4611_v33  ;;  %v4617_v44 = vadd.f32 %v4611_v33, %v4560_v40 }
0x4246   :  { %v7624_v37 = vpop.f32.mrf.mxu0 }
0x4247   :  { %4634 = vrot.lane.b32.xlu0 %v4632_v6, %s8284_s27  ;;  %v6887_v47 = vmul.f32 -1.442695, %v4617_v44 }
0x4248   :  { %v4614_v26 = vpop.f32.mrf.mxu0 }
0x4249   :  { %8139 = vpow2.f32 %v6887_v47 }
0x424a   :  { %v7625_v49 = vpop.f32.mrf.mxu0 }
0x4256   :  { %v8140_v18 = vpop.eup %8139 }
0x4257   :  { %v4621_v36 = vadd.f32 1.0, %v8140_v18 }
0x4259   :  { %8141 = vrcp.f32 %v4621_v36 }
0x4266   :  { %v8142_v48 = vpop.eup %8141 }
0x4267   :  { %v4644_v2 = vsub.f32 1.0, %v8142_v48  ;;  %v4650_v43 = vmul.f32 %v8142_v48, %v9452_v28  ;;  %v6889_v28 = vld [vmem:[%s10161_s12] ss:$0 sm:$0xff] }
0x42b9   :  { %v4635_v50 = vpop.permute.xlu0 %4634 }
0x42ba   :  { %v4637_v51 = vmul.f32 %v8142_v48, %v4635_v50 }
0x42bc   :  { %4639 = vrot.lane.b32.xlu1 %v4637_v51, %s8284_s27 }
0x432e   :  { %v4640_v52 = vpop.permute.xlu1 %4639 }
0x432f   :  { %v4642_v54 = vadd.f32 %v4640_v52, %v4560_v40 }
0x4331   :  { %8143 = vtanh.f32 %v4642_v54 }
0x433e   :  { %v8144_v60 = vpop.eup %8143 }
0x433f   :  { %4646 = vrot.lane.b32.xlu0 %v8144_v60, %s8289_s30 }
0x4343   :  { %4660 = vrot.lane.b32.xlu0 %v9583_v45, %s8289_s30  ;;  %v8114_v45 = vld [vmem:[%s10160_s11] sm:$0xff]  }
0x4344   :  { %7639 = vmatpush3.bf16.msra.mxu1 %v8114_v45 }
0x43b1   :  { %v4647_v27 = vpop.permute.xlu0 %4646 }
0x43b2   :  { %v4649_v21 = vmul.f32 %v4647_v27, %v4644_v2 }
0x43b4   :  { %v9680_v5 = vadd.f32 %v4650_v43, %v4649_v21 }
0x43b5   :  { %v4661_v12 = vpop.permute.xlu0 %4660 }
0x43b6   :  { %v8089_v8 = vpack.i.bf16 %v9596_v3, %v9680_v5 }
0x43b8   :  { %8090 = vrot.lane.b32.xlu1 %v8089_v8, %s8289_s30 }
0x442a   :  { %v8091_v9 = vpop.permute.xlu1 %8090 }
0x442b   :  { %v8093_v10 = vunpack.i.h.bf16 %v8091_v9  ;;  %v8092_v11 = vunpack.i.l.bf16 %v8091_v9 }
0x442d   :  { %v4663_v24 = vsel %vm259_vm2, %v8092_v11, %v8093_v10 }
0x442e   :  { %v4664_v14 = vsel %vm10202_vm1, %v4663_v24, %v4661_v12 }
0x442f   :  { %v4665_v15 = vpack.c.bf16 %v4664_v14, %v4664_v14 }
0x4431   :  { %7641 = vmatmul.mubr.msk.bf16.vlgmr.msra.gmra.mxu1 %vm10203_vm12, %v4665_v15 }
0x44f1   :  { %v4766_v25 = vpop.f32.mrf.mxu1 }
0x44f2   :  { %v4767_v3 = vadd.f32 %v6889_v28, %v4766_v25 }
0x44f3   :  { %v7642_v38 = vpop.f32.mrf.mxu1  ;;  %4781 = sbr.rel (%p6901_p9) target bundleno = 18288 (0x4770), region = 109 }
0x44f4   :  { %6898 = vst [vmem:[%s10170_s21 + $0xa] sm:$0x3] %v4767_v3 }
0x44f5   :  { %v4769_v22 = vpop.f32.mrf.mxu1 }
0x44f7   :  { %v7643_v23 = vpop.f32.mrf.mxu1 }
0x44f8   :  { %vm4782_vm15 = vcmask 189440   ;;  %v8298_v33 = vmov 0.0   ;;  %v8145_v62 = vld [vmem:[%s10159_s10 + $0x8] ss:$0 sps:$4 sm:$0xff]   ;;  %vm4823_vm12 = vcmask 1043456   ;;  %v8146_v44 = vld [vmem:[%s10159_s10] sm:$0xff]  }
0x44f9   :  { %v4783_v13 = vsel %vm4782_vm15, %v4767_v3, -inf  ;;  %7644 = vmatprep.subr.bf16.mxu0 %v8298_v33  ;;  %v4825_v40 = vsel %vm4823_vm12, %v8145_v62, 0 }
0x44fa   :  { %4784 = vmax.xlane.f32.xlu0 %v4783_v13  ;;  %7645 = vmatpush3.bf16.msra.mxu0 %v4825_v40 }
0x44fb   :  { %7646 = vmatprep.subr.bf16.mxu0 %v8298_v33 }
0x44fe   :  { %7647 = vmatpush3.bf16.msra.mxu0 %v8146_v44 }
0x4583   :  { %v4785_v42 = vpop.xlane.xlu0 %4784 }
0x4584   :  { %vm4786_vm13 = vcmp.eq.f32.partialorder %v4767_v3, %v4785_v42 }
0x4585   :  { %v4787_v29 = vsel %vm4786_vm13, %v8582_v16, 24 }
0x4586   :  { %v4788_v30 = vsel %vm4782_vm15, %v4787_v29, 2147483647  ;;  %vm8299_vm15 = vmmov 0  }
0x4587   :  { %v4790_v31 = vshra.s32 %v4788_v30, 16  ;;  %v4789_v6 = vand.u32 65535, %v4788_v30  ;;  %7648 = vmatprep.mubr.msk.bf16.mxu0 %vm8299_vm15, %v8298_v33 }
0x4589   :  { %v4792_v32 = vcvt.s32.f32 %v4790_v31  ;;  %v4791_v26 = vcvt.s32.f32 %v4789_v6 }
0x458b   :  { %4793 = vmin.xlane.f32.xlu0 %v4792_v32 }
0x4614   :  { %v4794_v37 = vpop.xlane.xlu0 %4793 }
0x4615   :  { %vm4795_vm1 = vcmp.eq.f32.partialorder %v4792_v32, %v4794_v37  ;;  %v4800_v47 = vcvt.f32.s32 %v4794_v37 }
0x4616   :  { %v4796_v49 = vsel %vm4795_vm1, %v4791_v26, inf  ;;  %vm4819_vm1 = vcmask 195584  }
0x4617   :  { %4797 = vmin.xlane.f32.xlu1 %v4796_v49  ;;  %v4801_v36 = vshll.u32 %v4800_v47, 16 }
0x46a0   :  { %v4798_v18 = vpop.xlane.xlu1 %4797 }
0x46a1   :  { %v4799_v48 = vcvt.f32.s32 %v4798_v18 }
0x46a3   :  { %v4802_v50 = vadd.s32 %v4801_v36, %v4799_v48 }
0x46a5   :  { %vm4803_vm13 = vcmp.eq.s32.totalorder %v8582_v16, %v4802_v50 }
0x46a6   :  { %v6902_v51 = vsel %vm4803_vm13, 1.0, %v8298_v33 }
0x46a7   :  { %v4806_v52 = vpack.c.bf16 %v6902_v51, %v6902_v51 }
0x46a9   :  { %7649 = vmatmul.mubr.msk.bf16.vlgmr.msra.gmra.mxu0 %vm4819_vm1, %v4806_v52 }
0x4769   :  { %v4861_v54 = vpop.f32.mrf.mxu0 }
0x476a   :  { %4867 = vst.msk [vmem:[#allocation3] sm:$0x3] %vm1187_vm14, %v4861_v54 }
0x476b   :  { %v7650_v57 = vpop.f32.mrf.mxu0 }
0x476d   :  { %v4864_v4 = vpop.f32.mrf.mxu0 }
0x476f   :  { %v7651_v60 = vpop.f32.mrf.mxu0 }
0x4770 PF:  { %v4869_v61 = vpack.c.bf16 %v9680_v5, %v9680_v5  ;;  %7652 = vmatprep.subr.bf16.mxu0 %v8282_v1  ;;  %v8154_v7 = vld [vmem:[%s10155_s6 + $0x8] sm:$0xff]   ;;  %7656 = vmatprep.mubr.msk.bf16.mxu0 %vm8283_vm0, %v8282_v1  ;;  %v8155_v17 = vld [vmem:[%s10155_s6] sm:$0xff]   ;;  %s10204_s3 = sld [smem:[#allocation10_spill]]  ;;  %vm10206_vm12 = vcmask 785408   ;;  %vm10207_vm15 = vcmask 916480  }
0x4771   :  { %8148 = vset.pattern.permute.xlu0 %v8286_v34  ;;  %8147 = vset.pattern.permute.xlu1 %v8286_v34  ;;  %v6909_v25 = vld [vmem:[%s10158_s9] ss:$0 sm:$0xff]  ;;  %s10205_s7 = sld [smem:[#allocation8_spill]] }
0x4772   :  { %4875 = vrot.lane.b32.xlu0 %v4869_v61, %s8289_s30  ;;  %7653 = vmatpush3.bf16.msra.mxu0 %v8154_v7  ;;  %s6944_s5 = sld [smem:[#allocation4 + $0x6]] }
0x4773   :  { %7654 = vmatprep.subr.bf16.mxu0 %v8282_v1  ;;  %7666 = vmatprep.subr.bf16.mxu1 %v8282_v1 }
0x4774   :  { %7676 = vmatprep.mubr.msk.bf16.mxu1 %vm8283_vm0, %v8282_v1 }
0x4776   :  { %7655 = vmatpush3.bf16.msra.mxu0 %v8155_v17 }
0x4777   :  { %7660 = vmatprep.subr.bf16.mxu0 %v8282_v1 }
0x4778   :  { %p6945_p10 = scmp.ne.s32.totalorder %s6944_s5, 0 }
0x47e4   :  { %v9722_v63 = vpop.permute.xlu0 %4875 }
0x47e5   :  { %7657 = vmatmul.mubr.msk.bf16.vlgmr.msra.gmra.mxu0 %vm259_vm2, %v9722_v63 }
0x47e6   :  { %7662 = vmatprep.mubr.msk.bf16.mxu0 %vm8283_vm0, %v8282_v1 }
0x48a5   :  { %v4926_v45 = vpop.f32.mrf.mxu0 }
0x48a6   :  { %v4939_v2 = vrot.slane %v4926_v45, %v8550_v41 }
0x48a7   :  { %v7658_v27 = vpop.f32.mrf.mxu0 }
0x48a8   :  { %v4940_v43 = vcombine.high %v4939_v2, %v4939_v2  ;;  %v4947_v21 = vrot.slane %v4939_v2, %v8550_v41 }
0x48a9   :  { %v4929_v8 = vpop.f32.mrf.mxu0 }
0x48aa   :  { %v4954_v9 = vrot.slane %v4940_v43, %v8550_v41  ;;  %v4958_v10 = vrot.slane %v4947_v21, %v8557_v46 }
0x48ab   :  { %v7659_v11 = vpop.f32.mrf.mxu0 }
0x48ac   :  { %v4962_v12 = vrot.slane %v4954_v9, %v8557_v46  ;;  %v4965_v24 = vadd.f32 %v4958_v10, %v8560_v53  ;;  %v4966_v14 = vadd.f32 %v4958_v10, %v8562_v55 }
0x48ae   :  { %v4967_v15 = vadd.f32 %v4962_v12, %v8564_v56  ;;  %8175 = vtanh.f32 %v4965_v24  ;;  %v4968_v28 = vadd.f32 %v4962_v12, %v8568_v59 }
0x48af   :  { %8177 = vtanh.f32 %v4966_v14 }
0x48b0   :  { %8179 = vtanh.f32 %v4967_v15 }
0x48b1   :  { %8181 = vtanh.f32 %v4968_v28 }
0x48bb   :  { %v8176_v3 = vpop.eup %8175 }
0x48bc   :  { %v8178_v38 = vpop.eup %8177  ;;  %v4980_v22 = vmul.f32 %v8176_v3, %v6909_v25 }
0x48bd   :  { %v8180_v23 = vpop.eup %8179  ;;  %v4981_v13 = vmul.f32 %v8178_v38, %v6909_v25 }
0x48be   :  { %v4984_v42 = vsel %vm259_vm2, %v4980_v22, 0.0  ;;  %v4982_v30 = vmul.f32 %v8180_v23, %v6909_v25  ;;  %v8182_v31 = vpop.eup %8181 }
0x48bf   :  { %v4987_v29 = vsel %vm261_vm3, %v4981_v13, 0.0  ;;  %4985 = vadd.xlane.f32.xlu0 %v4984_v42  ;;  %v4983_v33 = vmul.f32 %v8182_v31, %v6909_v25 }
0x48c0   :  { %4988 = vadd.xlane.f32.xlu1 %v4987_v29  ;;  %v4990_v32 = vsel %vm259_vm2, %v4982_v30, 0.0 }
0x48c1   :  { %v4993_v6 = vsel %vm261_vm3, %v4983_v33, 0.0 }
0x48c4   :  { %4991 = vadd.xlane.f32.xlu1 %v4990_v32 }
0x48c8   :  { %4994 = vadd.xlane.f32.xlu1 %v4993_v6 }
0x4948   :  { %v4986_v26 = vpop.xlane.xlu0 %4985 }
0x4949   :  { %v4989_v37 = vpop.xlane.xlu1 %4988  ;;  %v5003_v40 = vrot.slane %v4986_v26, %v8590_v20 }
0x494a   :  { %v5007_v62 = vrot.slane %v4989_v37, %v8586_v19 }
0x494c   :  { %v5008_v36 = vsel %vm508_vm4, %v5007_v62, %v5003_v40  ;;  %v8156_v40 = vld [vmem:[%s10204_s3] sm:$0x1f]  }
0x494d   :  { %v4992_v49 = vpop.xlane.xlu1 %4991 }
0x494e   :  { %v5012_v47 = vrot.slane %v4992_v49, %v8590_v20 }
0x4951   :  { %v4995_v44 = vpop.xlane.xlu1 %4994 }
0x4952   :  { %v5016_v18 = vrot.slane %v4995_v44, %v8586_v19 }
0x4954   :  { %v5017_v48 = vsel %vm508_vm4, %v5016_v18, %v5012_v47  ;;  %v5152_v47 = vsel %vm655_vm7, %v8156_v40, 0 }
0x4955   :  { %v5018_v50 = vsel %vm519_vm5, %v5017_v48, %v5008_v36  ;;  %7661 = vmatpush3.bf16.msra.mxu0 %v5152_v47 }
0x4956   :  { %v5020_v51 = vsel %vm522_vm6, %v5018_v50, -inf  ;;  %7680 = vmatprep.subr.bf16.mxu0 %v8282_v1 }
0x4957   :  { %5021 = vmax.xlane.f32.xlu1 %v5020_v51 }
0x49e0   :  { %v5022_v52 = vpop.xlane.xlu1 %5021 }
0x49e1   :  { %v5027_v54 = vrot.slane %v5022_v52, %v8557_v46  ;;  %v5031_v57 = vrot.slane %v5022_v52, %v8603_v35 }
0x49e3   :  { %v5034_v4 = vsub.f32 %v4986_v26, %v5027_v54  ;;  %v5035_v60 = vsub.f32 %v4989_v37, %v5027_v54  ;;  %v5036_v61 = vsub.f32 %v4992_v49, %v5031_v57  ;;  %v5037_v45 = vsub.f32 %v4995_v44, %v5031_v57 }
0x49e5   :  { %v5038_v7 = vmul.f32 1.442695, %v5034_v4  ;;  %v5042_v17 = vmul.f32 1.442695, %v5036_v61  ;;  %v5040_v2 = vmul.f32 1.442695, %v5035_v60 }
0x49e6   :  { %v5044_v27 = vmul.f32 1.442695, %v5037_v45  ;;  %v8157_v45 = vld [vmem:[%s10163_s14 + $0x8] sm:$0xff]  }
0x49e7   :  { %8183 = vpow2.f32 %v5038_v7 }
0x49e8   :  { %8185 = vpow2.f32 %v5042_v17 }
0x49e9   :  { %8187 = vpow2.f32 %v5040_v2  ;;  %v8159_v2 = vld [vmem:[%s10162_s13 + $0x20] sm:$0xff]  }
0x49ea   :  { %8189 = vpow2.f32 %v5044_v27  ;;  %v8158_v27 = vld [vmem:[%s10163_s14] sm:$0xff]   ;;  %7667 = vmatpush3.bf16.msra.mxu1 %v8159_v2 }
0x49eb   :  { %7668 = vmatprep.subr.bf16.mxu1 %v8282_v1 }
0x49f4   :  { %v8184_v43 = vpop.eup %8183 }
0x49f5   :  { %5051 = vperm.xlu1 %8147, %v8184_v43   ;;  %v8186_v21 = vpop.eup %8185 }
0x49f6   :  { %5057 = vperm.xlu0 %8148, %v8186_v21   ;;  %v8188_v8 = vpop.eup %8187 }
0x49f7   :  { %v8190_v9 = vpop.eup %8189 }
0x49f9   :  { %5054 = vperm.xlu1 %8147, %v8188_v8  }
0x49fd   :  { %5060 = vperm.xlu1 %8147, %v8190_v9  }
0x4a70   :  { %v5052_v10 = vpop.permute.xlu1 %5051 }
0x4a71   :  { %v5058_v12 = vpop.permute.xlu0 %5057  ;;  %v5065_v28 = vrot.slane %v5052_v10, %v8590_v20 }
0x4a72   :  { %v5074_v15 = vrot.slane %v5058_v12, %v8590_v20 }
0x4a74   :  { %v5055_v11 = vpop.permute.xlu1 %5054 }
0x4a75   :  { %v5069_v24 = vrot.slane %v5055_v11, %v8586_v19 }
0x4a77   :  { %v5070_v3 = vsel %vm508_vm4, %v5069_v24, %v5065_v28  ;;  %v9811_v24 = vld [vmem:[#allocation3] sm:$0x3] }
0x4a78   :  { %v5061_v14 = vpop.permute.xlu1 %5060 }
0x4a79   :  { %v5078_v25 = vrot.slane %v5061_v14, %v8586_v19  ;;  %v8163_v14 = vld [vmem:[%s10162_s13] sm:$0xff]  }
0x4a7b   :  { %v5079_v38 = vsel %vm508_vm4, %v5078_v25, %v5074_v15  ;;  %v6923_v15 = vld [vmem:[%s10165_s16] ss:$0 sm:$0xff] }
0x4a7c   :  { %v5080_v22 = vsel %vm519_vm5, %v5079_v38, %v5070_v3 }
0x4a7d   :  { %v5082_v23 = vsel %vm522_vm6, %v5080_v22, 0.0 }
0x4a7e   :  { %5083 = vadd.xlane.f32.xlu1 %v5082_v23 }
0x4b07   :  { %v5084_v13 = vpop.xlane.xlu1 %5083 }
0x4b08   :  { %8191 = vrcp.f32 %v5084_v13 }
0x4b15   :  { %v8192_v42 = vpop.eup %8191 }
0x4b16   :  { %v5090_v29 = vrot.slane %v8192_v42, %v8557_v46  ;;  %v5094_v30 = vrot.slane %v8192_v42, %v8603_v35 }
0x4b18   :  { %v5097_v31 = vmul.f32 %v8184_v43, %v5090_v29  ;;  %v5098_v32 = vmul.f32 %v8188_v8, %v5090_v29  ;;  %v5099_v33 = vmul.f32 %v8186_v21, %v5094_v30  ;;  %v5100_v6 = vmul.f32 %v8190_v9, %v5094_v30  ;;  %v8160_v43 = vld [vmem:[%s10162_s13 + $0x18] sm:$0xff]   ;;  %v8161_v21 = vld [vmem:[%s10162_s13 + $0x10] sm:$0xff]   ;;  %v8162_v8 = vld [vmem:[%s10162_s13 + $0x8] sm:$0xff]  }
0x4b19   :  { %7669 = vmatpush3.bf16.msra.mxu1 %v8160_v43 }
0x4b1a   :  { %v5101_v37 = vpack.c.bf16 %v5098_v32, %v5097_v31  ;;  %v5102_v62 = vpack.c.bf16 %v5100_v6, %v5099_v33  ;;  %7670 = vmatprep.subr.bf16.mxu1 %v8282_v1  ;;  %v6912_v32 = vld [vmem:[%s10164_s15] ss:$0 sm:$0xff] }
0x4b1c   :  { %v5108_v26 = vunpack.c.h.b16 %v5101_v37  ;;  %v5107_v49 = vunpack.c.l.b16 %v5101_v37  ;;  %v5109_v44 = vunpack.c.l.b16 %v5102_v62  ;;  %v5110_v18 = vunpack.c.h.b16 %v5102_v62 }
0x4b1d   :  { %7671 = vmatpush3.bf16.msra.mxu1 %v8161_v21 }
0x4b1e   :  { %5115 = vperm.xlu0 %8148, %v5108_v26   ;;  %5112 = vperm.xlu1 %8147, %v5107_v49  }
0x4b1f   :  { %7672 = vmatprep.subr.bf16.mxu1 %v8282_v1 }
0x4b21   :  { %7673 = vmatpush3.bf16.msra.mxu1 %v8162_v8 }
0x4b22   :  { %5118 = vperm.xlu0 %8148, %v5109_v44   ;;  %7674 = vmatprep.subr.bf16.mxu1 %v8282_v1 }
0x4b25   :  { %7675 = vmatpush3.bf16.msra.mxu1 %v8163_v14 }
0x4b26   :  { %5121 = vperm.xlu0 %8148, %v5110_v18   ;;  %7704 = vmatprep.subr.bf16.mxu1 %v8282_v1 }
0x4b99   :  { %v5116_v36 = vpop.permute.xlu0 %5115  ;;  %v5113_v48 = vpop.permute.xlu1 %5112 }
0x4b9a   :  { %v5130_v51 = vrot.slane %v5116_v36, %v8586_v19  ;;  %v5126_v52 = vrot.slane %v5113_v48, %v8590_v20 }
0x4b9c   :  { %v5131_v60 = vsel %vm508_vm4, %v5130_v51, %v5126_v52  ;;  %v8164_v52 = vld [vmem:[%s10166_s17 + $0x8] sm:$0xff]  }
0x4b9d   :  { %v5119_v50 = vpop.permute.xlu0 %5118 }
0x4b9e   :  { %v5135_v57 = vrot.slane %v5119_v50, %v8590_v20 }
0x4ba1   :  { %v5122_v54 = vpop.permute.xlu0 %5121 }
0x4ba2   :  { %v5139_v4 = vrot.slane %v5122_v54, %v8586_v19  ;;  %v8165_v54 = vld [vmem:[%s10166_s17] sm:$0xff]  }
0x4ba4   :  { %v5140_v61 = vsel %vm508_vm4, %v5139_v4, %v5135_v57 }
0x4ba5   :  { %v5141_v7 = vsel %vm519_vm5, %v5140_v61, %v5131_v60 }
0x4ba6   :  { %v5142_v17 = vpack.c.b16 %v5141_v7, %v5141_v7 }
0x4ba8   :  { %7663 = vmatmul.mubr.msk.bf16.vlgmr.msra.gmra.mxu0 %vm651_vm8, %v5142_v17  ;;  %v6932_v17 = vld [vmem:[%s10169_s20] ss:$0 sm:$0xff] }
0x4ba9   :  { %7684 = vmatprep.mubr.msk.bf16.mxu0 %vm8283_vm0, %v8282_v1  ;;  %7681 = vmatpush3.bf16.msra.mxu0 %v8157_v45 }
0x4baa   :  { %7682 = vmatprep.subr.bf16.mxu0 %v8282_v1 }
0x4bad   :  { %7683 = vmatpush3.bf16.msra.mxu0 %v8158_v27  ;;  %v8166_v27 = vld [vmem:[%s10167_s18 + $0x8] sm:$0xff]  }
0x4bae   :  { %7688 = vmatprep.subr.bf16.mxu0 %v8282_v1 }
0x4bb0   :  { %7685 = vmatmul.mubr.msk.bf16.vlgmr.msra.gmra.mxu0 %vm259_vm2, %v9632_v0  ;;  %v6943_v0 = vld [vmem:[%s10205_s7 + $0xc] sm:$0x3] }
0x4bb1   :  { %7692 = vmatprep.mubr.msk.bf16.mxu0 %vm8283_vm0, %v8282_v1  ;;  %5673 = vst.msk [vmem:[#allocation3] sm:$0x3] %vm1187_vm14, %v6943_v0  ;;  %7689 = vmatpush3.bf16.msra.mxu0 %v8164_v52 }
0x4bb2   :  { %7690 = vmatprep.subr.bf16.mxu0 %v8282_v1 }
0x4bb5   :  { %7691 = vmatpush3.bf16.msra.mxu0 %v8165_v54 }
0x4bb6   :  { %7696 = vmatprep.subr.bf16.mxu0 %v8282_v1 }
0x4c68   :  { %v5188_v9 = vpop.f32.mrf.mxu0 }
0x4c69   :  { %5195 = vrot.lane.b32.xlu0 %v5188_v9, %s8284_s27 }
0x4c6a   :  { %v7664_v10 = vpop.f32.mrf.mxu0 }
0x4c6c   :  { %v5191_v11 = vpop.f32.mrf.mxu0 }
0x4c6d   :  { %5364 = vrot.lane.b32.xlu0 %v6923_v15, %s8284_s27 }
0x4c6e   :  { %v7665_v12 = vpop.f32.mrf.mxu0 }
0x4c70   :  { %v5346_v3 = vpop.f32.mrf.mxu0 }
0x4c72   :  { %v7686_v38 = vpop.f32.mrf.mxu0 }
0x4c74   :  { %v5349_v22 = vpop.f32.mrf.mxu0 }
0x4c76   :  { %v7687_v23 = vpop.f32.mrf.mxu0 }
0x4cdb   :  { %v5196_v28 = vpop.permute.xlu0 %5195 }
0x4cdc   :  { %v9824_v25 = vsel %vm699_vm9, %v5188_v9, %v5196_v28 }
0x4cdd   :  { %5200 = vrot.lane.b32.xlu1 %v9824_v25, %s8287_s2 }
0x4cdf   :  { %v5365_v13 = vpop.permute.xlu0 %5364 }
0x4ce0   :  { %v5367_v42 = vadd.f32 %v5365_v13, %v5346_v3 }
0x4ce2   :  { %5369 = vrot.lane.b32.xlu1 %v5367_v42, %s8284_s27 }
0x4d4f   :  { %v5201_v29 = vpop.permute.xlu1 %5200 }
0x4d50   :  { %v5203_v30 = vsel %vm709_vm10, %v9811_v24, %v5201_v29 }
0x4d51   :  { %v5220_v31 = vpack.c.bf16 %v5203_v30, %v5203_v30 }
0x4d53   :  { %7677 = vmatmul.mubr.msk.bf16.vlgmr.msra.gmra.mxu1 %vm764_vm11, %v5220_v31 }
0x4d54   :  { %7718 = vmatprep.mubr.msk.bf16.mxu1 %vm8283_vm0, %v8282_v1  ;;  %v5370_v18 = vpop.permute.xlu1 %5369 }
0x4e13   :  { %v5294_v33 = vpop.f32.mrf.mxu1 }
0x4e14   :  { %v5295_v6 = vadd.f32 %v6912_v32, %v5294_v33  ;;  %v8168_v33 = vld [vmem:[%s10160_s11 + $0x30] sm:$0xff]  }
0x4e15   :  { %v7678_v37 = vpop.f32.mrf.mxu1  ;;  %7705 = vmatpush3.bf16.msra.mxu1 %v8168_v33 }
0x4e16   :  { %v5352_v26 = vadd.f32 %v5346_v3, %v5295_v6  ;;  %v6924_v3 = vld [vmem:[%s10168_s19] ss:$0 sm:$0xff]  ;;  %7706 = vmatprep.subr.bf16.mxu1 %v8282_v1 }
0x4e17   :  { %v5297_v49 = vpop.f32.mrf.mxu1 }
0x4e18   :  { %v6922_v62 = vmul.f32 -1.442695, %v5352_v26  ;;  %v8170_v26 = vld [vmem:[%s10160_s11 + $0x20] sm:$0xff]   ;;  %v8171_v49 = vld [vmem:[%s10160_s11 + $0x18] sm:$0xff]  }
0x4e19   :  { %v7679_v40 = vpop.f32.mrf.mxu1 }
0x4e1a   :  { %8193 = vpow2.f32 %v6922_v62  ;;  %v8172_v62 = vld [vmem:[%s10160_s11 + $0x10] sm:$0xff]   ;;  %v8173_v40 = vld [vmem:[%s10160_s11 + $0x8] sm:$0xff]  }
0x4e27   :  { %v8194_v44 = vpop.eup %8193 }
0x4e28   :  { %v5356_v47 = vadd.f32 1.0, %v8194_v44 }
0x4e2a   :  { %8195 = vrcp.f32 %v5356_v47 }
0x4e37   :  { %v8196_v36 = vpop.eup %8195 }
0x4e38   :  { %v5372_v48 = vmul.f32 %v8196_v36, %v5370_v18  ;;  %v5379_v4 = vsub.f32 1.0, %v8196_v36  ;;  %v5385_v7 = vmul.f32 %v8196_v36, %v9623_v58  ;;  %v8167_v58 = vld [vmem:[%s10167_s18] sm:$0xff]  }
0x4e3a   :  { %5374 = vrot.lane.b32.xlu0 %v5372_v48, %s8284_s27 }
0x4eac   :  { %v5375_v50 = vpop.permute.xlu0 %5374 }
0x4ead   :  { %v5377_v51 = vadd.f32 %v5375_v50, %v5295_v6  ;;  %v8169_v6 = vld [vmem:[%s10160_s11 + $0x28] sm:$0xff]  }
0x4eae   :  { %7707 = vmatpush3.bf16.msra.mxu1 %v8169_v6 }
0x4eaf   :  { %8197 = vtanh.f32 %v5377_v51  ;;  %7708 = vmatprep.subr.bf16.mxu1 %v8282_v1 }
0x4eb2   :  { %7709 = vmatpush3.bf16.msra.mxu1 %v8170_v26 }
0x4eb3   :  { %7710 = vmatprep.subr.bf16.mxu1 %v8282_v1 }
0x4eb6   :  { %7711 = vmatpush3.bf16.msra.mxu1 %v8171_v49 }
0x4eb7   :  { %7712 = vmatprep.subr.bf16.mxu1 %v8282_v1 }
0x4eba   :  { %7713 = vmatpush3.bf16.msra.mxu1 %v8172_v62 }
0x4ebb   :  { %7714 = vmatprep.subr.bf16.mxu1 %v8282_v1 }
0x4ebc   :  { %v8198_v57 = vpop.eup %8197 }
0x4ebd   :  { %5381 = vrot.lane.b32.xlu1 %v8198_v57, %s8289_s30 }
0x4ebe   :  { %7715 = vmatpush3.bf16.msra.mxu1 %v8173_v40 }
0x4ebf   :  { %7716 = vmatprep.subr.bf16.mxu1 %v8282_v1 }
0x4ec1   :  { %5526 = vrot.lane.b32.xlu1 %v6932_v17, %s8284_s27 }
0x4f2f   :  { %v5382_v60 = vpop.permute.xlu1 %5381 }
0x4f30   :  { %v5384_v61 = vmul.f32 %v5382_v60, %v5379_v4 }
0x4f32   :  { %v9851_v45 = vadd.f32 %v5385_v7, %v5384_v61 }
0x4f33   :  { %v5527_v11 = vpop.permute.xlu1 %5526 }
0x4f34   :  { %v5397_v2 = vpack.c.bf16 %v9851_v45, %v9851_v45 }
0x4f36   :  { %5405 = vrot.lane.b32.xlu0 %v5397_v2, %s8289_s30 }
0x4fa8   :  { %v9860_v43 = vpop.permute.xlu0 %5405 }
0x4fa9   :  { %7693 = vmatmul.mubr.msk.bf16.vlgmr.msra.gmra.mxu0 %vm259_vm2, %v9860_v43 }
0x4faa   :  { %7697 = vmatpush3.bf16.msra.mxu0 %v8166_v27  ;;  %7700 = vmatprep.mubr.msk.bf16.mxu0 %vm8283_vm0, %v8282_v1 }
0x4fab   :  { %7698 = vmatprep.subr.bf16.mxu0 %v8282_v1 }
0x4fae   :  { %7699 = vmatpush3.bf16.msra.mxu0 %v8167_v58 }
0x4fb1   :  { %7701 = vmatmul.mubr.msk.bf16.vlgmr.msra.gmra.mxu0 %vm259_vm2, %v9722_v63 }
0x5069   :  { %v5456_v21 = vpop.f32.mrf.mxu0 }
0x506a   :  { %v5457_v38 = vadd.f32 %v6924_v3, %v5456_v21 }
0x506b   :  { %v7694_v8 = vpop.f32.mrf.mxu0 }
0x506d   :  { %v5459_v9 = vpop.f32.mrf.mxu0 }
0x506f   :  { %v7695_v10 = vpop.f32.mrf.mxu0 }
0x5071   :  { %v5508_v12 = vpop.f32.mrf.mxu0 }
0x5072   :  { %v5529_v0 = vadd.f32 %v5527_v11, %v5508_v12  ;;  %v5514_v22 = vadd.f32 %v5508_v12, %v5457_v38 }
0x5073   :  { %v7702_v14 = vpop.f32.mrf.mxu0 }
0x5074   :  { %5531 = vrot.lane.b32.xlu0 %v5529_v0, %s8284_s27  ;;  %v6931_v23 = vmul.f32 -1.442695, %v5514_v22 }
0x5075   :  { %v5511_v15 = vpop.f32.mrf.mxu0 }
0x5076   :  { %8199 = vpow2.f32 %v6931_v23 }
0x5077   :  { %v7703_v28 = vpop.f32.mrf.mxu0 }
0x5083   :  { %v8200_v63 = vpop.eup %8199 }
0x5084   :  { %v5518_v13 = vadd.f32 1.0, %v8200_v63 }
0x5086   :  { %8201 = vrcp.f32 %v5518_v13 }
0x5093   :  { %v8202_v42 = vpop.eup %8201 }
0x5094   :  { %v5541_v44 = vsub.f32 1.0, %v8202_v42  ;;  %v5547_v18 = vmul.f32 %v8202_v42, %v9680_v5  ;;  %v6933_v5 = vld [vmem:[%s10161_s12] ss:$0 sm:$0xff] }
0x50e6   :  { %v5532_v29 = vpop.permute.xlu0 %5531 }
0x50e7   :  { %v5534_v30 = vmul.f32 %v8202_v42, %v5532_v29 }
0x50e9   :  { %5536 = vrot.lane.b32.xlu1 %v5534_v30, %s8284_s27 }
0x515b   :  { %v5537_v31 = vpop.permute.xlu1 %5536 }
0x515c   :  { %v5539_v32 = vadd.f32 %v5537_v31, %v5457_v38 }
0x515e   :  { %8203 = vtanh.f32 %v5539_v32 }
0x516b   :  { %v8204_v37 = vpop.eup %8203 }
0x516c   :  { %5543 = vrot.lane.b32.xlu0 %v8204_v37, %s8289_s30 }
0x5170   :  { %5557 = vrot.lane.b32.xlu0 %v9811_v24, %s8289_s30  ;;  %v8174_v24 = vld [vmem:[%s10160_s11] sm:$0xff]  }
0x5171   :  { %7717 = vmatpush3.bf16.msra.mxu1 %v8174_v24 }
0x51de   :  { %v5544_v47 = vpop.permute.xlu0 %5543 }
0x51df   :  { %v5546_v36 = vmul.f32 %v5544_v47, %v5541_v44 }
0x51e1   :  { %v9908_v48 = vadd.f32 %v5547_v18, %v5546_v36 }
0x51e2   :  { %v5558_v57 = vpop.permute.xlu0 %5557 }
0x51e3   :  { %v8149_v50 = vpack.i.bf16 %v9824_v25, %v9908_v48 }
0x51e5   :  { %8150 = vrot.lane.b32.xlu1 %v8149_v50, %s8289_s30 }
0x5257   :  { %v8151_v51 = vpop.permute.xlu1 %8150 }
0x5258   :  { %v8153_v52 = vunpack.i.h.bf16 %v8151_v51  ;;  %v8152_v54 = vunpack.i.l.bf16 %v8151_v51 }
0x525a   :  { %v5560_v4 = vsel %vm259_vm2, %v8152_v54, %v8153_v52 }
0x525b   :  { %v5561_v60 = vsel %vm10206_vm12, %v5560_v4, %v5558_v57 }
0x525c   :  { %v5562_v61 = vpack.c.bf16 %v5561_v60, %v5561_v60 }
0x525e   :  { %7719 = vmatmul.mubr.msk.bf16.vlgmr.msra.gmra.mxu1 %vm10207_vm15, %v5562_v61 }
0x531e   :  { %v5663_v7 = vpop.f32.mrf.mxu1 }
0x531f   :  { %v5664_v25 = vadd.f32 %v6933_v5, %v5663_v7 }
0x5320   :  { %v7720_v17 = vpop.f32.mrf.mxu1  ;;  %5678 = sbr.rel (%p6945_p10) target bundleno = 21917 (0x559d), region = 113 }
0x5321   :  { %6942 = vst [vmem:[%s10170_s21 + $0xc] sm:$0x3] %v5664_v25 }
0x5322   :  { %v5666_v2 = vpop.f32.mrf.mxu1 }
0x5324   :  { %v7721_v27 = vpop.f32.mrf.mxu1 }
0x5325   :  { %vm5679_vm13 = vcmask 189440   ;;  %v8300_v12 = vmov 0.0   ;;  %v8205_v3 = vld [vmem:[%s10159_s10 + $0x8] ss:$0 sps:$4 sm:$0xff]   ;;  %vm5720_vm15 = vcmask 1043456   ;;  %v8206_v22 = vld [vmem:[%s10159_s10] sm:$0xff]  }
0x5326   :  { %v5680_v58 = vsel %vm5679_vm13, %v5664_v25, -inf  ;;  %7722 = vmatprep.subr.bf16.mxu0 %v8300_v12  ;;  %v5722_v38 = vsel %vm5720_vm15, %v8205_v3, 0 }
0x5327   :  { %5681 = vmax.xlane.f32.xlu0 %v5680_v58  ;;  %7723 = vmatpush3.bf16.msra.mxu0 %v5722_v38 }
0x5328   :  { %7724 = vmatprep.subr.bf16.mxu0 %v8300_v12 }
0x532b   :  { %7725 = vmatpush3.bf16.msra.mxu0 %v8206_v22 }
0x53b0   :  { %v5682_v21 = vpop.xlane.xlu0 %5681 }
0x53b1   :  { %vm5683_vm1 = vcmp.eq.f32.partialorder %v5664_v25, %v5682_v21 }
0x53b2   :  { %v5684_v8 = vsel %vm5683_vm1, %v8582_v16, 24 }
0x53b3   :  { %v5685_v9 = vsel %vm5679_vm13, %v5684_v8, 2147483647  ;;  %vm8301_vm13 = vmmov 0  }
0x53b4   :  { %v5687_v10 = vshra.s32 %v5685_v9, 16  ;;  %v5686_v0 = vand.u32 65535, %v5685_v9  ;;  %7726 = vmatprep.mubr.msk.bf16.mxu0 %vm8301_vm13, %v8300_v12 }
0x53b6   :  { %v5689_v11 = vcvt.s32.f32 %v5687_v10  ;;  %v5688_v15 = vcvt.s32.f32 %v5686_v0 }
0x53b8   :  { %5690 = vmin.xlane.f32.xlu0 %v5689_v11 }
0x5441   :  { %v5691_v14 = vpop.xlane.xlu0 %5690 }
0x5442   :  { %vm5692_vm12 = vcmp.eq.f32.partialorder %v5689_v11, %v5691_v14  ;;  %v5697_v23 = vcvt.f32.s32 %v5691_v14 }
0x5443   :  { %v5693_v28 = vsel %vm5692_vm12, %v5688_v15, inf  ;;  %vm5716_vm12 = vcmask 195584  }
0x5444   :  { %5694 = vmin.xlane.f32.xlu1 %v5693_v28  ;;  %v5698_v13 = vshll.u32 %v5697_v23, 16 }
0x54cd   :  { %v5695_v63 = vpop.xlane.xlu1 %5694 }
0x54ce   :  { %v5696_v42 = vcvt.f32.s32 %v5695_v63 }
0x54d0   :  { %v5699_v29 = vadd.s32 %v5698_v13, %v5696_v42 }
0x54d2   :  { %vm5700_vm1 = vcmp.eq.s32.totalorder %v8582_v16, %v5699_v29 }
0x54d3   :  { %v6946_v30 = vsel %vm5700_vm1, 1.0, %v8300_v12 }
0x54d4   :  { %v5703_v31 = vpack.c.bf16 %v6946_v30, %v6946_v30 }
0x54d6   :  { %7727 = vmatmul.mubr.msk.bf16.vlgmr.msra.gmra.mxu0 %vm5716_vm12, %v5703_v31 }
0x5596   :  { %v5758_v32 = vpop.f32.mrf.mxu0 }
0x5597   :  { %5764 = vst.msk [vmem:[#allocation3] sm:$0x3] %vm1187_vm14, %v5758_v32 }
0x5598   :  { %v7728_v33 = vpop.f32.mrf.mxu0 }
0x559a   :  { %v5761_v6 = vpop.f32.mrf.mxu0 }
0x559c   :  { %v7729_v37 = vpop.f32.mrf.mxu0 }
0x559d PF:  { %v5766_v26 = vpack.c.bf16 %v9908_v48, %v9908_v48  ;;  %7730 = vmatprep.subr.bf16.mxu0 %v8282_v1  ;;  %v8214_v49 = vld [vmem:[%s10155_s6 + $0x8] sm:$0xff]   ;;  %7734 = vmatprep.mubr.msk.bf16.mxu0 %vm8283_vm0, %v8282_v1  ;;  %v8215_v62 = vld [vmem:[%s10155_s6] sm:$0xff]   ;;  %s10208_s22 = sld [smem:[#allocation10_spill]] }
0x559e   :  { %8208 = vset.pattern.permute.xlu0 %v8286_v34  ;;  %8207 = vset.pattern.permute.xlu1 %v8286_v34  ;;  %v6956_v39 = vld [vmem:[%s10164_s15] ss:$0 sm:$0xff] }
0x559f   :  { %5772 = vrot.lane.b32.xlu0 %v5766_v26, %s8289_s30  ;;  %7731 = vmatpush3.bf16.msra.mxu0 %v8214_v49 }
0x55a0   :  { %7732 = vmatprep.subr.bf16.mxu0 %v8282_v1  ;;  %7744 = vmatprep.subr.bf16.mxu1 %v8282_v1 }
0x55a1   :  { %7754 = vmatprep.mubr.msk.bf16.mxu1 %vm8283_vm0, %v8282_v1 }
0x55a3   :  { %7733 = vmatpush3.bf16.msra.mxu0 %v8215_v62 }
0x55a4   :  { %7738 = vmatprep.subr.bf16.mxu0 %v8282_v1 }
0x5611   :  { %v9950_v40 = vpop.permute.xlu0 %5772 }
0x5612   :  { %7735 = vmatmul.mubr.msk.bf16.vlgmr.msra.gmra.mxu0 %vm259_vm2, %v9950_v40 }
0x5613   :  { %7740 = vmatprep.mubr.msk.bf16.mxu0 %vm8283_vm0, %v8282_v1 }
0x56d2   :  { %v5823_v34 = vpop.f32.mrf.mxu0 }
0x56d3   :  { %v5836_v24 = vrot.slane %v5823_v34, %v8550_v41 }
0x56d4   :  { %v7736_v44 = vpop.f32.mrf.mxu0 }
0x56d5   :  { %v5837_v47 = vcombine.high %v5836_v24, %v5836_v24  ;;  %v5844_v18 = vrot.slane %v5836_v24, %v8550_v41 }
0x56d6   :  { %v5826_v36 = vpop.f32.mrf.mxu0 }
0x56d7   :  { %v5851_v50 = vrot.slane %v5837_v47, %v8550_v41  ;;  %v5855_v51 = vrot.slane %v5844_v18, %v8557_v46  ;;  %v6953_v41 = vld [vmem:[%s10158_s9] ss:$0 sm:$0xff]  ;;  %s10209_s9 = sld [smem:[#allocation8_spill]] }
0x56d8   :  { %v7737_v52 = vpop.f32.mrf.mxu0 }
0x56d9   :  { %v5859_v54 = vrot.slane %v5851_v50, %v8557_v46  ;;  %v5862_v57 = vadd.f32 %v5855_v51, %v8560_v53  ;;  %v5863_v4 = vadd.f32 %v5855_v51, %v8562_v55 }
0x56db   :  { %v5864_v60 = vadd.f32 %v5859_v54, %v8564_v56  ;;  %8235 = vtanh.f32 %v5862_v57  ;;  %v5865_v61 = vadd.f32 %v5859_v54, %v8568_v59 }
0x56dc   :  { %8237 = vtanh.f32 %v5863_v4 }
0x56dd   :  { %8239 = vtanh.f32 %v5864_v60 }
0x56de   :  { %8241 = vtanh.f32 %v5865_v61 }
0x56e8   :  { %v8236_v5 = vpop.eup %8235 }
0x56e9   :  { %v8238_v7 = vpop.eup %8237  ;;  %v5877_v25 = vmul.f32 %v8236_v5, %v6953_v41 }
0x56ea   :  { %v8240_v17 = vpop.eup %8239  ;;  %v5878_v2 = vmul.f32 %v8238_v7, %v6953_v41 }
0x56eb   :  { %v5881_v53 = vsel %vm259_vm2, %v5877_v25, 0.0  ;;  %v5879_v56 = vmul.f32 %v8240_v17, %v6953_v41  ;;  %v8242_v27 = vpop.eup %8241 }
0x56ec   :  { %v5884_v55 = vsel %vm261_vm3, %v5878_v2, 0.0  ;;  %5882 = vadd.xlane.f32.xlu0 %v5881_v53  ;;  %v5880_v58 = vmul.f32 %v8242_v27, %v6953_v41 }
0x56ed   :  { %5885 = vadd.xlane.f32.xlu1 %v5884_v55  ;;  %v5887_v59 = vsel %vm259_vm2, %v5879_v56, 0.0 }
0x56ee   :  { %v5890_v21 = vsel %vm261_vm3, %v5880_v58, 0.0  ;;  %v8216_v58 = vld [vmem:[%s10208_s22] sm:$0x1f]   ;;  %vm10211_vm3 = vcmask 916480  }
0x56f1   :  { %5888 = vadd.xlane.f32.xlu1 %v5887_v59 }
0x56f5   :  { %5891 = vadd.xlane.f32.xlu1 %v5890_v21 }
0x5775   :  { %v5883_v9 = vpop.xlane.xlu0 %5882 }
0x5776   :  { %v5886_v8 = vpop.xlane.xlu1 %5885  ;;  %v5900_v12 = vrot.slane %v5883_v9, %v8590_v20 }
0x5777   :  { %v5904_v11 = vrot.slane %v5886_v8, %v8586_v19 }
0x5779   :  { %v5905_v28 = vsel %vm508_vm4, %v5904_v11, %v5900_v12 }
0x577a   :  { %v5889_v10 = vpop.xlane.xlu1 %5888 }
0x577b   :  { %v5909_v14 = vrot.slane %v5889_v10, %v8590_v20 }
0x577e   :  { %v5892_v0 = vpop.xlane.xlu1 %5891 }
0x577f   :  { %v5913_v15 = vrot.slane %v5892_v0, %v8586_v19 }
0x5781   :  { %v5914_v3 = vsel %vm508_vm4, %v5913_v15, %v5909_v14 }
0x5782   :  { %v5915_v38 = vsel %vm519_vm5, %v5914_v3, %v5905_v28 }
0x5783   :  { %v5917_v22 = vsel %vm522_vm6, %v5915_v38, -inf }
0x5784   :  { %5918 = vmax.xlane.f32.xlu1 %v5917_v22 }
0x580d   :  { %v5919_v23 = vpop.xlane.xlu1 %5918 }
0x580e   :  { %v5924_v63 = vrot.slane %v5919_v23, %v8557_v46  ;;  %v5928_v13 = vrot.slane %v5919_v23, %v8603_v35  ;;  %v8217_v23 = vld [vmem:[%s10163_s14 + $0x8] sm:$0xff]  }
0x5810   :  { %v5931_v42 = vsub.f32 %v5883_v9, %v5924_v63  ;;  %v5932_v29 = vsub.f32 %v5886_v8, %v5924_v63  ;;  %v5933_v30 = vsub.f32 %v5889_v10, %v5928_v13  ;;  %v5934_v33 = vsub.f32 %v5892_v0, %v5928_v13  ;;  %v8220_v63 = vld [vmem:[%s10162_s13 + $0x18] sm:$0xff]   ;;  %v8221_v13 = vld [vmem:[%s10162_s13 + $0x10] sm:$0xff]  }
0x5811   :  { %v6049_v8 = vsel %vm655_vm7, %v8216_v58, 0 }
0x5812   :  { %v5935_v31 = vmul.f32 1.442695, %v5931_v42  ;;  %v5939_v32 = vmul.f32 1.442695, %v5933_v30  ;;  %v5937_v6 = vmul.f32 1.442695, %v5932_v29  ;;  %7739 = vmatpush3.bf16.msra.mxu0 %v6049_v8 }
0x5813   :  { %v5941_v37 = vmul.f32 1.442695, %v5934_v33  ;;  %7758 = vmatprep.subr.bf16.mxu0 %v8282_v1  ;;  %v8222_v42 = vld [vmem:[%s10162_s13 + $0x8] sm:$0xff]   ;;  %v10039_v33 = vld [vmem:[#allocation3] sm:$0x3] }
0x5814   :  { %8243 = vpow2.f32 %v5935_v31 }
0x5815   :  { %8245 = vpow2.f32 %v5939_v32 }
0x5816   :  { %8247 = vpow2.f32 %v5937_v6  ;;  %v8223_v6 = vld [vmem:[%s10162_s13] sm:$0xff]  }
0x5817   :  { %8249 = vpow2.f32 %v5941_v37  ;;  %v6967_v37 = vld [vmem:[%s10165_s16] ss:$0 sm:$0xff] }
0x5821   :  { %v8244_v26 = vpop.eup %8243 }
0x5822   :  { %5948 = vperm.xlu1 %8207, %v8244_v26   ;;  %v8246_v49 = vpop.eup %8245 }
0x5823   :  { %5954 = vperm.xlu0 %8208, %v8246_v49   ;;  %v8248_v62 = vpop.eup %8247 }
0x5824   :  { %v8250_v34 = vpop.eup %8249 }
0x5826   :  { %5951 = vperm.xlu1 %8207, %v8248_v62  }
0x582a   :  { %5957 = vperm.xlu1 %8207, %v8250_v34  }
0x589d   :  { %v5949_v24 = vpop.permute.xlu1 %5948 }
0x589e   :  { %v5955_v47 = vpop.permute.xlu0 %5954  ;;  %v5962_v51 = vrot.slane %v5949_v24, %v8590_v20 }
0x589f   :  { %v5971_v50 = vrot.slane %v5955_v47, %v8590_v20 }
0x58a1   :  { %v5952_v44 = vpop.permute.xlu1 %5951 }
0x58a2   :  { %v5966_v18 = vrot.slane %v5952_v44, %v8586_v19 }
0x58a4   :  { %v5967_v54 = vsel %vm508_vm4, %v5966_v18, %v5962_v51 }
0x58a5   :  { %v5958_v36 = vpop.permute.xlu1 %5957 }
0x58a6   :  { %v5975_v52 = vrot.slane %v5958_v36, %v8586_v19 }
0x58a8   :  { %v5976_v57 = vsel %vm508_vm4, %v5975_v52, %v5971_v50 }
0x58a9   :  { %v5977_v4 = vsel %vm519_vm5, %v5976_v57, %v5967_v54 }
0x58aa   :  { %v5979_v60 = vsel %vm522_vm6, %v5977_v4, 0.0 }
0x58ab   :  { %5980 = vadd.xlane.f32.xlu1 %v5979_v60 }
0x5934   :  { %v5981_v61 = vpop.xlane.xlu1 %5980 }
0x5935   :  { %8251 = vrcp.f32 %v5981_v61 }
0x5942   :  { %v8252_v41 = vpop.eup %8251 }
0x5943   :  { %v5987_v5 = vrot.slane %v8252_v41, %v8557_v46  ;;  %v5991_v7 = vrot.slane %v8252_v41, %v8603_v35 }
0x5945   :  { %v5994_v25 = vmul.f32 %v8244_v26, %v5987_v5  ;;  %v5995_v17 = vmul.f32 %v8248_v62, %v5987_v5  ;;  %v5996_v2 = vmul.f32 %v8246_v49, %v5991_v7  ;;  %v5997_v53 = vmul.f32 %v8250_v34, %v5991_v7 }
0x5947   :  { %v5998_v55 = vpack.c.bf16 %v5995_v17, %v5994_v25  ;;  %v5999_v59 = vpack.c.bf16 %v5997_v53, %v5996_v2 }
0x5949   :  { %v6005_v56 = vunpack.c.h.b16 %v5998_v55  ;;  %v6004_v27 = vunpack.c.l.b16 %v5998_v55  ;;  %v6006_v21 = vunpack.c.l.b16 %v5999_v59  ;;  %v6007_v46 = vunpack.c.h.b16 %v5999_v59 }
0x594b   :  { %6012 = vperm.xlu0 %8208, %v6005_v56   ;;  %6009 = vperm.xlu1 %8207, %v6004_v27   ;;  %v8224_v56 = vld [vmem:[%s10166_s17 + $0x8] sm:$0xff]   ;;  %v8225_v27 = vld [vmem:[%s10166_s17] sm:$0xff]  }
0x594f   :  { %6015 = vperm.xlu0 %8208, %v6006_v21  }
0x5953   :  { %6018 = vperm.xlu0 %8208, %v6007_v46  }
0x59c6   :  { %v6013_v35 = vpop.permute.xlu0 %6012  ;;  %v6010_v9 = vpop.permute.xlu1 %6009 }
0x59c7   :  { %v6027_v11 = vrot.slane %v6013_v35, %v8586_v19  ;;  %v6023_v12 = vrot.slane %v6010_v9, %v8590_v20  ;;  %v6976_v35 = vld [vmem:[%s10169_s20] ss:$0 sm:$0xff] }
0x59c9   :  { %v6028_v28 = vsel %vm508_vm4, %v6027_v11, %v6023_v12  ;;  %v8226_v11 = vld [vmem:[%s10167_s18 + $0x8] sm:$0xff]  }
0x59ca   :  { %v6016_v10 = vpop.permute.xlu0 %6015 }
0x59cb   :  { %v6032_v14 = vrot.slane %v6016_v10, %v8590_v20  ;;  %v8218_v20 = vld [vmem:[%s10163_s14] sm:$0xff]  }
0x59ce   :  { %v6019_v0 = vpop.permute.xlu0 %6018 }
0x59cf   :  { %v6036_v15 = vrot.slane %v6019_v0, %v8586_v19  ;;  %v8219_v19 = vld [vmem:[%s10162_s13 + $0x20] sm:$0xff]  }
0x59d0   :  { %7745 = vmatpush3.bf16.msra.mxu1 %v8219_v19 }
0x59d1   :  { %v6037_v3 = vsel %vm508_vm4, %v6036_v15, %v6032_v14  ;;  %7746 = vmatprep.subr.bf16.mxu1 %v8282_v1 }
0x59d2   :  { %v6038_v38 = vsel %vm519_vm5, %v6037_v3, %v6028_v28 }
0x59d3   :  { %v6039_v22 = vpack.c.b16 %v6038_v38, %v6038_v38 }
0x59d4   :  { %7747 = vmatpush3.bf16.msra.mxu1 %v8220_v63  ;;  %v6968_v63 = vld [vmem:[%s10168_s19] ss:$0 sm:$0xff] }
0x59d5   :  { %7741 = vmatmul.mubr.msk.bf16.vlgmr.msra.gmra.mxu0 %vm651_vm8, %v6039_v22  ;;  %7748 = vmatprep.subr.bf16.mxu1 %v8282_v1 }
0x59d6   :  { %7762 = vmatprep.mubr.msk.bf16.mxu0 %vm8283_vm0, %v8282_v1  ;;  %7759 = vmatpush3.bf16.msra.mxu0 %v8217_v23 }
0x59d7   :  { %7760 = vmatprep.subr.bf16.mxu0 %v8282_v1 }
0x59d8   :  { %7749 = vmatpush3.bf16.msra.mxu1 %v8221_v13 }
0x59d9   :  { %7750 = vmatprep.subr.bf16.mxu1 %v8282_v1 }
0x59da   :  { %7761 = vmatpush3.bf16.msra.mxu0 %v8218_v20 }
0x59db   :  { %7766 = vmatprep.subr.bf16.mxu0 %v8282_v1 }
0x59dc   :  { %7751 = vmatpush3.bf16.msra.mxu1 %v8222_v42 }
0x59dd   :  { %7763 = vmatmul.mubr.msk.bf16.vlgmr.msra.gmra.mxu0 %vm259_vm2, %v9860_v43  ;;  %7752 = vmatprep.subr.bf16.mxu1 %v8282_v1  ;;  %v6987_v43 = vld [vmem:[%s10209_s9 + $0xe] sm:$0x3] }
0x59de   :  { %7770 = vmatprep.mubr.msk.bf16.mxu0 %vm8283_vm0, %v8282_v1  ;;  %6570 = vst.msk [vmem:[#allocation3] sm:$0x3] %vm1187_vm14, %v6987_v43  ;;  %7767 = vmatpush3.bf16.msra.mxu0 %v8224_v56 }
0x59df   :  { %7768 = vmatprep.subr.bf16.mxu0 %v8282_v1 }
0x59e0   :  { %7753 = vmatpush3.bf16.msra.mxu1 %v8223_v6 }
0x59e1   :  { %7782 = vmatprep.subr.bf16.mxu1 %v8282_v1 }
0x59e2   :  { %7769 = vmatpush3.bf16.msra.mxu0 %v8225_v27 }
0x59e3   :  { %7774 = vmatprep.subr.bf16.mxu0 %v8282_v1 }
0x5a95   :  { %v6085_v29 = vpop.f32.mrf.mxu0 }
0x5a96   :  { %6092 = vrot.lane.b32.xlu0 %v6085_v29, %s8284_s27 }
0x5a97   :  { %v7742_v30 = vpop.f32.mrf.mxu0 }
0x5a99   :  { %v6088_v31 = vpop.f32.mrf.mxu0 }
0x5a9a   :  { %6261 = vrot.lane.b32.xlu0 %v6967_v37, %s8284_s27 }
0x5a9b   :  { %v7743_v32 = vpop.f32.mrf.mxu0 }
0x5a9d   :  { %v6243_v62 = vpop.f32.mrf.mxu0 }
0x5a9f   :  { %v7764_v34 = vpop.f32.mrf.mxu0 }
0x5aa1   :  { %v6246_v24 = vpop.f32.mrf.mxu0 }
0x5aa2   :  { %v8230_v24 = vld [vmem:[%s10160_s11 + $0x20] sm:$0xff]  }
0x5aa3   :  { %v7765_v44 = vpop.f32.mrf.mxu0 }
0x5aa4   :  { %v8231_v44 = vld [vmem:[%s10160_s11 + $0x18] sm:$0xff]  }
0x5b08   :  { %v6093_v26 = vpop.permute.xlu0 %6092 }
0x5b09   :  { %v10052_v49 = vsel %vm699_vm9, %v6085_v29, %v6093_v26  ;;  %v8228_v26 = vld [vmem:[%s10160_s11 + $0x30] sm:$0xff]  }
0x5b0a   :  { %6097 = vrot.lane.b32.xlu1 %v10052_v49, %s8287_s2 }
0x5b0c   :  { %v6262_v47 = vpop.permute.xlu0 %6261 }
0x5b0d   :  { %v6264_v18 = vadd.f32 %v6262_v47, %v6243_v62  ;;  %v8232_v47 = vld [vmem:[%s10160_s11 + $0x10] sm:$0xff]  }
0x5b0f   :  { %6266 = vrot.lane.b32.xlu1 %v6264_v18, %s8284_s27  ;;  %v8233_v18 = vld [vmem:[%s10160_s11 + $0x8] sm:$0xff]  }
0x5b7c   :  { %v6098_v36 = vpop.permute.xlu1 %6097 }
0x5b7d   :  { %v6100_v50 = vsel %vm709_vm10, %v10039_v33, %v6098_v36 }
0x5b7e   :  { %v6117_v51 = vpack.c.bf16 %v6100_v50, %v6100_v50 }
0x5b80   :  { %7755 = vmatmul.mubr.msk.bf16.vlgmr.msra.gmra.mxu1 %vm764_vm11, %v6117_v51 }
0x5b81   :  { %7796 = vmatprep.mubr.msk.bf16.mxu1 %vm8283_vm0, %v8282_v1  ;;  %v6267_v25 = vpop.permute.xlu1 %6266  ;;  %7783 = vmatpush3.bf16.msra.mxu1 %v8228_v26 }
0x5b82   :  { %7784 = vmatprep.subr.bf16.mxu1 %v8282_v1 }
0x5c40   :  { %v6191_v52 = vpop.f32.mrf.mxu1 }
0x5c41   :  { %v6192_v54 = vadd.f32 %v6956_v39, %v6191_v52 }
0x5c42   :  { %v7756_v57 = vpop.f32.mrf.mxu1 }
0x5c43   :  { %v6249_v4 = vadd.f32 %v6243_v62, %v6192_v54  ;;  %v8229_v62 = vld [vmem:[%s10160_s11 + $0x28] sm:$0xff]  }
0x5c44   :  { %v6194_v60 = vpop.f32.mrf.mxu1  ;;  %7785 = vmatpush3.bf16.msra.mxu1 %v8229_v62 }
0x5c45   :  { %v6966_v61 = vmul.f32 -1.442695, %v6249_v4  ;;  %7786 = vmatprep.subr.bf16.mxu1 %v8282_v1 }
0x5c46   :  { %v7757_v41 = vpop.f32.mrf.mxu1 }
0x5c47   :  { %8253 = vpow2.f32 %v6966_v61 }
0x5c48   :  { %7787 = vmatpush3.bf16.msra.mxu1 %v8230_v24 }
0x5c49   :  { %7788 = vmatprep.subr.bf16.mxu1 %v8282_v1 }
0x5c4c   :  { %7789 = vmatpush3.bf16.msra.mxu1 %v8231_v44 }
0x5c4d   :  { %7790 = vmatprep.subr.bf16.mxu1 %v8282_v1 }
0x5c50   :  { %7791 = vmatpush3.bf16.msra.mxu1 %v8232_v47 }
0x5c51   :  { %7792 = vmatprep.subr.bf16.mxu1 %v8282_v1 }
0x5c54   :  { %v8254_v5 = vpop.eup %8253  ;;  %7793 = vmatpush3.bf16.msra.mxu1 %v8233_v18 }
0x5c55   :  { %v6253_v7 = vadd.f32 1.0, %v8254_v5  ;;  %7794 = vmatprep.subr.bf16.mxu1 %v8282_v1 }
0x5c57   :  { %8255 = vrcp.f32 %v6253_v7 }
0x5c64   :  { %v8256_v17 = vpop.eup %8255 }
0x5c65   :  { %v6269_v2 = vmul.f32 %v8256_v17, %v6267_v25  ;;  %v6276_v58 = vsub.f32 1.0, %v8256_v17  ;;  %v6282_v46 = vmul.f32 %v8256_v17, %v9851_v45  ;;  %v8227_v45 = vld [vmem:[%s10167_s18] sm:$0xff]  }
0x5c67   :  { %6271 = vrot.lane.b32.xlu0 %v6269_v2, %s8284_s27 }
0x5cd9   :  { %v6272_v53 = vpop.permute.xlu0 %6271 }
0x5cda   :  { %v6274_v55 = vadd.f32 %v6272_v53, %v6192_v54 }
0x5cdc   :  { %8257 = vtanh.f32 %v6274_v55 }
0x5ce9   :  { %v8258_v59 = vpop.eup %8257 }
0x5cea   :  { %6278 = vrot.lane.b32.xlu1 %v8258_v59, %s8289_s30 }
0x5cee   :  { %6423 = vrot.lane.b32.xlu1 %v6976_v35, %s8284_s27 }
0x5d5c   :  { %v6279_v21 = vpop.permute.xlu1 %6278 }
0x5d5d   :  { %v6281_v8 = vmul.f32 %v6279_v21, %v6276_v58 }
0x5d5f   :  { %v6283_v9 = vadd.f32 %v6282_v46, %v6281_v8 }
0x5d60   :  { %v6424_v3 = vpop.permute.xlu1 %6423 }
0x5d61   :  { %v6294_v10 = vpack.c.bf16 %v6283_v9, %v6283_v9 }
0x5d63   :  { %6302 = vrot.lane.b32.xlu0 %v6294_v10, %s8289_s30 }
0x5dd5   :  { %v6303_v12 = vpop.permute.xlu0 %6302 }
0x5dd6   :  { %7771 = vmatmul.mubr.msk.bf16.vlgmr.msra.gmra.mxu0 %vm259_vm2, %v6303_v12 }
0x5dd7   :  { %7775 = vmatpush3.bf16.msra.mxu0 %v8226_v11  ;;  %7778 = vmatprep.mubr.msk.bf16.mxu0 %vm8283_vm0, %v8282_v1  ;;  %vm10210_vm0 = vcmask 785408  }
0x5dd8   :  { %7776 = vmatprep.subr.bf16.mxu0 %v8282_v1 }
0x5ddb   :  { %7777 = vmatpush3.bf16.msra.mxu0 %v8227_v45 }
0x5dde   :  { %7779 = vmatmul.mubr.msk.bf16.vlgmr.msra.gmra.mxu0 %vm259_vm2, %v9950_v40 }
0x5e96   :  { %v6353_v0 = vpop.f32.mrf.mxu0 }
0x5e97   :  { %v6354_v13 = vadd.f32 %v6968_v63, %v6353_v0 }
0x5e98   :  { %v7772_v14 = vpop.f32.mrf.mxu0 }
0x5e9a   :  { %v6356_v15 = vpop.f32.mrf.mxu0 }
0x5e9c   :  { %v7773_v28 = vpop.f32.mrf.mxu0 }
0x5e9e   :  { %v6405_v38 = vpop.f32.mrf.mxu0 }
0x5e9f   :  { %v6426_v22 = vadd.f32 %v6424_v3, %v6405_v38  ;;  %v6411_v42 = vadd.f32 %v6405_v38, %v6354_v13 }
0x5ea0   :  { %v7780_v23 = vpop.f32.mrf.mxu0 }
0x5ea1   :  { %6428 = vrot.lane.b32.xlu0 %v6426_v22, %s8284_s27  ;;  %v6975_v29 = vmul.f32 -1.442695, %v6411_v42 }
0x5ea2   :  { %v6408_v19 = vpop.f32.mrf.mxu0 }
0x5ea3   :  { %8259 = vpow2.f32 %v6975_v29 }
0x5ea4   :  { %v7781_v20 = vpop.f32.mrf.mxu0 }
0x5eb0   :  { %v8260_v40 = vpop.eup %8259 }
0x5eb1   :  { %v6415_v30 = vadd.f32 1.0, %v8260_v40 }
0x5eb3   :  { %8261 = vrcp.f32 %v6415_v30 }
0x5ec0   :  { %v8262_v31 = vpop.eup %8261 }
0x5ec1   :  { %v6438_v36 = vsub.f32 1.0, %v8262_v31  ;;  %v6444_v51 = vmul.f32 %v8262_v31, %v9908_v48  ;;  %v6977_v48 = vld [vmem:[%s10161_s12] ss:$0 sm:$0xff] }
0x5f13   :  { %v6429_v32 = vpop.permute.xlu0 %6428 }
0x5f14   :  { %v6431_v43 = vmul.f32 %v8262_v31, %v6429_v32 }
0x5f16   :  { %6433 = vrot.lane.b32.xlu1 %v6431_v43, %s8284_s27 }
0x5f88   :  { %v6434_v6 = vpop.permute.xlu1 %6433 }
0x5f89   :  { %v6436_v37 = vadd.f32 %v6434_v6, %v6354_v13 }
0x5f8b   :  { %8263 = vtanh.f32 %v6436_v37 }
0x5f98   :  { %v8264_v34 = vpop.eup %8263 }
0x5f99   :  { %6440 = vrot.lane.b32.xlu0 %v8264_v34, %s8289_s30 }
0x5f9d   :  { %6454 = vrot.lane.b32.xlu0 %v10039_v33, %s8289_s30  ;;  %v8234_v33 = vld [vmem:[%s10160_s11] sm:$0xff]   ;;  %s6988_s11 = sld [smem:[#allocation4 + $0x7]] }
0x5f9e   :  { %7795 = vmatpush3.bf16.msra.mxu1 %v8234_v33 }
0x5fa3   :  { %p6989_p11 = scmp.ne.s32.totalorder %s6988_s11, 0 }
0x600b   :  { %v6441_v50 = vpop.permute.xlu0 %6440 }
0x600c   :  { %v6443_v39 = vmul.f32 %v6441_v50, %v6438_v36 }
0x600e   :  { %v6445_v52 = vadd.f32 %v6444_v51, %v6443_v39 }
0x600f   :  { %v6455_v61 = vpop.permute.xlu0 %6454 }
0x6010   :  { %v8209_v54 = vpack.i.bf16 %v10052_v49, %v6445_v52 }
0x6012   :  { %8210 = vrot.lane.b32.xlu1 %v8209_v54, %s8289_s30 }
0x6084   :  { %v8211_v57 = vpop.permute.xlu1 %8210 }
0x6085   :  { %v8213_v4 = vunpack.i.h.bf16 %v8211_v57  ;;  %v8212_v60 = vunpack.i.l.bf16 %v8211_v57 }
0x6087   :  { %v6457_v1 = vsel %vm259_vm2, %v8212_v60, %v8213_v4 }
0x6088   :  { %v6458_v41 = vsel %vm10210_vm0, %v6457_v1, %v6455_v61 }
0x6089   :  { %v6459_v5 = vpack.c.bf16 %v6458_v41, %v6458_v41 }
0x608b   :  { %7797 = vmatmul.mubr.msk.bf16.vlgmr.msra.gmra.mxu1 %vm10211_vm3, %v6459_v5 }
0x614b   :  { %v6560_v7 = vpop.f32.mrf.mxu1 }
0x614c   :  { %v6561_v49 = vadd.f32 %v6977_v48, %v6560_v7 }
0x614d   :  { %v7798_v25 = vpop.f32.mrf.mxu1  ;;  %6575 = sbr.rel (%p6989_p11) target bundleno = 25546 (0x63ca), region = 117 }
0x614e   :  { %6986 = vst [vmem:[%s10170_s21 + $0xe] sm:$0x3] %v6561_v49 }
0x614f   :  { %v6563_v17 = vpop.f32.mrf.mxu1 }
0x6151   :  { %v7799_v2 = vpop.f32.mrf.mxu1 }
0x6152   :  { %vm6576_vm2 = vcmask 189440   ;;  %v8302_v21 = vmov 0.0   ;;  %v8265_v10 = vld [vmem:[%s10159_s10 + $0x8] ss:$0 sps:$4 sm:$0xff]   ;;  %vm6617_vm6 = vcmask 1043456   ;;  %v8266_v12 = vld [vmem:[%s10159_s10] sm:$0xff]  }
0x6153   :  { %v6577_v53 = vsel %vm6576_vm2, %v6561_v49, -inf  ;;  %7800 = vmatprep.subr.bf16.mxu0 %v8302_v21  ;;  %v6619_v11 = vsel %vm6617_vm6, %v8265_v10, 0  ;;  %vm8303_vm7 = vmmov 0   ;;  %vm6613_vm9 = vcmask 195584  }
0x6154   :  { %6578 = vmax.xlane.f32.xlu0 %v6577_v53  ;;  %7801 = vmatpush3.bf16.msra.mxu0 %v6619_v11 }
0x6155   :  { %7802 = vmatprep.subr.bf16.mxu0 %v8302_v21  ;;  %7804 = vmatprep.mubr.msk.bf16.mxu0 %vm8303_vm7, %v8302_v21 }
0x6158   :  { %7803 = vmatpush3.bf16.msra.mxu0 %v8266_v12 }
0x61dd   :  { %v6579_v55 = vpop.xlane.xlu0 %6578 }
0x61de   :  { %vm6580_vm4 = vcmp.eq.f32.partialorder %v6561_v49, %v6579_v55 }
0x61df   :  { %v6581_v56 = vsel %vm6580_vm4, %v8582_v16, 24 }
0x61e0   :  { %v6582_v27 = vsel %vm6576_vm2, %v6581_v56, 2147483647 }
0x61e1   :  { %v6584_v59 = vshra.s32 %v6582_v27, 16  ;;  %v6583_v8 = vand.u32 65535, %v6582_v27 }
0x61e3   :  { %v6586_v58 = vcvt.s32.f32 %v6584_v59  ;;  %v6585_v35 = vcvt.s32.f32 %v6583_v8 }
0x61e5   :  { %6587 = vmin.xlane.f32.xlu0 %v6586_v58 }
0x626e   :  { %v6588_v46 = vpop.xlane.xlu0 %6587 }
0x626f   :  { %vm6589_vm5 = vcmp.eq.f32.partialorder %v6586_v58, %v6588_v46  ;;  %v6594_v45 = vcvt.f32.s32 %v6588_v46 }
0x6270   :  { %v6590_v9 = vsel %vm6589_vm5, %v6585_v35, inf }
0x6271   :  { %6591 = vmin.xlane.f32.xlu1 %v6590_v9  ;;  %v6595_v14 = vshll.u32 %v6594_v45, 16 }
0x62fa   :  { %v6592_v0 = vpop.xlane.xlu1 %6591 }
0x62fb   :  { %v6593_v15 = vcvt.f32.s32 %v6592_v0 }
0x62fd   :  { %v6596_v28 = vadd.s32 %v6595_v14, %v6593_v15 }
0x62ff   :  { %vm6597_vm8 = vcmp.eq.s32.totalorder %v8582_v16, %v6596_v28 }
0x6300   :  { %v6990_v3 = vsel %vm6597_vm8, 1.0, %v8302_v21 }
0x6301   :  { %v6600_v38 = vpack.c.bf16 %v6990_v3, %v6990_v3 }
0x6303   :  { %7805 = vmatmul.mubr.msk.bf16.vlgmr.msra.gmra.mxu0 %vm6613_vm9, %v6600_v38 }
0x63c3   :  { %v6655_v22 = vpop.f32.mrf.mxu0 }
0x63c4   :  { %6661 = vst.msk [vmem:[#allocation3] sm:$0x3] %vm1187_vm14, %v6655_v22 }
0x63c5   :  { %v7806_v23 = vpop.f32.mrf.mxu0 }
0x63c7   :  { %v6658_v19 = vpop.f32.mrf.mxu0 }
0x63c9   :  { %v7807_v20 = vpop.f32.mrf.mxu0 }
0x63ca PF:  { %6666 = vsyncpa [#allocation5], 1 }

</bundles_post_ra>
